<compile_context>
chip_gen: v5e
topology: v5e:2x2
jax: 0.10.0
libtpu: 0.0.40
codegen_flags: <defaults>
</compile_context>

<pallas_src>
import math
import functools

import jax
import jax.numpy as jnp
from jax.experimental import pallas as pl
from jax.experimental.pallas import tpu as pltpu

# ----------------------------- configuration --------------------------------
IMAGE_SIZE = 32
NUM_ENC_LAYERS = 1
NUM_OPE_STEPS = 2          # num_ope_iterative_steps
NUM_OBJECTS = 3
EMB_DIM = 32
NUM_HEADS = 2
KERNEL_DIM = 3
REDUCTION = 8
MLP_FACTOR = 2
NUM_ITERATIONS = 2         # iterations inside IterativeExemplarFeatureLearning
BACKBONE_CHANNELS = 64
LN_EPS = 1e-5
ZERO_SHOT = False

# bf16 MXU operands (f32 accumulation everywhere).  Non-matmul math stays f32 so the
# v5e VPU/EUP f32-only path is unaffected; flip to jnp.float32 for bit-parity checks.
MXU_DTYPE = jnp.bfloat16


# ----------------------------- in-kernel helpers ------------------------------
def _mxu(x):
    return x.astype(MXU_DTYPE)


def _dot(a, b):
    return jnp.dot(_mxu(a), _mxu(b), preferred_element_type=jnp.float32)


def _layer_norm(x, g, b):
    mu = jnp.mean(x, axis=-1, keepdims=True)
    var = jnp.mean((x - mu) ** 2, axis=-1, keepdims=True)
    return (x - mu) * jax.lax.rsqrt(var + LN_EPS) * g + b


def _mh_attention(q, k, v, num_heads, scale):
    """Batched-head attention: one batched dot per stage, no per-head loop / lane concat."""
    S, E = q.shape
    dh = E // num_heads
    qh = q.reshape(S, num_heads, dh)
    kh = k.reshape(S, num_heads, dh)
    vh = v.reshape(S, num_heads, dh)
    logits = jnp.einsum("qhd,khd->hqk", _mxu(qh), _mxu(kh),
                        preferred_element_type=jnp.float32) * scale
    logits = logits - jnp.max(logits, axis=-1, keepdims=True)
    p = jnp.exp(logits)
    # NOTE: approx reciprocal (EUP slot) -> ~1e-2 rel. error vs exact softmax division.
    p = p * pl.reciprocal(jnp.sum(p, axis=-1, keepdims=True), approx=True)
    out = jnp.einsum("hqk,khd->qhd", _mxu(p), _mxu(vh),
                     preferred_element_type=jnp.float32)
    return out.reshape(S, E)


# ----------------------------- Pallas kernels --------------------------------
def _stem_sa_fusion_kernel(p_ref, ws_ref, bs_ref, wqkv_ref, bqkv_ref, wo_ref, bo_ref,
                           wf_ref, bf_ref, src_ref, s4_ref, *, num_heads, scale):
    """Stem (patchify matmul) + SelfAttention (fused QKV) + fusion1, one batch element."""
    E = src_ref.shape[-1]
    pat = p_ref[0]                                            # (S, 3*R*R)
    src = _dot(pat, ws_ref[...]) + bs_ref[...]                # (S, E)
    src_ref[0] = src

    # SelfAttention: q = k = v = src -> single (S,E)@(E,3E) projection.
    qkv = _dot(src, wqkv_ref[...]) + bqkv_ref[...]            # (S, 3E)
    attn = _mh_attention(qkv[:, :E], qkv[:, E:2 * E], qkv[:, 2 * E:], num_heads, scale)
    s5 = _dot(attn, wo_ref[...]) + bo_ref[...]                # (S, E)

    # fusion1: concat([S4=src, S5]) @ W == src @ W[:E] + s5 @ W[E:]  (concat avoided).
    s4 = _dot(src, wf_ref[0]) + _dot(s5, wf_ref[1]) + bf_ref[...]
    s4_ref[0] = jax.nn.gelu(s4)


def _iefl_kernel(src_ref, wq_ref, bq_ref, wkv_ref, bkv_ref, wo_ref, bo_ref,
                 g_ref, beta_ref, o_ref, *, num_heads, scale, num_iters):
    """Iterative exemplar feature learning: all iterations fused in one kernel.
    K/V come from the fixed image features -> fused (E,2E) projection computed once."""
    E = src_ref.shape[-1]
    src = src_ref[0]
    kv = _dot(src, wkv_ref[...]) + bkv_ref[...]               # (S, 2E), computed once
    k = kv[:, :E]
    v = kv[:, E:]
    ex = src
    for _ in range(num_iters):
        q = _dot(ex, wq_ref[...]) + bq_ref[...]
        attn = _mh_attention(q, k, v, num_heads, scale)
        out = _dot(attn, wo_ref[...]) + bo_ref[...]
        ex = _layer_norm(ex + out, g_ref[...], beta_ref[...])
    o_ref[0] = ex


def _encoder_layer_kernel(s_ref, pos_ref, wqk_ref, bqk_ref, wv_ref, bv_ref,
                          wo_ref, bo_ref, g1_ref, b1n_ref,
                          w1_ref, b1_ref, w2_ref, b2_ref,
                          g2_ref, b2n_ref, gf_ref, bfn_ref,
                          o_ref, *, num_heads, scale, final_ln):
    """Post-norm transformer encoder layer (attn + FFN + LNs [+ final LN]) fused."""
    E = s_ref.shape[-1]
    s = s_ref[0]
    qk_in = s + pos_ref[...]
    qk = _dot(qk_in, wqk_ref[...]) + bqk_ref[...]             # fused (E,2E) q/k proj
    v = _dot(s, wv_ref[...]) + bv_ref[...]
    attn = _mh_attention(qk[:, :E], qk[:, E:], v, num_heads, scale)
    a = _dot(attn, wo_ref[...]) + bo_ref[...]
    s = _layer_norm(s + a, g1_ref[...], b1n_ref[...])
    h1 = jax.nn.gelu(_dot(s, w1_ref[...]) + b1_ref[...])
    h2 = _dot(h1, w2_ref[...]) + b2_ref[...]
    y = _layer_norm(s + h2, g2_ref[...], b2n_ref[...])
    if final_ln:
        y = _layer_norm(y, gf_ref[...], bfn_ref[...])
    o_ref[0] = y


def _ope_refine_kernel(x_ref, w_ref, b_ref, o_ref, *, n_steps):
    """All OPE refinement steps (residual GELU MLPs with per-step weights) in one launch."""
    cur = x_ref[...]
    for s in range(n_steps):
        cur = jax.nn.gelu(_dot(cur, w_ref[s]) + b_ref[s]) + cur
        o_ref[s] = cur


def _corr_heads_kernel(f_ref, p_ref, wh_ref, bh_ref, o_ref, *, n_steps, O, h, w, K):
    """Per-object depthwise prototype correlation + max over objects + fused 1x1
    regression head + ReLU, for ALL ope steps, one batch element.  Channel-last layout;
    the K*K shifted views are computed once and reused across steps/objects."""
    S = h * w
    f = f_ref[0]                                              # (h+2p, w+2p, E)
    shifts = jnp.stack(
        [f[dy:dy + h, dx:dx + w, :].reshape(S, E_ := f.shape[-1])
         for dy in range(K) for dx in range(K)], axis=0)      # (K*K, S, E)
    dms = []
    for step in range(n_steps):
        protos = p_ref[step, 0]                               # (O, K*K, 1, E)
        prod = shifts[None] * protos                          # (O, K*K, S, E)
        resp = jnp.max(jnp.sum(prod, axis=1), axis=0)         # (S, E): corr, max over objects
        dm = jnp.sum(resp * wh_ref[step], axis=-1) + bh_ref[step]   # fused 1x1 head
        dms.append(jnp.maximum(dm, 0.0))
    o_ref[0] = jnp.stack(dms, axis=0)                         # (n_steps, S) lane-clean store


# ----------------------------- pallas wrappers --------------------------------
def _rep(a):
    return pl.BlockSpec(a.shape, lambda b, _nd=a.ndim: (0,) * _nd)


def pallas_stem_sa_fusion(patches, params):
    B, S, P = patches.shape
    E = EMB_DIM
    scale = 1.0 / math.sqrt(E // NUM_HEADS)
    sa, f1, st = params["self_attn"], params["fusion1"], params["stem"]
    tok = pl.BlockSpec((1, S, E), lambda b: (b, 0, 0))
    args = [patches, st["w"], st["b"], sa["wqkv"], sa["bqkv"], sa["wo"], sa["bo"],
            f1["w"], f1["b"]]
    return pl.pallas_call(
        functools.partial(_stem_sa_fusion_kernel, num_heads=NUM_HEADS, scale=scale),
        out_shape=(jax.ShapeDtypeStruct((B, S, E), jnp.float32),
                   jax.ShapeDtypeStruct((B, S, E), jnp.float32)),
        grid=(B,),
        in_specs=[pl.BlockSpec((1, S, P), lambda b: (b, 0, 0))] + [_rep(a) for a in args[1:]],
        out_specs=(tok, tok),
        compiler_params=pltpu.CompilerParams(dimension_semantics=("parallel",)),
    )(*args)


def pallas_iefl(src, mp, ln):
    B, S, E = src.shape
    scale = 1.0 / math.sqrt(E // NUM_HEADS)
    tok = pl.BlockSpec((1, S, E), lambda b: (b, 0, 0))
    args = [src, mp["wq"], mp["bq"], mp["wkv"], mp["bkv"], mp["wo"], mp["bo"],
            ln["g"], ln["b"]]
    return pl.pallas_call(
        functools.partial(_iefl_kernel, num_heads=NUM_HEADS, scale=scale,
                          num_iters=NUM_ITERATIONS),
        out_shape=jax.ShapeDtypeStruct((B, S, E), jnp.float32),
        grid=(B,),
        in_specs=[tok] + [_rep(a) for a in args[1:]],
        out_specs=tok,
        compiler_params=pltpu.CompilerParams(dimension_semantics=("parallel",)),
    )(*args)


def pallas_encoder_layer(s, pos, ep, *, final_ln):
    B, S, E = s.shape
    scale = 1.0 / math.sqrt(E // NUM_HEADS)
    tok = pl.BlockSpec((1, S, E), lambda b: (b, 0, 0))
    at = ep["attn"]
    args = [s, pos, at["wqk"], at["bqk"], at["wv"], at["bv"], at["wo"], at["bo"],
            ep["ln1"]["g"], ep["ln1"]["b"],
            ep["ffn1"]["w"], ep["ffn1"]["b"], ep["ffn2"]["w"], ep["ffn2"]["b"],
            ep["ln2"]["g"], ep["ln2"]["b"], ep["lnf"]["g"], ep["lnf"]["b"]]
    return pl.pallas_call(
        functools.partial(_encoder_layer_kernel, num_heads=NUM_HEADS, scale=scale,
                          final_ln=final_ln),
        out_shape=jax.ShapeDtypeStruct((B, S, E), jnp.float32),
        grid=(B,),
        in_specs=[tok] + [_rep(a) for a in args[1:]],
        out_specs=tok,
        compiler_params=pltpu.CompilerParams(dimension_semantics=("parallel",)),
    )(*args)


def pallas_corr_heads(f_e_hw, all_protos, head_w, head_b, K):
    """Matches: relu(conv1x1(max_o depthwise_conv(f_e, protos[step, :, o], pad=K//2)))
    for every ope step in ONE launch.  Padding is hoisted out of the step loop."""
    B, h, w, E = f_e_hw.shape
    n_steps, _, O = all_protos.shape[:3]
    S = h * w
    pad = K // 2
    f_pad = jnp.pad(f_e_hw, ((0, 0), (pad, pad), (pad, pad), (0, 0)))
    hp, wp = h + 2 * pad, w + 2 * pad
    protos = all_protos.reshape(n_steps, B, O, K * K, 1, E)
    out = pl.pallas_call(
        functools.partial(_corr_heads_kernel, n_steps=n_steps, O=O, h=h, w=w, K=K),
        out_shape=jax.ShapeDtypeStruct((B, n_steps, S), jnp.float32),
        grid=(B,),
        in_specs=[
            pl.BlockSpec((1, hp, wp, E), lambda b: (b, 0, 0, 0)),
            pl.BlockSpec((n_steps, 1, O, K * K, 1, E), lambda b: (0, b, 0, 0, 0, 0)),
            _rep(head_w), _rep(head_b),
        ],
        out_specs=pl.BlockSpec((1, n_steps, S), lambda b: (b, 0, 0)),
        compiler_params=pltpu.CompilerParams(dimension_semantics=("parallel",)),
    )(f_pad, protos, head_w, head_b)
    return out.reshape(B, n_steps, h, w)


# ----------------------------- plain-JAX glue --------------------------------
def positional_encodings(h, w, E):
    """Fixed 2D sinusoidal positional encodings in token layout -> (h*w, E)."""
    d = E // 2
    y = (jnp.arange(1, h + 1, dtype=jnp.float32) / h) * 2.0 * math.pi
    x = (jnp.arange(1, w + 1, dtype=jnp.float32) / w) * 2.0 * math.pi
    dim_t = 10000.0 ** (2.0 * (jnp.arange(d) // 2).astype(jnp.float32) / d)
    pos_x = jnp.broadcast_to(x[None, :, None] / dim_t, (h, w, d))
    pos_y = jnp.broadcast_to(y[:, None, None] / dim_t, (h, w, d))

    def interleave(p):
        return jnp.stack([jnp.sin(p[..., 0::2]), jnp.cos(p[..., 1::2])],
                         axis=-1).reshape(h, w, d)

    pos = jnp.concatenate([interleave(pos_y), interleave(pos_x)], axis=-1)
    return pos.reshape(h * w, E)


def ope_module(f_e_hw, bboxes, ope_w, ope_b, num_objects):
    """Simplified OPE: bbox ROI-mean prototypes, tiled to KxK, refined per step (one launch).
    Returns (num_steps, B, num_objects, K, K, E)."""
    # TODO(synk): OPEModule internals unknown; approximated with bbox ROI-mean +
    # residual GELU-MLP refinement steps.
    B, h, w, E = f_e_hw.shape
    K = KERNEL_DIM
    n_steps = ope_w.shape[0]
    scl = 1.0 / REDUCTION
    x1, y1, x2, y2 = (bboxes[..., i] * scl for i in range(4))
    ys = jnp.arange(h, dtype=jnp.float32) + 0.5
    xs = jnp.arange(w, dtype=jnp.float32) + 0.5
    my = (ys[None, None, :] >= y1[..., None]) & (ys[None, None, :] <= y2[..., None])
    mx = (xs[None, None, :] >= x1[..., None]) & (xs[None, None, :] <= x2[..., None])
    mask = (my[..., :, None] & mx[..., None, :]).astype(jnp.float32)          # (B,O,h,w)
    denom = jnp.maximum(mask.sum((-2, -1)), 1.0)
    region = jnp.einsum("bhwe,bohw->boe", f_e_hw, mask) / denom[..., None]    # (B,O,E)

    M = B * num_objects * K * K
    Mp = ((M + 7) // 8) * 8                     # pad rows to a sublane multiple (54 -> 56)
    cur = jnp.broadcast_to(region[:, :, None, None, :],
                           (B, num_objects, K, K, E)).reshape(M, E)
    cur = jnp.pad(cur, ((0, Mp - M), (0, 0)))
    steps = pl.pallas_call(
        functools.partial(_ope_refine_kernel, n_steps=n_steps),
        out_shape=jax.ShapeDtypeStruct((n_steps, Mp, E), jnp.float32),
    )(cur, ope_w, ope_b)
    return steps[:, :M].reshape(n_steps, B, num_objects, K, K, E)


# ----------------------------- parameters ------------------------------------
def init_linear(key, fan_in, fan_out, scale=0.02):
    return {"w": scale * jax.random.normal(key, (fan_in, fan_out), jnp.float32),
            "b": jnp.zeros((1, fan_out), jnp.float32)}


def init_ln():
    return {"g": jnp.ones((1, EMB_DIM), jnp.float32),
            "b": jnp.zeros((1, EMB_DIM), jnp.float32)}


def init_attention_site(key, E, mode):
    """Attention weights in a site-specific FUSED layout (folded offline)."""
    ks = jax.random.split(key, 4)
    wq, wk, wv, wo = (0.02 * jax.random.normal(k, (E, E), jnp.float32) for k in ks)
    if mode == "qkv":            # q == k == v input: single (E, 3E)
        return {"wqkv": jnp.concatenate([wq, wk, wv], axis=1),
                "bqkv": jnp.zeros((1, 3 * E), jnp.float32),
                "wo": wo, "bo": jnp.zeros((1, E), jnp.float32)}
    if mode == "q_kv":           # cross-attn: separate Q, fused (E, 2E) KV
        return {"wq": wq, "bq": jnp.zeros((1, E), jnp.float32),
                "wkv": jnp.concatenate([wk, wv], axis=1),
                "bkv": jnp.zeros((1, 2 * E), jnp.float32),
                "wo": wo, "bo": jnp.zeros((1, E), jnp.float32)}
    # "qk_v": encoder: q and k share the same input (src + pos), v is src
    return {"wqk": jnp.concatenate([wq, wk], axis=1),
            "bqk": jnp.zeros((1, 2 * E), jnp.float32),
            "wv": wv, "bv": jnp.zeros((1, E), jnp.float32),
            "wo": wo, "bo": jnp.zeros((1, E), jnp.float32)}


def init_params(key):
    keys = jax.random.split(key, 16)
    it = iter(keys)
    p = {}
    # TODO(synk): pretrained ResNet/SwAV backbone has no in-script equivalent; using a
    # strided conv stem.  Stride == kernel, so it is an exact patchify matmul; folded
    # OFFLINE with the 1x1 input_proj into one (3*R*R -> E) weight.  NOTE: the fold
    # assumes the (c, ky, kx) patch-flatten order used in forward(); valid only while
    # stride == kernel and there is no stem padding.
    backbone_w = 0.02 * jax.random.normal(
        next(it), (BACKBONE_CHANNELS, 3, REDUCTION, REDUCTION), jnp.float32)
    in_proj_w = 0.02 * jax.random.normal(next(it), (BACKBONE_CHANNELS, EMB_DIM), jnp.float32)
    wb_flat = backbone_w.reshape(BACKBONE_CHANNELS, 3 * REDUCTION * REDUCTION).T
    p["stem"] = {"w": wb_flat @ in_proj_w, "b": jnp.zeros((1, EMB_DIM), jnp.float32)}

    # TODO(synk): SelfAttention / CrossScaleFusion / IterativeExemplarFeatureLearning
    # internals unknown; approximated as MHA / concat+1x1+GELU / cross-attn+res+LN.
    p["self_attn"] = init_attention_site(next(it), EMB_DIM, "qkv")
    f1w = 0.02 * jax.random.normal(next(it), (2 * EMB_DIM, EMB_DIM), jnp.float32)
    p["fusion1"] = {"w": f1w.reshape(2, EMB_DIM, EMB_DIM),        # split for concat-free dots
                    "b": jnp.zeros((1, EMB_DIM), jnp.float32)}
    # fusion2 parameters dropped: its output (S3) is unused in the reference forward.

    p["iefl"] = init_attention_site(next(it), EMB_DIM, "q_kv")
    p["iefl_ln"] = init_ln()

    p["enc"] = {
        "attn": init_attention_site(next(it), EMB_DIM, "qk_v"),
        "ln1": init_ln(), "ln2": init_ln(), "lnf": init_ln(),
        "ffn1": init_linear(next(it), EMB_DIM, MLP_FACTOR * EMB_DIM),
        "ffn2": init_linear(next(it), MLP_FACTOR * EMB_DIM, EMB_DIM),
    }

    ope_ws, ope_bs = [], []
    for _ in range(NUM_OPE_STEPS):
        lin = init_linear(next(it), EMB_DIM, EMB_DIM)
        ope_ws.append(lin["w"]); ope_bs.append(lin["b"])
    p["ope_w"] = jnp.stack(ope_ws)                                 # (n_steps, E, E)
    p["ope_b"] = jnp.stack(ope_bs)                                 # (n_steps, 1, E)

    # TODO(synk): DensityMapRegressor approximated as a 1x1 conv (E -> 1) + ReLU, stored
    # lane-dense as (1, E) so it fuses into the correlation-kernel epilogue.
    head_ws, head_bs = [], []
    for _ in range(NUM_OPE_STEPS - 1):                             # aux heads (steps 0..n-2)
        head_ws.append(0.02 * jax.random.normal(next(it), (1, EMB_DIM), jnp.float32))
        head_bs.append(jnp.zeros((1, 1), jnp.float32))
    head_ws.append(0.02 * jax.random.normal(next(it), (1, EMB_DIM), jnp.float32))  # reg head
    head_bs.append(jnp.zeros((1, 1), jnp.float32))
    p["head_w"] = jnp.concatenate(head_ws, axis=0)                 # (n_steps, E)
    p["head_b"] = jnp.concatenate(head_bs, axis=0)                 # (n_steps, 1)
    return p


# ----------------------------- forward pass -----------------------------------
def forward(params, x, bboxes):
    B = x.shape[0]
    num_objects = bboxes.shape[1] if not ZERO_SHOT else NUM_OBJECTS
    h = w = IMAGE_SIZE // REDUCTION
    S = h * w
    E = EMB_DIM
    R = REDUCTION

    # Patchify (exactly matches the offline stem-weight fold order: c, ky, kx last).
    patches = x.reshape(B, 3, h, R, w, R).transpose(0, 2, 4, 1, 3, 5).reshape(B, S, 3 * R * R)
    pos = positional_encodings(h, w, E)                            # (S, E)

    # Launch 1: stem + SelfAttention + fusion1.  The fused S4 output mirrors the
    # reference (S4 / S3 never feed the returned tensors).
    src, _s4_unused = pallas_stem_sa_fusion(patches, params)

    # Launch 2: iterative exemplar feature learning (both iterations in-kernel).
    exemplar = pallas_iefl(src, params["iefl"], params["iefl_ln"])

    # Launch 3: transformer encoder (post-norm, GELU FFN, final LN), one launch per layer.
    if NUM_ENC_LAYERS > 0:
        s = src
        for li in range(NUM_ENC_LAYERS):
            s = pallas_encoder_layer(s, pos, params["enc"],
                                     final_ln=(li == NUM_ENC_LAYERS - 1))
        image_features = s
    else:
        image_features = src

    f_e_hw = image_features.reshape(B, h, w, E)                    # channel-last (lane-dense)

    # Launch 4: OPE prototype refinement (all steps in one kernel).
    all_prototypes = ope_module(f_e_hw, bboxes, params["ope_w"], params["ope_b"], num_objects)

    ex = exemplar.reshape(B, h, w, E).transpose(0, 3, 1, 2)
    ex_up = jax.image.resize(ex, (B, E, IMAGE_SIZE, IMAGE_SIZE), method="bilinear")

    # Launch 5: correlation + max-over-objects + regression heads + ReLU, ALL steps.
    dmaps = pallas_corr_heads(f_e_hw, all_prototypes, params["head_w"], params["head_b"],
                              KERNEL_DIM)                          # (B, n_steps, h, w)
    outputs = []
    n_steps = dmaps.shape[1]
    for i in range(n_steps):
        dm = jax.image.resize(dmaps[:, i][:, None], (B, 1, IMAGE_SIZE, IMAGE_SIZE),
                              method="bilinear")
        outputs.append(dm)

    return outputs[-1], outputs[:-1], ex_up


# ----------------------------------- main -------------------------------------
if __name__ == "__main__":
    key = jax.random.PRNGKey(0)
    k_param, k_x = jax.random.split(key)
    params = init_params(k_param)

    x = jax.random.normal(k_x, (2, 3, IMAGE_SIZE, IMAGE_SIZE), jnp.float32)
    bboxes = jnp.array(
        [[[2.0, 2.0, 14.0, 14.0], [8.0, 10.0, 28.0, 26.0], [0.0, 0.0, 32.0, 32.0]],
         [[4.0, 6.0, 20.0, 22.0], [10.0, 2.0, 30.0, 16.0], [1.0, 1.0, 15.0, 31.0]]],
        dtype=jnp.float32)                                         # (B=2, num_objects=3, 4)

    fwd = jax.jit(forward)
    final_dmap, aux_dmaps, exemplar_feats = fwd(params, x, bboxes)
    jax.block_until_ready((final_dmap, aux_dmaps, exemplar_feats))

    assert final_dmap.shape == (2, 1, IMAGE_SIZE, IMAGE_SIZE)
    assert len(aux_dmaps) == NUM_OPE_STEPS - 1
    assert all(a.shape == (2, 1, IMAGE_SIZE, IMAGE_SIZE) for a in aux_dmaps)
    assert exemplar_feats.shape == (2, EMB_DIM, IMAGE_SIZE, IMAGE_SIZE)
    assert bool(jnp.all(jnp.isfinite(final_dmap)))
    print("KERNEL_OK")
</pallas_src>

<mosaic_0001>
module attributes {stable_mosaic.version = 11 : i64} {
  func.func @_stem_sa_fusion_kernel(%arg0: i32, %arg1: memref<1x16x192xf32, #tpu.memory_space<vmem>>, %arg2: memref<192x32xf32, #tpu.memory_space<vmem>>, %arg3: memref<1x32xf32, #tpu.memory_space<vmem>>, %arg4: memref<32x96xf32, #tpu.memory_space<vmem>>, %arg5: memref<1x96xf32, #tpu.memory_space<vmem>>, %arg6: memref<32x32xf32, #tpu.memory_space<vmem>>, %arg7: memref<1x32xf32, #tpu.memory_space<vmem>>, %arg8: memref<2x32x32xf32, #tpu.memory_space<vmem>>, %arg9: memref<1x32xf32, #tpu.memory_space<vmem>>, %arg10: memref<1x16x32xf32, #tpu.memory_space<vmem>>, %arg11: memref<1x16x32xf32, #tpu.memory_space<vmem>>) attributes {dimension_semantics = [#tpu.dimension_semantics<parallel>], iteration_bounds = array<i64: 2>, scalar_prefetch = 0 : i64, scratch_operands = 0 : i64, tpu.core_type = #tpu.core_type<tc>, window_params = [{transform_indices = @transform_0, window_bounds = array<i64: 1, 16, 192>}, {pipeline_mode = #tpu.pipeline_mode<synchronous>, transform_indices = @transform_1, window_bounds = array<i64: 192, 32>}, {pipeline_mode = #tpu.pipeline_mode<synchronous>, transform_indices = @transform_2, window_bounds = array<i64: 1, 32>}, {pipeline_mode = #tpu.pipeline_mode<synchronous>, transform_indices = @transform_3, window_bounds = array<i64: 32, 96>}, {pipeline_mode = #tpu.pipeline_mode<synchronous>, transform_indices = @transform_4, window_bounds = array<i64: 1, 96>}, {pipeline_mode = #tpu.pipeline_mode<synchronous>, transform_indices = @transform_5, window_bounds = array<i64: 32, 32>}, {pipeline_mode = #tpu.pipeline_mode<synchronous>, transform_indices = @transform_6, window_bounds = array<i64: 1, 32>}, {pipeline_mode = #tpu.pipeline_mode<synchronous>, transform_indices = @transform_7, window_bounds = array<i64: 2, 32, 32>}, {pipeline_mode = #tpu.pipeline_mode<synchronous>, transform_indices = @transform_8, window_bounds = array<i64: 1, 32>}, {transform_indices = @transform_9, window_bounds = array<i64: 1, 16, 32>}, {transform_indices = @transform_10, window_bounds = array<i64: 1, 16, 32>}]} {
    %c0 = arith.constant 0 : index
    %c0_0 = arith.constant 0 : index
    %c0_1 = arith.constant 0 : index
    %0 = vector.load %arg1[%c0, %c0_0, %c0_1] : memref<1x16x192xf32, #tpu.memory_space<vmem>>, vector<1x16x192xf32>
    %1 = vector.shape_cast %0 : vector<1x16x192xf32> to vector<16x192xf32>
    %c0_2 = arith.constant 0 : index
    %c0_3 = arith.constant 0 : index
    %2 = vector.load %arg2[%c0_2, %c0_3] : memref<192x32xf32, #tpu.memory_space<vmem>>, vector<192x32xf32>
    %3 = arith.truncf %1 : vector<16x192xf32> to vector<16x192xbf16>
    %4 = arith.truncf %2 : vector<192x32xf32> to vector<192x32xbf16>
    %cst = arith.constant dense<0.000000e+00> : vector<16x32xf32>
    %5 = tpu.matmul %3, %4, %cst {dimension_numbers = #tpu.dot_dimension_numbers<[1], [0], [0], [1], [0, 0, 1, 1], [], []>} : vector<16x192xbf16>, vector<192x32xbf16>, vector<16x32xf32> -> vector<16x32xf32>
    %c0_4 = arith.constant 0 : index
    %c0_5 = arith.constant 0 : index
    %6 = vector.load %arg3[%c0_4, %c0_5] : memref<1x32xf32, #tpu.memory_space<vmem>>, vector<1x32xf32>
    %7 = vector.broadcast %6 : vector<1x32xf32> to vector<16x32xf32>
    %8 = arith.addf %5, %7 : vector<16x32xf32>
    %c0_6 = arith.constant 0 : index
    %c0_7 = arith.constant 0 : index
    %c0_8 = arith.constant 0 : index
    %9 = vector.load %arg10[%c0_6, %c0_7, %c0_8] : memref<1x16x32xf32, #tpu.memory_space<vmem>>, vector<1x16x32xf32>
    %10 = vector.shape_cast %9 : vector<1x16x32xf32> to vector<16x32xf32>
    %11 = vector.shape_cast %8 : vector<16x32xf32> to vector<1x16x32xf32>
    tpu.vector_store %arg10[%c0_6, %c0_7, %c0_8], %11 {strides = array<i32>} : memref<1x16x32xf32, #tpu.memory_space<vmem>>, vector<1x16x32xf32>,
    %c0_9 = arith.constant 0 : index
    %c0_10 = arith.constant 0 : index
    %12 = vector.load %arg4[%c0_9, %c0_10] : memref<32x96xf32, #tpu.memory_space<vmem>>, vector<32x96xf32>
    %13 = arith.truncf %8 : vector<16x32xf32> to vector<16x32xbf16>
    %14 = arith.truncf %12 : vector<32x96xf32> to vector<32x96xbf16>
    %cst_11 = arith.constant dense<0.000000e+00> : vector<16x96xf32>
    %15 = tpu.matmul %13, %14, %cst_11 {dimension_numbers = #tpu.dot_dimension_numbers<[1], [0], [0], [1], [0, 0, 1, 1], [], []>} : vector<16x32xbf16>, vector<32x96xbf16>, vector<16x96xf32> -> vector<16x96xf32>
    %c0_12 = arith.constant 0 : index
    %c0_13 = arith.constant 0 : index
    %16 = vector.load %arg5[%c0_12, %c0_13] : memref<1x96xf32, #tpu.memory_space<vmem>>, vector<1x96xf32>
    %17 = vector.broadcast %16 : vector<1x96xf32> to vector<16x96xf32>
    %18 = arith.addf %15, %17 : vector<16x96xf32>
    %19 = vector.extract_strided_slice %18 {offsets = [0, 0], sizes = [16, 32], strides = [1, 1]} : vector<16x96xf32> to vector<16x32xf32>
    %20 = vector.extract_strided_slice %18 {offsets = [0, 32], sizes = [16, 32], strides = [1, 1]} : vector<16x96xf32> to vector<16x32xf32>
    %21 = vector.extract_strided_slice %18 {offsets = [0, 64], sizes = [16, 32], strides = [1, 1]} : vector<16x96xf32> to vector<16x32xf32>
    %22 = vector.shape_cast %19 : vector<16x32xf32> to vector<16x2x16xf32>
    %23 = vector.shape_cast %20 : vector<16x32xf32> to vector<16x2x16xf32>
    %24 = vector.shape_cast %21 : vector<16x32xf32> to vector<16x2x16xf32>
    %25 = arith.truncf %22 : vector<16x2x16xf32> to vector<16x2x16xbf16>
    %26 = arith.truncf %23 : vector<16x2x16xf32> to vector<16x2x16xbf16>
    "tpu.trace_start"() <{level = 10 : i32, message = "qhd,khd->hqk"}> : () -> ()
    %cst_14 = arith.constant dense<0.000000e+00> : vector<2x16x16xf32>
    %27 = tpu.matmul %25, %26, %cst_14 {dimension_numbers = #tpu.dot_dimension_numbers<[2], [2], [0], [0], [0, 1, 0, 0, 1, 0], [1], [1]>} : vector<16x2x16xbf16>, vector<16x2x16xbf16>, vector<2x16x16xf32> -> vector<2x16x16xf32>
    "tpu.trace_stop"() : () -> ()
    %cst_15 = arith.constant 2.500000e-01 : f32
    %28 = vector.broadcast %cst_15 : f32 to vector<2x16x16xf32>
    %29 = arith.mulf %27, %28 : vector<2x16x16xf32>
    %cst_16 = arith.constant dense<0xFF800000> : vector<2x16xf32>
    %30 = vector.multi_reduction <maximumf>, %29, %cst_16 [2] : vector<2x16x16xf32> to vector<2x16xf32>
    %31 = vector.shape_cast %30 : vector<2x16xf32> to vector<2x16x1xf32>
    %32 = vector.broadcast %31 : vector<2x16x1xf32> to vector<2x16x16xf32>
    %33 = arith.subf %29, %32 : vector<2x16x16xf32>
    %34 = math.exp %33 : vector<2x16x16xf32>
    %cst_17 = arith.constant dense<0.000000e+00> : vector<2x16xf32>
    %35 = vector.multi_reduction <add>, %34, %cst_17 [2] : vector<2x16x16xf32> to vector<2x16xf32>
    %36 = vector.shape_cast %35 : vector<2x16xf32> to vector<2x16x1xf32>
    %37 = tpu.reciprocal %36 {approx = true} : vector<2x16x1xf32> -> vector<2x16x1xf32>
    %38 = vector.broadcast %37 : vector<2x16x1xf32> to vector<2x16x16xf32>
    %39 = arith.mulf %34, %38 : vector<2x16x16xf32>
    %40 = arith.truncf %39 : vector<2x16x16xf32> to vector<2x16x16xbf16>
    %41 = arith.truncf %24 : vector<16x2x16xf32> to vector<16x2x16xbf16>
    "tpu.trace_start"() <{level = 10 : i32, message = "hqk,khd->qhd"}> : () -> ()
    %cst_18 = arith.constant dense<0.000000e+00> : vector<2x16x16xf32>
    %42 = tpu.matmul %41, %40, %cst_18 {dimension_numbers = #tpu.dot_dimension_numbers<[0], [2], [2], [1], [0, 1, 0, 2, 1, 1], [1], [0]>} : vector<16x2x16xbf16>, vector<2x16x16xbf16>, vector<2x16x16xf32> -> vector<2x16x16xf32>
    %43 = tpu.transpose %42, [2, 0, 1] : vector<2x16x16xf32> -> vector<16x2x16xf32>
    "tpu.trace_stop"() : () -> ()
    %44 = vector.shape_cast %43 : vector<16x2x16xf32> to vector<16x32xf32>
    %c0_19 = arith.constant 0 : index
    %c0_20 = arith.constant 0 : index
    %45 = vector.load %arg6[%c0_19, %c0_20] : memref<32x32xf32, #tpu.memory_space<vmem>>, vector<32x32xf32>
    %46 = arith.truncf %44 : vector<16x32xf32> to vector<16x32xbf16>
    %47 = arith.truncf %45 : vector<32x32xf32> to vector<32x32xbf16>
    %cst_21 = arith.constant dense<0.000000e+00> : vector<16x32xf32>
    %48 = tpu.matmul %46, %47, %cst_21 {dimension_numbers = #tpu.dot_dimension_numbers<[1], [0], [0], [1], [0, 0, 1, 1], [], []>} : vector<16x32xbf16>, vector<32x32xbf16>, vector<16x32xf32> -> vector<16x32xf32>
    %c0_22 = arith.constant 0 : index
    %c0_23 = arith.constant 0 : index
    %49 = vector.load %arg7[%c0_22, %c0_23] : memref<1x32xf32, #tpu.memory_space<vmem>>, vector<1x32xf32>
    %50 = vector.broadcast %49 : vector<1x32xf32> to vector<16x32xf32>
    %51 = arith.addf %48, %50 : vector<16x32xf32>
    %c0_24 = arith.constant 0 : index
    %c0_25 = arith.constant 0 : index
    %c0_26 = arith.constant 0 : index
    %52 = vector.load %arg8[%c0_24, %c0_25, %c0_26] : memref<2x32x32xf32, #tpu.memory_space<vmem>>, vector<1x32x32xf32>
    %53 = vector.shape_cast %52 : vector<1x32x32xf32> to vector<32x32xf32>
    %54 = arith.truncf %8 : vector<16x32xf32> to vector<16x32xbf16>
    %55 = arith.truncf %53 : vector<32x32xf32> to vector<32x32xbf16>
    %cst_27 = arith.constant dense<0.000000e+00> : vector<16x32xf32>
    %56 = tpu.matmul %54, %55, %cst_27 {dimension_numbers = #tpu.dot_dimension_numbers<[1], [0], [0], [1], [0, 0, 1, 1], [], []>} : vector<16x32xbf16>, vector<32x32xbf16>, vector<16x32xf32> -> vector<16x32xf32>
    %c1 = arith.constant 1 : index
    %c0_28 = arith.constant 0 : index
    %c0_29 = arith.constant 0 : index
    %57 = vector.load %arg8[%c1, %c0_28, %c0_29] : memref<2x32x32xf32, #tpu.memory_space<vmem>>, vector<1x32x32xf32>
    %58 = vector.shape_cast %57 : vector<1x32x32xf32> to vector<32x32xf32>
    %59 = arith.truncf %51 : vector<16x32xf32> to vector<16x32xbf16>
    %60 = arith.truncf %58 : vector<32x32xf32> to vector<32x32xbf16>
    %cst_30 = arith.constant dense<0.000000e+00> : vector<16x32xf32>
    %61 = tpu.matmul %59, %60, %cst_30 {dimension_numbers = #tpu.dot_dimension_numbers<[1], [0], [0], [1], [0, 0, 1, 1], [], []>} : vector<16x32xbf16>, vector<32x32xbf16>, vector<16x32xf32> -> vector<16x32xf32>
    %62 = arith.addf %56, %61 : vector<16x32xf32>
    %c0_31 = arith.constant 0 : index
    %c0_32 = arith.constant 0 : index
    %63 = vector.load %arg9[%c0_31, %c0_32] : memref<1x32xf32, #tpu.memory_space<vmem>>, vector<1x32xf32>
    %64 = vector.broadcast %63 : vector<1x32xf32> to vector<16x32xf32>
    %65 = arith.addf %62, %64 : vector<16x32xf32>
    %66 = arith.mulf %65, %65 : vector<16x32xf32>
    %67 = arith.mulf %65, %66 : vector<16x32xf32>
    %cst_33 = arith.constant 4.471500e-02 : f32
    %68 = vector.broadcast %cst_33 : f32 to vector<16x32xf32>
    %69 = arith.mulf %68, %67 : vector<16x32xf32>
    %70 = arith.addf %65, %69 : vector<16x32xf32>
    %cst_34 = arith.constant 0.797884583 : f32
    %71 = vector.broadcast %cst_34 : f32 to vector<16x32xf32>
    %72 = arith.mulf %71, %70 : vector<16x32xf32>
    %73 = math.tanh %72 : vector<16x32xf32>
    %cst_35 = arith.constant 1.000000e+00 : f32
    %74 = vector.broadcast %cst_35 : f32 to vector<16x32xf32>
    %75 = arith.addf %74, %73 : vector<16x32xf32>
    %cst_36 = arith.constant 5.000000e-01 : f32
    %76 = vector.broadcast %cst_36 : f32 to vector<16x32xf32>
    %77 = arith.mulf %76, %75 : vector<16x32xf32>
    %78 = arith.mulf %65, %77 : vector<16x32xf32>
    %c0_37 = arith.constant 0 : index
    %c0_38 = arith.constant 0 : index
    %c0_39 = arith.constant 0 : index
    %79 = vector.load %arg11[%c0_37, %c0_38, %c0_39] : memref<1x16x32xf32, #tpu.memory_space<vmem>>, vector<1x16x32xf32>
    %80 = vector.shape_cast %79 : vector<1x16x32xf32> to vector<16x32xf32>
    %81 = vector.shape_cast %78 : vector<16x32xf32> to vector<1x16x32xf32>
    tpu.vector_store %arg11[%c0_37, %c0_38, %c0_39], %81 {strides = array<i32>} : memref<1x16x32xf32, #tpu.memory_space<vmem>>, vector<1x16x32xf32>,
    return
  }
  func.func @transform_0(%arg0: i32) -> (i32, i32, i32) {
    %c0_i32 = arith.constant 0 : i32
    %c0_i32_0 = arith.constant 0 : i32
    %c0_i32_1 = arith.constant 0 : i32
    return %arg0, %c0_i32, %c0_i32_0 : i32, i32, i32
  }
  func.func @transform_1(%arg0: i32) -> (i32, i32) {
    %c0_i32 = arith.constant 0 : i32
    %c0_i32_0 = arith.constant 0 : i32
    %c0_i32_1 = arith.constant 0 : i32
    return %c0_i32, %c0_i32_0 : i32, i32
  }
  func.func @transform_2(%arg0: i32) -> (i32, i32) {
    %c0_i32 = arith.constant 0 : i32
    %c0_i32_0 = arith.constant 0 : i32
    %c0_i32_1 = arith.constant 0 : i32
    return %c0_i32, %c0_i32_0 : i32, i32
  }
  func.func @transform_3(%arg0: i32) -> (i32, i32) {
    %c0_i32 = arith.constant 0 : i32
    %c0_i32_0 = arith.constant 0 : i32
    %c0_i32_1 = arith.constant 0 : i32
    return %c0_i32, %c0_i32_0 : i32, i32
  }
  func.func @transform_4(%arg0: i32) -> (i32, i32) {
    %c0_i32 = arith.constant 0 : i32
    %c0_i32_0 = arith.constant 0 : i32
    %c0_i32_1 = arith.constant 0 : i32
    return %c0_i32, %c0_i32_0 : i32, i32
  }
  func.func @transform_5(%arg0: i32) -> (i32, i32) {
    %c0_i32 = arith.constant 0 : i32
    %c0_i32_0 = arith.constant 0 : i32
    %c0_i32_1 = arith.constant 0 : i32
    return %c0_i32, %c0_i32_0 : i32, i32
  }
  func.func @transform_6(%arg0: i32) -> (i32, i32) {
    %c0_i32 = arith.constant 0 : i32
    %c0_i32_0 = arith.constant 0 : i32
    %c0_i32_1 = arith.constant 0 : i32
    return %c0_i32, %c0_i32_0 : i32, i32
  }
  func.func @transform_7(%arg0: i32) -> (i32, i32, i32) {
    %c0_i32 = arith.constant 0 : i32
    %c0_i32_0 = arith.constant 0 : i32
    %c0_i32_1 = arith.constant 0 : i32
    %c0_i32_2 = arith.constant 0 : i32
    return %c0_i32, %c0_i32_0, %c0_i32_1 : i32, i32, i32
  }
  func.func @transform_8(%arg0: i32) -> (i32, i32) {
    %c0_i32 = arith.constant 0 : i32
    %c0_i32_0 = arith.constant 0 : i32
    %c0_i32_1 = arith.constant 0 : i32
    return %c0_i32, %c0_i32_0 : i32, i32
  }
  func.func @transform_9(%arg0: i32) -> (i32, i32, i32) {
    %c0_i32 = arith.constant 0 : i32
    %c0_i32_0 = arith.constant 0 : i32
    %c0_i32_1 = arith.constant 0 : i32
    return %arg0, %c0_i32, %c0_i32_0 : i32, i32, i32
  }
  func.func @transform_10(%arg0: i32) -> (i32, i32, i32) {
    %c0_i32 = arith.constant 0 : i32
    %c0_i32_0 = arith.constant 0 : i32
    %c0_i32_1 = arith.constant 0 : i32
    return %arg0, %c0_i32, %c0_i32_0 : i32, i32, i32
  }
}

module attributes {stable_mosaic.version = 11 : i64} {
  func.func @_encoder_layer_kernel(%arg0: i32, %arg1: memref<1x16x32xf32, #tpu.memory_space<vmem>>, %arg2: memref<16x32xf32, #tpu.memory_space<vmem>>, %arg3: memref<32x64xf32, #tpu.memory_space<vmem>>, %arg4: memref<1x64xf32, #tpu.memory_space<vmem>>, %arg5: memref<32x32xf32, #tpu.memory_space<vmem>>, %arg6: memref<1x32xf32, #tpu.memory_space<vmem>>, %arg7: memref<32x32xf32, #tpu.memory_space<vmem>>, %arg8: memref<1x32xf32, #tpu.memory_space<vmem>>, %arg9: memref<1x32xf32, #tpu.memory_space<vmem>>, %arg10: memref<1x32xf32, #tpu.memory_space<vmem>>, %arg11: memref<32x64xf32, #tpu.memory_space<vmem>>, %arg12: memref<1x64xf32, #tpu.memory_space<vmem>>, %arg13: memref<64x32xf32, #tpu.memory_space<vmem>>, %arg14: memref<1x32xf32, #tpu.memory_space<vmem>>, %arg15: memref<1x32xf32, #tpu.memory_space<vmem>>, %arg16: memref<1x32xf32, #tpu.memory_space<vmem>>, %arg17: memref<1x32xf32, #tpu.memory_space<vmem>>, %arg18: memref<1x32xf32, #tpu.memory_space<vmem>>, %arg19: memref<1x16x32xf32, #tpu.memory_space<vmem>>) attributes {dimension_semantics = [#tpu.dimension_semantics<parallel>], iteration_bounds = array<i64: 2>, scalar_prefetch = 0 : i64, scratch_operands = 0 : i64, tpu.core_type = #tpu.core_type<tc>, window_params = [{transform_indices = @transform_0, window_bounds = array<i64: 1, 16, 32>}, {pipeline_mode = #tpu.pipeline_mode<synchronous>, transform_indices = @transform_1, window_bounds = array<i64: 16, 32>}, {pipeline_mode = #tpu.pipeline_mode<synchronous>, transform_indices = @transform_2, window_bounds = array<i64: 32, 64>}, {pipeline_mode = #tpu.pipeline_mode<synchronous>, transform_indices = @transform_3, window_bounds = array<i64: 1, 64>}, {pipeline_mode = #tpu.pipeline_mode<synchronous>, transform_indices = @transform_4, window_bounds = array<i64: 32, 32>}, {pipeline_mode = #tpu.pipeline_mode<synchronous>, transform_indices = @transform_5, window_bounds = array<i64: 1, 32>}, {pipeline_mode = #tpu.pipeline_mode<synchronous>, transform_indices = @transform_6, window_bounds = array<i64: 32, 32>}, {pipeline_mode = #tpu.pipeline_mode<synchronous>, transform_indices = @transform_7, window_bounds = array<i64: 1, 32>}, {pipeline_mode = #tpu.pipeline_mode<synchronous>, transform_indices = @transform_8, window_bounds = array<i64: 1, 32>}, {pipeline_mode = #tpu.pipeline_mode<synchronous>, transform_indices = @transform_9, window_bounds = array<i64: 1, 32>}, {pipeline_mode = #tpu.pipeline_mode<synchronous>, transform_indices = @transform_10, window_bounds = array<i64: 32, 64>}, {pipeline_mode = #tpu.pipeline_mode<synchronous>, transform_indices = @transform_11, window_bounds = array<i64: 1, 64>}, {pipeline_mode = #tpu.pipeline_mode<synchronous>, transform_indices = @transform_12, window_bounds = array<i64: 64, 32>}, {pipeline_mode = #tpu.pipeline_mode<synchronous>, transform_indices = @transform_13, window_bounds = array<i64: 1, 32>}, {pipeline_mode = #tpu.pipeline_mode<synchronous>, transform_indices = @transform_14, window_bounds = array<i64: 1, 32>}, {pipeline_mode = #tpu.pipeline_mode<synchronous>, transform_indices = @transform_15, window_bounds = array<i64: 1, 32>}, {pipeline_mode = #tpu.pipeline_mode<synchronous>, transform_indices = @transform_16, window_bounds = array<i64: 1, 32>}, {pipeline_mode = #tpu.pipeline_mode<synchronous>, transform_indices = @transform_17, window_bounds = array<i64: 1, 32>}, {transform_indices = @transform_18, window_bounds = array<i64: 1, 16, 32>}]} {
    %c0 = arith.constant 0 : index
    %c0_0 = arith.constant 0 : index
    %c0_1 = arith.constant 0 : index
    %0 = vector.load %arg1[%c0, %c0_0, %c0_1] : memref<1x16x32xf32, #tpu.memory_space<vmem>>, vector<1x16x32xf32>
    %1 = vector.shape_cast %0 : vector<1x16x32xf32> to vector<16x32xf32>
    %c0_2 = arith.constant 0 : index
    %c0_3 = arith.constant 0 : index
    %2 = vector.load %arg2[%c0_2, %c0_3] : memref<16x32xf32, #tpu.memory_space<vmem>>, vector<16x32xf32>
    %3 = arith.addf %1, %2 : vector<16x32xf32>
    %c0_4 = arith.constant 0 : index
    %c0_5 = arith.constant 0 : index
    %4 = vector.load %arg3[%c0_4, %c0_5] : memref<32x64xf32, #tpu.memory_space<vmem>>, vector<32x64xf32>
    %5 = arith.truncf %3 : vector<16x32xf32> to vector<16x32xbf16>
    %6 = arith.truncf %4 : vector<32x64xf32> to vector<32x64xbf16>
    %cst = arith.constant dense<0.000000e+00> : vector<16x64xf32>
    %7 = tpu.matmul %5, %6, %cst {dimension_numbers = #tpu.dot_dimension_numbers<[1], [0], [0], [1], [0, 0, 1, 1], [], []>} : vector<16x32xbf16>, vector<32x64xbf16>, vector<16x64xf32> -> vector<16x64xf32>
    %c0_6 = arith.constant 0 : index
    %c0_7 = arith.constant 0 : index
    %8 = vector.load %arg4[%c0_6, %c0_7] : memref<1x64xf32, #tpu.memory_space<vmem>>, vector<1x64xf32>
    %9 = vector.broadcast %8 : vector<1x64xf32> to vector<16x64xf32>
    %10 = arith.addf %7, %9 : vector<16x64xf32>
    %c0_8 = arith.constant 0 : index
    %c0_9 = arith.constant 0 : index
    %11 = vector.load %arg5[%c0_8, %c0_9] : memref<32x32xf32, #tpu.memory_space<vmem>>, vector<32x32xf32>
    %12 = arith.truncf %1 : vector<16x32xf32> to vector<16x32xbf16>
    %13 = arith.truncf %11 : vector<32x32xf32> to vector<32x32xbf16>
    %cst_10 = arith.constant dense<0.000000e+00> : vector<16x32xf32>
    %14 = tpu.matmul %12, %13, %cst_10 {dimension_numbers = #tpu.dot_dimension_numbers<[1], [0], [0], [1], [0, 0, 1, 1], [], []>} : vector<16x32xbf16>, vector<32x32xbf16>, vector<16x32xf32> -> vector<16x32xf32>
    %c0_11 = arith.constant 0 : index
    %c0_12 = arith.constant 0 : index
    %15 = vector.load %arg6[%c0_11, %c0_12] : memref<1x32xf32, #tpu.memory_space<vmem>>, vector<1x32xf32>
    %16 = vector.broadcast %15 : vector<1x32xf32> to vector<16x32xf32>
    %17 = arith.addf %14, %16 : vector<16x32xf32>
    %18 = vector.extract_strided_slice %10 {offsets = [0, 0], sizes = [16, 32], strides = [1, 1]} : vector<16x64xf32> to vector<16x32xf32>
    %19 = vector.extract_strided_slice %10 {offsets = [0, 32], sizes = [16, 32], strides = [1, 1]} : vector<16x64xf32> to vector<16x32xf32>
    %20 = vector.shape_cast %18 : vector<16x32xf32> to vector<16x2x16xf32>
    %21 = vector.shape_cast %19 : vector<16x32xf32> to vector<16x2x16xf32>
    %22 = vector.shape_cast %17 : vector<16x32xf32> to vector<16x2x16xf32>
    %23 = arith.truncf %20 : vector<16x2x16xf32> to vector<16x2x16xbf16>
    %24 = arith.truncf %21 : vector<16x2x16xf32> to vector<16x2x16xbf16>
    "tpu.trace_start"() <{level = 10 : i32, message = "qhd,khd->hqk"}> : () -> ()
    %cst_13 = arith.constant dense<0.000000e+00> : vector<2x16x16xf32>
    %25 = tpu.matmul %23, %24, %cst_13 {dimension_numbers = #tpu.dot_dimension_numbers<[2], [2], [0], [0], [0, 1, 0, 0, 1, 0], [1], [1]>} : vector<16x2x16xbf16>, vector<16x2x16xbf16>, vector<2x16x16xf32> -> vector<2x16x16xf32>
    "tpu.trace_stop"() : () -> ()
    %cst_14 = arith.constant 2.500000e-01 : f32
    %26 = vector.broadcast %cst_14 : f32 to vector<2x16x16xf32>
    %27 = arith.mulf %25, %26 : vector<2x16x16xf32>
    %cst_15 = arith.constant dense<0xFF800000> : vector<2x16xf32>
    %28 = vector.multi_reduction <maximumf>, %27, %cst_15 [2] : vector<2x16x16xf32> to vector<2x16xf32>
    %29 = vector.shape_cast %28 : vector<2x16xf32> to vector<2x16x1xf32>
    %30 = vector.broadcast %29 : vector<2x16x1xf32> to vector<2x16x16xf32>
    %31 = arith.subf %27, %30 : vector<2x16x16xf32>
    %32 = math.exp %31 : vector<2x16x16xf32>
    %cst_16 = arith.constant dense<0.000000e+00> : vector<2x16xf32>
    %33 = vector.multi_reduction <add>, %32, %cst_16 [2] : vector<2x16x16xf32> to vector<2x16xf32>
    %34 = vector.shape_cast %33 : vector<2x16xf32> to vector<2x16x1xf32>
    %35 = tpu.reciprocal %34 {approx = true} : vector<2x16x1xf32> -> vector<2x16x1xf32>
    %36 = vector.broadcast %35 : vector<2x16x1xf32> to vector<2x16x16xf32>
    %37 = arith.mulf %32, %36 : vector<2x16x16xf32>
    %38 = arith.truncf %37 : vector<2x16x16xf32> to vector<2x16x16xbf16>
    %39 = arith.truncf %22 : vector<16x2x16xf32> to vector<16x2x16xbf16>
    "tpu.trace_start"() <{level = 10 : i32, message = "hqk,khd->qhd"}> : () -> ()
    %cst_17 = arith.constant dense<0.000000e+00> : vector<2x16x16xf32>
    %40 = tpu.matmul %39, %38, %cst_17 {dimension_numbers = #tpu.dot_dimension_numbers<[0], [2], [2], [1], [0, 1, 0, 2, 1, 1], [1], [0]>} : vector<16x2x16xbf16>, vector<2x16x16xbf16>, vector<2x16x16xf32> -> vector<2x16x16xf32>
    %41 = tpu.transpose %40, [2, 0, 1] : vector<2x16x16xf32> -> vector<16x2x16xf32>
    "tpu.trace_stop"() : () -> ()
    %42 = vector.shape_cast %41 : vector<16x2x16xf32> to vector<16x32xf32>
    %c0_18 = arith.constant 0 : index
    %c0_19 = arith.constant 0 : index
    %43 = vector.load %arg7[%c0_18, %c0_19] : memref<32x32xf32, #tpu.memory_space<vmem>>, vector<32x32xf32>
    %44 = arith.truncf %42 : vector<16x32xf32> to vector<16x32xbf16>
    %45 = arith.truncf %43 : vector<32x32xf32> to vector<32x32xbf16>
    %cst_20 = arith.constant dense<0.000000e+00> : vector<16x32xf32>
    %46 = tpu.matmul %44, %45, %cst_20 {dimension_numbers = #tpu.dot_dimension_numbers<[1], [0], [0], [1], [0, 0, 1, 1], [], []>} : vector<16x32xbf16>, vector<32x32xbf16>, vector<16x32xf32> -> vector<16x32xf32>
    %c0_21 = arith.constant 0 : index
    %c0_22 = arith.constant 0 : index
    %47 = vector.load %arg8[%c0_21, %c0_22] : memref<1x32xf32, #tpu.memory_space<vmem>>, vector<1x32xf32>
    %48 = vector.broadcast %47 : vector<1x32xf32> to vector<16x32xf32>
    %49 = arith.addf %46, %48 : vector<16x32xf32>
    %50 = arith.addf %1, %49 : vector<16x32xf32>
    %c0_23 = arith.constant 0 : index
    %c0_24 = arith.constant 0 : index
    %51 = vector.load %arg9[%c0_23, %c0_24] : memref<1x32xf32, #tpu.memory_space<vmem>>, vector<1x32xf32>
    %c0_25 = arith.constant 0 : index
    %c0_26 = arith.constant 0 : index
    %52 = vector.load %arg10[%c0_25, %c0_26] : memref<1x32xf32, #tpu.memory_space<vmem>>, vector<1x32xf32>
    %cst_27 = arith.constant dense<0.000000e+00> : vector<16xf32>
    %53 = vector.multi_reduction <add>, %50, %cst_27 [1] : vector<16x32xf32> to vector<16xf32>
    %54 = vector.shape_cast %53 : vector<16xf32> to vector<16x1xf32>
    %cst_28 = arith.constant 3.200000e+01 : f32
    %55 = vector.broadcast %cst_28 : f32 to vector<16x1xf32>
    %56 = arith.divf %54, %55 : vector<16x1xf32>
    %57 = vector.broadcast %56 : vector<16x1xf32> to vector<16x32xf32>
    %58 = arith.subf %50, %57 : vector<16x32xf32>
    %59 = arith.mulf %58, %58 : vector<16x32xf32>
    %cst_29 = arith.constant dense<0.000000e+00> : vector<16xf32>
    %60 = vector.multi_reduction <add>, %59, %cst_29 [1] : vector<16x32xf32> to vector<16xf32>
    %61 = vector.shape_cast %60 : vector<16xf32> to vector<16x1xf32>
    %cst_30 = arith.constant 3.200000e+01 : f32
    %62 = vector.broadcast %cst_30 : f32 to vector<16x1xf32>
    %63 = arith.divf %61, %62 : vector<16x1xf32>
    %64 = vector.broadcast %56 : vector<16x1xf32> to vector<16x32xf32>
    %65 = arith.subf %50, %64 : vector<16x32xf32>
    %cst_31 = arith.constant 9.99999974E-6 : f32
    %66 = vector.broadcast %cst_31 : f32 to vector<16x1xf32>
    %67 = arith.addf %63, %66 : vector<16x1xf32>
    %68 = math.rsqrt %67 : vector<16x1xf32>
    %69 = vector.broadcast %68 : vector<16x1xf32> to vector<16x32xf32>
    %70 = arith.mulf %65, %69 : vector<16x32xf32>
    %71 = vector.broadcast %51 : vector<1x32xf32> to vector<16x32xf32>
    %72 = arith.mulf %70, %71 : vector<16x32xf32>
    %73 = vector.broadcast %52 : vector<1x32xf32> to vector<16x32xf32>
    %74 = arith.addf %72, %73 : vector<16x32xf32>
    %c0_32 = arith.constant 0 : index
    %c0_33 = arith.constant 0 : index
    %75 = vector.load %arg11[%c0_32, %c0_33] : memref<32x64xf32, #tpu.memory_space<vmem>>, vector<32x64xf32>
    %76 = arith.truncf %74 : vector<16x32xf32> to vector<16x32xbf16>
    %77 = arith.truncf %75 : vector<32x64xf32> to vector<32x64xbf16>
    %cst_34 = arith.constant dense<0.000000e+00> : vector<16x64xf32>
    %78 = tpu.matmul %76, %77, %cst_34 {dimension_numbers = #tpu.dot_dimension_numbers<[1], [0], [0], [1], [0, 0, 1, 1], [], []>} : vector<16x32xbf16>, vector<32x64xbf16>, vector<16x64xf32> -> vector<16x64xf32>
    %c0_35 = arith.constant 0 : index
    %c0_36 = arith.constant 0 : index
    %79 = vector.load %arg12[%c0_35, %c0_36] : memref<1x64xf32, #tpu.memory_space<vmem>>, vector<1x64xf32>
    %80 = vector.broadcast %79 : vector<1x64xf32> to vector<16x64xf32>
    %81 = arith.addf %78, %80 : vector<16x64xf32>
    %82 = arith.mulf %81, %81 : vector<16x64xf32>
    %83 = arith.mulf %81, %82 : vector<16x64xf32>
    %cst_37 = arith.constant 4.471500e-02 : f32
    %84 = vector.broadcast %cst_37 : f32 to vector<16x64xf32>
    %85 = arith.mulf %84, %83 : vector<16x64xf32>
    %86 = arith.addf %81, %85 : vector<16x64xf32>
    %cst_38 = arith.constant 0.797884583 : f32
    %87 = vector.broadcast %cst_38 : f32 to vector<16x64xf32>
    %88 = arith.mulf %87, %86 : vector<16x64xf32>
    %89 = math.tanh %88 : vector<16x64xf32>
    %cst_39 = arith.constant 1.000000e+00 : f32
    %90 = vector.broadcast %cst_39 : f32 to vector<16x64xf32>
    %91 = arith.addf %90, %89 : vector<16x64xf32>
    %cst_40 = arith.constant 5.000000e-01 : f32
    %92 = vector.broadcast %cst_40 : f32 to vector<16x64xf32>
    %93 = arith.mulf %92, %91 : vector<16x64xf32>
    %94 = arith.mulf %81, %93 : vector<16x64xf32>
    %c0_41 = arith.constant 0 : index
    %c0_42 = arith.constant 0 : index
    %95 = vector.load %arg13[%c0_41, %c0_42] : memref<64x32xf32, #tpu.memory_space<vmem>>, vector<64x32xf32>
    %96 = arith.truncf %94 : vector<16x64xf32> to vector<16x64xbf16>
    %97 = arith.truncf %95 : vector<64x32xf32> to vector<64x32xbf16>
    %cst_43 = arith.constant dense<0.000000e+00> : vector<16x32xf32>
    %98 = tpu.matmul %96, %97, %cst_43 {dimension_numbers = #tpu.dot_dimension_numbers<[1], [0], [0], [1], [0, 0, 1, 1], [], []>} : vector<16x64xbf16>, vector<64x32xbf16>, vector<16x32xf32> -> vector<16x32xf32>
    %c0_44 = arith.constant 0 : index
    %c0_45 = arith.constant 0 : index
    %99 = vector.load %arg14[%c0_44, %c0_45] : memref<1x32xf32, #tpu.memory_space<vmem>>, vector<1x32xf32>
    %100 = vector.broadcast %99 : vector<1x32xf32> to vector<16x32xf32>
    %101 = arith.addf %98, %100 : vector<16x32xf32>
    %102 = arith.addf %74, %101 : vector<16x32xf32>
    %c0_46 = arith.constant 0 : index
    %c0_47 = arith.constant 0 : index
    %103 = vector.load %arg15[%c0_46, %c0_47] : memref<1x32xf32, #tpu.memory_space<vmem>>, vector<1x32xf32>
    %c0_48 = arith.constant 0 : index
    %c0_49 = arith.constant 0 : index
    %104 = vector.load %arg16[%c0_48, %c0_49] : memref<1x32xf32, #tpu.memory_space<vmem>>, vector<1x32xf32>
    %cst_50 = arith.constant dense<0.000000e+00> : vector<16xf32>
    %105 = vector.multi_reduction <add>, %102, %cst_50 [1] : vector<16x32xf32> to vector<16xf32>
    %106 = vector.shape_cast %105 : vector<16xf32> to vector<16x1xf32>
    %cst_51 = arith.constant 3.200000e+01 : f32
    %107 = vector.broadcast %cst_51 : f32 to vector<16x1xf32>
    %108 = arith.divf %106, %107 : vector<16x1xf32>
    %109 = vector.broadcast %108 : vector<16x1xf32> to vector<16x32xf32>
    %110 = arith.subf %102, %109 : vector<16x32xf32>
    %111 = arith.mulf %110, %110 : vector<16x32xf32>
    %cst_52 = arith.constant dense<0.000000e+00> : vector<16xf32>
    %112 = vector.multi_reduction <add>, %111, %cst_52 [1] : vector<16x32xf32> to vector<16xf32>
    %113 = vector.shape_cast %112 : vector<16xf32> to vector<16x1xf32>
    %cst_53 = arith.constant 3.200000e+01 : f32
    %114 = vector.broadcast %cst_53 : f32 to vector<16x1xf32>
    %115 = arith.divf %113, %114 : vector<16x1xf32>
    %116 = vector.broadcast %108 : vector<16x1xf32> to vector<16x32xf32>
    %117 = arith.subf %102, %116 : vector<16x32xf32>
    %cst_54 = arith.constant 9.99999974E-6 : f32
    %118 = vector.broadcast %cst_54 : f32 to vector<16x1xf32>
    %119 = arith.addf %115, %118 : vector<16x1xf32>
    %120 = math.rsqrt %119 : vector<16x1xf32>
    %121 = vector.broadcast %120 : vector<16x1xf32> to vector<16x32xf32>
    %122 = arith.mulf %117, %121 : vector<16x32xf32>
    %123 = vector.broadcast %103 : vector<1x32xf32> to vector<16x32xf32>
    %124 = arith.mulf %122, %123 : vector<16x32xf32>
    %125 = vector.broadcast %104 : vector<1x32xf32> to vector<16x32xf32>
    %126 = arith.addf %124, %125 : vector<16x32xf32>
    %c0_55 = arith.constant 0 : index
    %c0_56 = arith.constant 0 : index
    %127 = vector.load %arg17[%c0_55, %c0_56] : memref<1x32xf32, #tpu.memory_space<vmem>>, vector<1x32xf32>
    %c0_57 = arith.constant 0 : index
    %c0_58 = arith.constant 0 : index
    %128 = vector.load %arg18[%c0_57, %c0_58] : memref<1x32xf32, #tpu.memory_space<vmem>>, vector<1x32xf32>
    %cst_59 = arith.constant dense<0.000000e+00> : vector<16xf32>
    %129 = vector.multi_reduction <add>, %126, %cst_59 [1] : vector<16x32xf32> to vector<16xf32>
    %130 = vector.shape_cast %129 : vector<16xf32> to vector<16x1xf32>
    %cst_60 = arith.constant 3.200000e+01 : f32
    %131 = vector.broadcast %cst_60 : f32 to vector<16x1xf32>
    %132 = arith.divf %130, %131 : vector<16x1xf32>
    %133 = vector.broadcast %132 : vector<16x1xf32> to vector<16x32xf32>
    %134 = arith.subf %126, %133 : vector<16x32xf32>
    %135 = arith.mulf %134, %134 : vector<16x32xf32>
    %cst_61 = arith.constant dense<0.000000e+00> : vector<16xf32>
    %136 = vector.multi_reduction <add>, %135, %cst_61 [1] : vector<16x32xf32> to vector<16xf32>
    %137 = vector.shape_cast %136 : vector<16xf32> to vector<16x1xf32>
    %cst_62 = arith.constant 3.200000e+01 : f32
    %138 = vector.broadcast %cst_62 : f32 to vector<16x1xf32>
    %139 = arith.divf %137, %138 : vector<16x1xf32>
    %140 = vector.broadcast %132 : vector<16x1xf32> to vector<16x32xf32>
    %141 = arith.subf %126, %140 : vector<16x32xf32>
    %cst_63 = arith.constant 9.99999974E-6 : f32
    %142 = vector.broadcast %cst_63 : f32 to vector<16x1xf32>
    %143 = arith.addf %139, %142 : vector<16x1xf32>
    %144 = math.rsqrt %143 : vector<16x1xf32>
    %145 = vector.broadcast %144 : vector<16x1xf32> to vector<16x32xf32>
    %146 = arith.mulf %141, %145 : vector<16x32xf32>
    %147 = vector.broadcast %127 : vector<1x32xf32> to vector<16x32xf32>
    %148 = arith.mulf %146, %147 : vector<16x32xf32>
    %149 = vector.broadcast %128 : vector<1x32xf32> to vector<16x32xf32>
    %150 = arith.addf %148, %149 : vector<16x32xf32>
    %c0_64 = arith.constant 0 : index
    %c0_65 = arith.constant 0 : index
    %c0_66 = arith.constant 0 : index
    %151 = vector.load %arg19[%c0_64, %c0_65, %c0_66] : memref<1x16x32xf32, #tpu.memory_space<vmem>>, vector<1x16x32xf32>
    %152 = vector.shape_cast %151 : vector<1x16x32xf32> to vector<16x32xf32>
    %153 = vector.shape_cast %150 : vector<16x32xf32> to vector<1x16x32xf32>
    tpu.vector_store %arg19[%c0_64, %c0_65, %c0_66], %153 {strides = array<i32>} : memref<1x16x32xf32, #tpu.memory_space<vmem>>, vector<1x16x32xf32>,
    return
  }
  func.func @transform_0(%arg0: i32) -> (i32, i32, i32) {
    %c0_i32 = arith.constant 0 : i32
    %c0_i32_0 = arith.constant 0 : i32
    %c0_i32_1 = arith.constant 0 : i32
    return %arg0, %c0_i32, %c0_i32_0 : i32, i32, i32
  }
  func.func @transform_1(%arg0: i32) -> (i32, i32) {
    %c0_i32 = arith.constant 0 : i32
    %c0_i32_0 = arith.constant 0 : i32
    %c0_i32_1 = arith.constant 0 : i32
    return %c0_i32, %c0_i32_0 : i32, i32
  }
  func.func @transform_2(%arg0: i32) -> (i32, i32) {
    %c0_i32 = arith.constant 0 : i32
    %c0_i32_0 = arith.constant 0 : i32
    %c0_i32_1 = arith.constant 0 : i32
    return %c0_i32, %c0_i32_0 : i32, i32
  }
  func.func @transform_3(%arg0: i32) -> (i32, i32) {
    %c0_i32 = arith.constant 0 : i32
    %c0_i32_0 = arith.constant 0 : i32
    %c0_i32_1 = arith.constant 0 : i32
    return %c0_i32, %c0_i32_0 : i32, i32
  }
  func.func @transform_4(%arg0: i32) -> (i32, i32) {
    %c0_i32 = arith.constant 0 : i32
    %c0_i32_0 = arith.constant 0 : i32
    %c0_i32_1 = arith.constant 0 : i32
    return %c0_i32, %c0_i32_0 : i32, i32
  }
  func.func @transform_5(%arg0: i32) -> (i32, i32) {
    %c0_i32 = arith.constant 0 : i32
    %c0_i32_0 = arith.constant 0 : i32
    %c0_i32_1 = arith.constant 0 : i32
    return %c0_i32, %c0_i32_0 : i32, i32
  }
  func.func @transform_6(%arg0: i32) -> (i32, i32) {
    %c0_i32 = arith.constant 0 : i32
    %c0_i32_0 = arith.constant 0 : i32
    %c0_i32_1 = arith.constant 0 : i32
    return %c0_i32, %c0_i32_0 : i32, i32
  }
  func.func @transform_7(%arg0: i32) -> (i32, i32) {
    %c0_i32 = arith.constant 0 : i32
    %c0_i32_0 = arith.constant 0 : i32
    %c0_i32_1 = arith.constant 0 : i32
    return %c0_i32, %c0_i32_0 : i32, i32
  }
  func.func @transform_8(%arg0: i32) -> (i32, i32) {
    %c0_i32 = arith.constant 0 : i32
    %c0_i32_0 = arith.constant 0 : i32
    %c0_i32_1 = arith.constant 0 : i32
    return %c0_i32, %c0_i32_0 : i32, i32
  }
  func.func @transform_9(%arg0: i32) -> (i32, i32) {
    %c0_i32 = arith.constant 0 : i32
    %c0_i32_0 = arith.constant 0 : i32
    %c0_i32_1 = arith.constant 0 : i32
    return %c0_i32, %c0_i32_0 : i32, i32
  }
  func.func @transform_10(%arg0: i32) -> (i32, i32) {
    %c0_i32 = arith.constant 0 : i32
    %c0_i32_0 = arith.constant 0 : i32
    %c0_i32_1 = arith.constant 0 : i32
    return %c0_i32, %c0_i32_0 : i32, i32
  }
  func.func @transform_11(%arg0: i32) -> (i32, i32) {
    %c0_i32 = arith.constant 0 : i32
    %c0_i32_0 = arith.constant 0 : i32
    %c0_i32_1 = arith.constant 0 : i32
    return %c0_i32, %c0_i32_0 : i32, i32
  }
  func.func @transform_12(%arg0: i32) -> (i32, i32) {
    %c0_i32 = arith.constant 0 : i32
    %c0_i32_0 = arith.constant 0 : i32
    %c0_i32_1 = arith.constant 0 : i32
    return %c0_i32, %c0_i32_0 : i32, i32
  }
  func.func @transform_13(%arg0: i32) -> (i32, i32) {
    %c0_i32 = arith.constant 0 : i32
    %c0_i32_0 = arith.constant 0 : i32
    %c0_i32_1 = arith.constant 0 : i32
    return %c0_i32, %c0_i32_0 : i32, i32
  }
  func.func @transform_14(%arg0: i32) -> (i32, i32) {
    %c0_i32 = arith.constant 0 : i32
    %c0_i32_0 = arith.constant 0 : i32
    %c0_i32_1 = arith.constant 0 : i32
    return %c0_i32, %c0_i32_0 : i32, i32
  }
  func.func @transform_15(%arg0: i32) -> (i32, i32) {
    %c0_i32 = arith.constant 0 : i32
    %c0_i32_0 = arith.constant 0 : i32
    %c0_i32_1 = arith.constant 0 : i32
    return %c0_i32, %c0_i32_0 : i32, i32
  }
  func.func @transform_16(%arg0: i32) -> (i32, i32) {
    %c0_i32 = arith.constant 0 : i32
    %c0_i32_0 = arith.constant 0 : i32
    %c0_i32_1 = arith.constant 0 : i32
    return %c0_i32, %c0_i32_0 : i32, i32
  }
  func.func @transform_17(%arg0: i32) -> (i32, i32) {
    %c0_i32 = arith.constant 0 : i32
    %c0_i32_0 = arith.constant 0 : i32
    %c0_i32_1 = arith.constant 0 : i32
    return %c0_i32, %c0_i32_0 : i32, i32
  }
  func.func @transform_18(%arg0: i32) -> (i32, i32, i32) {
    %c0_i32 = arith.constant 0 : i32
    %c0_i32_0 = arith.constant 0 : i32
    %c0_i32_1 = arith.constant 0 : i32
    return %arg0, %c0_i32, %c0_i32_0 : i32, i32, i32
  }
}

module attributes {stable_mosaic.version = 11 : i64} {
  func.func @_iefl_kernel(%arg0: i32, %arg1: memref<1x16x32xf32, #tpu.memory_space<vmem>>, %arg2: memref<32x32xf32, #tpu.memory_space<vmem>>, %arg3: memref<1x32xf32, #tpu.memory_space<vmem>>, %arg4: memref<32x64xf32, #tpu.memory_space<vmem>>, %arg5: memref<1x64xf32, #tpu.memory_space<vmem>>, %arg6: memref<32x32xf32, #tpu.memory_space<vmem>>, %arg7: memref<1x32xf32, #tpu.memory_space<vmem>>, %arg8: memref<1x32xf32, #tpu.memory_space<vmem>>, %arg9: memref<1x32xf32, #tpu.memory_space<vmem>>, %arg10: memref<1x16x32xf32, #tpu.memory_space<vmem>>) attributes {dimension_semantics = [#tpu.dimension_semantics<parallel>], iteration_bounds = array<i64: 2>, scalar_prefetch = 0 : i64, scratch_operands = 0 : i64, tpu.core_type = #tpu.core_type<tc>, window_params = [{transform_indices = @transform_0, window_bounds = array<i64: 1, 16, 32>}, {pipeline_mode = #tpu.pipeline_mode<synchronous>, transform_indices = @transform_1, window_bounds = array<i64: 32, 32>}, {pipeline_mode = #tpu.pipeline_mode<synchronous>, transform_indices = @transform_2, window_bounds = array<i64: 1, 32>}, {pipeline_mode = #tpu.pipeline_mode<synchronous>, transform_indices = @transform_3, window_bounds = array<i64: 32, 64>}, {pipeline_mode = #tpu.pipeline_mode<synchronous>, transform_indices = @transform_4, window_bounds = array<i64: 1, 64>}, {pipeline_mode = #tpu.pipeline_mode<synchronous>, transform_indices = @transform_5, window_bounds = array<i64: 32, 32>}, {pipeline_mode = #tpu.pipeline_mode<synchronous>, transform_indices = @transform_6, window_bounds = array<i64: 1, 32>}, {pipeline_mode = #tpu.pipeline_mode<synchronous>, transform_indices = @transform_7, window_bounds = array<i64: 1, 32>}, {pipeline_mode = #tpu.pipeline_mode<synchronous>, transform_indices = @transform_8, window_bounds = array<i64: 1, 32>}, {transform_indices = @transform_9, window_bounds = array<i64: 1, 16, 32>}]} {
    %c0 = arith.constant 0 : index
    %c0_0 = arith.constant 0 : index
    %c0_1 = arith.constant 0 : index
    %0 = vector.load %arg1[%c0, %c0_0, %c0_1] : memref<1x16x32xf32, #tpu.memory_space<vmem>>, vector<1x16x32xf32>
    %1 = vector.shape_cast %0 : vector<1x16x32xf32> to vector<16x32xf32>
    %c0_2 = arith.constant 0 : index
    %c0_3 = arith.constant 0 : index
    %2 = vector.load %arg4[%c0_2, %c0_3] : memref<32x64xf32, #tpu.memory_space<vmem>>, vector<32x64xf32>
    %3 = arith.truncf %1 : vector<16x32xf32> to vector<16x32xbf16>
    %4 = arith.truncf %2 : vector<32x64xf32> to vector<32x64xbf16>
    %cst = arith.constant dense<0.000000e+00> : vector<16x64xf32>
    %5 = tpu.matmul %3, %4, %cst {dimension_numbers = #tpu.dot_dimension_numbers<[1], [0], [0], [1], [0, 0, 1, 1], [], []>} : vector<16x32xbf16>, vector<32x64xbf16>, vector<16x64xf32> -> vector<16x64xf32>
    %c0_4 = arith.constant 0 : index
    %c0_5 = arith.constant 0 : index
    %6 = vector.load %arg5[%c0_4, %c0_5] : memref<1x64xf32, #tpu.memory_space<vmem>>, vector<1x64xf32>
    %7 = vector.broadcast %6 : vector<1x64xf32> to vector<16x64xf32>
    %8 = arith.addf %5, %7 : vector<16x64xf32>
    %9 = vector.extract_strided_slice %8 {offsets = [0, 0], sizes = [16, 32], strides = [1, 1]} : vector<16x64xf32> to vector<16x32xf32>
    %10 = vector.extract_strided_slice %8 {offsets = [0, 32], sizes = [16, 32], strides = [1, 1]} : vector<16x64xf32> to vector<16x32xf32>
    %c0_6 = arith.constant 0 : index
    %c0_7 = arith.constant 0 : index
    %11 = vector.load %arg2[%c0_6, %c0_7] : memref<32x32xf32, #tpu.memory_space<vmem>>, vector<32x32xf32>
    %12 = arith.truncf %1 : vector<16x32xf32> to vector<16x32xbf16>
    %13 = arith.truncf %11 : vector<32x32xf32> to vector<32x32xbf16>
    %cst_8 = arith.constant dense<0.000000e+00> : vector<16x32xf32>
    %14 = tpu.matmul %12, %13, %cst_8 {dimension_numbers = #tpu.dot_dimension_numbers<[1], [0], [0], [1], [0, 0, 1, 1], [], []>} : vector<16x32xbf16>, vector<32x32xbf16>, vector<16x32xf32> -> vector<16x32xf32>
    %c0_9 = arith.constant 0 : index
    %c0_10 = arith.constant 0 : index
    %15 = vector.load %arg3[%c0_9, %c0_10] : memref<1x32xf32, #tpu.memory_space<vmem>>, vector<1x32xf32>
    %16 = vector.broadcast %15 : vector<1x32xf32> to vector<16x32xf32>
    %17 = arith.addf %14, %16 : vector<16x32xf32>
    %18 = vector.shape_cast %17 : vector<16x32xf32> to vector<16x2x16xf32>
    %19 = vector.shape_cast %9 : vector<16x32xf32> to vector<16x2x16xf32>
    %20 = vector.shape_cast %10 : vector<16x32xf32> to vector<16x2x16xf32>
    %21 = arith.truncf %18 : vector<16x2x16xf32> to vector<16x2x16xbf16>
    %22 = arith.truncf %19 : vector<16x2x16xf32> to vector<16x2x16xbf16>
    "tpu.trace_start"() <{level = 10 : i32, message = "qhd,khd->hqk"}> : () -> ()
    %cst_11 = arith.constant dense<0.000000e+00> : vector<2x16x16xf32>
    %23 = tpu.matmul %21, %22, %cst_11 {dimension_numbers = #tpu.dot_dimension_numbers<[2], [2], [0], [0], [0, 1, 0, 0, 1, 0], [1], [1]>} : vector<16x2x16xbf16>, vector<16x2x16xbf16>, vector<2x16x16xf32> -> vector<2x16x16xf32>
    "tpu.trace_stop"() : () -> ()
    %cst_12 = arith.constant 2.500000e-01 : f32
    %24 = vector.broadcast %cst_12 : f32 to vector<2x16x16xf32>
    %25 = arith.mulf %23, %24 : vector<2x16x16xf32>
    %cst_13 = arith.constant dense<0xFF800000> : vector<2x16xf32>
    %26 = vector.multi_reduction <maximumf>, %25, %cst_13 [2] : vector<2x16x16xf32> to vector<2x16xf32>
    %27 = vector.shape_cast %26 : vector<2x16xf32> to vector<2x16x1xf32>
    %28 = vector.broadcast %27 : vector<2x16x1xf32> to vector<2x16x16xf32>
    %29 = arith.subf %25, %28 : vector<2x16x16xf32>
    %30 = math.exp %29 : vector<2x16x16xf32>
    %cst_14 = arith.constant dense<0.000000e+00> : vector<2x16xf32>
    %31 = vector.multi_reduction <add>, %30, %cst_14 [2] : vector<2x16x16xf32> to vector<2x16xf32>
    %32 = vector.shape_cast %31 : vector<2x16xf32> to vector<2x16x1xf32>
    %33 = tpu.reciprocal %32 {approx = true} : vector<2x16x1xf32> -> vector<2x16x1xf32>
    %34 = vector.broadcast %33 : vector<2x16x1xf32> to vector<2x16x16xf32>
    %35 = arith.mulf %30, %34 : vector<2x16x16xf32>
    %36 = arith.truncf %35 : vector<2x16x16xf32> to vector<2x16x16xbf16>
    %37 = arith.truncf %20 : vector<16x2x16xf32> to vector<16x2x16xbf16>
    "tpu.trace_start"() <{level = 10 : i32, message = "hqk,khd->qhd"}> : () -> ()
    %cst_15 = arith.constant dense<0.000000e+00> : vector<2x16x16xf32>
    %38 = tpu.matmul %37, %36, %cst_15 {dimension_numbers = #tpu.dot_dimension_numbers<[0], [2], [2], [1], [0, 1, 0, 2, 1, 1], [1], [0]>} : vector<16x2x16xbf16>, vector<2x16x16xbf16>, vector<2x16x16xf32> -> vector<2x16x16xf32>
    %39 = tpu.transpose %38, [2, 0, 1] : vector<2x16x16xf32> -> vector<16x2x16xf32>
    "tpu.trace_stop"() : () -> ()
    %40 = vector.shape_cast %39 : vector<16x2x16xf32> to vector<16x32xf32>
    %c0_16 = arith.constant 0 : index
    %c0_17 = arith.constant 0 : index
    %41 = vector.load %arg6[%c0_16, %c0_17] : memref<32x32xf32, #tpu.memory_space<vmem>>, vector<32x32xf32>
    %42 = arith.truncf %40 : vector<16x32xf32> to vector<16x32xbf16>
    %43 = arith.truncf %41 : vector<32x32xf32> to vector<32x32xbf16>
    %cst_18 = arith.constant dense<0.000000e+00> : vector<16x32xf32>
    %44 = tpu.matmul %42, %43, %cst_18 {dimension_numbers = #tpu.dot_dimension_numbers<[1], [0], [0], [1], [0, 0, 1, 1], [], []>} : vector<16x32xbf16>, vector<32x32xbf16>, vector<16x32xf32> -> vector<16x32xf32>
    %c0_19 = arith.constant 0 : index
    %c0_20 = arith.constant 0 : index
    %45 = vector.load %arg7[%c0_19, %c0_20] : memref<1x32xf32, #tpu.memory_space<vmem>>, vector<1x32xf32>
    %46 = vector.broadcast %45 : vector<1x32xf32> to vector<16x32xf32>
    %47 = arith.addf %44, %46 : vector<16x32xf32>
    %48 = arith.addf %1, %47 : vector<16x32xf32>
    %c0_21 = arith.constant 0 : index
    %c0_22 = arith.constant 0 : index
    %49 = vector.load %arg8[%c0_21, %c0_22] : memref<1x32xf32, #tpu.memory_space<vmem>>, vector<1x32xf32>
    %c0_23 = arith.constant 0 : index
    %c0_24 = arith.constant 0 : index
    %50 = vector.load %arg9[%c0_23, %c0_24] : memref<1x32xf32, #tpu.memory_space<vmem>>, vector<1x32xf32>
    %cst_25 = arith.constant dense<0.000000e+00> : vector<16xf32>
    %51 = vector.multi_reduction <add>, %48, %cst_25 [1] : vector<16x32xf32> to vector<16xf32>
    %52 = vector.shape_cast %51 : vector<16xf32> to vector<16x1xf32>
    %cst_26 = arith.constant 3.200000e+01 : f32
    %53 = vector.broadcast %cst_26 : f32 to vector<16x1xf32>
    %54 = arith.divf %52, %53 : vector<16x1xf32>
    %55 = vector.broadcast %54 : vector<16x1xf32> to vector<16x32xf32>
    %56 = arith.subf %48, %55 : vector<16x32xf32>
    %57 = arith.mulf %56, %56 : vector<16x32xf32>
    %cst_27 = arith.constant dense<0.000000e+00> : vector<16xf32>
    %58 = vector.multi_reduction <add>, %57, %cst_27 [1] : vector<16x32xf32> to vector<16xf32>
    %59 = vector.shape_cast %58 : vector<16xf32> to vector<16x1xf32>
    %cst_28 = arith.constant 3.200000e+01 : f32
    %60 = vector.broadcast %cst_28 : f32 to vector<16x1xf32>
    %61 = arith.divf %59, %60 : vector<16x1xf32>
    %62 = vector.broadcast %54 : vector<16x1xf32> to vector<16x32xf32>
    %63 = arith.subf %48, %62 : vector<16x32xf32>
    %cst_29 = arith.constant 9.99999974E-6 : f32
    %64 = vector.broadcast %cst_29 : f32 to vector<16x1xf32>
    %65 = arith.addf %61, %64 : vector<16x1xf32>
    %66 = math.rsqrt %65 : vector<16x1xf32>
    %67 = vector.broadcast %66 : vector<16x1xf32> to vector<16x32xf32>
    %68 = arith.mulf %63, %67 : vector<16x32xf32>
    %69 = vector.broadcast %49 : vector<1x32xf32> to vector<16x32xf32>
    %70 = arith.mulf %68, %69 : vector<16x32xf32>
    %71 = vector.broadcast %50 : vector<1x32xf32> to vector<16x32xf32>
    %72 = arith.addf %70, %71 : vector<16x32xf32>
    %c0_30 = arith.constant 0 : index
    %c0_31 = arith.constant 0 : index
    %73 = vector.load %arg2[%c0_30, %c0_31] : memref<32x32xf32, #tpu.memory_space<vmem>>, vector<32x32xf32>
    %74 = arith.truncf %72 : vector<16x32xf32> to vector<16x32xbf16>
    %75 = arith.truncf %73 : vector<32x32xf32> to vector<32x32xbf16>
    %cst_32 = arith.constant dense<0.000000e+00> : vector<16x32xf32>
    %76 = tpu.matmul %74, %75, %cst_32 {dimension_numbers = #tpu.dot_dimension_numbers<[1], [0], [0], [1], [0, 0, 1, 1], [], []>} : vector<16x32xbf16>, vector<32x32xbf16>, vector<16x32xf32> -> vector<16x32xf32>
    %c0_33 = arith.constant 0 : index
    %c0_34 = arith.constant 0 : index
    %77 = vector.load %arg3[%c0_33, %c0_34] : memref<1x32xf32, #tpu.memory_space<vmem>>, vector<1x32xf32>
    %78 = vector.broadcast %77 : vector<1x32xf32> to vector<16x32xf32>
    %79 = arith.addf %76, %78 : vector<16x32xf32>
    %80 = vector.shape_cast %79 : vector<16x32xf32> to vector<16x2x16xf32>
    %81 = vector.shape_cast %9 : vector<16x32xf32> to vector<16x2x16xf32>
    %82 = vector.shape_cast %10 : vector<16x32xf32> to vector<16x2x16xf32>
    %83 = arith.truncf %80 : vector<16x2x16xf32> to vector<16x2x16xbf16>
    %84 = arith.truncf %81 : vector<16x2x16xf32> to vector<16x2x16xbf16>
    "tpu.trace_start"() <{level = 10 : i32, message = "qhd,khd->hqk"}> : () -> ()
    %cst_35 = arith.constant dense<0.000000e+00> : vector<2x16x16xf32>
    %85 = tpu.matmul %83, %84, %cst_35 {dimension_numbers = #tpu.dot_dimension_numbers<[2], [2], [0], [0], [0, 1, 0, 0, 1, 0], [1], [1]>} : vector<16x2x16xbf16>, vector<16x2x16xbf16>, vector<2x16x16xf32> -> vector<2x16x16xf32>
    "tpu.trace_stop"() : () -> ()
    %cst_36 = arith.constant 2.500000e-01 : f32
    %86 = vector.broadcast %cst_36 : f32 to vector<2x16x16xf32>
    %87 = arith.mulf %85, %86 : vector<2x16x16xf32>
    %cst_37 = arith.constant dense<0xFF800000> : vector<2x16xf32>
    %88 = vector.multi_reduction <maximumf>, %87, %cst_37 [2] : vector<2x16x16xf32> to vector<2x16xf32>
    %89 = vector.shape_cast %88 : vector<2x16xf32> to vector<2x16x1xf32>
    %90 = vector.broadcast %89 : vector<2x16x1xf32> to vector<2x16x16xf32>
    %91 = arith.subf %87, %90 : vector<2x16x16xf32>
    %92 = math.exp %91 : vector<2x16x16xf32>
    %cst_38 = arith.constant dense<0.000000e+00> : vector<2x16xf32>
    %93 = vector.multi_reduction <add>, %92, %cst_38 [2] : vector<2x16x16xf32> to vector<2x16xf32>
    %94 = vector.shape_cast %93 : vector<2x16xf32> to vector<2x16x1xf32>
    %95 = tpu.reciprocal %94 {approx = true} : vector<2x16x1xf32> -> vector<2x16x1xf32>
    %96 = vector.broadcast %95 : vector<2x16x1xf32> to vector<2x16x16xf32>
    %97 = arith.mulf %92, %96 : vector<2x16x16xf32>
    %98 = arith.truncf %97 : vector<2x16x16xf32> to vector<2x16x16xbf16>
    %99 = arith.truncf %82 : vector<16x2x16xf32> to vector<16x2x16xbf16>
    "tpu.trace_start"() <{level = 10 : i32, message = "hqk,khd->qhd"}> : () -> ()
    %cst_39 = arith.constant dense<0.000000e+00> : vector<2x16x16xf32>
    %100 = tpu.matmul %99, %98, %cst_39 {dimension_numbers = #tpu.dot_dimension_numbers<[0], [2], [2], [1], [0, 1, 0, 2, 1, 1], [1], [0]>} : vector<16x2x16xbf16>, vector<2x16x16xbf16>, vector<2x16x16xf32> -> vector<2x16x16xf32>
    %101 = tpu.transpose %100, [2, 0, 1] : vector<2x16x16xf32> -> vector<16x2x16xf32>
    "tpu.trace_stop"() : () -> ()
    %102 = vector.shape_cast %101 : vector<16x2x16xf32> to vector<16x32xf32>
    %c0_40 = arith.constant 0 : index
    %c0_41 = arith.constant 0 : index
    %103 = vector.load %arg6[%c0_40, %c0_41] : memref<32x32xf32, #tpu.memory_space<vmem>>, vector<32x32xf32>
    %104 = arith.truncf %102 : vector<16x32xf32> to vector<16x32xbf16>
    %105 = arith.truncf %103 : vector<32x32xf32> to vector<32x32xbf16>
    %cst_42 = arith.constant dense<0.000000e+00> : vector<16x32xf32>
    %106 = tpu.matmul %104, %105, %cst_42 {dimension_numbers = #tpu.dot_dimension_numbers<[1], [0], [0], [1], [0, 0, 1, 1], [], []>} : vector<16x32xbf16>, vector<32x32xbf16>, vector<16x32xf32> -> vector<16x32xf32>
    %c0_43 = arith.constant 0 : index
    %c0_44 = arith.constant 0 : index
    %107 = vector.load %arg7[%c0_43, %c0_44] : memref<1x32xf32, #tpu.memory_space<vmem>>, vector<1x32xf32>
    %108 = vector.broadcast %107 : vector<1x32xf32> to vector<16x32xf32>
    %109 = arith.addf %106, %108 : vector<16x32xf32>
    %110 = arith.addf %72, %109 : vector<16x32xf32>
    %c0_45 = arith.constant 0 : index
    %c0_46 = arith.constant 0 : index
    %111 = vector.load %arg8[%c0_45, %c0_46] : memref<1x32xf32, #tpu.memory_space<vmem>>, vector<1x32xf32>
    %c0_47 = arith.constant 0 : index
    %c0_48 = arith.constant 0 : index
    %112 = vector.load %arg9[%c0_47, %c0_48] : memref<1x32xf32, #tpu.memory_space<vmem>>, vector<1x32xf32>
    %cst_49 = arith.constant dense<0.000000e+00> : vector<16xf32>
    %113 = vector.multi_reduction <add>, %110, %cst_49 [1] : vector<16x32xf32> to vector<16xf32>
    %114 = vector.shape_cast %113 : vector<16xf32> to vector<16x1xf32>
    %cst_50 = arith.constant 3.200000e+01 : f32
    %115 = vector.broadcast %cst_50 : f32 to vector<16x1xf32>
    %116 = arith.divf %114, %115 : vector<16x1xf32>
    %117 = vector.broadcast %116 : vector<16x1xf32> to vector<16x32xf32>
    %118 = arith.subf %110, %117 : vector<16x32xf32>
    %119 = arith.mulf %118, %118 : vector<16x32xf32>
    %cst_51 = arith.constant dense<0.000000e+00> : vector<16xf32>
    %120 = vector.multi_reduction <add>, %119, %cst_51 [1] : vector<16x32xf32> to vector<16xf32>
    %121 = vector.shape_cast %120 : vector<16xf32> to vector<16x1xf32>
    %cst_52 = arith.constant 3.200000e+01 : f32
    %122 = vector.broadcast %cst_52 : f32 to vector<16x1xf32>
    %123 = arith.divf %121, %122 : vector<16x1xf32>
    %124 = vector.broadcast %116 : vector<16x1xf32> to vector<16x32xf32>
    %125 = arith.subf %110, %124 : vector<16x32xf32>
    %cst_53 = arith.constant 9.99999974E-6 : f32
    %126 = vector.broadcast %cst_53 : f32 to vector<16x1xf32>
    %127 = arith.addf %123, %126 : vector<16x1xf32>
    %128 = math.rsqrt %127 : vector<16x1xf32>
    %129 = vector.broadcast %128 : vector<16x1xf32> to vector<16x32xf32>
    %130 = arith.mulf %125, %129 : vector<16x32xf32>
    %131 = vector.broadcast %111 : vector<1x32xf32> to vector<16x32xf32>
    %132 = arith.mulf %130, %131 : vector<16x32xf32>
    %133 = vector.broadcast %112 : vector<1x32xf32> to vector<16x32xf32>
    %134 = arith.addf %132, %133 : vector<16x32xf32>
    %c0_54 = arith.constant 0 : index
    %c0_55 = arith.constant 0 : index
    %c0_56 = arith.constant 0 : index
    %135 = vector.load %arg10[%c0_54, %c0_55, %c0_56] : memref<1x16x32xf32, #tpu.memory_space<vmem>>, vector<1x16x32xf32>
    %136 = vector.shape_cast %135 : vector<1x16x32xf32> to vector<16x32xf32>
    %137 = vector.shape_cast %134 : vector<16x32xf32> to vector<1x16x32xf32>
    tpu.vector_store %arg10[%c0_54, %c0_55, %c0_56], %137 {strides = array<i32>} : memref<1x16x32xf32, #tpu.memory_space<vmem>>, vector<1x16x32xf32>,
    return
  }
  func.func @transform_0(%arg0: i32) -> (i32, i32, i32) {
    %c0_i32 = arith.constant 0 : i32
    %c0_i32_0 = arith.constant 0 : i32
    %c0_i32_1 = arith.constant 0 : i32
    return %arg0, %c0_i32, %c0_i32_0 : i32, i32, i32
  }
  func.func @transform_1(%arg0: i32) -> (i32, i32) {
    %c0_i32 = arith.constant 0 : i32
    %c0_i32_0 = arith.constant 0 : i32
    %c0_i32_1 = arith.constant 0 : i32
    return %c0_i32, %c0_i32_0 : i32, i32
  }
  func.func @transform_2(%arg0: i32) -> (i32, i32) {
    %c0_i32 = arith.constant 0 : i32
    %c0_i32_0 = arith.constant 0 : i32
    %c0_i32_1 = arith.constant 0 : i32
    return %c0_i32, %c0_i32_0 : i32, i32
  }
  func.func @transform_3(%arg0: i32) -> (i32, i32) {
    %c0_i32 = arith.constant 0 : i32
    %c0_i32_0 = arith.constant 0 : i32
    %c0_i32_1 = arith.constant 0 : i32
    return %c0_i32, %c0_i32_0 : i32, i32
  }
  func.func @transform_4(%arg0: i32) -> (i32, i32) {
    %c0_i32 = arith.constant 0 : i32
    %c0_i32_0 = arith.constant 0 : i32
    %c0_i32_1 = arith.constant 0 : i32
    return %c0_i32, %c0_i32_0 : i32, i32
  }
  func.func @transform_5(%arg0: i32) -> (i32, i32) {
    %c0_i32 = arith.constant 0 : i32
    %c0_i32_0 = arith.constant 0 : i32
    %c0_i32_1 = arith.constant 0 : i32
    return %c0_i32, %c0_i32_0 : i32, i32
  }
  func.func @transform_6(%arg0: i32) -> (i32, i32) {
    %c0_i32 = arith.constant 0 : i32
    %c0_i32_0 = arith.constant 0 : i32
    %c0_i32_1 = arith.constant 0 : i32
    return %c0_i32, %c0_i32_0 : i32, i32
  }
  func.func @transform_7(%arg0: i32) -> (i32, i32) {
    %c0_i32 = arith.constant 0 : i32
    %c0_i32_0 = arith.constant 0 : i32
    %c0_i32_1 = arith.constant 0 : i32
    return %c0_i32, %c0_i32_0 : i32, i32
  }
  func.func @transform_8(%arg0: i32) -> (i32, i32) {
    %c0_i32 = arith.constant 0 : i32
    %c0_i32_0 = arith.constant 0 : i32
    %c0_i32_1 = arith.constant 0 : i32
    return %c0_i32, %c0_i32_0 : i32, i32
  }
  func.func @transform_9(%arg0: i32) -> (i32, i32, i32) {
    %c0_i32 = arith.constant 0 : i32
    %c0_i32_0 = arith.constant 0 : i32
    %c0_i32_1 = arith.constant 0 : i32
    return %arg0, %c0_i32, %c0_i32_0 : i32, i32, i32
  }
}

module attributes {stable_mosaic.version = 11 : i64} {
  func.func @_ope_refine_kernel(%arg0: memref<56x32xf32, #tpu.memory_space<vmem>>, %arg1: memref<2x32x32xf32, #tpu.memory_space<vmem>>, %arg2: memref<2x1x32xf32, #tpu.memory_space<vmem>>, %arg3: memref<2x56x32xf32, #tpu.memory_space<vmem>>) attributes {dimension_semantics = [], scalar_prefetch = 0 : i64, scratch_operands = 0 : i64, tpu.core_type = #tpu.core_type<tc>} {
    %c0 = arith.constant 0 : index
    %c0_0 = arith.constant 0 : index
    %0 = vector.load %arg0[%c0, %c0_0] : memref<56x32xf32, #tpu.memory_space<vmem>>, vector<56x32xf32>
    %c0_1 = arith.constant 0 : index
    %c0_2 = arith.constant 0 : index
    %c0_3 = arith.constant 0 : index
    %1 = vector.load %arg1[%c0_1, %c0_2, %c0_3] : memref<2x32x32xf32, #tpu.memory_space<vmem>>, vector<1x32x32xf32>
    %2 = vector.shape_cast %1 : vector<1x32x32xf32> to vector<32x32xf32>
    %3 = arith.truncf %0 : vector<56x32xf32> to vector<56x32xbf16>
    %4 = arith.truncf %2 : vector<32x32xf32> to vector<32x32xbf16>
    %cst = arith.constant dense<0.000000e+00> : vector<56x32xf32>
    %5 = tpu.matmul %3, %4, %cst {dimension_numbers = #tpu.dot_dimension_numbers<[1], [0], [0], [1], [0, 0, 1, 1], [], []>} : vector<56x32xbf16>, vector<32x32xbf16>, vector<56x32xf32> -> vector<56x32xf32>
    %c0_4 = arith.constant 0 : index
    %c0_5 = arith.constant 0 : index
    %c0_6 = arith.constant 0 : index
    %6 = vector.load %arg2[%c0_4, %c0_5, %c0_6] : memref<2x1x32xf32, #tpu.memory_space<vmem>>, vector<1x1x32xf32>
    %7 = vector.shape_cast %6 : vector<1x1x32xf32> to vector<1x32xf32>
    %8 = vector.broadcast %7 : vector<1x32xf32> to vector<56x32xf32>
    %9 = arith.addf %5, %8 : vector<56x32xf32>
    %10 = arith.mulf %9, %9 : vector<56x32xf32>
    %11 = arith.mulf %9, %10 : vector<56x32xf32>
    %cst_7 = arith.constant 4.471500e-02 : f32
    %12 = vector.broadcast %cst_7 : f32 to vector<56x32xf32>
    %13 = arith.mulf %12, %11 : vector<56x32xf32>
    %14 = arith.addf %9, %13 : vector<56x32xf32>
    %cst_8 = arith.constant 0.797884583 : f32
    %15 = vector.broadcast %cst_8 : f32 to vector<56x32xf32>
    %16 = arith.mulf %15, %14 : vector<56x32xf32>
    %17 = math.tanh %16 : vector<56x32xf32>
    %cst_9 = arith.constant 1.000000e+00 : f32
    %18 = vector.broadcast %cst_9 : f32 to vector<56x32xf32>
    %19 = arith.addf %18, %17 : vector<56x32xf32>
    %cst_10 = arith.constant 5.000000e-01 : f32
    %20 = vector.broadcast %cst_10 : f32 to vector<56x32xf32>
    %21 = arith.mulf %20, %19 : vector<56x32xf32>
    %22 = arith.mulf %9, %21 : vector<56x32xf32>
    %23 = arith.addf %22, %0 : vector<56x32xf32>
    %c0_11 = arith.constant 0 : index
    %c0_12 = arith.constant 0 : index
    %c0_13 = arith.constant 0 : index
    %24 = vector.load %arg3[%c0_11, %c0_12, %c0_13] : memref<2x56x32xf32, #tpu.memory_space<vmem>>, vector<1x56x32xf32>
    %25 = vector.shape_cast %24 : vector<1x56x32xf32> to vector<56x32xf32>
    %26 = vector.shape_cast %23 : vector<56x32xf32> to vector<1x56x32xf32>
    tpu.vector_store %arg3[%c0_11, %c0_12, %c0_13], %26 {strides = array<i32>} : memref<2x56x32xf32, #tpu.memory_space<vmem>>, vector<1x56x32xf32>,
    %c1 = arith.constant 1 : index
    %c0_14 = arith.constant 0 : index
    %c0_15 = arith.constant 0 : index
    %27 = vector.load %arg1[%c1, %c0_14, %c0_15] : memref<2x32x32xf32, #tpu.memory_space<vmem>>, vector<1x32x32xf32>
    %28 = vector.shape_cast %27 : vector<1x32x32xf32> to vector<32x32xf32>
    %29 = arith.truncf %23 : vector<56x32xf32> to vector<56x32xbf16>
    %30 = arith.truncf %28 : vector<32x32xf32> to vector<32x32xbf16>
    %cst_16 = arith.constant dense<0.000000e+00> : vector<56x32xf32>
    %31 = tpu.matmul %29, %30, %cst_16 {dimension_numbers = #tpu.dot_dimension_numbers<[1], [0], [0], [1], [0, 0, 1, 1], [], []>} : vector<56x32xbf16>, vector<32x32xbf16>, vector<56x32xf32> -> vector<56x32xf32>
    %c1_17 = arith.constant 1 : index
    %c0_18 = arith.constant 0 : index
    %c0_19 = arith.constant 0 : index
    %32 = vector.load %arg2[%c1_17, %c0_18, %c0_19] : memref<2x1x32xf32, #tpu.memory_space<vmem>>, vector<1x1x32xf32>
    %33 = vector.shape_cast %32 : vector<1x1x32xf32> to vector<1x32xf32>
    %34 = vector.broadcast %33 : vector<1x32xf32> to vector<56x32xf32>
    %35 = arith.addf %31, %34 : vector<56x32xf32>
    %36 = arith.mulf %35, %35 : vector<56x32xf32>
    %37 = arith.mulf %35, %36 : vector<56x32xf32>
    %cst_20 = arith.constant 4.471500e-02 : f32
    %38 = vector.broadcast %cst_20 : f32 to vector<56x32xf32>
    %39 = arith.mulf %38, %37 : vector<56x32xf32>
    %40 = arith.addf %35, %39 : vector<56x32xf32>
    %cst_21 = arith.constant 0.797884583 : f32
    %41 = vector.broadcast %cst_21 : f32 to vector<56x32xf32>
    %42 = arith.mulf %41, %40 : vector<56x32xf32>
    %43 = math.tanh %42 : vector<56x32xf32>
    %cst_22 = arith.constant 1.000000e+00 : f32
    %44 = vector.broadcast %cst_22 : f32 to vector<56x32xf32>
    %45 = arith.addf %44, %43 : vector<56x32xf32>
    %cst_23 = arith.constant 5.000000e-01 : f32
    %46 = vector.broadcast %cst_23 : f32 to vector<56x32xf32>
    %47 = arith.mulf %46, %45 : vector<56x32xf32>
    %48 = arith.mulf %35, %47 : vector<56x32xf32>
    %49 = arith.addf %48, %23 : vector<56x32xf32>
    %c1_24 = arith.constant 1 : index
    %c0_25 = arith.constant 0 : index
    %c0_26 = arith.constant 0 : index
    %50 = vector.load %arg3[%c1_24, %c0_25, %c0_26] : memref<2x56x32xf32, #tpu.memory_space<vmem>>, vector<1x56x32xf32>
    %51 = vector.shape_cast %50 : vector<1x56x32xf32> to vector<56x32xf32>
    %52 = vector.shape_cast %49 : vector<56x32xf32> to vector<1x56x32xf32>
    tpu.vector_store %arg3[%c1_24, %c0_25, %c0_26], %52 {strides = array<i32>} : memref<2x56x32xf32, #tpu.memory_space<vmem>>, vector<1x56x32xf32>,
    return
  }
}

module attributes {stable_mosaic.version = 11 : i64} {
  func.func @_corr_heads_kernel(%arg0: i32, %arg1: memref<1x6x6x32xf32, #tpu.memory_space<vmem>>, %arg2: memref<2x1x3x9x1x32xf32, #tpu.memory_space<vmem>>, %arg3: memref<2x32xf32, #tpu.memory_space<vmem>>, %arg4: memref<2x1xf32, #tpu.memory_space<vmem>>, %arg5: memref<1x2x16xf32, #tpu.memory_space<vmem>>) attributes {dimension_semantics = [#tpu.dimension_semantics<parallel>], iteration_bounds = array<i64: 2>, scalar_prefetch = 0 : i64, scratch_operands = 0 : i64, tpu.core_type = #tpu.core_type<tc>, window_params = [{transform_indices = @transform_0, window_bounds = array<i64: 1, 6, 6, 32>}, {transform_indices = @transform_1, window_bounds = array<i64: 2, 1, 3, 9, 1, 32>}, {pipeline_mode = #tpu.pipeline_mode<synchronous>, transform_indices = @transform_2, window_bounds = array<i64: 2, 32>}, {pipeline_mode = #tpu.pipeline_mode<synchronous>, transform_indices = @transform_3, window_bounds = array<i64: 2, 1>}, {transform_indices = @transform_4, window_bounds = array<i64: 1, 2, 16>}]} {
    %c0 = arith.constant 0 : index
    %c0_0 = arith.constant 0 : index
    %c0_1 = arith.constant 0 : index
    %c0_2 = arith.constant 0 : index
    %0 = vector.load %arg1[%c0, %c0_0, %c0_1, %c0_2] : memref<1x6x6x32xf32, #tpu.memory_space<vmem>>, vector<1x6x6x32xf32>
    %1 = vector.shape_cast %0 : vector<1x6x6x32xf32> to vector<6x6x32xf32>
    %2 = vector.extract_strided_slice %1 {offsets = [0, 0, 0], sizes = [4, 4, 32], strides = [1, 1, 1]} : vector<6x6x32xf32> to vector<4x4x32xf32>
    %3 = vector.shape_cast %2 : vector<4x4x32xf32> to vector<16x32xf32>
    %4 = vector.extract_strided_slice %1 {offsets = [0, 1, 0], sizes = [4, 4, 32], strides = [1, 1, 1]} : vector<6x6x32xf32> to vector<4x4x32xf32>
    %5 = vector.shape_cast %4 : vector<4x4x32xf32> to vector<16x32xf32>
    %6 = vector.extract_strided_slice %1 {offsets = [0, 2, 0], sizes = [4, 4, 32], strides = [1, 1, 1]} : vector<6x6x32xf32> to vector<4x4x32xf32>
    %7 = vector.shape_cast %6 : vector<4x4x32xf32> to vector<16x32xf32>
    %8 = vector.extract_strided_slice %1 {offsets = [1, 0, 0], sizes = [4, 4, 32], strides = [1, 1, 1]} : vector<6x6x32xf32> to vector<4x4x32xf32>
    %9 = vector.shape_cast %8 : vector<4x4x32xf32> to vector<16x32xf32>
    %10 = vector.extract_strided_slice %1 {offsets = [1, 1, 0], sizes = [4, 4, 32], strides = [1, 1, 1]} : vector<6x6x32xf32> to vector<4x4x32xf32>
    %11 = vector.shape_cast %10 : vector<4x4x32xf32> to vector<16x32xf32>
    %12 = vector.extract_strided_slice %1 {offsets = [1, 2, 0], sizes = [4, 4, 32], strides = [1, 1, 1]} : vector<6x6x32xf32> to vector<4x4x32xf32>
    %13 = vector.shape_cast %12 : vector<4x4x32xf32> to vector<16x32xf32>
    %14 = vector.extract_strided_slice %1 {offsets = [2, 0, 0], sizes = [4, 4, 32], strides = [1, 1, 1]} : vector<6x6x32xf32> to vector<4x4x32xf32>
    %15 = vector.shape_cast %14 : vector<4x4x32xf32> to vector<16x32xf32>
    %16 = vector.extract_strided_slice %1 {offsets = [2, 1, 0], sizes = [4, 4, 32], strides = [1, 1, 1]} : vector<6x6x32xf32> to vector<4x4x32xf32>
    %17 = vector.shape_cast %16 : vector<4x4x32xf32> to vector<16x32xf32>
    %18 = vector.extract_strided_slice %1 {offsets = [2, 2, 0], sizes = [4, 4, 32], strides = [1, 1, 1]} : vector<6x6x32xf32> to vector<4x4x32xf32>
    %19 = vector.shape_cast %18 : vector<4x4x32xf32> to vector<16x32xf32>
    %20 = vector.shape_cast %3 : vector<16x32xf32> to vector<1x16x32xf32>
    %21 = vector.shape_cast %5 : vector<16x32xf32> to vector<1x16x32xf32>
    %22 = vector.shape_cast %7 : vector<16x32xf32> to vector<1x16x32xf32>
    %23 = vector.shape_cast %9 : vector<16x32xf32> to vector<1x16x32xf32>
    %24 = vector.shape_cast %11 : vector<16x32xf32> to vector<1x16x32xf32>
    %25 = vector.shape_cast %13 : vector<16x32xf32> to vector<1x16x32xf32>
    %26 = vector.shape_cast %15 : vector<16x32xf32> to vector<1x16x32xf32>
    %27 = vector.shape_cast %17 : vector<16x32xf32> to vector<1x16x32xf32>
    %28 = vector.shape_cast %19 : vector<16x32xf32> to vector<1x16x32xf32>
    %29 = tpu.concatenate %20, %21, %22, %23, %24, %25, %26, %27, %28 in 0 : vector<1x16x32xf32>, vector<1x16x32xf32>, vector<1x16x32xf32>, vector<1x16x32xf32>, vector<1x16x32xf32>, vector<1x16x32xf32>, vector<1x16x32xf32>, vector<1x16x32xf32>, vector<1x16x32xf32> -> vector<9x16x32xf32>
    %c0_3 = arith.constant 0 : index
    %c0_4 = arith.constant 0 : index
    %c0_5 = arith.constant 0 : index
    %c0_6 = arith.constant 0 : index
    %c0_7 = arith.constant 0 : index
    %c0_8 = arith.constant 0 : index
    %30 = vector.load %arg2[%c0_3, %c0_4, %c0_5, %c0_6, %c0_7, %c0_8] : memref<2x1x3x9x1x32xf32, #tpu.memory_space<vmem>>, vector<1x1x3x9x1x32xf32>
    %31 = vector.shape_cast %30 : vector<1x1x3x9x1x32xf32> to vector<3x9x1x32xf32>
    %32 = vector.shape_cast %29 : vector<9x16x32xf32> to vector<1x9x16x32xf32>
    %33 = vector.broadcast %32 : vector<1x9x16x32xf32> to vector<3x9x16x32xf32>
    %34 = vector.broadcast %31 : vector<3x9x1x32xf32> to vector<3x9x16x32xf32>
    %35 = arith.mulf %33, %34 : vector<3x9x16x32xf32>
    %cst = arith.constant dense<0.000000e+00> : vector<3x16x32xf32>
    %36 = vector.multi_reduction <add>, %35, %cst [1] : vector<3x9x16x32xf32> to vector<3x16x32xf32>
    %cst_9 = arith.constant dense<0xFF800000> : vector<16x32xf32>
    %37 = vector.multi_reduction <maximumf>, %36, %cst_9 [0] : vector<3x16x32xf32> to vector<16x32xf32>
    %c0_10 = arith.constant 0 : index
    %c0_11 = arith.constant 0 : index
    %38 = vector.load %arg3[%c0_10, %c0_11] : memref<2x32xf32, #tpu.memory_space<vmem>>, vector<1x32xf32>
    %39 = vector.shape_cast %38 : vector<1x32xf32> to vector<32xf32>
    %40 = vector.shape_cast %39 : vector<32xf32> to vector<1x32xf32>
    %41 = vector.broadcast %40 : vector<1x32xf32> to vector<16x32xf32>
    %42 = arith.mulf %37, %41 : vector<16x32xf32>
    %cst_12 = arith.constant dense<0.000000e+00> : vector<16xf32>
    %43 = vector.multi_reduction <add>, %42, %cst_12 [1] : vector<16x32xf32> to vector<16xf32>
    %c0_13 = arith.constant 0 : index
    %c0_14 = arith.constant 0 : index
    %44 = vector.load %arg4[%c0_13, %c0_14] : memref<2x1xf32, #tpu.memory_space<vmem>>, vector<1x1xf32>
    %45 = vector.shape_cast %44 : vector<1x1xf32> to vector<1xf32>
    %46 = vector.broadcast %45 : vector<1xf32> to vector<16xf32>
    %47 = arith.addf %43, %46 : vector<16xf32>
    %cst_15 = arith.constant 0.000000e+00 : f32
    %48 = vector.broadcast %cst_15 : f32 to vector<16xf32>
    %49 = arith.maximumf %47, %48 : vector<16xf32>
    %c1 = arith.constant 1 : index
    %c0_16 = arith.constant 0 : index
    %c0_17 = arith.constant 0 : index
    %c0_18 = arith.constant 0 : index
    %c0_19 = arith.constant 0 : index
    %c0_20 = arith.constant 0 : index
    %50 = vector.load %arg2[%c1, %c0_16, %c0_17, %c0_18, %c0_19, %c0_20] : memref<2x1x3x9x1x32xf32, #tpu.memory_space<vmem>>, vector<1x1x3x9x1x32xf32>
    %51 = vector.shape_cast %50 : vector<1x1x3x9x1x32xf32> to vector<3x9x1x32xf32>
    %52 = vector.shape_cast %29 : vector<9x16x32xf32> to vector<1x9x16x32xf32>
    %53 = vector.broadcast %52 : vector<1x9x16x32xf32> to vector<3x9x16x32xf32>
    %54 = vector.broadcast %51 : vector<3x9x1x32xf32> to vector<3x9x16x32xf32>
    %55 = arith.mulf %53, %54 : vector<3x9x16x32xf32>
    %cst_21 = arith.constant dense<0.000000e+00> : vector<3x16x32xf32>
    %56 = vector.multi_reduction <add>, %55, %cst_21 [1] : vector<3x9x16x32xf32> to vector<3x16x32xf32>
    %cst_22 = arith.constant dense<0xFF800000> : vector<16x32xf32>
    %57 = vector.multi_reduction <maximumf>, %56, %cst_22 [0] : vector<3x16x32xf32> to vector<16x32xf32>
    %c1_23 = arith.constant 1 : index
    %c0_24 = arith.constant 0 : index
    %58 = vector.load %arg3[%c1_23, %c0_24] : memref<2x32xf32, #tpu.memory_space<vmem>>, vector<1x32xf32>
    %59 = vector.shape_cast %58 : vector<1x32xf32> to vector<32xf32>
    %60 = vector.shape_cast %59 : vector<32xf32> to vector<1x32xf32>
    %61 = vector.broadcast %60 : vector<1x32xf32> to vector<16x32xf32>
    %62 = arith.mulf %57, %61 : vector<16x32xf32>
    %cst_25 = arith.constant dense<0.000000e+00> : vector<16xf32>
    %63 = vector.multi_reduction <add>, %62, %cst_25 [1] : vector<16x32xf32> to vector<16xf32>
    %c1_26 = arith.constant 1 : index
    %c0_27 = arith.constant 0 : index
    %64 = vector.load %arg4[%c1_26, %c0_27] : memref<2x1xf32, #tpu.memory_space<vmem>>, vector<1x1xf32>
    %65 = vector.shape_cast %64 : vector<1x1xf32> to vector<1xf32>
    %66 = vector.broadcast %65 : vector<1xf32> to vector<16xf32>
    %67 = arith.addf %63, %66 : vector<16xf32>
    %cst_28 = arith.constant 0.000000e+00 : f32
    %68 = vector.broadcast %cst_28 : f32 to vector<16xf32>
    %69 = arith.maximumf %67, %68 : vector<16xf32>
    %70 = vector.shape_cast %49 : vector<16xf32> to vector<1x16xf32>
    %71 = vector.shape_cast %69 : vector<16xf32> to vector<1x16xf32>
    %72 = tpu.concatenate %70, %71 in 0 : vector<1x16xf32>, vector<1x16xf32> -> vector<2x16xf32>
    %c0_29 = arith.constant 0 : index
    %c0_30 = arith.constant 0 : index
    %c0_31 = arith.constant 0 : index
    %73 = vector.load %arg5[%c0_29, %c0_30, %c0_31] : memref<1x2x16xf32, #tpu.memory_space<vmem>>, vector<1x2x16xf32>
    %74 = vector.shape_cast %73 : vector<1x2x16xf32> to vector<2x16xf32>
    %75 = vector.shape_cast %72 : vector<2x16xf32> to vector<1x2x16xf32>
    tpu.vector_store %arg5[%c0_29, %c0_30, %c0_31], %75 {strides = array<i32>} : memref<1x2x16xf32, #tpu.memory_space<vmem>>, vector<1x2x16xf32>,
    return
  }
  func.func @transform_0(%arg0: i32) -> (i32, i32, i32, i32) {
    %c0_i32 = arith.constant 0 : i32
    %c0_i32_0 = arith.constant 0 : i32
    %c0_i32_1 = arith.constant 0 : i32
    %c0_i32_2 = arith.constant 0 : i32
    return %arg0, %c0_i32, %c0_i32_0, %c0_i32_1 : i32, i32, i32, i32
  }
  func.func @transform_1(%arg0: i32) -> (i32, i32, i32, i32, i32, i32) {
    %c0_i32 = arith.constant 0 : i32
    %c0_i32_0 = arith.constant 0 : i32
    %c0_i32_1 = arith.constant 0 : i32
    %c0_i32_2 = arith.constant 0 : i32
    %c0_i32_3 = arith.constant 0 : i32
    %c0_i32_4 = arith.constant 0 : i32
    return %c0_i32, %arg0, %c0_i32_0, %c0_i32_1, %c0_i32_2, %c0_i32_3 : i32, i32, i32, i32, i32, i32
  }
  func.func @transform_2(%arg0: i32) -> (i32, i32) {
    %c0_i32 = arith.constant 0 : i32
    %c0_i32_0 = arith.constant 0 : i32
    %c0_i32_1 = arith.constant 0 : i32
    return %c0_i32, %c0_i32_0 : i32, i32
  }
  func.func @transform_3(%arg0: i32) -> (i32, i32) {
    %c0_i32 = arith.constant 0 : i32
    %c0_i32_0 = arith.constant 0 : i32
    %c0_i32_1 = arith.constant 0 : i32
    return %c0_i32, %c0_i32_0 : i32, i32
  }
  func.func @transform_4(%arg0: i32) -> (i32, i32, i32) {
    %c0_i32 = arith.constant 0 : i32
    %c0_i32_0 = arith.constant 0 : i32
    %c0_i32_1 = arith.constant 0 : i32
    return %arg0, %c0_i32, %c0_i32_0 : i32, i32, i32
  }
}

</mosaic_0001>

<bundles_post_ra>
// kernel: cos.4
= control target key start
LH: loop header
LB: loop body
LE: loop exit
PB: predicated region body
PF: predicated region fallthrough
CT: control target
= control target key end

     0   :  { %v168_v12 = vmov 683565275   ;;  %v169_v14 = vmov 2475754826   ;;  %v170_v16 = vmov 2131351028   ;;  %s245_s0 = inlined_call_operand.vmem [shape: f32[4,8], index: 0, kind: input, shape index: {}]   ;;  %s246_s1 = inlined_call_operand.vmem [shape: f32[4,8], index: 1, kind: output, shape index: {}]  }
   0x1   :  { %v188_v0 = vld [vmem:[%s245_s0] sm:$0xff]  ;;  %v171_v18 = vmov 2102212464   ;;  %v172_v20 = vmov 920167782  }
   0x2   :  { %v6_v1 = vand.u32 2139095040, %v188_v0  ;;  %v3_v3 = vand.u32 2147483647, %v188_v0  ;;  %v173_v26 = vmov 1326507024   ;;  %vm5_vm12 = vcmp.lt.s32.totalorder %v188_v0, 0 }
   0x4   :  { %v7_v2 = vshrl.u32 %v6_v1, 23  ;;  %v10_v6 = vand.u32 8388607, %v3_v3  ;;  %v174_v1 = vmov 0   ;;  %vm232_vm13 = vcmp.le.f32.partialorder %v3_v3, 0.7853982 }
   0x6   :  { %v158_v4 = vadd.s32 4294967169, %v7_v2  ;;  %v11_v9 = vor.u32 8388608, %v10_v6 }
   0x8   :  { %v13_v5 = vadd.s32 1, %v158_v4  ;;  %v197_v28 = vshll.u32 %v11_v9, 8 }
   0xa   :  { %vm14_vm0 = vcmp.gt.s32.totalorder %v13_v5, 0  ;;  %v52_v40 = vand.u32 65535, %v197_v28  ;;  %v53_v41 = vshrl.u32 %v197_v28, 16 }
   0xb   :  { %v15_v7 = vsel %vm14_vm0, %v13_v5, 0 }
   0xc   :  { %v17_v8 = vand.u32 31, %v15_v7  ;;  %v194_v10 = vshrl.u32 %v15_v7, 5 }
   0xe   :  { %v18_v11 = vsub.s32 32, %v17_v8  ;;  %v20_v13 = vshll.u32 %v168_v12, %v17_v8  ;;  %v23_v15 = vshll.u32 %v169_v14, %v17_v8  ;;  %v26_v17 = vshll.u32 %v170_v16, %v17_v8 }
   0xf   :  { %v29_v19 = vshll.u32 %v171_v18, %v17_v8  ;;  %v32_v21 = vshll.u32 %v172_v20, %v17_v8  ;;  %vm35_vm1 = vcmp.lt.s32.totalorder %v194_v10, 1  ;;  %vm38_vm2 = vcmp.lt.s32.totalorder %v194_v10, 4 }
  0x10   :  { %v21_v22 = vshrl.u32 %v169_v14, %v18_v11  ;;  %v24_v23 = vshrl.u32 %v170_v16, %v18_v11  ;;  %v27_v24 = vshrl.u32 %v171_v18, %v18_v11  ;;  %v30_v25 = vshrl.u32 %v172_v20, %v18_v11 }
  0x11   :  { %v33_v27 = vshrl.u32 %v173_v26, %v18_v11  ;;  %vm37_vm3 = vcmp.lt.s32.totalorder %v194_v10, 3  ;;  %vm36_vm4 = vcmp.lt.s32.totalorder %v194_v10, 2  ;;  %v19_v48 = vshrl.u32 %v168_v12, %v18_v11 }
  0x12   :  { %v22_v29 = vor.u32 %v21_v22, %v20_v13  ;;  %v25_v30 = vor.u32 %v24_v23, %v23_v15  ;;  %v28_v31 = vor.u32 %v27_v24, %v26_v17  ;;  %v31_v32 = vor.u32 %v30_v25, %v29_v19 }
  0x13   :  { %v34_v33 = vor.u32 %v33_v27, %v32_v21 }
  0x14   :  { %v43_v34 = vsel %vm35_vm1, %v22_v29, %v25_v30  ;;  %v47_v35 = vsel %vm35_vm1, %v25_v30, %v28_v31  ;;  %v44_v36 = vsel %vm38_vm2, %v31_v32, 920167782  ;;  %v39_v61 = vsel %vm35_vm1, %v19_v48, %v22_v29 }
  0x15   :  { %v48_v37 = vsel %vm38_vm2, %v34_v33, 1326507024  ;;  %v45_v38 = vsel %vm37_vm3, %v28_v31, %v44_v36  ;;  %v40_v63 = vsel %vm38_vm2, %v28_v31, 2102212464  ;;  %vm146_vm1 = vweird.f32 %v188_v0 }
  0x16   :  { %v49_v39 = vsel %vm37_vm3, %v31_v32, %v48_v37  ;;  %v46_v42 = vsel %vm36_vm4, %v43_v34, %v45_v38  ;;  %v41_v12 = vsel %vm37_vm3, %v25_v30, %v40_v63 }
  0x17   :  { %v50_v43 = vsel %vm36_vm4, %v47_v35, %v49_v39  ;;  %v76_v46 = vand.u32 65535, %v46_v42  ;;  %v77_v47 = vshrl.u32 %v46_v42, 16  ;;  %v42_v10 = vsel %vm36_vm4, %v39_v61, %v41_v12 }
  0x18   :  { %v54_v44 = vand.u32 65535, %v50_v43  ;;  %v55_v45 = vshrl.u32 %v50_v43, 16  ;;  %v96_v23 = vmul.u32 %v197_v28, %v42_v10 }
  0x19   :  { %v78_v52 = vmul.u32 %v76_v46, %v52_v40  ;;  %v79_v53 = vmul.u32 %v77_v47, %v52_v40  ;;  %v80_v54 = vmul.u32 %v76_v46, %v53_v41  ;;  %v81_v58 = vmul.u32 %v77_v47, %v53_v41 }
  0x1a   :  { %v56_v49 = vmul.u32 %v54_v44, %v52_v40  ;;  %v57_v50 = vmul.u32 %v55_v45, %v52_v40  ;;  %v58_v51 = vmul.u32 %v54_v44, %v53_v41  ;;  %v59_v55 = vmul.u32 %v55_v45, %v53_v41 }
  0x1b   :  { %v82_v59 = vshll.u32 %v79_v53, 16  ;;  %v84_v60 = vshll.u32 %v80_v54, 16  ;;  %v83_v9 = vshrl.u32 %v79_v53, 16  ;;  %v85_v16 = vshrl.u32 %v80_v54, 16 }
  0x1c   :  { %v60_v56 = vshll.u32 %v57_v50, 16  ;;  %v62_v57 = vshll.u32 %v58_v51, 16  ;;  %v61_v5 = vshrl.u32 %v57_v50, 16  ;;  %v63_v13 = vshrl.u32 %v58_v51, 16 }
  0x1d   :  { %vm86_vm6 = vc.u32 %v78_v52, %v82_v59  ;;  %v88_v4 = vadd.s32 %v82_v59, %v78_v52 }
  0x1e   :  { %vm64_vm5 = vc.u32 %v56_v49, %v60_v56  ;;  %v66_v62 = vadd.s32 %v60_v56, %v56_v49  ;;  %v87_v7 = vsel %vm86_vm6, 1, %v174_v1 }
  0x1f   :  { %v65_v2 = vsel %vm64_vm5, 1, %v174_v1  ;;  %v89_v11 = vadd.s32 %v87_v7, %v81_v58  ;;  %vm90_vm8 = vc.u32 %v88_v4, %v84_v60  ;;  %v92_v19 = vadd.s32 %v88_v4, %v84_v60 }
  0x20   :  { %v67_v6 = vadd.s32 %v65_v2, %v59_v55  ;;  %vm68_vm7 = vc.u32 %v66_v62, %v62_v57  ;;  %v91_v15 = vsel %vm90_vm8, 1, %v174_v1 }
  0x21   :  { %v69_v8 = vsel %vm68_vm7, 1, %v174_v1  ;;  %v93_v17 = vadd.s32 %v91_v15, %v89_v11 }
  0x22   :  { %v71_v14 = vadd.s32 %v69_v8, %v67_v6 }
  0x23   :  { %v94_v20 = vadd.s32 %v93_v17, %v83_v9 }
  0x24   :  { %v72_v18 = vadd.s32 %v71_v14, %v61_v5 }
  0x25   :  { %v95_v22 = vadd.s32 %v94_v20, %v85_v16 }
  0x26   :  { %v73_v21 = vadd.s32 %v72_v18, %v63_v13 }
  0x27   :  { %v99_v24 = vadd.s32 1, %v95_v22 }
  0x28   :  { %vm98_vm9 = vc.u32 %v73_v21, %v92_v19  ;;  %v97_v35 = vadd.s32 %v92_v19, %v73_v21 }
  0x29   :  { %v100_v25 = vsel %vm98_vm9, %v99_v24, %v95_v22 }
  0x2a   :  { %v101_v26 = vadd.s32 %v100_v25, %v96_v23 }
  0x2c   :  { %v102_v27 = vadd.s32 536870912, %v101_v26 }
  0x2e   :  { %v103_v28 = vshrl.u32 %v102_v27, 30 }
  0x30   :  { %v104_v29 = vshll.u32 %v103_v28, 30  ;;  %v127_v50 = vsub.s32 4, %v103_v28 }
  0x32   :  { %v105_v30 = vsub.s32 %v101_v26, %v104_v29  ;;  %v128_v55 = vsel %vm5_vm12, %v127_v50, %v103_v28 }
  0x33   :  { %v130_v58 = vsel %vm232_vm13, 0, %v128_v55 }
  0x34   :  { %vm106_vm10 = vcmp.lt.s32.totalorder %v105_v30, 0  ;;  %v107_v31 = vsub.s32 0, %v105_v30  ;;  %v147_v63 = vand.u32 3, %v130_v58 }
  0x36   :  { %v108_v32 = vsel %vm106_vm10, %v107_v31, %v105_v30  ;;  %vm152_vm14 = vcmp.eq.s32.totalorder %v147_v63, 2  ;;  %vm149_vm15 = vcmp.eq.s32.totalorder %v147_v63, 0  ;;  %vm148_vm0 = vcmp.lt.s32.totalorder %v147_v63, 2 }
  0x37   :  { %v109_v33 = vclz %v108_v32 }
  0x39   :  { %v159_v34 = vadd.s32 4294967294, %v109_v33 }
  0x3b   :  { %vm160_vm11 = vcmp.lt.s32.totalorder %v159_v34, 0 }
  0x3c   :  { %v112_v36 = vsel %vm160_vm11, 0, %v159_v34 }
  0x3d   :  { %v113_v37 = vsub.s32 32, %v112_v36  ;;  %v114_v38 = vshll.u32 %v105_v30, %v112_v36  ;;  %v117_v39 = vsub.s32 4294967266, %v112_v36 }
  0x3f   :  { %v115_v40 = vshrl.u32 %v97_v35, %v113_v37  ;;  %v118_v41 = vadd.s32 127, %v117_v39 }
  0x41   :  { %v116_v42 = vor.u32 %v115_v40, %v114_v38  ;;  %v119_v43 = vshll.u32 %v118_v41, 23 }
  0x43   :  { %v120_v44 = vor.u32 4788187, %v119_v43  ;;  %v123_v45 = vcvt.s32.f32 %v116_v42 }
  0x45   :  { %v121_v46 = vand.u32 2147483647, %v120_v44 }
  0x47   :  { %v124_v47 = vmul.f32 %v123_v45, %v121_v46 }
  0x49   :  { %v125_v48 = vxor.u32 2147483648, %v124_v47 }
  0x4b   :  { %v126_v49 = vsel %vm5_vm12, %v125_v48, %v124_v47 }
  0x4c   :  { %v129_v51 = vsel %vm232_vm13, %v188_v0, %v126_v49 }
  0x4d   :  { %v131_v52 = vmul.f32 %v129_v51, %v129_v51 }
  0x4f   :  { %v132_v53 = vmul.f32 -0.001358992, %v131_v52  ;;  %v139_v54 = vmul.f32 -0.00019511016, %v131_v52 }
  0x51   :  { %v133_v56 = vadd.f32 0.041655596, %v132_v53  ;;  %v140_v57 = vadd.f32 0.008332121, %v139_v54 }
  0x53   :  { %v134_v59 = vmul.f32 %v133_v56, %v131_v52  ;;  %v141_v60 = vmul.f32 %v140_v57, %v131_v52 }
  0x55   :  { %v135_v61 = vadd.f32 -0.4999988, %v134_v59  ;;  %v142_v62 = vadd.f32 -0.16666654, %v141_v60 }
  0x57   :  { %v136_v1 = vmul.f32 %v135_v61, %v131_v52  ;;  %v143_v2 = vmul.f32 %v142_v62, %v131_v52 }
  0x59   :  { %v137_v4 = vadd.f32 1.0, %v136_v1  ;;  %v144_v5 = vadd.f32 1.0, %v143_v2 }
  0x5b   :  { %v145_v6 = vmul.f32 %v144_v5, %v129_v51  ;;  %v153_v7 = vxor.u32 2147483648, %v137_v4 }
  0x5d   :  { %v150_v8 = vxor.u32 2147483648, %v145_v6  ;;  %v154_v9 = vsel %vm152_vm14, %v153_v7, %v145_v6 }
  0x5f   :  { %v151_v0 = vsel %vm149_vm15, %v137_v4, %v150_v8 }
  0x60   :  { %v155_v11 = vsel %vm148_vm0, %v151_v0, %v154_v9 }
  0x61   :  { %v156_v12 = vsel %vm146_vm1, nan, %v155_v11 }
  0x62   :  { %157 = vst [vmem:[%s246_s1] sm:$0xff] %v156_v12 }

// kernel: sin.4
= control target key start
LH: loop header
LB: loop body
LE: loop exit
PB: predicated region body
PF: predicated region fallthrough
CT: control target
= control target key end

     0   :  { %v169_v12 = vmov 683565275   ;;  %v170_v14 = vmov 2475754826   ;;  %v171_v16 = vmov 2131351028   ;;  %s238_s0 = inlined_call_operand.vmem [shape: f32[4,8], index: 0, kind: input, shape index: {}]   ;;  %s239_s1 = inlined_call_operand.vmem [shape: f32[4,8], index: 1, kind: output, shape index: {}]  }
   0x1   :  { %v189_v0 = vld [vmem:[%s238_s0] sm:$0xff]  ;;  %v172_v18 = vmov 2102212464   ;;  %v173_v20 = vmov 920167782  }
   0x2   :  { %v6_v1 = vand.u32 2139095040, %v189_v0  ;;  %v3_v3 = vand.u32 2147483647, %v189_v0  ;;  %v174_v26 = vmov 1326507024   ;;  %vm5_vm12 = vcmp.lt.s32.totalorder %v189_v0, 0 }
   0x4   :  { %v7_v2 = vshrl.u32 %v6_v1, 23  ;;  %v10_v6 = vand.u32 8388607, %v3_v3  ;;  %v175_v1 = vmov 0   ;;  %vm4_vm13 = vcmp.le.f32.partialorder %v3_v3, 0.7853982 }
   0x6   :  { %v159_v4 = vadd.s32 4294967169, %v7_v2  ;;  %v11_v9 = vor.u32 8388608, %v10_v6 }
   0x8   :  { %v13_v5 = vadd.s32 1, %v159_v4  ;;  %v198_v28 = vshll.u32 %v11_v9, 8 }
   0xa   :  { %vm14_vm0 = vcmp.gt.s32.totalorder %v13_v5, 0  ;;  %v52_v40 = vand.u32 65535, %v198_v28  ;;  %v53_v41 = vshrl.u32 %v198_v28, 16 }
   0xb   :  { %v15_v7 = vsel %vm14_vm0, %v13_v5, 0 }
   0xc   :  { %v17_v8 = vand.u32 31, %v15_v7  ;;  %v195_v10 = vshrl.u32 %v15_v7, 5 }
   0xe   :  { %v18_v11 = vsub.s32 32, %v17_v8  ;;  %v20_v13 = vshll.u32 %v169_v12, %v17_v8  ;;  %v23_v15 = vshll.u32 %v170_v14, %v17_v8  ;;  %v26_v17 = vshll.u32 %v171_v16, %v17_v8 }
   0xf   :  { %v29_v19 = vshll.u32 %v172_v18, %v17_v8  ;;  %v32_v21 = vshll.u32 %v173_v20, %v17_v8  ;;  %vm35_vm1 = vcmp.lt.s32.totalorder %v195_v10, 1  ;;  %vm38_vm2 = vcmp.lt.s32.totalorder %v195_v10, 4 }
  0x10   :  { %v21_v22 = vshrl.u32 %v170_v14, %v18_v11  ;;  %v24_v23 = vshrl.u32 %v171_v16, %v18_v11  ;;  %v27_v24 = vshrl.u32 %v172_v18, %v18_v11  ;;  %v30_v25 = vshrl.u32 %v173_v20, %v18_v11 }
  0x11   :  { %v33_v27 = vshrl.u32 %v174_v26, %v18_v11  ;;  %vm37_vm3 = vcmp.lt.s32.totalorder %v195_v10, 3  ;;  %vm36_vm4 = vcmp.lt.s32.totalorder %v195_v10, 2  ;;  %v19_v48 = vshrl.u32 %v169_v12, %v18_v11 }
  0x12   :  { %v22_v29 = vor.u32 %v21_v22, %v20_v13  ;;  %v25_v30 = vor.u32 %v24_v23, %v23_v15  ;;  %v28_v31 = vor.u32 %v27_v24, %v26_v17  ;;  %v31_v32 = vor.u32 %v30_v25, %v29_v19 }
  0x13   :  { %v34_v33 = vor.u32 %v33_v27, %v32_v21 }
  0x14   :  { %v43_v34 = vsel %vm35_vm1, %v22_v29, %v25_v30  ;;  %v47_v35 = vsel %vm35_vm1, %v25_v30, %v28_v31  ;;  %v44_v36 = vsel %vm38_vm2, %v31_v32, 920167782  ;;  %v39_v61 = vsel %vm35_vm1, %v19_v48, %v22_v29 }
  0x15   :  { %v48_v37 = vsel %vm38_vm2, %v34_v33, 1326507024  ;;  %v45_v38 = vsel %vm37_vm3, %v28_v31, %v44_v36  ;;  %v40_v63 = vsel %vm38_vm2, %v28_v31, 2102212464  ;;  %vm146_vm1 = vweird.f32 %v189_v0 }
  0x16   :  { %v49_v39 = vsel %vm37_vm3, %v31_v32, %v48_v37  ;;  %v46_v42 = vsel %vm36_vm4, %v43_v34, %v45_v38  ;;  %v41_v12 = vsel %vm37_vm3, %v25_v30, %v40_v63 }
  0x17   :  { %v50_v43 = vsel %vm36_vm4, %v47_v35, %v49_v39  ;;  %v76_v46 = vand.u32 65535, %v46_v42  ;;  %v77_v47 = vshrl.u32 %v46_v42, 16  ;;  %v42_v10 = vsel %vm36_vm4, %v39_v61, %v41_v12 }
  0x18   :  { %v54_v44 = vand.u32 65535, %v50_v43  ;;  %v55_v45 = vshrl.u32 %v50_v43, 16  ;;  %v96_v23 = vmul.u32 %v198_v28, %v42_v10 }
  0x19   :  { %v78_v52 = vmul.u32 %v76_v46, %v52_v40  ;;  %v79_v53 = vmul.u32 %v77_v47, %v52_v40  ;;  %v80_v54 = vmul.u32 %v76_v46, %v53_v41  ;;  %v81_v58 = vmul.u32 %v77_v47, %v53_v41 }
  0x1a   :  { %v56_v49 = vmul.u32 %v54_v44, %v52_v40  ;;  %v57_v50 = vmul.u32 %v55_v45, %v52_v40  ;;  %v58_v51 = vmul.u32 %v54_v44, %v53_v41  ;;  %v59_v55 = vmul.u32 %v55_v45, %v53_v41 }
  0x1b   :  { %v82_v59 = vshll.u32 %v79_v53, 16  ;;  %v84_v60 = vshll.u32 %v80_v54, 16  ;;  %v83_v9 = vshrl.u32 %v79_v53, 16  ;;  %v85_v16 = vshrl.u32 %v80_v54, 16 }
  0x1c   :  { %v60_v56 = vshll.u32 %v57_v50, 16  ;;  %v62_v57 = vshll.u32 %v58_v51, 16  ;;  %v61_v5 = vshrl.u32 %v57_v50, 16  ;;  %v63_v13 = vshrl.u32 %v58_v51, 16 }
  0x1d   :  { %vm86_vm6 = vc.u32 %v78_v52, %v82_v59  ;;  %v88_v4 = vadd.s32 %v82_v59, %v78_v52 }
  0x1e   :  { %vm64_vm5 = vc.u32 %v56_v49, %v60_v56  ;;  %v66_v62 = vadd.s32 %v60_v56, %v56_v49  ;;  %v87_v7 = vsel %vm86_vm6, 1, %v175_v1 }
  0x1f   :  { %v65_v2 = vsel %vm64_vm5, 1, %v175_v1  ;;  %v89_v11 = vadd.s32 %v87_v7, %v81_v58  ;;  %vm90_vm8 = vc.u32 %v88_v4, %v84_v60  ;;  %v92_v19 = vadd.s32 %v88_v4, %v84_v60 }
  0x20   :  { %v67_v6 = vadd.s32 %v65_v2, %v59_v55  ;;  %vm68_vm7 = vc.u32 %v66_v62, %v62_v57  ;;  %v91_v15 = vsel %vm90_vm8, 1, %v175_v1 }
  0x21   :  { %v69_v8 = vsel %vm68_vm7, 1, %v175_v1  ;;  %v93_v17 = vadd.s32 %v91_v15, %v89_v11 }
  0x22   :  { %v71_v14 = vadd.s32 %v69_v8, %v67_v6 }
  0x23   :  { %v94_v20 = vadd.s32 %v93_v17, %v83_v9 }
  0x24   :  { %v72_v18 = vadd.s32 %v71_v14, %v61_v5 }
  0x25   :  { %v95_v22 = vadd.s32 %v94_v20, %v85_v16 }
  0x26   :  { %v73_v21 = vadd.s32 %v72_v18, %v63_v13 }
  0x27   :  { %v99_v24 = vadd.s32 1, %v95_v22 }
  0x28   :  { %vm98_vm9 = vc.u32 %v73_v21, %v92_v19  ;;  %v97_v35 = vadd.s32 %v92_v19, %v73_v21 }
  0x29   :  { %v100_v25 = vsel %vm98_vm9, %v99_v24, %v95_v22 }
  0x2a   :  { %v101_v26 = vadd.s32 %v100_v25, %v96_v23 }
  0x2c   :  { %v102_v27 = vadd.s32 536870912, %v101_v26 }
  0x2e   :  { %v103_v28 = vshrl.u32 %v102_v27, 30 }
  0x30   :  { %v104_v29 = vshll.u32 %v103_v28, 30  ;;  %v127_v48 = vsub.s32 4, %v103_v28 }
  0x32   :  { %v105_v30 = vsub.s32 %v101_v26, %v104_v29  ;;  %v128_v50 = vsel %vm5_vm12, %v127_v48, %v103_v28 }
  0x33   :  { %v130_v53 = vsel %vm4_vm13, 0, %v128_v50 }
  0x34   :  { %vm106_vm10 = vcmp.lt.s32.totalorder %v105_v30, 0  ;;  %v107_v31 = vsub.s32 0, %v105_v30  ;;  %v147_v58 = vadd.s32 3, %v130_v53 }
  0x36   :  { %v108_v32 = vsel %vm106_vm10, %v107_v31, %v105_v30  ;;  %v148_v63 = vand.u32 3, %v147_v58 }
  0x37   :  { %v109_v33 = vclz %v108_v32 }
  0x38   :  { %vm153_vm14 = vcmp.eq.s32.totalorder %v148_v63, 2  ;;  %vm150_vm15 = vcmp.eq.s32.totalorder %v148_v63, 0  ;;  %vm149_vm0 = vcmp.lt.s32.totalorder %v148_v63, 2 }
  0x39   :  { %v160_v34 = vadd.s32 4294967294, %v109_v33 }
  0x3b   :  { %vm161_vm11 = vcmp.lt.s32.totalorder %v160_v34, 0 }
  0x3c   :  { %v112_v36 = vsel %vm161_vm11, 0, %v160_v34 }
  0x3d   :  { %v113_v37 = vsub.s32 32, %v112_v36  ;;  %v114_v38 = vshll.u32 %v105_v30, %v112_v36  ;;  %v117_v39 = vsub.s32 4294967266, %v112_v36 }
  0x3f   :  { %v115_v40 = vshrl.u32 %v97_v35, %v113_v37  ;;  %v118_v41 = vadd.s32 127, %v117_v39 }
  0x41   :  { %v116_v42 = vor.u32 %v115_v40, %v114_v38  ;;  %v119_v43 = vshll.u32 %v118_v41, 23 }
  0x43   :  { %v120_v44 = vor.u32 4788187, %v119_v43  ;;  %v123_v45 = vcvt.s32.f32 %v116_v42 }
  0x45   :  { %v121_v46 = vand.u32 2147483647, %v120_v44 }
  0x47   :  { %v124_v47 = vmul.f32 %v123_v45, %v121_v46 }
  0x49   :  { %v125_v3 = vxor.u32 2147483648, %v124_v47 }
  0x4b   :  { %v126_v49 = vsel %vm5_vm12, %v125_v3, %v124_v47 }
  0x4c   :  { %v129_v51 = vsel %vm4_vm13, %v189_v0, %v126_v49 }
  0x4d   :  { %v131_v52 = vmul.f32 %v129_v51, %v129_v51 }
  0x4f   :  { %v132_v54 = vmul.f32 -0.001358992, %v131_v52  ;;  %v139_v55 = vmul.f32 -0.00019511016, %v131_v52 }
  0x51   :  { %v133_v56 = vadd.f32 0.041655596, %v132_v54  ;;  %v140_v57 = vadd.f32 0.008332121, %v139_v55 }
  0x53   :  { %v134_v59 = vmul.f32 %v133_v56, %v131_v52  ;;  %v141_v60 = vmul.f32 %v140_v57, %v131_v52 }
  0x55   :  { %v135_v61 = vadd.f32 -0.4999988, %v134_v59  ;;  %v142_v62 = vadd.f32 -0.16666654, %v141_v60 }
  0x57   :  { %v136_v1 = vmul.f32 %v135_v61, %v131_v52  ;;  %v143_v2 = vmul.f32 %v142_v62, %v131_v52 }
  0x59   :  { %v137_v4 = vadd.f32 1.0, %v136_v1  ;;  %v144_v5 = vadd.f32 1.0, %v143_v2 }
  0x5b   :  { %v145_v6 = vmul.f32 %v144_v5, %v129_v51  ;;  %v154_v7 = vxor.u32 2147483648, %v137_v4 }
  0x5d   :  { %v151_v8 = vxor.u32 2147483648, %v145_v6  ;;  %v155_v9 = vsel %vm153_vm14, %v154_v7, %v145_v6 }
  0x5f   :  { %v152_v0 = vsel %vm150_vm15, %v137_v4, %v151_v8 }
  0x60   :  { %v156_v11 = vsel %vm149_vm0, %v152_v0, %v155_v9 }
  0x61   :  { %v157_v12 = vsel %vm146_vm1, nan, %v156_v11 }
  0x62   :  { %158 = vst [vmem:[%s239_s1] sm:$0xff] %v157_v12 }

// kernel: forward.8
= control target key start
LH: loop header
LB: loop body
LE: loop exit
PB: predicated region body
PF: predicated region fallthrough
CT: control target
= control target key end

     0   :  { %vm36_vm0 = vcmask 261120   ;;  %s546_s1 = inlined_call_operand.vmem [shape: f32[2,32,32], index: 1, kind: input, shape index: {}]   ;;  %s547_s0 = inlined_call_operand.vmem [shape: f32[56,32], index: 0, kind: input, shape index: {}]   ;;  %s548_s2 = inlined_call_operand.vmem [shape: f32[2,1,32], index: 2, kind: input, shape index: {}]   ;;  %s549_s3 = inlined_call_operand.vmem [shape: f32[2,56,32], index: 3, kind: output, shape index: {}]  }
   0x1   :  { %v24_v0 = vld [vmem:[%s546_s1 + $0x10] sm:$0xff]  ;;  %v25_v1 = vld [vmem:[%s546_s1 + $0x18] sm:$0xff]  ;;  %v22_v2 = vld [vmem:[%s546_s1] sm:$0xff] }
   0x2   :  { %v31_v3 = vpack.c.bf16 %v25_v1, %v24_v0  ;;  %v23_v4 = vld [vmem:[%s546_s1 + $0x8] sm:$0xff]  ;;  %v381_v5 = vld [vmem:[%s547_s0] sm:$0xff]  ;;  %v407_v12 = vld [vmem:[%s547_s0 + $0x10] sm:$0xff] }
   0x3   :  { %v386_v6 = vld [vmem:[%s547_s0 + $0x8] sm:$0xff]  ;;  %v30_v7 = vpack.c.bf16 %v23_v4, %v22_v2  ;;  %v391_v8 = vld [vmem:[%s547_s0 + $0x20] sm:$0xff]  ;;  %v412_v13 = vld [vmem:[%s547_s0 + $0x18] sm:$0xff] }
   0x4   :  { %55 = vmatpush.bf16.msra.mxu0 %v31_v3  ;;  %312 = vmatpush.bf16.msra.mxu2 %v31_v3  ;;  %v396_v9 = vld [vmem:[%s547_s0 + $0x28] sm:$0xff]  ;;  %v26_v10 = vpack.c.bf16 %v386_v6, %v381_v5  ;;  %v417_v14 = vld [vmem:[%s547_s0 + $0x30] sm:$0xff]  ;;  %v27_v15 = vpack.c.bf16 %v412_v13, %v407_v12  ;;  %v299_v18 = vld [vmem:[%s546_s1 + $0x38] sm:$0xff] }
   0x5   :  { %v28_v11 = vpack.c.bf16 %v396_v9, %v391_v8  ;;  %v29_v16 = vpack.c.bf16 %v417_v14, %v417_v14  ;;  %v298_v17 = vld [vmem:[%s546_s1 + $0x30] sm:$0xff]  ;;  %v316_v19 = vld [vmem:[%s548_s2] ss:$0 sm:$0xff]  ;;  %v297_v23 = vld [vmem:[%s546_s1 + $0x28] sm:$0xff] }
   0x6   :  { %v164_v20 = vpack.c.bf16 %v299_v18, %v298_v17  ;;  %v296_v22 = vld [vmem:[%s546_s1 + $0x20] sm:$0xff] }
   0x7   :  { %v163_v25 = vpack.c.bf16 %v297_v23, %v296_v22 }
   0x8   :  { %56 = vmatpush.bf16.msra.mxu0 %v30_v7  ;;  %313 = vmatpush.bf16.msra.mxu2 %v30_v7 }
   0x9   :  { %188 = vmatpush.bf16.msra.mxu1 %v164_v20  ;;  %314 = vmatpush.bf16.msra.mxu3 %v164_v20 }
   0xb   :  { %292 = vmatmul.msk.bf16.vlgmr.msra.gmra.mxu0 %vm36_vm0, %v26_v10  ;;  %294 = vmatmul.msk.bf16.vlgmr.msra.gmra.mxu2 %vm36_vm0, %v28_v11 }
   0xd   :  { %189 = vmatpush.bf16.msra.mxu1 %v163_v25  ;;  %315 = vmatpush.bf16.msra.mxu3 %v163_v25 }
  0x1b   :  { %293 = vmatmul.msk.bf16.gmra.mxu0 %vm36_vm0, %v27_v15  ;;  %295 = vmatmul.msk.bf16.gmra.mxu2 %vm36_vm0, %v29_v16 }
  0x88   :  { %v58_v21 = vpop.f32.mrf.mxu0 }
  0x89   :  { %v59_v24 = vadd.f32 %v316_v19, %v58_v21 }
  0x8b   :  { %v77_v26 = vmul.f32 %v59_v24, %v59_v24 }
  0x8d   :  { %v84_v27 = vmul.f32 %v77_v26, %v59_v24 }
  0x8e   :  { %v68_v28 = vpop.f32.mrf.mxu2 }
  0x8f   :  { %v91_v29 = vmul.f32 0.044715, %v84_v27  ;;  %v69_v30 = vadd.f32 %v316_v19, %v68_v28 }
  0x90   :  { %v60_v31 = vpop.f32.mrf.mxu0 }
  0x91   :  { %v98_v32 = vadd.f32 %v91_v29, %v59_v24  ;;  %v81_v33 = vmul.f32 %v69_v30, %v69_v30  ;;  %v61_v34 = vadd.f32 %v316_v19, %v60_v31 }
  0x93   :  { %v105_v35 = vmul.f32 0.7978846, %v98_v32  ;;  %v88_v36 = vmul.f32 %v81_v33, %v69_v30  ;;  %v78_v37 = vmul.f32 %v61_v34, %v61_v34 }
  0x95   :  { %318 = vtanh.f32 %v105_v35  ;;  %v95_v38 = vmul.f32 0.044715, %v88_v36  ;;  %v85_v39 = vmul.f32 %v78_v37, %v61_v34 }
  0x96   :  { %v70_v40 = vpop.f32.mrf.mxu2 }
  0x97   :  { %v102_v41 = vadd.f32 %v95_v38, %v69_v30  ;;  %v92_v42 = vmul.f32 0.044715, %v85_v39  ;;  %v71_v43 = vadd.f32 %v316_v19, %v70_v40 }
  0x98   :  { %v63_v44 = vpop.f32.mrf.mxu0 }
  0x99   :  { %v109_v45 = vmul.f32 0.7978846, %v102_v41  ;;  %v99_v46 = vadd.f32 %v92_v42, %v61_v34  ;;  %v82_v47 = vmul.f32 %v71_v43, %v71_v43  ;;  %v64_v48 = vadd.f32 %v316_v19, %v63_v44 }
  0x9b   :  { %v319_v49 = vpop.eup %318  ;;  %320 = vtanh.f32 %v109_v45  ;;  %v106_v50 = vmul.f32 0.7978846, %v99_v46  ;;  %v89_v51 = vmul.f32 %v82_v47, %v71_v43  ;;  %v79_v52 = vmul.f32 %v64_v48, %v64_v48 }
  0x9c   :  { %v119_v53 = vadd.f32 1.0, %v319_v49 }
  0x9d   :  { %322 = vtanh.f32 %v106_v50  ;;  %v96_v54 = vmul.f32 0.044715, %v89_v51  ;;  %v86_v55 = vmul.f32 %v79_v52, %v64_v48 }
  0x9e   :  { %v126_v56 = vmul.f32 0.5, %v119_v53  ;;  %v73_v57 = vpop.f32.mrf.mxu2 }
  0x9f   :  { %v103_v58 = vadd.f32 %v96_v54, %v71_v43  ;;  %v93_v59 = vmul.f32 0.044715, %v86_v55  ;;  %v74_v60 = vadd.f32 %v316_v19, %v73_v57 }
  0xa0   :  { %v133_v61 = vmul.f32 %v126_v56, %v59_v24  ;;  %v65_v62 = vpop.f32.mrf.mxu0 }
  0xa1   :  { %v321_v63 = vpop.eup %320  ;;  %v110_v0 = vmul.f32 0.7978846, %v103_v58  ;;  %v100_v1 = vadd.f32 %v93_v59, %v64_v48  ;;  %v83_v2 = vmul.f32 %v74_v60, %v74_v60  ;;  %v66_v3 = vadd.f32 %v316_v19, %v65_v62 }
  0xa2   :  { %v123_v4 = vadd.f32 1.0, %v321_v63  ;;  %v441_v7 = vadd.f32 %v133_v61, %v381_v5 }
  0xa3   :  { %v323_v10 = vpop.eup %322  ;;  %324 = vtanh.f32 %v110_v0  ;;  %v107_v11 = vmul.f32 0.7978846, %v100_v1  ;;  %v90_v15 = vmul.f32 %v83_v2, %v74_v60  ;;  %v80_v16 = vmul.f32 %v66_v3, %v66_v3 }
  0xa4   :  { %v130_v17 = vmul.f32 0.5, %v123_v4  ;;  %v120_v18 = vadd.f32 1.0, %v323_v10  ;;  %147 = vst.msk [vmem:[%s549_s3] sm:$0xff] %vm36_vm0, %v441_v7 }
  0xa5   :  { %326 = vtanh.f32 %v107_v11  ;;  %v97_v20 = vmul.f32 0.044715, %v90_v15  ;;  %v87_v19 = vmul.f32 %v80_v16, %v66_v3 }
  0xa6   :  { %v137_v21 = vmul.f32 %v130_v17, %v69_v30  ;;  %v127_v22 = vmul.f32 0.5, %v120_v18  ;;  %v75_v5 = vpop.f32.mrf.mxu2 }
  0xa7   :  { %v104_v23 = vadd.f32 %v97_v20, %v74_v60  ;;  %v94_v24 = vmul.f32 0.044715, %v87_v19 }
  0xa8   :  { %v134_v25 = vmul.f32 %v127_v22, %v61_v34  ;;  %v449_v26 = vadd.f32 %v137_v21, %v391_v8 }
  0xa9   :  { %v325_v27 = vpop.eup %324  ;;  %v111_v28 = vmul.f32 0.7978846, %v104_v23  ;;  %v101_v29 = vadd.f32 %v94_v24, %v66_v3 }
  0xaa   :  { %v124_v31 = vadd.f32 1.0, %v325_v27  ;;  %v452_v32 = vadd.f32 %v134_v25, %v386_v6  ;;  %151 = vst.msk [vmem:[%s549_s3 + $0x20] sm:$0xff] %vm36_vm0, %v449_v26 }
  0xab   :  { %v327_v30 = vpop.eup %326  ;;  %328 = vtanh.f32 %v111_v28  ;;  %v108_v33 = vmul.f32 0.7978846, %v101_v29 }
  0xac   :  { %v131_v34 = vmul.f32 0.5, %v124_v31  ;;  %v121_v35 = vadd.f32 1.0, %v327_v30  ;;  %148 = vst.msk [vmem:[%s549_s3 + $0x8] sm:$0xff] %vm36_vm0, %v452_v32  ;;  %v159_v6 = vpack.c.bf16 %v452_v32, %v441_v7 }
  0xad   :  { %330 = vtanh.f32 %v108_v33 }
  0xae   :  { %v138_v8 = vmul.f32 %v131_v34, %v71_v43  ;;  %v128_v36 = vmul.f32 0.5, %v121_v35  ;;  %301 = vmatmul.msk.bf16.vlgmr.msra.gmra.mxu1 %vm36_vm0, %v159_v6 }
  0xb0   :  { %v135_v37 = vmul.f32 %v128_v36, %v64_v48  ;;  %v468_v38 = vadd.f32 %v138_v8, %v396_v9 }
  0xb1   :  { %v329_v39 = vpop.eup %328 }
  0xb2   :  { %v125_v40 = vadd.f32 1.0, %v329_v39  ;;  %152 = vst.msk [vmem:[%s549_s3 + $0x28] sm:$0xff] %vm36_vm0, %v468_v38  ;;  %v161_v41 = vpack.c.bf16 %v468_v38, %v449_v26  ;;  %v478_v42 = vadd.f32 %v135_v37, %v407_v12 }
  0xb3   :  { %v331_v43 = vpop.eup %330 }
  0xb4   :  { %v132_v44 = vmul.f32 0.5, %v125_v40  ;;  %v122_v45 = vadd.f32 1.0, %v331_v43  ;;  %303 = vmatmul.msk.bf16.vlgmr.msra.gmra.mxu3 %vm36_vm0, %v161_v41  ;;  %149 = vst.msk [vmem:[%s549_s3 + $0x10] sm:$0xff] %vm36_vm0, %v478_v42 }
  0xb6   :  { %v139_v9 = vmul.f32 %v132_v44, %v74_v60  ;;  %v129_v46 = vmul.f32 0.5, %v122_v45 }
  0xb8   :  { %v136_v47 = vmul.f32 %v129_v46, %v66_v3  ;;  %v487_v48 = vadd.f32 %v139_v9, %v417_v14  ;;  %v317_v14 = vld [vmem:[%s548_s2 + $0x1] ss:$0 sm:$0xff] }
  0xba   :  { %v490_v12 = vadd.f32 %v136_v47, %v412_v13  ;;  %153 = vst.msk [vmem:[%s549_s3 + $0x30] sm:$0xff] %vm36_vm0, %v487_v48  ;;  %v162_v13 = vpack.c.bf16 %v487_v48, %v487_v48 }
  0xbc   :  { %150 = vst.msk [vmem:[%s549_s3 + $0x18] sm:$0xff] %vm36_vm0, %v490_v12  ;;  %v160_v49 = vpack.c.bf16 %v490_v12, %v478_v42 }
  0xbe   :  { %302 = vmatmul.msk.bf16.gmra.mxu1 %vm36_vm0, %v160_v49 }
  0xc4   :  { %304 = vmatmul.msk.bf16.gmra.mxu3 %vm36_vm0, %v162_v13 }
 0x12b   :  { %v191_v50 = vpop.f32.mrf.mxu1 }
 0x12c   :  { %v192_v51 = vadd.f32 %v317_v14, %v191_v50 }
 0x12e   :  { %v210_v52 = vmul.f32 %v192_v51, %v192_v51 }
 0x130   :  { %v217_v53 = vmul.f32 %v210_v52, %v192_v51 }
 0x132   :  { %v224_v54 = vmul.f32 0.044715, %v217_v53 }
 0x133   :  { %v193_v55 = vpop.f32.mrf.mxu1 }
 0x134   :  { %v231_v56 = vadd.f32 %v224_v54, %v192_v51  ;;  %v194_v57 = vadd.f32 %v317_v14, %v193_v55 }
 0x136   :  { %v238_v58 = vmul.f32 0.7978846, %v231_v56  ;;  %v211_v59 = vmul.f32 %v194_v57, %v194_v57 }
 0x137   :  { %v201_v60 = vpop.f32.mrf.mxu3 }
 0x138   :  { %332 = vtanh.f32 %v238_v58  ;;  %v218_v61 = vmul.f32 %v211_v59, %v194_v57  ;;  %v202_v62 = vadd.f32 %v317_v14, %v201_v60 }
 0x13a   :  { %v225_v63 = vmul.f32 0.044715, %v218_v61  ;;  %v214_v0 = vmul.f32 %v202_v62, %v202_v62 }
 0x13b   :  { %v196_v1 = vpop.f32.mrf.mxu1 }
 0x13c   :  { %v232_v2 = vadd.f32 %v225_v63, %v194_v57  ;;  %v221_v3 = vmul.f32 %v214_v0, %v202_v62  ;;  %v197_v4 = vadd.f32 %v317_v14, %v196_v1 }
 0x13e   :  { %v333_v10 = vpop.eup %332  ;;  %v239_v11 = vmul.f32 0.7978846, %v232_v2  ;;  %v228_v15 = vmul.f32 0.044715, %v221_v3  ;;  %v212_v16 = vmul.f32 %v197_v4, %v197_v4 }
 0x13f   :  { %v252_v17 = vadd.f32 1.0, %v333_v10  ;;  %v203_v18 = vpop.f32.mrf.mxu3 }
 0x140   :  { %334 = vtanh.f32 %v239_v11  ;;  %v235_v20 = vadd.f32 %v228_v15, %v202_v62  ;;  %v219_v19 = vmul.f32 %v212_v16, %v197_v4  ;;  %v204_v21 = vadd.f32 %v317_v14, %v203_v18 }
 0x141   :  { %v259_v22 = vmul.f32 0.5, %v252_v17 }
 0x142   :  { %v242_v5 = vmul.f32 0.7978846, %v235_v20  ;;  %v226_v23 = vmul.f32 0.044715, %v219_v19  ;;  %v215_v24 = vmul.f32 %v204_v21, %v204_v21 }
 0x143   :  { %v266_v25 = vmul.f32 %v259_v22, %v192_v51  ;;  %v198_v27 = vpop.f32.mrf.mxu1 }
 0x144   :  { %336 = vtanh.f32 %v242_v5  ;;  %v233_v28 = vadd.f32 %v226_v23, %v197_v4  ;;  %v222_v29 = vmul.f32 %v215_v24, %v204_v21  ;;  %v199_v31 = vadd.f32 %v317_v14, %v198_v27 }
 0x145   :  { %v273_v30 = vadd.f32 %v266_v25, %v441_v7 }
 0x146   :  { %v335_v33 = vpop.eup %334  ;;  %v240_v34 = vmul.f32 0.7978846, %v233_v28  ;;  %v229_v35 = vmul.f32 0.044715, %v222_v29  ;;  %v213_v6 = vmul.f32 %v199_v31, %v199_v31 }
 0x147   :  { %305 = vst.msk [vmem:[%s549_s3 + $0x38] sm:$0xff] %vm36_vm0, %v273_v30  ;;  %v253_v8 = vadd.f32 1.0, %v335_v33  ;;  %v206_v36 = vpop.f32.mrf.mxu3 }
 0x148   :  { %338 = vtanh.f32 %v240_v34  ;;  %v236_v37 = vadd.f32 %v229_v35, %v204_v21  ;;  %v220_v39 = vmul.f32 %v213_v6, %v199_v31  ;;  %v207_v40 = vadd.f32 %v317_v14, %v206_v36 }
 0x149   :  { %v260_v41 = vmul.f32 0.5, %v253_v8 }
 0x14a   :  { %v337_v43 = vpop.eup %336  ;;  %v243_v44 = vmul.f32 0.7978846, %v236_v37  ;;  %v227_v45 = vmul.f32 0.044715, %v220_v39  ;;  %v216_v7 = vmul.f32 %v207_v40, %v207_v40 }
 0x14b   :  { %v267_v9 = vmul.f32 %v260_v41, %v194_v57  ;;  %v256_v46 = vadd.f32 1.0, %v337_v43 }
 0x14c   :  { %340 = vtanh.f32 %v243_v44  ;;  %v234_v47 = vadd.f32 %v227_v45, %v199_v31  ;;  %v223_v49 = vmul.f32 %v216_v7, %v207_v40 }
 0x14d   :  { %v274_v13 = vadd.f32 %v267_v9, %v452_v32  ;;  %v263_v50 = vmul.f32 0.5, %v256_v46 }
 0x14e   :  { %v339_v51 = vpop.eup %338  ;;  %v241_v52 = vmul.f32 0.7978846, %v234_v47  ;;  %v230_v53 = vmul.f32 0.044715, %v223_v49 }
 0x14f   :  { %306 = vst.msk [vmem:[%s549_s3 + $0x40] sm:$0xff] %vm36_vm0, %v274_v13  ;;  %v270_v14 = vmul.f32 %v263_v50, %v202_v62  ;;  %v254_v54 = vadd.f32 1.0, %v339_v51  ;;  %v208_v55 = vpop.f32.mrf.mxu3 }
 0x150   :  { %342 = vtanh.f32 %v241_v52  ;;  %v237_v56 = vadd.f32 %v230_v53, %v207_v40 }
 0x151   :  { %v277_v57 = vadd.f32 %v270_v14, %v449_v26  ;;  %v261_v58 = vmul.f32 0.5, %v254_v54 }
 0x152   :  { %v341_v59 = vpop.eup %340  ;;  %v244_v60 = vmul.f32 0.7978846, %v237_v56 }
 0x153   :  { %309 = vst.msk [vmem:[%s549_s3 + $0x58] sm:$0xff] %vm36_vm0, %v277_v57  ;;  %v268_v32 = vmul.f32 %v261_v58, %v197_v4  ;;  %v257_v61 = vadd.f32 1.0, %v341_v59 }
 0x154   :  { %344 = vtanh.f32 %v244_v60 }
 0x155   :  { %v275_v63 = vadd.f32 %v268_v32, %v478_v42  ;;  %v264_v62 = vmul.f32 0.5, %v257_v61 }
 0x156   :  { %v343_v0 = vpop.eup %342 }
 0x157   :  { %307 = vst.msk [vmem:[%s549_s3 + $0x48] sm:$0xff] %vm36_vm0, %v275_v63  ;;  %v271_v26 = vmul.f32 %v264_v62, %v204_v21  ;;  %v255_v1 = vadd.f32 1.0, %v343_v0 }
 0x159   :  { %v278_v2 = vadd.f32 %v271_v26, %v468_v38  ;;  %v262_v3 = vmul.f32 0.5, %v255_v1 }
 0x15a   :  { %v345_v10 = vpop.eup %344 }
 0x15b   :  { %310 = vst.msk [vmem:[%s549_s3 + $0x60] sm:$0xff] %vm36_vm0, %v278_v2  ;;  %v269_v4 = vmul.f32 %v262_v3, %v199_v31  ;;  %v258_v42 = vadd.f32 1.0, %v345_v10 }
 0x15d   :  { %v276_v11 = vadd.f32 %v269_v4, %v490_v12  ;;  %v265_v15 = vmul.f32 0.5, %v258_v42 }
 0x15f   :  { %308 = vst.msk [vmem:[%s549_s3 + $0x50] sm:$0xff] %vm36_vm0, %v276_v11  ;;  %v272_v16 = vmul.f32 %v265_v15, %v207_v40 }
 0x161   :  { %v279_v38 = vadd.f32 %v272_v16, %v487_v48 }
 0x163   :  { %311 = vst.msk [vmem:[%s549_s3 + $0x68] sm:$0xff] %vm36_vm0, %v279_v38 }

// kernel: forward.5
= control target key start
LH: loop header
LB: loop body
LE: loop exit
PB: predicated region body
PF: predicated region fallthrough
CT: control target
= control target key end

     0   :  { %16 = vsyncpa [#allocation3], 0  ;;  %s4802_s0 = inlined_call_operand.vmem [shape: f32[2,16,192], index: 0, kind: input, shape index: {}]   ;;  %s4803_s1 = inlined_call_operand.vmem [shape: f32[192,32], index: 1, kind: input, shape index: {}]   ;;  %s4804_s2 = inlined_call_operand.vmem [shape: f32[1,32], index: 2, kind: input, shape index: {}]   ;;  %s4805_s3 = inlined_call_operand.vmem [shape: f32[32,96], index: 3, kind: input, shape index: {}]   ;;  %s4806_s4 = inlined_call_operand.vmem [shape: f32[1,96], index: 4, kind: input, shape index: {}]   ;;  %s4807_s5 = inlined_call_operand.vmem [shape: f32[32,32], index: 5, kind: input, shape index: {}]   ;;  %s4808_s6 = inlined_call_operand.vmem [shape: f32[1,32], index: 6, kind: input, shape index: {}]   ;;  %s4809_s7 = inlined_call_operand.vmem [shape: f32[2,32,32], index: 7, kind: input, shape index: {}]   ;;  %s4810_s8 = inlined_call_operand.vmem [shape: f32[1,32], index: 8, kind: input, shape index: {}]   ;;  %s4811_s9 = inlined_call_operand.vmem [shape: f32[2,16,32], index: 9, kind: output, shape index: {0}]   ;;  %s4812_s10 = inlined_call_operand.hbm [shape: f32[2,16,32], index: 10, kind: output, shape index: {1}]  }
   0x1   :  { %18 = vsyncpa [#allocation3 + $0x1], 0  ;;  %s3702_s13 = smov 0   ;;  %s3704_s14 = smov 0  }
   0x2   :  { %s3706_s15 = smov 0   ;;  %s3708_s16 = smov 0  }
   0x3 LB: > { %4814 = sst [smem:[#allocation5_spill]] %s3633_s15  ;;  %s3723_s17 = sadd.s32 4294967295, %s3637_s16   ;;  %s3637_s16 = sphi %s3708_s16, %s4833_s16   ;;  %s3633_s15 = sphi %s3706_s15, %s4830_s15   ;;  %s3629_s14 = sphi %s3704_s14, %s4832_s14   ;;  %s3625_s13 = sphi %s3702_s13, %s4831_s13  }
   0x4   : > { %s3332_s18 = sadd.s32 4294967294, %s3637_s16   ;;  %s3727_s19 = sadd.s32 1, %s3637_s16  }
   0x5   : > { %s251_s20 = sadd.s32 1, %s3633_s15  ;;  %s248_s21 = ssub.s32 %s3637_s16, %s3727_s19 }
   0x6   : > { %p261_p0 = scmp.ne.s32.totalorder %s3633_s15, %s3629_s14  ;;  %p249_p1 = scmp.eq.s32.totalorder %s248_s21, 0 }
   0x7   : > { %p262_p2 = scmp.eq.s32.totalorder %s3723_s17, 1  ;;  %p267_p3 = scmp.ne.s32.totalorder %s3629_s14, %s3625_s13 }
   0x8   : > { %p268_p4 = scmp.eq.s32.totalorder %s3332_s18, 1  ;;  %p3335_p7 = scmp.ge.s32.totalorder %s3637_s16, 1 }
   0x9   : > { %s3738_s22 = scalar_select %p249_p1, %s3633_s15, %s251_s20  }
   0xa   : > { %p3740_p5 = por %p262_p2, %p261_p0  ;;  %p3744_p6 = por %p268_p4, %p267_p3 }
   0xb   : > { %4815 = sst [smem:[#allocation6_spill]] %s3738_s22  ;;  %p318_p8 = scmp.lt.s32.totalorder %s3637_s16, 3 }
   0xd   : > { %p319_p9 = pnand %p3335_p7, %p318_p8 }
   0xe   : > { %p361_p10 = scmp.lt.s32.totalorder (!%p319_p9), %s3723_s17, 1  ;;  %s3639_s20 = smov (!%p319_p9), 112  }
   0xf   : > { %322 = sbr.rel (%p319_p9) target bundleno = 2423 (0x977), region = 56  ;;  %s3642_s21 = smov (!%p319_p9), 96  }
  0x10   : > { %s3643_s22 = smov (!%p319_p9), 64  }
  0x14   : > { %v390_v0 = vld [vmem:[%s4803_s1 + $0x70] sm:$0xff]  ;;  %v391_v1 = vld [vmem:[%s4803_s1 + $0x78] sm:$0xff]  ;;  %v388_v2 = vld [vmem:[%s4803_s1 + $0x60] sm:$0xff]  ;;  %s3776_s30 = scalar_select %p361_p10, %s3723_s17, 1  ;;  %vm418_vm0 = vcmask 523264   ;;  %vm450_vm1 = vcmask 261120  }
  0x15   : > { %v409_v3 = vpack.c.bf16 %v391_v1, %v390_v0  ;;  %v389_v4 = vld [vmem:[%s4803_s1 + $0x68] sm:$0xff]  ;;  %v398_v5 = vld [vmem:[%s4803_s1 + $0xb0] sm:$0xff]  ;;  %v399_v6 = vld [vmem:[%s4803_s1 + $0xb8] sm:$0xff]  ;;  %vm490_vm2 = vcmask 1047556   ;;  %vm1830_vm3 = vcmask 130048  }
  0x16   : > { %v408_v7 = vpack.c.bf16 %v389_v4, %v388_v2  ;;  %v413_v8 = vpack.c.bf16 %v399_v6, %v398_v5  ;;  %v396_v9 = vld [vmem:[%s4803_s1 + $0xa0] sm:$0xff]  ;;  %v397_v10 = vld [vmem:[%s4803_s1 + $0xa8] sm:$0xff]  ;;  %v386_v11 = vld [vmem:[%s4803_s1 + $0x50] sm:$0xff]  ;;  %s3359_s28 = sshll.u32 %s3776_s30, 5  ;;  %s3360_s29 = sshll.u32 %s3776_s30, 4 }
  0x17   : > { %422 = vmatpush.bf16.msra.mxu0 %v409_v3  ;;  %v387_v12 = vld [vmem:[%s4803_s1 + $0x58] sm:$0xff]  ;;  %v412_v13 = vpack.c.bf16 %v397_v10, %v396_v9  ;;  %v394_v14 = vld [vmem:[%s4803_s1 + $0x90] sm:$0xff]  ;;  %v384_v17 = vld [vmem:[%s4803_s1 + $0x40] sm:$0xff]  ;;  %s365_s15 = scalar_lea.vmem %s4802_s0, %s3359_s28  ;;  %s370_s12 = scalar_lea.vmem %s4811_s9, %s3360_s29  ;;  %v3640_v6 = vmov 1983009808  }
  0x18   : > { %440 = vmatpush.bf16.msra.mxu1 %v413_v8  ;;  %v395_v15 = vld [vmem:[%s4803_s1 + $0x98] sm:$0xff]  ;;  %v407_v16 = vpack.c.bf16 %v387_v12, %v386_v11  ;;  %v385_v18 = vld [vmem:[%s4803_s1 + $0x48] sm:$0xff]  ;;  %v392_v20 = vld [vmem:[%s4803_s1 + $0x80] sm:$0xff]  ;;  %s3644_s30 = smov 16  }
  0x19   : > { %v411_v19 = vpack.c.bf16 %v395_v15, %v394_v14  ;;  %v393_v21 = vld [vmem:[%s4803_s1 + $0x88] sm:$0xff]  ;;  %v406_v22 = vpack.c.bf16 %v385_v18, %v384_v17  ;;  %v382_v23 = vld [vmem:[%s4803_s1 + $0x30] sm:$0xff]  ;;  %v383_v24 = vld [vmem:[%s4803_s1 + $0x38] sm:$0xff]  ;;  %v3641_v14 = vmov 1934713408  }
  0x1a   : > { %v410_v25 = vpack.c.bf16 %v393_v21, %v392_v20  ;;  %v373_v26 = vld [vmem:[%s365_s15 + $0x8] sm:$0xff]  ;;  %v375_v27 = vld [vmem:[%s365_s15 + $0x18] sm:$0xff]  ;;  %v405_v28 = vpack.c.bf16 %v383_v24, %v382_v23  ;;  %v380_v29 = vld [vmem:[%s4803_s1 + $0x20] sm:$0xff]  ;;  %v515_v15 = vunpack.c.l.s4 %v3641_v14 }
  0x1b   : > { %423 = vmatpush.bf16.msra.mxu0 %v408_v7  ;;  %v381_v30 = vld [vmem:[%s4803_s1 + $0x28] sm:$0xff]  ;;  %v401_v31 = vpack.c.bf16 %v375_v27, %v373_v26  ;;  %v378_v33 = vld [vmem:[%s4803_s1 + $0x10] sm:$0xff]  ;;  %v379_v34 = vld [vmem:[%s4803_s1 + $0x18] sm:$0xff]  ;;  %v493_v7 = vunpack.c.l.s4 %v3640_v6 }
  0x1c   : > { %441 = vmatpush.bf16.msra.mxu1 %v412_v13  ;;  %v404_v32 = vpack.c.bf16 %v381_v30, %v380_v29  ;;  %v403_v35 = vpack.c.bf16 %v379_v34, %v378_v33  ;;  %v376_v36 = vld [vmem:[%s4803_s1] sm:$0xff]  ;;  %v377_v37 = vld [vmem:[%s4803_s1 + $0x8] sm:$0xff]  ;;  %v374_v40 = vld [vmem:[%s365_s15 + $0x10] sm:$0xff]  ;;  %v3876_v24 = vunpack.c.0.s8 %v515_v15 }
  0x1d   : > { %v402_v38 = vpack.c.bf16 %v377_v37, %v376_v36  ;;  %v372_v39 = vld [vmem:[%s365_s15] sm:$0xff]  ;;  %v455_v42 = vld [vmem:[%s4805_s3 + $0x10] sm:$0xff]  ;;  %v456_v43 = vld [vmem:[%s4805_s3 + $0x18] sm:$0xff]  ;;  %v3868_v9 = vunpack.c.0.s8 %v493_v7 }
  0x1e   : > { %v400_v41 = vpack.c.bf16 %v374_v40, %v372_v39  ;;  %v3152_v44 = vld [vmem:[%s4809_s7 + $0x10] sm:$0xff]  ;;  %v459_v45 = vpack.c.bf16 %v456_v43, %v455_v42  ;;  %v3153_v46 = vld [vmem:[%s4809_s7 + $0x18] sm:$0xff]  ;;  %v453_v48 = vld [vmem:[%s4805_s3] sm:$0xff] }
  0x1f   : > { %424 = vmatpush.bf16.msra.mxu0 %v407_v16  ;;  %v3155_v47 = vpack.c.bf16 %v3153_v46, %v3152_v44  ;;  %v454_v49 = vld [vmem:[%s4805_s3 + $0x8] sm:$0xff]  ;;  %v3150_v50 = vld [vmem:[%s4809_s7] sm:$0xff] }
  0x20   : > { %442 = vmatpush.bf16.msra.mxu1 %v411_v19  ;;  %473 = vmatpush.bf16.msra.mxu2 %v459_v45  ;;  %v458_v51 = vpack.c.bf16 %v454_v49, %v453_v48  ;;  %v3151_v52 = vld [vmem:[%s4809_s7 + $0x8] sm:$0xff]  ;;  %v3551_v54 = vld [vmem:[%s4804_s2] ss:$0 sm:$0xff] }
  0x21   : > { %v3154_v53 = vpack.c.bf16 %v3151_v52, %v3150_v50  ;;  %v3552_v1 = vld [vmem:[%s4806_s4] ss:$0 sm:$0xff] }
  0x23   : > { %425 = vmatpush.bf16.msra.mxu0 %v406_v22 }
  0x24   : > { %443 = vmatpush.bf16.msra.mxu1 %v410_v25  ;;  %474 = vmatpush.bf16.msra.mxu2 %v458_v51 }
  0x27   : > { %426 = vmatpush.bf16.msra.mxu0 %v405_v28  ;;  %3341 = vmatmul.msk.bf16.vlgmr.msra.gmra.mxu1 %vm418_vm0, %v401_v31 }
  0x2b   : > { %427 = vmatpush.bf16.msra.mxu0 %v404_v32 }
  0x2f   : > { %428 = vmatpush.bf16.msra.mxu0 %v403_v35 }
  0x33   : > { %429 = vmatpush.bf16.msra.mxu0 %v402_v38 }
  0x36   : > { %430 = vmatmul.bf16.vlgmr.msra.gmra.mxu0 %v400_v41 }
  0x37   : > { %3187 = vmatpush.bf16.msrb.mxu0 %v3155_v47 }
  0x3b   : > { %3188 = vmatpush.bf16.msrb.mxu0 %v3154_v53 }
  0xa4   : > { %v445_v55 = vpop.f32.mrf.mxu1 }
  0xac   : > { %v447_v61 = vpop.f32.mrf.mxu1 }
  0xb3   : > { %v431_v56 = vpop.f32.mrf.mxu0 }
  0xb4   : > { %v432_v57 = vadd.f32 %v3551_v54, %v431_v56 }
  0xb6   : > { %v446_v58 = vadd.f32 %v445_v55, %v432_v57 }
  0xb8   : > { %451 = vst.msk [vmem:[%s370_s12] sm:$0xff] %vm450_vm1, %v446_v58 }
  0xbb   : > { %v433_v59 = vpop.f32.mrf.mxu0 }
  0xbc   : > { %v434_v60 = vadd.f32 %v3551_v54, %v433_v59 }
  0xbe   : > { %v448_v62 = vadd.f32 %v447_v61, %v434_v60 }
  0xc0   : > { %452 = vst.msk [vmem:[%s370_s12 + $0x8] sm:$0xff] %vm450_vm1, %v448_v62  ;;  %v457_v63 = vpack.c.bf16 %v448_v62, %v446_v58 }
  0xc2   : > { %3342 = vmatmul.msk.bf16.vlgmr.msra.gmra.mxu2 %vm450_vm1, %v457_v63  ;;  %3353 = vmatmul.msk.bf16.vlgmr.msrb.gmra.mxu0 %vm450_vm1, %v457_v63 }
 0x145   : > { %v476_v0 = vpop.f32.mrf.mxu2 }
 0x146   : > { %v477_v3 = vadd.f32 %v3552_v1, %v476_v0 }
 0x148   : > { %v489_v8 = vrot.slane %v477_v3, 4  ;;  %v495_v12 = vperm.slane %v477_v3, %v3868_v9 }
 0x14a   : > { %v491_v11 = vsel %vm490_vm2, 0.0, %v489_v8  ;;  %v512_v21 = vrot.slane %v495_v12, 4 }
 0x14b   : > { %v499_v17 = vperm.slane %v491_v11, %v3868_v9 }
 0x14d   : > { %v478_v2 = vpop.f32.mrf.mxu2  ;;  %v524_v29 = vrot.slane %v499_v17, 4 }
 0x14e   : > { %v479_v4 = vadd.f32 %v3552_v1, %v478_v2 }
 0x150   : > { %v3411_v5 = vpack.i.bf16 %v479_v4, %v477_v3  ;;  %v542_v10 = vrot.slane %v479_v4, 4  ;;  %v547_v13 = vperm.slane %v479_v4, %v3868_v9 }
 0x152   : > { %3412 = vrot.lane.b32.xlu0 %v3411_v5, %s3639_s20  ;;  %v543_v16 = vsel %vm490_vm2, 0.0, %v542_v10  ;;  %v564_v23 = vrot.slane %v547_v13, 4  ;;  %s3361_s20 = sshll.u32 %s3723_s17, 4 }
 0x153   : > { %v551_v22 = vperm.slane %v543_v16, %v3868_v9  ;;  %s3241_s25 = scalar_lea.hbm %s4812_s10, %s3361_s20 }
 0x154   : > { %s3244_s27 = sshll.u32 %s3241_s25, 4  ;;  %s3245_s27 = int_to_ptr.hbm [resolvable:$true] %s3244_s27 }
 0x155   : > { %v576_v36 = vrot.slane %v551_v22, 4  ;;  %s3589_s29 = sshra.s32 %s3245_s27, 4  ;;  %s3590_s29 = int_to_ptr.hbm [resolvable:$true] %s3589_s29 }
 0x156   : > { %s3591_s11 = scalar_lea.hbm %s3590_s29, 16  ;;  %p3596_p0 = scmp.lt.s32.totalorder %s3590_s29, %s4812_s10 }
 0x157   : > { %p3592_p11 = scmp.ne.s32.totalorder %s3590_s29, %s3591_s11 }
 0x159   : > { %p3593_p12 = pnand %p3592_p11, %p3740_p5 }
 0x15b   : > { %p3594_p13 = pneg %p3593_p12 }
 0x1c4   : > { %v3413_v18 = vpop.permute.xlu0 %3412 }
 0x1c5   : > { %v3415_v19 = vunpack.i.h.bf16 %v3413_v18  ;;  %v3414_v20 = vunpack.i.l.bf16 %v3413_v18 }
 0x1c7   : > { %v552_v25 = vrot.slane %v3415_v19, 4  ;;  %v557_v26 = vperm.slane %v3415_v19, %v3868_v9  ;;  %v500_v27 = vrot.slane %v3414_v20, 4  ;;  %v505_v28 = vperm.slane %v3414_v20, %v3868_v9 }
 0x1c8   : > { %v3426_v30 = vpack.i.bf16 %v479_v4, %v3415_v19  ;;  %v3421_v31 = vpack.i.bf16 %v477_v3, %v3414_v20 }
 0x1c9   : > { %v553_v32 = vsel %vm490_vm2, 0.0, %v552_v25  ;;  %v562_v33 = vrot.slane %v557_v26, 4  ;;  %v565_v34 = vsel %vm490_vm2, %v557_v26, %v564_v23  ;;  %v501_v35 = vsel %vm490_vm2, 0.0, %v500_v27 }
 0x1ca   : > { %v561_v37 = vperm.slane %v553_v32, %v3868_v9  ;;  %v3885_v38 = vperm.slane %v565_v34, %v3876_v24  ;;  %v510_v39 = vrot.slane %v505_v28, 4  ;;  %3427 = vrot.lane.b32.xlu1 %v3426_v30, %s3642_s21  ;;  %3422 = vrot.lane.b32.xlu2 %v3421_v31, %s3643_s22  ;;  %v509_v41 = vperm.slane %v501_v35, %v3868_v9 }
 0x1cb   : > { %v563_v40 = vsel %vm490_vm2, %v562_v33, %v547_v13  ;;  %v513_v42 = vsel %vm490_vm2, %v505_v28, %v512_v21  ;;  %3417 = vrot.lane.b32.xlu0 %v3421_v31, %s3642_s21 }
 0x1cc   : > { %v3892_v43 = vperm.slane %v563_v40, %v3876_v24  ;;  %v574_v44 = vrot.slane %v561_v37, 4  ;;  %v577_v45 = vsel %vm490_vm2, %v561_v37, %v576_v36  ;;  %v588_v46 = vrot.slane %v3885_v38, 4 }
 0x1cd   : > { %v585_v47 = vperm.slane %v577_v45, %v3876_v24  ;;  %v836_v48 = vpack.c.bf16 %v3885_v38, %v3885_v38  ;;  %v511_v49 = vsel %vm490_vm2, %v510_v39, %v495_v12  ;;  %v521_v50 = vperm.slane %v513_v42, %v3876_v24 }
 0x1ce   : > { %v575_v51 = vsel %vm490_vm2, %v574_v44, %v551_v22  ;;  %v586_v52 = vrot.slane %v3892_v43, 4  ;;  %v3904_v53 = vsel %vm490_vm2, 0.0, %v588_v46  ;;  %v834_v54 = vpack.c.bf16 %v3892_v43, %v3892_v43 }
 0x1cf   : > { %v581_v55 = vperm.slane %v575_v51, %v3876_v24  ;;  %v592_v56 = vrot.slane %v585_v47, 4  ;;  %v837_v57 = vpack.c.bf16 %v3904_v53, %v3904_v53  ;;  %v840_v58 = vpack.c.bf16 %v585_v47, %v585_v47 }
 0x1d0   : > { %v517_v59 = vperm.slane %v511_v49, %v3876_v24  ;;  %v522_v60 = vrot.slane %v509_v41, 4  ;;  %v525_v61 = vsel %vm490_vm2, %v509_v41, %v524_v29  ;;  %v536_v62 = vrot.slane %v521_v50, 4 }
 0x1d1   : > { %v533_v63 = vperm.slane %v525_v61, %v3876_v24  ;;  %v828_v0 = vpack.c.bf16 %v521_v50, %v521_v50  ;;  %v587_v1 = vsel %vm490_vm2, 0.0, %v586_v52  ;;  %v590_v2 = vrot.slane %v581_v55, 4 }
 0x1d2   : > { %v523_v3 = vsel %vm490_vm2, %v522_v60, %v499_v17  ;;  %v534_v4 = vrot.slane %v517_v59, 4  ;;  %v537_v5 = vsel %vm490_vm2, 0.0, %v536_v62  ;;  %v826_v6 = vpack.c.bf16 %v517_v59, %v517_v59  ;;  %3432 = vrot.lane.b32.xlu1 %v3426_v30, %s3643_s22 }
 0x1d3   : > { %v529_v7 = vperm.slane %v523_v3, %v3876_v24  ;;  %v540_v8 = vrot.slane %v533_v63, 4  ;;  %v829_v10 = vpack.c.bf16 %v537_v5, %v537_v5  ;;  %v832_v11 = vpack.c.bf16 %v533_v63, %v533_v63 }
 0x1d4   : > { %v535_v12 = vsel %vm490_vm2, 0.0, %v534_v4  ;;  %v591_v13 = vsel %vm490_vm2, 0.0, %v590_v2  ;;  %v593_v14 = vsel %vm490_vm2, 0.0, %v592_v56  ;;  %v835_v15 = vpack.c.bf16 %v587_v1, %v587_v1 }
 0x1d5   : > { %v538_v16 = vrot.slane %v529_v7, 4  ;;  %v541_v17 = vsel %vm490_vm2, 0.0, %v540_v8  ;;  %v827_v18 = vpack.c.bf16 %v535_v12, %v535_v12  ;;  %v830_v19 = vpack.c.bf16 %v529_v7, %v529_v7 }
 0x1d6   : > { %v833_v20 = vpack.c.bf16 %v541_v17, %v541_v17  ;;  %v838_v21 = vpack.c.bf16 %v581_v55, %v581_v55  ;;  %v839_v22 = vpack.c.bf16 %v591_v13, %v591_v13  ;;  %v841_v23 = vpack.c.bf16 %v593_v14, %v593_v14 }
 0x1d7   : > { %v539_v25 = vsel %vm490_vm2, 0.0, %v538_v16  ;;  %v858_v26 = vrot.slane %v830_v19, 4  ;;  %v865_v27 = vrot.slane %v832_v11, 4  ;;  %v901_v28 = vrot.slane %v840_v58, 4 }
 0x1d8   : > { %v831_v29 = vpack.c.bf16 %v539_v25, %v539_v25  ;;  %v883_v30 = vrot.slane %v833_v20, 4  ;;  %v895_v31 = vrot.slane %v838_v21, 4  ;;  %v913_v32 = vrot.slane %v839_v22, 4 }
 0x1d9   : > { %v860_v33 = vsel %vm490_vm2, %v858_v26, %v826_v6  ;;  %v866_v34 = vsel %vm490_vm2, %v865_v27, %v828_v0  ;;  %v902_v35 = vsel %vm490_vm2, %v901_v28, %v836_v48  ;;  %v919_v36 = vrot.slane %v841_v23, 4 }
 0x1da   : > { %v864_v37 = vperm.slane %v860_v33, %v3868_v9  ;;  %v870_v38 = vperm.slane %v866_v34, %v3868_v9  ;;  %v877_v39 = vrot.slane %v831_v29, 4  ;;  %v884_v40 = vsel %vm490_vm2, %v883_v30, %v829_v10 }
 0x1db   : > { %v888_v41 = vperm.slane %v884_v40, %v3868_v9  ;;  %v896_v42 = vsel %vm490_vm2, %v895_v31, %v834_v54  ;;  %v906_v43 = vperm.slane %v902_v35, %v3868_v9  ;;  %v914_v44 = vsel %vm490_vm2, %v913_v32, %v835_v15 }
 0x1dc   : > { %v871_v45 = vrot.slane %v870_v38, 4  ;;  %v878_v46 = vsel %vm490_vm2, %v877_v39, %v827_v18  ;;  %v900_v47 = vperm.slane %v896_v42, %v3868_v9  ;;  %v920_v51 = vsel %vm490_vm2, %v919_v36, %v837_v57 }
 0x1dd   : > { %v882_v48 = vperm.slane %v878_v46, %v3868_v9  ;;  %v889_v49 = vrot.slane %v888_v41, 4  ;;  %v907_v50 = vrot.slane %v906_v43, 4  ;;  %v918_v53 = vperm.slane %v914_v44, %v3868_v9 }
 0x1de   : > { %v872_v52 = vsel %vm490_vm2, %v871_v45, %v864_v37  ;;  %v924_v54 = vperm.slane %v920_v51, %v3868_v9 }
 0x1df   : > { %v876_v55 = vperm.slane %v872_v52, %v3876_v24  ;;  %v890_v56 = vsel %vm490_vm2, %v889_v49, %v882_v48  ;;  %v908_v58 = vsel %vm490_vm2, %v907_v50, %v900_v47 }
 0x1e0   : > { %v894_v59 = vperm.slane %v890_v56, %v3876_v24  ;;  %v925_v60 = vrot.slane %v924_v54, 4  ;;  %v912_v61 = vperm.slane %v908_v58, %v3876_v24 }
 0x1e1   : > { %v934_v63 = vshrl.u32 %v876_v55, 16 }
 0x1e2   : > { %v926_v62 = vsel %vm490_vm2, %v925_v60, %v918_v53  ;;  %v933_v57 = vpack.i.b16 %v894_v59, %v876_v55  ;;  %v935_v0 = vshrl.u32 %v894_v59, 16  ;;  %v940_v4 = vshrl.u32 %v912_v61, 16 }
 0x1e3   : > { %v930_v1 = vperm.slane %v926_v62, %v3876_v24 }
 0x1e4   : > { %v936_v2 = vpack.i.b16 %v935_v0, %v934_v63  ;;  %v3948_v6 = vunpack.c.l.b16 %v933_v57 }
 0x1e5   : > { %v939_v3 = vpack.i.b16 %v930_v1, %v912_v61  ;;  %v941_v5 = vshrl.u32 %v930_v1, 16 }
 0x1e6   : > { %v1848_v10 = vunpack.c.l.b16 %v936_v2 }
 0x1e7   : > { %v3950_v7 = vunpack.c.l.b16 %v939_v3  ;;  %v942_v8 = vpack.i.b16 %v941_v5, %v940_v4 }
 0x1e9   : > { %v1849_v12 = vunpack.c.l.b16 %v942_v8 }
 0x1eb   : > { %v3954_v13 = vpack.c.b16 %v1849_v12, %v1848_v10 }
 0x224   : > { %v3956_v14 = vpop.permute.xlu2 %3422 }
 0x225   : > { %v3425_v15 = vunpack.i.h.bf16 %v3956_v14  ;;  %v3424_v16 = vunpack.i.l.bf16 %v3956_v14 }
 0x227   : > { %v727_v17 = vperm.slane %v3425_v15, %v3868_v9  ;;  %v737_v18 = vperm.slane %v3424_v16, %v3868_v9 }
 0x229   : > { %v744_v19 = vrot.slane %v727_v17, 4  ;;  %v742_v20 = vrot.slane %v737_v18, 4 }
 0x22b   : > { %v745_v21 = vsel %vm490_vm2, %v737_v18, %v744_v19  ;;  %v743_v22 = vsel %vm490_vm2, %v742_v20, %v727_v17 }
 0x22c   : > { %v753_v23 = vperm.slane %v745_v21, %v3876_v24  ;;  %v749_v25 = vperm.slane %v743_v22, %v3876_v24 }
 0x22e   : > { %v768_v26 = vrot.slane %v753_v23, 4  ;;  %v766_v27 = vrot.slane %v749_v25, 4  ;;  %v1922_v30 = vpack.c.bf16 %v753_v23, %v753_v23  ;;  %v1920_v33 = vpack.c.bf16 %v749_v25, %v749_v25 }
 0x22f   : > { %v722_v25 = vrot.slane %v3425_v15, 4 }
 0x230   : > { %v769_v28 = vsel %vm490_vm2, 0.0, %v768_v26  ;;  %v767_v29 = vsel %vm490_vm2, 0.0, %v766_v27 }
 0x231   : > { %v1923_v31 = vpack.c.bf16 %v769_v28, %v769_v28  ;;  %v1921_v32 = vpack.c.bf16 %v767_v29, %v767_v29 }
 0x233   : > { %3439 = vxpose.binary.xlu1.c.b16.start.end [1/2] (short) (narrow) %v1923_v31, %v1922_v30, 16 }
 0x234   : > { %3445 = vxpose.binary.xlu0.c.b16.start.end [1/2] (short) (narrow) %v1921_v32, %v1920_v33, 16 }
 0x23c   : > { %v3972_v34 = vpop.permute.xlu1 %3427 }
 0x23d   : > { %v3418_v35 = vpop.permute.xlu0 %3417  ;;  %v3429_v45 = vunpack.i.l.bf16 %v3972_v34  ;;  %v3430_v20 = vunpack.i.h.bf16 %v3972_v34 }
 0x23e   : > { %v3420_v36 = vunpack.i.h.bf16 %v3418_v35  ;;  %v3419_v37 = vunpack.i.l.bf16 %v3418_v35 }
 0x23f   : > { %v3991_v58 = vperm.slane %v3429_v45, %v3868_v9  ;;  %v4018_v32 = vperm.slane %v3430_v20, %v3868_v9 }
 0x240   : > { %v606_v38 = vrot.slane %v3420_v36, 4  ;;  %v611_v39 = vperm.slane %v3420_v36, %v3868_v9  ;;  %v621_v40 = vperm.slane %v3419_v37, %v3868_v9  ;;  %v616_v43 = vrot.slane %v3419_v37, 4 }
 0x241   : > { %v678_v27 = vrot.slane %v3991_v58, 4  ;;  %v723_v36 = vsel %vm490_vm2, 0.0, %v722_v25 }
 0x242   : > { %v607_v41 = vsel %vm490_vm2, 0.0, %v606_v38  ;;  %v628_v42 = vrot.slane %v611_v39, 4  ;;  %v626_v44 = vrot.slane %v621_v40, 4  ;;  %v617_v53 = vsel %vm490_vm2, 0.0, %v616_v43 }
 0x243   : > { %v3979_v46 = vperm.slane %v607_v41, %v3868_v9  ;;  %v4000_v1 = vperm.slane %v617_v53, %v3868_v9  ;;  %v679_v37 = vsel %vm490_vm2, %v678_v27, %v4018_v32  ;;  %v731_v41 = vperm.slane %v723_v36, %v3868_v9 }
 0x244   : > { %v3433_v47 = vpop.permute.xlu1 %3432  ;;  %v629_v48 = vsel %vm490_vm2, %v621_v40, %v628_v42  ;;  %v627_v52 = vsel %vm490_vm2, %v626_v44, %v611_v39  ;;  %v732_v39 = vrot.slane %v3424_v16, 4  ;;  %v685_v43 = vperm.slane %v679_v37, %v3876_v24 }
 0x245   : > { %v3435_v49 = vunpack.i.h.bf16 %v3433_v47  ;;  %v3434_v50 = vunpack.i.l.bf16 %v3433_v47  ;;  %v637_v51 = vperm.slane %v629_v48, %v3876_v24  ;;  %v640_v59 = vrot.slane %v3979_v46, 4 }
 0x246   : > { %v633_v61 = vperm.slane %v627_v52, %v3876_v24  ;;  %v733_v44 = vsel %vm490_vm2, 0.0, %v732_v39  ;;  %v756_v48 = vrot.slane %v731_v41, 4 }
 0x247   : > { %v774_v54 = vrot.slane %v3435_v49, 4  ;;  %v3986_v55 = vperm.slane %v3435_v49, %v3868_v9  ;;  %v784_v56 = vrot.slane %v3434_v50, 4  ;;  %v652_v60 = vrot.slane %v637_v51, 4 }
 0x248   : > { %v789_v0 = vperm.slane %v3434_v50, %v3868_v9  ;;  %v650_v4 = vrot.slane %v633_v61, 4  ;;  %v844_v8 = vpack.c.bf16 %v637_v51, %v637_v51  ;;  %v842_v21 = vpack.c.bf16 %v633_v61, %v633_v61 }
 0x249   : > { %v775_v62 = vsel %vm490_vm2, 0.0, %v774_v54  ;;  %v796_v57 = vrot.slane %v3986_v55, 4  ;;  %v785_v63 = vsel %vm490_vm2, 0.0, %v784_v56  ;;  %v653_v3 = vsel %vm490_vm2, 0.0, %v652_v60 }
 0x24a   : > { %v793_v2 = vperm.slane %v785_v63, %v3868_v9  ;;  %v783_v5 = vperm.slane %v775_v62, %v3868_v9  ;;  %v845_v10 = vpack.c.bf16 %v653_v3, %v653_v3  ;;  %v651_v18 = vsel %vm490_vm2, 0.0, %v650_v4 }
 0x24b   : > { %v797_v12 = vsel %vm490_vm2, %v789_v0, %v796_v57  ;;  %v843_v22 = vpack.c.bf16 %v651_v18, %v651_v18  ;;  %v641_v23 = vsel %vm490_vm2, %v4000_v1, %v640_v59  ;;  %v702_v50 = vrot.slane %v685_v43, 4 }
 0x24c   : > { %v806_v17 = vrot.slane %v793_v2, 4  ;;  %v805_v19 = vperm.slane %v797_v12, %v3876_v24  ;;  %3436 = vxpose.binary.xlu2.c.b16.start.end [1/2] (short) (narrow) %v845_v10, %v844_v8, 16  ;;  %v808_v28 = vrot.slane %v783_v5, 4  ;;  %v649_v31 = vperm.slane %v641_v23, %v3876_v24 }
 0x24d   : > { %3442 = vxpose.binary.xlu1.c.b16.start.end [1/2] (short) (narrow) %v843_v22, %v842_v21, 16  ;;  %v741_v51 = vperm.slane %v733_v44, %v3868_v9  ;;  %v703_v56 = vsel %vm490_vm2, 0.0, %v702_v50  ;;  %v794_v59 = vrot.slane %v789_v0, 4  ;;  %v850_v61 = vpack.c.bf16 %v685_v43, %v685_v43 }
 0x24e   : > { %v820_v26 = vrot.slane %v805_v19, 4  ;;  %v807_v29 = vsel %vm490_vm2, %v806_v17, %v783_v5  ;;  %v1930_v33 = vpack.c.bf16 %v805_v19, %v805_v19  ;;  %v4025_v38 = vsel %vm490_vm2, %v793_v2, %v808_v28 }
 0x24f   : > { %v813_v15 = vperm.slane %v807_v29, %v3876_v24  ;;  %v656_v40 = vrot.slane %v649_v31, 4  ;;  %v848_v52 = vpack.c.bf16 %v649_v31, %v649_v31  ;;  %v757_v54 = vsel %vm490_vm2, %v741_v51, %v756_v48 }
 0x250   : > { %v821_v30 = vsel %vm490_vm2, 0.0, %v820_v26  ;;  %v765_v60 = vperm.slane %v757_v54, %v3876_v24  ;;  %v851_v62 = vpack.c.bf16 %v703_v56, %v703_v56  ;;  %v795_v57 = vsel %vm490_vm2, %v794_v59, %v3986_v55 }
 0x251   : > { %v1931_v35 = vpack.c.bf16 %v821_v30, %v821_v30  ;;  %v822_v42 = vrot.slane %v813_v15, 4  ;;  %v657_v47 = vsel %vm490_vm2, 0.0, %v656_v40  ;;  %v1932_v14 = vpack.c.bf16 %v813_v15, %v813_v15 }
 0x252   : > { %v849_v53 = vpack.c.bf16 %v657_v47, %v657_v47  ;;  %v668_v63 = vrot.slane %v3429_v45, 4  ;;  %v772_v2 = vrot.slane %v765_v60, 4  ;;  %v801_v3 = vperm.slane %v795_v57, %v3876_v24 }
 0x253   : > { %3463 = vxpose.binary.xlu0.c.b16.start.end [1/2] (short) (narrow) %v1931_v35, %v1930_v33, 16  ;;  %v823_v49 = vsel %vm490_vm2, 0.0, %v822_v42  ;;  %v638_v0 = vrot.slane %v4000_v1, 4  ;;  %v658_v8 = vrot.slane %v3430_v20, 4  ;;  %v1926_v17 = vpack.c.bf16 %v765_v60, %v765_v60 }
 0x254   : > { %v1933_v16 = vpack.c.bf16 %v823_v49, %v823_v49  ;;  %v669_v4 = vsel %vm490_vm2, 0.0, %v668_v63  ;;  %v773_v5 = vsel %vm490_vm2, 0.0, %v772_v2  ;;  %v818_v10 = vrot.slane %v801_v3, 4 }
 0x255   : > { %v677_v12 = vperm.slane %v669_v4, %v3868_v9  ;;  %v1927_v18 = vpack.c.bf16 %v773_v5, %v773_v5  ;;  %v639_v34 = vsel %vm490_vm2, %v638_v0, %v3979_v46  ;;  %v659_v45 = vsel %vm490_vm2, 0.0, %v658_v8 }
 0x256   : > { %v819_v55 = vsel %vm490_vm2, 0.0, %v818_v10  ;;  %v645_v21 = vperm.slane %v639_v34, %v3876_v24  ;;  %v667_v22 = vperm.slane %v659_v45, %v3868_v9  ;;  %v1928_v1 = vpack.c.bf16 %v801_v3, %v801_v3 }
 0x257   : > { %v690_v19 = vrot.slane %v677_v12, 4  ;;  %v1929_v20 = vpack.c.bf16 %v819_v55, %v819_v55  ;;  %v754_v46 = vrot.slane %v741_v51, 4  ;;  %v680_v40 = vrot.slane %v4018_v32, 4 }
 0x258   : > { %v654_v25 = vrot.slane %v645_v21, 4  ;;  %v846_v29 = vpack.c.bf16 %v645_v21, %v645_v21  ;;  %v692_v49 = vrot.slane %v667_v22, 4 }
 0x259   : > { %v691_v23 = vsel %vm490_vm2, %v690_v19, %v667_v22  ;;  %v755_v31 = vsel %vm490_vm2, %v754_v46, %v731_v41  ;;  %v681_v44 = vsel %vm490_vm2, %v3991_v58, %v680_v40  ;;  %v817_v58 = vperm.slane %v4025_v38, %v3876_v24 }
 0x25a   : > { %v697_v26 = vperm.slane %v691_v23, %v3876_v24  ;;  %v655_v27 = vsel %vm490_vm2, 0.0, %v654_v25  ;;  %v761_v35 = vperm.slane %v755_v31, %v3876_v24  ;;  %v689_v41 = vperm.slane %v681_v44, %v3876_v24 }
 0x25b   : > { %v847_v30 = vpack.c.bf16 %v655_v27, %v655_v27  ;;  %v824_v56 = vrot.slane %v817_v58, 4  ;;  %v1934_v60 = vpack.c.bf16 %v817_v58, %v817_v58 }
 0x25c   : > { %3448 = vxpose.binary.xlu2.c.b16.start.end [1/2] (short) (narrow) %v849_v53, %v848_v52, 16  ;;  %v706_v28 = vrot.slane %v697_v26, 4  ;;  %v854_v36 = vpack.c.bf16 %v697_v26, %v697_v26  ;;  %v770_v37 = vrot.slane %v761_v35, 4  ;;  %v1924_v42 = vpack.c.bf16 %v761_v35, %v761_v35 }
 0x25d   : > { %3481 = vxpose.binary.xlu1.c.b16.start.end [1/2] (short) (narrow) %v1933_v16, %v1932_v14, 16  ;;  %v704_v47 = vrot.slane %v689_v41, 4  ;;  %v852_v50 = vpack.c.bf16 %v689_v41, %v689_v41  ;;  %v693_v52 = vsel %vm490_vm2, %v677_v12, %v692_v49  ;;  %v825_v59 = vsel %vm490_vm2, 0.0, %v824_v56 }
 0x25e   : > { %v707_v33 = vsel %vm490_vm2, 0.0, %v706_v28  ;;  %v771_v39 = vsel %vm490_vm2, 0.0, %v770_v37  ;;  %v701_v53 = vperm.slane %v693_v52, %v3876_v24 }
 0x25f   : > { %v855_v15 = vpack.c.bf16 %v707_v33, %v707_v33  ;;  %v1925_v43 = vpack.c.bf16 %v771_v39, %v771_v39  ;;  %v705_v48 = vsel %vm490_vm2, 0.0, %v704_v47 }
 0x260   : > { %v853_v51 = vpack.c.bf16 %v705_v48, %v705_v48  ;;  %v708_v32 = vrot.slane %v701_v53, 4  ;;  %v856_v16 = vpack.c.bf16 %v701_v53, %v701_v53 }
 0x262   : > { %v709_v14 = vsel %vm490_vm2, 0.0, %v708_v32 }
 0x263   : > { %3466 = vxpose.binary.xlu0.c.b16.start.end [1/2] (short) (narrow) %v851_v62, %v850_v61, 16  ;;  %v857_v54 = vpack.c.bf16 %v709_v14, %v709_v14  ;;  %v1935_v61 = vpack.c.bf16 %v825_v59, %v825_v59 }
 0x26c   : > { %3451 = vxpose.binary.xlu2.c.b16.start.end [1/2] (short) (narrow) %v1927_v18, %v1926_v17, 16 }
 0x273   : > { %3469 = vxpose.binary.xlu0.c.b16.start.end [1/2] (short) (narrow) %v1929_v20, %v1928_v1, 16 }
 0x27c   : > { %3454 = vxpose.binary.xlu2.c.b16.start.end [1/2] (short) (narrow) %v847_v30, %v846_v29, 16 }
 0x283   : > { %3478 = vxpose.binary.xlu0.c.b16.start.end [1/2] (short) (narrow) %v855_v15, %v854_v36, 16 }
 0x28c   : > { %3457 = vxpose.binary.xlu2.c.b16.start.end [1/2] (short) (narrow) %v1925_v43, %v1924_v42, 16 }
 0x29c   : > { %3460 = vxpose.binary.xlu2.c.b16.start.end [1/2] (short) (narrow) %v853_v51, %v852_v50, 16 }
 0x2ac   : > { %3472 = vxpose.binary.xlu2.c.b16.start.end [1/2] (short) (narrow) %v857_v54, %v856_v16, 16 }
 0x2bc   : > { %3475 = vxpose.binary.xlu2.c.b16.start.end [1/2] (short) (narrow) %v1935_v61, %v1934_v60, 16 }
 0x2df   : > { %v3440_v55 = vpop.trf.xlu1 }
 0x2e0   : > { %v3446_v62 = vpop.trf.xlu0  ;;  %v2206_v29 = vrot.slane %v3440_v55, 4 }
 0x2e1   : > { %v2194_v15 = vrot.slane %v3446_v62, 4 }
 0x2e7   : > { %v3441_v20 = vpop.trf.xlu1 }
 0x2e8   : > { %v4071_v63 = vpop.trf.xlu0  ;;  %v2318_v37 = vrot.slane %v3441_v20, 4 }
 0x2e9   : > { %v2306_v60 = vrot.slane %v4071_v63, 4 }
 0x2ed   : > { %v3437_v57 = vpop.trf.xlu2 }
 0x2ee   : > { %v1213_v3 = vrot.slane %v3437_v57, 4 }
 0x2f5   : > { %v3438_v2 = vpop.trf.xlu2 }
 0x2f6   : > { %v1325_v10 = vrot.slane %v3438_v2, 4 }
 0x2f9   : > { %v3443_v28 = vpop.trf.xlu1 }
 0x2fa   : > { %v1201_v48 = vrot.slane %v3443_v28, 4 }
 0x2fd   : > { %v3449_v4 = vpop.trf.xlu2 }
 0x2fe   : > { %v1211_v5 = vrot.slane %v3449_v4, 4  ;;  %v1214_v0 = vsel %vm490_vm2, %v3449_v4, %v1213_v3 }
 0x2ff   : > { %v4074_v8 = vpop.trf.xlu0 }
 0x300   : > { %v4077_v38 = vsel %vm490_vm2, %v1211_v5, %v3437_v57 }
 0x301   : > { %v3444_v35 = vpop.trf.xlu1 }
 0x305   : > { %v3450_v12 = vpop.trf.xlu2 }
 0x306   : > { %v1323_v17 = vrot.slane %v3450_v12, 4  ;;  %v4080_v18 = vsel %vm490_vm2, %v3450_v12, %v1325_v10  ;;  %v1222_v12 = vperm.slane %v1214_v0, %v3868_v9 }
 0x307   : > { %v4085_v45 = vpop.trf.xlu0 }
 0x308   : > { %v4083_v34 = vsel %vm490_vm2, %v1323_v17, %v3438_v2 }
 0x309   : > { %v3482_v51 = vpop.trf.xlu1 }
 0x30d   : > { %v3452_v19 = vpop.trf.xlu2 }
 0x30e   : > { %v2204_v21 = vrot.slane %v3452_v19, 4  ;;  %v2207_v33 = vsel %vm490_vm2, %v3452_v19, %v2206_v29  ;;  %v1330_v29 = vperm.slane %v4083_v34, %v3868_v9 }
 0x30f   : > { %v4088_v1 = vpop.trf.xlu0  ;;  %v2215_v36 = vperm.slane %v2207_v33, %v3868_v9 }
 0x310   : > { %v2205_v22 = vsel %vm490_vm2, %v2204_v21, %v3440_v55 }
 0x311   : > { %v2211_v39 = vperm.slane %v2205_v22, %v3868_v9  ;;  %v2252_v44 = vrot.slane %v2215_v36, 4 }
 0x313   : > { %v2240_v52 = vrot.slane %v2211_v39, 4 }
 0x315   : > { %v3453_v23 = vpop.trf.xlu2 }
 0x316   : > { %v2316_v25 = vrot.slane %v3453_v23, 4  ;;  %v2319_v47 = vsel %vm490_vm2, %v3453_v23, %v2318_v37 }
 0x317   : > { %v4091_v27 = vpop.trf.xlu0  ;;  %v4109_v54 = vperm.slane %v2319_v47, %v3868_v9 }
 0x318   : > { %v2317_v26 = vsel %vm490_vm2, %v2316_v25, %v3441_v20 }
 0x319   : > { %v2323_v61 = vperm.slane %v2317_v26, %v3868_v9  ;;  %v2364_v17 = vrot.slane %v4109_v54, 4 }
 0x31b   : > { %v2352_v21 = vrot.slane %v2323_v61, 4 }
 0x31d   : > { %v3455_v46 = vpop.trf.xlu2 }
 0x31e   : > { %v1199_v16 = vrot.slane %v3455_v46, 4  ;;  %v1202_v57 = vsel %vm490_vm2, %v3455_v46, %v1201_v48  ;;  %v2216_v46 = vrot.slane %v3482_v51, 4 }
 0x31f   : > { %v4093_v31 = vpop.trf.xlu0  ;;  %v1210_v22 = vperm.slane %v1202_v57, %v3868_v9 }
 0x320   : > { %v1200_v4 = vsel %vm490_vm2, %v1199_v16, %v3443_v28  ;;  %v1218_v28 = vperm.slane %v4077_v38, %v3868_v9  ;;  %v2230_v38 = vrot.slane %v4074_v8, 4  ;;  %v2342_v16 = vrot.slane %v4085_v45, 4 }
 0x321   : > { %v1206_v25 = vperm.slane %v1200_v4, %v3868_v9 }
 0x323   : > { %v1249_v34 = vrot.slane %v1206_v25, 4 }
 0x325   : > { %v3456_v30 = vpop.trf.xlu2  ;;  %v1250_v4 = vsel %vm490_vm2, %v1218_v28, %v1249_v34 }
 0x326   : > { %v1311_v55 = vrot.slane %v3456_v30, 4 }
 0x327   : > { %v4101_v49 = vpop.trf.xlu0 }
 0x32d   : > { %v3458_v40 = vpop.trf.xlu2 }
 0x32e   : > { %v2192_v42 = vrot.slane %v3458_v40, 4  ;;  %v2195_v43 = vsel %vm490_vm2, %v3458_v40, %v2194_v15  ;;  %v1312_v15 = vsel %vm490_vm2, %v1311_v55, %v3444_v35 }
 0x32f   : > { %v2203_v41 = vperm.slane %v2195_v43, %v3868_v9  ;;  %v3479_v33 = vpop.trf.xlu0  ;;  %v1261_v43 = vrot.slane %v1210_v22, 4  ;;  %v1318_v48 = vperm.slane %v1312_v15, %v3868_v9 }
 0x330   : > { %v2193_v50 = vsel %vm490_vm2, %v2192_v42, %v3446_v62  ;;  %v1313_v62 = vrot.slane %v3444_v35, 4  ;;  %v1259_v42 = vrot.slane %v1222_v12, 4  ;;  %v1247_v35 = vrot.slane %v1218_v28, 4 }
 0x331   : > { %v2199_v53 = vperm.slane %v2193_v50, %v3868_v9  ;;  %v4106_v32 = vsel %vm490_vm2, %v2252_v44, %v2203_v41  ;;  %v2254_v14 = vrot.slane %v2203_v41, 4  ;;  %v2330_v50 = vrot.slane %v4101_v49, 4 }
 0x332   : > { %v1314_v20 = vsel %vm490_vm2, %v3456_v30, %v1313_v62  ;;  %v1334_v30 = vperm.slane %v4080_v18, %v3868_v9  ;;  %v2217_v18 = vsel %vm490_vm2, %v2216_v46, %v4093_v31  ;;  %v1262_v62 = vsel %vm490_vm2, %v1222_v12, %v1261_v43 }
 0x333   : > { %v4112_v58 = vsel %vm490_vm2, %v2240_v52, %v2199_v53  ;;  %v2242_v56 = vrot.slane %v2199_v53, 4  ;;  %v4115_v59 = vsel %vm490_vm2, %v2215_v36, %v2254_v14  ;;  %v3483_v36 = vpop.trf.xlu1  ;;  %v1322_v37 = vperm.slane %v1314_v20, %v3868_v9 }
 0x334   : > { %v2328_v41 = vrot.slane %v3483_v36, 4  ;;  %v1359_v53 = vrot.slane %v1330_v29, 4  ;;  %v1371_v14 = vrot.slane %v1334_v30, 4  ;;  %v1248_v57 = vsel %vm490_vm2, %v1247_v35, %v1206_v25 }
 0x335   : > { %v3459_v2 = vpop.trf.xlu2  ;;  %v4121_v3 = vsel %vm490_vm2, %v2211_v39, %v2242_v56  ;;  %v1373_v56 = vrot.slane %v1322_v37, 4  ;;  %v2331_v12 = vsel %vm490_vm2, %v3483_v36, %v2330_v50  ;;  %v4195_v46 = vperm.slane %v1250_v4, %v3876_v24 }
 0x336   : > { %v2304_v5 = vrot.slane %v3459_v2, 4  ;;  %v2307_v10 = vsel %vm490_vm2, %v3459_v2, %v2306_v60  ;;  %v1260_v60 = vsel %vm490_vm2, %v1259_v42, %v1210_v22  ;;  %v1360_v22 = vsel %vm490_vm2, %v1359_v53, %v1318_v48 }
 0x337   : > { %v4128_v19 = vperm.slane %v2307_v10, %v3868_v9  ;;  %v1361_v10 = vrot.slane %v1318_v48, 4  ;;  %v4181_v55 = vperm.slane %v1260_v60, %v3876_v24  ;;  %v1374_v20 = vsel %vm490_vm2, %v1334_v30, %v1373_v56 }
 0x338   : > { %v2305_v23 = vsel %vm490_vm2, %v2304_v5, %v4071_v63  ;;  %v2218_v63 = vrot.slane %v4093_v31, 4  ;;  %v1225_v31 = vrot.slane %v4088_v1, 4  ;;  %v1337_v5 = vrot.slane %v4091_v27, 4 }
 0x339   : > { %v2311_v26 = vperm.slane %v2305_v23, %v3868_v9  ;;  %v4138_v0 = vsel %vm490_vm2, %v2364_v17, %v4128_v19  ;;  %v1372_v17 = vsel %vm490_vm2, %v1371_v14, %v1322_v37  ;;  %v3480_v23 = vpop.trf.xlu0  ;;  %v4203_v30 = vperm.slane %v2331_v12, %v3868_v9 }
 0x33a   : > { %v2219_v52 = vsel %vm490_vm2, %v3482_v51, %v2218_v63  ;;  %v2329_v51 = vsel %vm490_vm2, %v2328_v41, %v4101_v49  ;;  %v1223_v49 = vrot.slane %v3479_v33, 4  ;;  %v4198_v28 = vperm.slane %v1372_v17, %v3876_v24 }
 0x33b   : > { %v4150_v39 = vsel %vm490_vm2, %v2352_v21, %v2311_v26  ;;  %v2354_v40 = vrot.slane %v2311_v26, 4  ;;  %v4172_v2 = vperm.slane %v2219_v52, %v3868_v9  ;;  %v4184_v21 = vperm.slane %v1262_v62, %v3876_v24 }
 0x33c   : > { %v4189_v25 = vperm.slane %v2329_v51, %v3868_v9  ;;  %v4192_v26 = vperm.slane %v1248_v57, %v3876_v24  ;;  %v4208_v37 = vperm.slane %v1374_v20, %v3876_v24  ;;  %v4212_v42 = vperm.slane %v1360_v22, %v3876_v24 }
 0x33d   : > { %v4155_v44 = vpop.trf.xlu2  ;;  %v4158_v47 = vsel %vm490_vm2, %v2323_v61, %v2354_v40  ;;  %v4168_v61 = vperm.slane %v2217_v18, %v3868_v9  ;;  %v2278_v36 = vrot.slane %v4172_v2, 4  ;;  %v1226_v40 = vsel %vm490_vm2, %v3479_v33, %v1225_v31 }
 0x33e   : > { %v1362_v43 = vsel %vm490_vm2, %v1330_v29, %v1361_v10  ;;  %v2366_v34 = vrot.slane %v4128_v19, 4  ;;  %v1335_v18 = vrot.slane %v3480_v23, 4  ;;  %v1309_v41 = vrot.slane %v4184_v21, 4 }
 0x33f   : > { %v1305_v35 = vrot.slane %v4181_v55, 4  ;;  %v1224_v48 = vsel %vm490_vm2, %v1223_v49, %v4088_v1  ;;  %v1297_v52 = vrot.slane %v4192_v26, 4  ;;  %v1301_v33 = vrot.slane %v4195_v46, 4 }
 0x340   : > { %v4225_v53 = vperm.slane %v4106_v32, %v3876_v24  ;;  %v1234_v19 = vperm.slane %v1226_v40, %v3868_v9  ;;  %v1338_v29 = vsel %vm490_vm2, %v3480_v23, %v1337_v5  ;;  %v4230_v14 = vperm.slane %v1362_v43, %v3876_v24 }
 0x341   : > { %v1421_v1 = vrot.slane %v4208_v37, 4  ;;  %v1417_v31 = vrot.slane %v4198_v28, 4  ;;  %v1409_v60 = vrot.slane %v4212_v42, 4  ;;  %v4238_v62 = vperm.slane %v4115_v59, %v3876_v24 }
 0x342   : > { %v1230_v32 = vperm.slane %v1224_v48, %v3868_v9  ;;  %v2367_v57 = vsel %vm490_vm2, %v4109_v54, %v2366_v34  ;;  %v1336_v51 = vsel %vm490_vm2, %v1335_v18, %v4091_v27  ;;  %v4247_v4 = vperm.slane %v4112_v58, %v3876_v24 }
 0x343   : > { %v4250_v5 = vperm.slane %v1338_v29, %v3868_v9  ;;  %v1237_v10 = vrot.slane %v4155_v44, 4  ;;  %v4255_v59 = vperm.slane %v4121_v3, %v3876_v24  ;;  %v1285_v12 = vrot.slane %v1234_v19, 4 }
 0x344   : > { %v4260_v54 = vperm.slane %v4138_v0, %v3876_v24  ;;  %v1413_v58 = vrot.slane %v4230_v14, 4  ;;  %v4264_v22 = vperm.slane %v2367_v57, %v3876_v24  ;;  %v4267_v20 = vperm.slane %v1336_v51, %v3868_v9 }
 0x345   : > { %v4205_v15 = vpop.trf.xlu2  ;;  %v1273_v23 = vrot.slane %v1230_v32, 4  ;;  %v4272_v40 = vperm.slane %v4150_v39, %v3876_v24  ;;  %v2302_v43 = vrot.slane %v4238_v62, 4  ;;  %v1397_v34 = vrot.slane %v4250_v5, 4 }
 0x346   : > { %v4285_v39 = vperm.slane %v4158_v47, %v3876_v24 }
 0x34d   : > { %v3473_v27 = vpop.trf.xlu2 }
 0x34e   : > { %v1235_v49 = vrot.slane %v3473_v27, 4  ;;  %v1238_v3 = vsel %vm490_vm2, %v3473_v27, %v1237_v10 }
 0x34f   : > { %v1246_v0 = vperm.slane %v1238_v3, %v3868_v9  ;;  %v1385_v3 = vrot.slane %v4267_v20, 4 }
 0x350   : > { %v1236_v18 = vsel %vm490_vm2, %v1235_v49, %v4155_v44 }
 0x351   : > { %v1242_v57 = vperm.slane %v1236_v18, %v3868_v9  ;;  %v1283_v51 = vrot.slane %v1246_v0, 4  ;;  %v1286_v10 = vsel %vm490_vm2, %v1246_v0, %v1285_v12  ;;  %v1349_v0 = vrot.slane %v4205_v15, 4 }
 0x352   : > { %v4290_v11 = vperm.slane %v1286_v10, %v3876_v24 }
 0x353   : > { %v1271_v49 = vrot.slane %v1242_v57, 4  ;;  %v1274_v29 = vsel %vm490_vm2, %v1242_v57, %v1273_v23  ;;  %v1284_v18 = vsel %vm490_vm2, %v1283_v51, %v1234_v19 }
 0x354   : > { %v1310_v47 = vsel %vm490_vm2, %v4290_v11, %v1309_v41  ;;  %v1290_v48 = vperm.slane %v1284_v18, %v3876_v24  ;;  %v1282_v27 = vperm.slane %v1274_v29, %v3876_v24  ;;  %v1307_v63 = vrot.slane %v4290_v11, 4 }
 0x355   : > { %v3474_v10 = vpop.trf.xlu2  ;;  %v1483_v17 = vshrl.u32 %v1310_v47, 16  ;;  %v1272_v50 = vsel %vm490_vm2, %v1271_v49, %v1230_v32 }
 0x356   : > { %v1347_v19 = vrot.slane %v3474_v10, 4  ;;  %v1350_v57 = vsel %vm490_vm2, %v3474_v10, %v1349_v0  ;;  %v1306_v51 = vsel %vm490_vm2, %v1290_v48, %v1305_v35  ;;  %v1278_v12 = vperm.slane %v1272_v50, %v3876_v24 }
 0x357   : > { %v1358_v41 = vperm.slane %v1350_v57, %v3868_v9  ;;  %v1467_v18 = vshrl.u32 %v1306_v51, 16  ;;  %v1303_v44 = vrot.slane %v1290_v48, 4  ;;  %v1299_v29 = vrot.slane %v1282_v27, 4 }
 0x358   : > { %v1348_v56 = vsel %vm490_vm2, %v1347_v19, %v4205_v15  ;;  %v1298_v32 = vsel %vm490_vm2, %v1278_v12, %v1297_v52  ;;  %v4316_v49 = vsel %vm490_vm2, %v1282_v27, %v1301_v33  ;;  %v1295_v35 = vrot.slane %v1278_v12, 4 }
 0x359   : > { %v1354_v50 = vperm.slane %v1348_v56, %v3868_v9  ;;  %v1395_v0 = vrot.slane %v1358_v41, 4  ;;  %v1398_v10 = vsel %vm490_vm2, %v1358_v41, %v1397_v34  ;;  %v1435_v48 = vshrl.u32 %v1298_v32, 16 }
 0x35a   : > { %v4321_v57 = vperm.slane %v1398_v10, %v3876_v24  ;;  %v4325_v15 = vsel %vm490_vm2, %v1303_v44, %v4181_v55  ;;  %v4329_v52 = vsel %vm490_vm2, %v1299_v29, %v4195_v46  ;;  %v1451_v33 = vshrl.u32 %v4316_v49, 16 }
 0x35b   : > { %v1383_v27 = vrot.slane %v1354_v50, 4  ;;  %v1386_v56 = vsel %vm490_vm2, %v1354_v50, %v1385_v3  ;;  %v1396_v34 = vsel %vm490_vm2, %v1395_v0, %v4250_v5  ;;  %v1459_v12 = vshrl.u32 %v4325_v15, 16 }
 0x35c   : > { %v1422_v55 = vsel %vm490_vm2, %v4321_v57, %v1421_v1  ;;  %v1402_v44 = vperm.slane %v1396_v34, %v3876_v24  ;;  %v1394_v46 = vperm.slane %v1386_v56, %v3876_v24  ;;  %v1443_v19 = vshrl.u32 %v4329_v52, 16 }
 0x35d   : > { %v3476_v41 = vpop.trf.xlu2  ;;  %v1481_v29 = vpack.i.b16 %v1422_v55, %v1310_v47  ;;  %v1484_v10 = vshrl.u32 %v1422_v55, 16  ;;  %v1384_v3 = vsel %vm490_vm2, %v1383_v27, %v4267_v20  ;;  %v4347_v5 = vsel %vm490_vm2, %v1295_v35, %v4192_v26 }
 0x35e   : > { %v2228_v50 = vrot.slane %v3476_v41, 4  ;;  %v2231_v1 = vsel %vm490_vm2, %v3476_v41, %v2230_v38  ;;  %v1418_v0 = vsel %vm490_vm2, %v1402_v44, %v1417_v31  ;;  %v1390_v56 = vperm.slane %v1384_v3, %v3876_v24 }
 0x35f   : > { %v2239_v47 = vperm.slane %v2231_v1, %v3868_v9  ;;  %v1485_v34 = vpack.i.b16 %v1484_v10, %v1483_v17  ;;  %v1465_v55 = vpack.i.b16 %v1418_v0, %v1306_v51  ;;  %v1468_v20 = vshrl.u32 %v1418_v0, 16 }
 0x360   : > { %v2229_v26 = vsel %vm490_vm2, %v2228_v50, %v4074_v8  ;;  %v1410_v35 = vsel %vm490_vm2, %v1390_v56, %v1409_v60  ;;  %v1415_v27 = vrot.slane %v1402_v44, 4  ;;  %v1411_v38 = vrot.slane %v1394_v46, 4 }
 0x361   : > { %v2235_v41 = vperm.slane %v2229_v26, %v3868_v9  ;;  %v2276_v23 = vrot.slane %v2239_v47, 4  ;;  %v2279_v31 = vsel %vm490_vm2, %v2239_v47, %v2278_v36  ;;  %3487 = vxpose.binary.xlu1.c.b16.start.end [1/2] (short) (narrow) %v1485_v34, %v1481_v29, 16  ;;  %v1469_v17 = vpack.i.b16 %v1468_v20, %v1467_v18 }
 0x362   : > { %v4367_v51 = vperm.slane %v2279_v31, %v3876_v24  ;;  %v1433_v10 = vpack.i.b16 %v1410_v35, %v1298_v32  ;;  %v1436_v8 = vshrl.u32 %v1410_v35, 16  ;;  %v1416_v3 = vsel %vm490_vm2, %v1415_v27, %v4198_v28 }
 0x363   : > { %v2264_v60 = vrot.slane %v2235_v41, 4  ;;  %v2277_v44 = vsel %vm490_vm2, %v2276_v23, %v4172_v2  ;;  %3484 = vxpose.binary.xlu2.c.b16.start.end [1/2] (short) (narrow) %v1469_v17, %v1465_v55, 16  ;;  %v1457_v50 = vpack.i.b16 %v1416_v3, %v4325_v15  ;;  %v1460_v1 = vshrl.u32 %v1416_v3, 16 }
 0x364   : > { %v4375_v36 = vperm.slane %v2277_v44, %v3876_v24  ;;  %v2300_v18 = vrot.slane %v4367_v51, 4  ;;  %v1437_v29 = vpack.i.b16 %v1436_v8, %v1435_v48  ;;  %v1412_v32 = vsel %vm490_vm2, %v1411_v38, %v4230_v14 }
 0x365   : > { %v4382_v28 = vsel %vm490_vm2, %v2264_v60, %v4168_v61  ;;  %v3477_v0 = vpop.trf.xlu2  ;;  %v1461_v47 = vpack.i.b16 %v1460_v1, %v1459_v12  ;;  %v1441_v2 = vpack.i.b16 %v1412_v32, %v4329_v52  ;;  %v1444_v23 = vshrl.u32 %v1412_v32, 16 }
 0x366   : > { %v2296_v15 = vrot.slane %v4375_v36, 4  ;;  %3490 = vxpose.binary.xlu0.c.b16.start.end [1/2] (short) (narrow) %v1437_v29, %v1433_v10, 16  ;;  %v2340_v34 = vrot.slane %v3477_v0, 4  ;;  %v2343_v48 = vsel %vm490_vm2, %v3477_v0, %v2342_v16  ;;  %v4392_v55 = vsel %vm490_vm2, %v1394_v46, %v1413_v58 }
 0x367   : > { %v2351_v20 = vperm.slane %v2343_v48, %v3868_v9  ;;  %v1445_v26 = vpack.i.b16 %v1444_v23, %v1443_v19  ;;  %v1449_v52 = vpack.i.b16 %v4392_v55, %v4316_v49  ;;  %v1452_v12 = vshrl.u32 %v4392_v55, 16 }
 0x368   : > { %v2341_v35 = vsel %vm490_vm2, %v2340_v34, %v4085_v45  ;;  %v4404_v16 = vsel %vm490_vm2, %v4367_v51, %v2302_v43  ;;  %v1407_v14 = vrot.slane %v1390_v56, 4  ;;  %v1427_v58 = vshrl.u32 %v4347_v5, 16 }
 0x369   : > { %v2347_v46 = vperm.slane %v2341_v35, %v3868_v9  ;;  %v2388_v19 = vrot.slane %v2351_v20, 4  ;;  %v4818_v27 = vrot.slane %v4203_v30, 4  ;;  %v1453_v31 = vpack.i.b16 %v1452_v12, %v1451_v33 }
 0x36a   : > { %v2476_v17 = vshrl.u32 %v4404_v16, 16  ;;  %v4417_v43 = vsel %vm490_vm2, %v1407_v14, %v4212_v42  ;;  %v4423_v56 = vsel %vm490_vm2, %v1307_v63, %v4184_v21  ;;  %v4819_v42 = vrot.slane %v4264_v22, 4 }
 0x36b   : > { %v2391_v38 = vsel %vm490_vm2, %v2351_v20, %v4818_v27  ;;  %v2376_v51 = vrot.slane %v2347_v46, 4  ;;  %v2389_v10 = vsel %vm490_vm2, %v2388_v19, %v4203_v30  ;;  %v1425_v49 = vpack.i.b16 %v4417_v43, %v4347_v5 }
 0x36c   : > { %v2399_v45 = vperm.slane %v2391_v38, %v3876_v24  ;;  %v1428_v33 = vshrl.u32 %v4417_v43, 16  ;;  %v2395_v8 = vperm.slane %v2389_v10, %v3876_v24  ;;  %v1419_v11 = vrot.slane %v4321_v57, 4 }
 0x36d   : > { %v2377_v21 = vsel %vm490_vm2, %v2376_v51, %v4189_v25  ;;  %v1475_v32 = vshrl.u32 %v4423_v56, 16  ;;  %v4820_v0 = vrot.slane %v4168_v61, 4  ;;  %v4821_v20 = vrot.slane %v4189_v25, 4 }
 0x36e   : > { %v2412_v3 = vrot.slane %v2399_v45, 4  ;;  %v4434_v60 = vsel %vm490_vm2, %v2399_v45, %v4819_v42  ;;  %v4442_v44 = vpack.i.b16 %v1428_v33, %v1427_v58  ;;  %v2408_v1 = vrot.slane %v2395_v8, 4 }
 0x36f   : > { %v2474_v63 = vpack.i.b16 %v4434_v60, %v4404_v16  ;;  %v2477_v30 = vshrl.u32 %v4434_v60, 16  ;;  %v4446_v29 = vsel %vm490_vm2, %v1419_v11, %v4208_v37  ;;  %v2267_v57 = vsel %vm490_vm2, %v2235_v41, %v4820_v0 }
 0x370   : > { %v1473_v34 = vpack.i.b16 %v4446_v29, %v4423_v56  ;;  %v1476_v48 = vshrl.u32 %v4446_v29, 16  ;;  %v2275_v55 = vperm.slane %v2267_v57, %v3876_v24  ;;  %v2379_v12 = vsel %vm490_vm2, %v2347_v46, %v4821_v20 }
 0x371   : > { %v2478_v23 = vpack.i.b16 %v2477_v30, %v2476_v17  ;;  %v4822_v37 = vrot.slane %v4225_v53, 4  ;;  %v4823_v61 = vrot.slane %v4260_v54, 4  ;;  %v4472_v14 = vsel %vm490_vm2, %v2300_v18, %v4238_v62  ;;  %3493 = vxpose.binary.xlu1.c.b16.start.end [1/2] (short) (narrow) %v1461_v47, %v1457_v50, 16 }
 0x372   : > { %v1477_v58 = vpack.i.b16 %v1476_v48, %v1475_v32  ;;  %v2292_v25 = vrot.slane %v2275_v55, 4  ;;  %v4824_v46 = vrot.slane %v4255_v59, 4  ;;  %v2387_v27 = vperm.slane %v2379_v12, %v3876_v24 }
 0x373   : > { %v4463_v35 = vsel %vm490_vm2, %v4375_v36, %v4822_v37  ;;  %v4468_v41 = vsel %vm490_vm2, %v2395_v8, %v4823_v61  ;;  %3511 = vxpose.binary.xlu2.c.b16.start.end [1/2] (short) (narrow) %v1445_v26, %v1441_v2, 16  ;;  %v4825_v62 = vrot.slane %v4285_v39, 4  ;;  %v4487_v47 = vsel %vm490_vm2, %v2412_v3, %v4264_v22 }
 0x374   : > { %v2295_v19 = vsel %vm490_vm2, %v2275_v55, %v4824_v46  ;;  %v2458_v45 = vpack.i.b16 %v4468_v41, %v4463_v35  ;;  %v2460_v17 = vshrl.u32 %v4463_v35, 16  ;;  %v2461_v56 = vshrl.u32 %v4468_v41, 16 }
 0x375   : > { %v2444_v38 = vshrl.u32 %v2295_v19, 16  ;;  %v2407_v50 = vsel %vm490_vm2, %v2387_v27, %v4825_v62  ;;  %v2404_v18 = vrot.slane %v2387_v27, 4  ;;  %v2468_v51 = vshrl.u32 %v4472_v14, 16 }
 0x376   : > { %v2442_v10 = vpack.i.b16 %v2407_v50, %v2295_v19  ;;  %v2445_v33 = vshrl.u32 %v2407_v50, 16  ;;  %v4490_v8 = vpack.i.b16 %v2461_v56, %v2460_v17  ;;  %v2466_v42 = vpack.i.b16 %v4487_v47, %v4472_v14  ;;  %3499 = vxpose.binary.xlu0.c.b16.start.end [1/2] (short) (narrow) %v1453_v31, %v1449_v52, 16 }
 0x377   : > { %v2469_v2 = vshrl.u32 %v4487_v47, 16  ;;  %v2271_v26 = vperm.slane %v4382_v28, %v3876_v24  ;;  %v2383_v11 = vperm.slane %v2377_v21, %v3876_v24  ;;  %v4500_v22 = vsel %vm490_vm2, %v2292_v25, %v4255_v59 }
 0x378   : > { %v2446_v3 = vpack.i.b16 %v2445_v33, %v2444_v38  ;;  %v4504_v30 = vsel %vm490_vm2, %v2404_v18, %v4285_v39  ;;  %v2436_v29 = vshrl.u32 %v4500_v22, 16  ;;  %v4511_v32 = vsel %vm490_vm2, %v2296_v15, %v4225_v53 }
 0x379   : > { %v4513_v28 = vpack.i.b16 %v2469_v2, %v2468_v51  ;;  %v4826_v21 = vrot.slane %v4247_v4, 4  ;;  %v4827_v52 = vrot.slane %v4272_v40, 4  ;;  %v2434_v31 = vpack.i.b16 %v4504_v30, %v4500_v22 }
 0x37a   : > { %v2437_v0 = vshrl.u32 %v4504_v30, 16  ;;  %v4534_v57 = vsel %vm490_vm2, %v2408_v1, %v4260_v54  ;;  %v2452_v48 = vshrl.u32 %v4511_v32, 16  ;;  %v2288_v55 = vrot.slane %v2271_v26, 4 }
 0x37b   : > { %v4518_v59 = vsel %vm490_vm2, %v2271_v26, %v4826_v21  ;;  %v4523_v39 = vsel %vm490_vm2, %v2383_v11, %v4827_v52  ;;  %v2400_v20 = vrot.slane %v2383_v11, 4  ;;  %v2450_v61 = vpack.i.b16 %v4534_v57, %v4511_v32 }
 0x37c   : > { %v2426_v36 = vpack.i.b16 %v4523_v39, %v4518_v59  ;;  %v2428_v53 = vshrl.u32 %v4518_v59, 16  ;;  %v2429_v15 = vshrl.u32 %v4523_v39, 16  ;;  %v4539_v37 = vpack.i.b16 %v2437_v0, %v2436_v29 }
 0x37d   : > { %v2453_v25 = vshrl.u32 %v4534_v57, 16  ;;  %v4546_v46 = vsel %vm490_vm2, %v2288_v55, %v4247_v4  ;;  %v4550_v54 = vsel %vm490_vm2, %v2400_v20, %v4272_v40 }
 0x37e   : > { %v4537_v12 = vpack.i.b16 %v2429_v15, %v2428_v53  ;;  %v2418_v19 = vpack.i.b16 %v4550_v54, %v4546_v46  ;;  %v2420_v27 = vshrl.u32 %v4546_v46, 16  ;;  %v2421_v38 = vshrl.u32 %v4550_v54, 16 }
 0x37f   : > { %v4552_v1 = vpack.i.b16 %v2453_v25, %v2452_v48 }
 0x380   : > { %v4558_v17 = vpack.i.b16 %v2421_v38, %v2420_v27 }
 0x381   : > { %3496 = vxpose.binary.xlu1.c.b16.start.end [1/2] (short) (narrow) %v2478_v23, %v2474_v63, 16 }
 0x386   : > { %3505 = vxpose.binary.xlu0.c.b16.start.end [1/2] (short) (narrow) %v4442_v44, %v1425_v49, 16 }
 0x391   : > { %3502 = vxpose.binary.xlu1.c.b16.start.end [1/2] (short) (narrow) %v1477_v58, %v1473_v34, 16 }
 0x396   : > { %3508 = vxpose.binary.xlu0.c.b16.start.end [1/2] (short) (narrow) %v2446_v3, %v2442_v10, 16 }
 0x404   : > { %v3485_v18 = vpop.trf.xlu2 }
 0x40c   : > { %v3486_v2 = vpop.trf.xlu2 }
 0x40d   : > { %v3488_v4 = vpop.trf.xlu1 }
 0x40e   : > { %v1761_v5 = vrot.slane %v3488_v4, 4 }
 0x410   : > { %v1762_v49 = vsel %vm490_vm2, %v1761_v5, %v3485_v18 }
 0x411   : > { %v1766_v44 = vperm.slane %v1762_v49, %v3868_v9 }
 0x412   : > { %v3491_v40 = vpop.trf.xlu0 }
 0x413   : > { %v1773_v15 = vrot.slane %v1766_v44, 4 }
 0x414   : > { %v3512_v16 = vpop.trf.xlu2 }
 0x415   : > { %v3489_v56 = vpop.trf.xlu1  ;;  %v1743_v3 = vrot.slane %v3512_v16, 4 }
 0x416   : > { %v1799_v58 = vrot.slane %v3489_v56, 4 }
 0x418   : > { %v1800_v55 = vsel %vm490_vm2, %v1799_v58, %v3486_v2 }
 0x41a   : > { %v3492_v62 = vpop.trf.xlu0 }
 0x41c   : > { %v3513_v23 = vpop.trf.xlu2 }
 0x41d   : > { %v3494_v50 = vpop.trf.xlu1  ;;  %v1781_v52 = vrot.slane %v3513_v23, 4 }
 0x422   : > { %v3500_v51 = vpop.trf.xlu0 }
 0x423   : > { %v1749_v63 = vrot.slane %v3500_v51, 4 }
 0x425   : > { %v3495_v33 = vpop.trf.xlu1  ;;  %v1750_v21 = vsel %vm490_vm2, %v1749_v63, %v3491_v40  ;;  %v1804_v40 = vperm.slane %v1800_v55, %v3868_v9 }
 0x426   : > { %v1754_v27 = vperm.slane %v1750_v21, %v3868_v9 }
 0x427   : > { %v1811_v5 = vrot.slane %v1804_v40, 4 }
 0x42a   : > { %v3501_v26 = vpop.trf.xlu0 }
 0x42b   : > { %v1787_v10 = vrot.slane %v3501_v26, 4  ;;  %v1767_v26 = vrot.slane %v1754_v27, 4 }
 0x42d   : > { %v4567_v11 = vpop.trf.xlu1  ;;  %v1788_v20 = vsel %vm490_vm2, %v1787_v10, %v3492_v62 }
 0x42e   : > { %v1792_v56 = vperm.slane %v1788_v20, %v3868_v9 }
 0x432   : > { %v3506_v43 = vpop.trf.xlu0 }
 0x433   : > { %v1744_v25 = vsel %vm490_vm2, %v1743_v3, %v3506_v43  ;;  %v1805_v43 = vrot.slane %v1792_v56, 4 }
 0x435   : > { %v4569_v60 = vpop.trf.xlu1 }
 0x43a   : > { %v3507_v0 = vpop.trf.xlu0 }
 0x43b   : > { %v1782_v4 = vsel %vm490_vm2, %v1781_v52, %v3507_v0 }
 0x43c   : > { %v1786_v62 = vperm.slane %v1782_v4, %v3868_v9 }
 0x43d   : > { %v3503_v34 = vpop.trf.xlu1 }
 0x43e   : > { %v1755_v29 = vrot.slane %v3503_v34, 4  ;;  %v1806_v23 = vsel %vm490_vm2, %v1805_v43, %v1786_v62 }
 0x440   : > { %v1756_v53 = vsel %vm490_vm2, %v1755_v29, %v3494_v50  ;;  %v1748_v50 = vperm.slane %v1744_v25, %v3868_v9  ;;  %v1810_v29 = vperm.slane %v1806_v23, %v3876_v24 }
 0x441   : > { %v1760_v48 = vperm.slane %v1756_v53, %v3868_v9 }
 0x442   : > { %v1768_v63 = vsel %vm490_vm2, %v1767_v26, %v1748_v50 }
 0x443   : > { %v1774_v38 = vsel %vm490_vm2, %v1773_v15, %v1760_v48  ;;  %v1772_v58 = vperm.slane %v1768_v63, %v3876_v24  ;;  %v4828_v48 = vpack.c.b16 %v3950_v7, %v3948_v6 }
 0x444   : > { %v1778_v2 = vperm.slane %v1774_v38, %v3876_v24 }
 0x445   : > { %v3504_v18 = vpop.trf.xlu1 }
 0x446   : > { %v1793_v51 = vrot.slane %v3504_v18, 4  ;;  %v1779_v44 = vrot.slane %v1778_v2, 4 }
 0x448   : > { %v1794_v16 = vsel %vm490_vm2, %v1793_v51, %v3495_v33  ;;  %v1780_v3 = vsel %vm490_vm2, %v1779_v44, %v1772_v58  ;;  %v2754_v44 = vrot.slane %v4567_v11, 4  ;;  %v2792_v58 = vrot.slane %v4569_v60, 4 }
 0x449   : > { %v1798_v49 = vperm.slane %v1794_v16, %v3868_v9  ;;  %v1823_v53 = vshrl.u32 %v1780_v3, 16 }
 0x44b   : > { %v1812_v34 = vsel %vm490_vm2, %v1811_v5, %v1798_v49 }
 0x44c   : > { %v1816_v10 = vperm.slane %v1812_v34, %v3876_v24 }
 0x44e   : > { %v1817_v33 = vrot.slane %v1816_v10, 4 }
 0x450   : > { %v1818_v21 = vsel %vm490_vm2, %v1817_v33, %v1810_v29 }
 0x451   : > { %v1821_v52 = vpack.i.b16 %v1818_v21, %v1780_v3  ;;  %v1824_v15 = vshrl.u32 %v1818_v21, 16 }
 0x453   : > { %1841 = vmatpush.bf16.msra.mxu3 %v1821_v52  ;;  %v1825_v0 = vpack.i.b16 %v1824_v15, %v1823_v53 }
 0x456   : > { %3343 = vmatmul.msk.bf16.vlgmr.msra.gmra.mxu3 %vm1830_vm3, %v4828_v48 }
 0x457   : > { %1861 = vmatpush.bf16.msrb.mxu3 %v1825_v0 }
 0x466   : > { %3344 = vmatmul.msk.bf16.vlgmr.msrb.gmra.mxu3 %vm1830_vm3, %v3954_v13  ;;  %v3509_v13 = vpop.trf.xlu0 }
 0x467   : > { %v2742_v22 = vrot.slane %v3509_v13, 4 }
 0x46e   : > { %v4619_v51 = vpop.trf.xlu0 }
 0x4d9   : > { %v1843_v55 = vpop.f32.mrf.mxu3 }
 0x4da   : > { %v1868_v20 = vmul.f32 0.25, %v1843_v55 }
 0x4dc   : > { %v1872_v25 = vsel %vm1830_vm3, %v1868_v20, -inf }
 0x4dd   : > { %1873 = vmax.xlane.f32.xlu0 %v1872_v25 }
 0x4e1   : > { %v1845_v27 = vpop.f32.mrf.mxu3 }
 0x4e2   : > { %v1869_v38 = vmul.f32 0.25, %v1845_v27 }
 0x4e4   : > { %v1875_v4 = vsel %vm1830_vm3, %v1869_v38, -inf }
 0x4e5   : > { %1876 = vmax.xlane.f32.xlu1 %v1875_v4 }
 0x4e9   : > { %v1863_v40 = vpop.f32.mrf.mxu3 }
 0x4ea   : > { %v1870_v56 = vmul.f32 0.25, %v1863_v40 }
 0x4ec   : > { %v1878_v50 = vsel %vm1830_vm3, %v1870_v56, -inf }
 0x4ed   : > { %1879 = vmax.xlane.f32.xlu2 %v1878_v50 }
 0x4f1   : > { %v1865_v6 = vpop.f32.mrf.mxu3 }
 0x4f2   : > { %v1871_v7 = vmul.f32 0.25, %v1865_v6 }
 0x4f4   : > { %v1881_v18 = vsel %vm1830_vm3, %v1871_v7, -inf }
 0x4f5   : > { %1882 = vmax.xlane.f32.xlu0 %v1881_v18 }
 0x516   : > { %3514 = vxpose.binary.xlu2.c.b16.start.end [1/2] (short) (narrow) %v4490_v8, %v2458_v45, 16 }
 0x51e   : > { %3517 = vxpose.binary.xlu0.c.b16.start.end [1/2] (short) (narrow) %v4513_v28, %v2466_v42, 16 }
 0x51f   : > { %3520 = vxpose.binary.xlu1.c.b16.start.end [1/2] (short) (narrow) %v4537_v12, %v2426_v36, 16 }
 0x550   : > { %v1874_v2 = vpop.xlane.xlu0 %1873 }
 0x551   : > { %v1884_v28 = vsub.f32 %v1868_v20, %v1874_v2 }
 0x553   : > { %v1888_v39 = vmul.f32 1.442695, %v1884_v28 }
 0x558   : > { %v1877_v26 = vpop.xlane.xlu1 %1876 }
 0x559   : > { %v1885_v62 = vsub.f32 %v1869_v38, %v1877_v26 }
 0x55b   : > { %v1890_v16 = vmul.f32 1.442695, %v1885_v62 }
 0x55d   : > { %3555 = vpow2.f32 %v1890_v16 }
 0x560   : > { %v1880_v35 = vpop.xlane.xlu2 %1879 }
 0x561   : > { %v1886_v45 = vsub.f32 %v1870_v56, %v1880_v35 }
 0x563   : > { %v1892_v14 = vmul.f32 1.442695, %v1886_v45  ;;  %v3556_v42 = vpop.eup %3555 }
 0x564   : > { %v1899_v59 = vsel %vm1830_vm3, %v3556_v42, 0.0 }
 0x565   : > { %3557 = vpow2.f32 %v1892_v14  ;;  %v2780_v14 = vrot.slane %v4619_v51, 4 }
 0x568   : > { %v1883_v41 = vpop.xlane.xlu0 %1882 }
 0x569   : > { %v1887_v8 = vsub.f32 %v1871_v7, %v1883_v41 }
 0x56b   : > { %v1894_v47 = vmul.f32 1.442695, %v1887_v8  ;;  %v3558_v36 = vpop.eup %3557 }
 0x56c   : > { %v1902_v5 = vsel %vm1830_vm3, %v3558_v36, 0.0 }
 0x56d   : > { %3559 = vpow2.f32 %v1894_v47 }
 0x56e   : > { %3561 = vpow2.f32 %v1888_v39 }
 0x573   : > { %v3560_v12 = vpop.eup %3559 }
 0x574   : > { %v1905_v43 = vsel %vm1830_vm3, %v3560_v12, 0.0  ;;  %v3562_v49 = vpop.eup %3561 }
 0x575   : > { %v1896_v63 = vsel %vm1830_vm3, %v3562_v49, 0.0 }
 0x57f   : > { %1900 = vadd.xlane.f32.xlu1 %v1899_v59 }
 0x587   : > { %1903 = vadd.xlane.f32.xlu2 %v1902_v5  ;;  %1906 = vadd.xlane.f32.xlu1 %v1905_v43 }
 0x58f   : > { %1897 = vadd.xlane.f32.xlu0 %v1896_v63 }
 0x5b0   : > { %3523 = vxpose.binary.xlu2.c.b16.start.end [1/2] (short) (narrow) %v4539_v37, %v2434_v31, 16 }
 0x5b7   : > { %v3515_v23 = vpop.trf.xlu2 }
 0x5b8   : > { %v2755_v34 = vsel %vm490_vm2, %v2754_v44, %v3515_v23  ;;  %3526 = vxpose.binary.xlu0.c.b16.start.end [1/2] (short) (narrow) %v4552_v1, %v2450_v61, 16 }
 0x5b9   : > { %v2759_v50 = vperm.slane %v2755_v34, %v3868_v9 }
 0x5bb   : > { %v2766_v2 = vrot.slane %v2759_v50, 4 }
 0x5bf   : > { %v3516_v10 = vpop.trf.xlu2 }
 0x5c0   : > { %v2793_v3 = vsel %vm490_vm2, %v2792_v58, %v3516_v10 }
 0x5c1   : > { %3529 = vxpose.binary.xlu1.c.b16.start.end [1/2] (short) (narrow) %v4558_v17, %v2418_v19, 16  ;;  %v2797_v16 = vperm.slane %v2793_v3, %v3868_v9 }
 0x5c3   : > { %v2804_v28 = vrot.slane %v2797_v16, 4 }
 0x5ca   : > { %v3518_v11 = vpop.trf.xlu0 }
 0x5cb   : > { %v3521_v30 = vpop.trf.xlu1  ;;  %v2748_v6 = vrot.slane %v3518_v11, 4 }
 0x5cc   : > { %v2743_v31 = vsel %vm490_vm2, %v2742_v22, %v3521_v30 }
 0x5cd   : > { %v2747_v41 = vperm.slane %v2743_v31, %v3868_v9 }
 0x5d2   : > { %v3519_v32 = vpop.trf.xlu0 }
 0x5d3   : > { %v3522_v37 = vpop.trf.xlu1  ;;  %v2786_v45 = vrot.slane %v3519_v32, 4 }
 0x5f2   : > { %v1901_v29 = vpop.xlane.xlu1 %1900 }
 0x5fa   : > { %v1904_v57 = vpop.xlane.xlu2 %1903  ;;  %v1907_v61 = vpop.xlane.xlu1 %1906 }
 0x5fb   : > { %3563 = vrcp.f32 %v1904_v57 }
 0x5fc   : > { %3565 = vrcp.f32 %v1907_v61 }
 0x5fd   : > { %3567 = vrcp.f32 %v1901_v29 }
 0x601   : > { %v3564_v1 = vpop.eup %3563 }
 0x602   : > { %v3566_v60 = vpop.eup %3565  ;;  %v1898_v33 = vpop.xlane.xlu0 %1897  ;;  %v1914_v21 = vmul.f32 %v3564_v1, %v3558_v36 }
 0x603   : > { %v3568_v46 = vpop.eup %3567  ;;  %3569 = vrcp.f32 %v1898_v33  ;;  %v1915_v54 = vmul.f32 %v3566_v60, %v3560_v12  ;;  %v2760_v12 = vrot.slane %v2747_v41, 4 }
 0x604   : > { %v1918_v19 = vpack.c.bf16 %v1914_v21, %v1914_v21  ;;  %v1913_v53 = vmul.f32 %v3568_v46, %v3556_v42 }
 0x605   : > { %v1919_v17 = vpack.c.bf16 %v1915_v54, %v1915_v54 }
 0x606   : > { %v2845_v52 = vunpack.c.l.b16 %v1918_v19  ;;  %v1917_v20 = vpack.c.bf16 %v1913_v53, %v1913_v53 }
 0x607   : > { %v2846_v15 = vunpack.c.l.b16 %v1919_v17 }
 0x608   : > { %v2821_v4 = vunpack.c.l.b16 %v1917_v20 }
 0x609   : > { %v3570_v0 = vpop.eup %3569  ;;  %v2847_v48 = vpack.c.b16 %v2846_v15, %v2845_v52 }
 0x60a   : > { %v1912_v55 = vmul.f32 %v3570_v0, %v3562_v49  ;;  %v2781_v49 = vsel %vm490_vm2, %v2780_v14, %v3522_v37 }
 0x60b   : > { %v2852_v25 = vsel %vm1830_vm3, %v2847_v48, 0  ;;  %v2785_v58 = vperm.slane %v2781_v49, %v3868_v9 }
 0x60c   : > { %2861 = vmatpush.bf16.xpose.msrb.mxu1 %v2852_v25  ;;  %v1916_v27 = vpack.c.bf16 %v1912_v55, %v1912_v55 }
 0x60d   : > { %v2798_v31 = vrot.slane %v2785_v58, 4 }
 0x60e   : > { %v2820_v38 = vunpack.c.l.b16 %v1916_v27 }
 0x610   : > { %v2822_v40 = vpack.c.b16 %v2821_v4, %v2820_v38 }
 0x612   : > { %v2827_v56 = vsel %vm1830_vm3, %v2822_v40, 0 }
 0x613   : > { %2836 = vmatpush.bf16.xpose.msrb.mxu2 %v2827_v56 }
 0x651   : > { %v3524_v13 = vpop.trf.xlu2 }
 0x652   : > { %v2736_v35 = vrot.slane %v3524_v13, 4 }
 0x659   : > { %v3525_v43 = vpop.trf.xlu2 }
 0x65a   : > { %v2774_v34 = vrot.slane %v3525_v43, 4 }
 0x664   : > { %v3527_v7 = vpop.trf.xlu0 }
 0x665   : > { %v2749_v18 = vsel %vm490_vm2, %v2748_v6, %v3527_v7 }
 0x666   : > { %v2753_v26 = vperm.slane %v2749_v18, %v3868_v9 }
 0x668   : > { %v2767_v62 = vsel %vm490_vm2, %v2766_v2, %v2753_v26 }
 0x669   : > { %v2771_v59 = vperm.slane %v2767_v62, %v3876_v24 }
 0x66b   : > { %v2772_v44 = vrot.slane %v2771_v59, 4 }
 0x66c   : > { %v3528_v8 = vpop.trf.xlu0 }
 0x66d   : > { %v2787_v47 = vsel %vm490_vm2, %v2786_v45, %v3528_v8  ;;  %v3530_v42 = vpop.trf.xlu1 }
 0x66e   : > { %v2791_v39 = vperm.slane %v2787_v47, %v3868_v9  ;;  %v2737_v36 = vsel %vm490_vm2, %v2736_v35, %v3530_v42 }
 0x66f   : > { %v2741_v5 = vperm.slane %v2737_v36, %v3868_v9 }
 0x670   : > { %v2805_v63 = vsel %vm490_vm2, %v2804_v28, %v2791_v39 }
 0x671   : > { %v2761_v51 = vsel %vm490_vm2, %v2760_v12, %v2741_v5  ;;  %v2809_v22 = vperm.slane %v2805_v63, %v3876_v24 }
 0x672   : > { %v2765_v23 = vperm.slane %v2761_v51, %v3876_v24 }
 0x673   : > { %v2810_v29 = vrot.slane %v2809_v22, 4 }
 0x674   : > { %v2773_v10 = vsel %vm490_vm2, %v2772_v44, %v2765_v23 }
 0x675   : > { %v3531_v3 = vpop.trf.xlu1  ;;  %v2815_v1 = vshrl.u32 %v2773_v10, 16 }
 0x676   : > { %v2775_v30 = vsel %vm490_vm2, %v2774_v34, %v3531_v3 }
 0x677   : > { %v2779_v37 = vperm.slane %v2775_v30, %v3868_v9 }
 0x679   : > { %v2799_v11 = vsel %vm490_vm2, %v2798_v31, %v2779_v37 }
 0x67a   : > { %v2803_v32 = vperm.slane %v2799_v11, %v3876_v24 }
 0x67c   : > { %v2811_v57 = vsel %vm490_vm2, %v2810_v29, %v2803_v32  ;;  %v3124_v32 = vld [vmem:[%s4807_s5 + $0x10] sm:$0xff] }
 0x67d   : > { %v2814_v61 = vpack.i.b16 %v2811_v57, %v2773_v10  ;;  %v2816_v60 = vshrl.u32 %v2811_v57, 16  ;;  %v3125_v57 = vld [vmem:[%s4807_s5 + $0x18] sm:$0xff] }
 0x67f   : > { %3345 = vmatmul.msk.bf16.vlgmr.msrb.gmra.mxu2 %vm1830_vm3, %v2814_v61  ;;  %v2817_v33 = vpack.i.b16 %v2816_v60, %v2815_v1 }
 0x681   : > { %3346 = vmatmul.msk.bf16.vlgmr.msrb.gmra.mxu1 %vm1830_vm3, %v2817_v33 }
 0x6fe   : > { %v2863_v21 = vpop.f32.mrf.mxu1 }
 0x702   : > { %v2838_v46 = vpop.f32.mrf.mxu2 }
 0x703   : > { %v3532_v54 = vpack.i.bf16 %v2863_v21, %v2838_v46 }
 0x705   : > { %3533 = vxpose.xlu2.b32.start [1/2] (short) (narrow) %v3532_v54, 16 }
 0x706   : > { %v2865_v19 = vpop.f32.mrf.mxu1 }
 0x70a   : > { %v2840_v17 = vpop.f32.mrf.mxu2 }
 0x70b   : > { %v3534_v52 = vpack.i.bf16 %v2865_v19, %v2840_v17  ;;  %v3122_v17 = vld [vmem:[%s4807_s5] sm:$0xff] }
 0x70d   : > { %3535 = vxpose.xlu2.b32.end [2/2] (short) (narrow) %v3534_v52, 16  ;;  %v3123_v52 = vld [vmem:[%s4807_s5 + $0x8] sm:$0xff] }
 0x79e   : > { %v3536_v53 = vpop.trf.xlu2 }
 0x79f   : > { %v3540_v15 = vunpack.i.h.bf16 %v3536_v53  ;;  %v3537_v0 = vunpack.i.l.bf16 %v3536_v53 }
 0x7a1   : > { %v2942_v48 = vrot.slane %v3540_v15, 4  ;;  %v2947_v55 = vperm.slane %v3540_v15, %v3868_v9  ;;  %v2932_v20 = vrot.slane %v3537_v0, 4  ;;  %v2937_v25 = vperm.slane %v3537_v0, %v3868_v9 }
 0x7a3   : > { %v2943_v27 = vsel %vm490_vm2, 0.0, %v2942_v48  ;;  %v2952_v38 = vrot.slane %v2947_v55, 4  ;;  %v2933_v4 = vsel %vm490_vm2, 0.0, %v2932_v20  ;;  %v2954_v40 = vrot.slane %v2937_v25, 4 }
 0x7a4   : > { %v2951_v56 = vperm.slane %v2943_v27, %v3868_v9  ;;  %v2941_v50 = vperm.slane %v2933_v4, %v3868_v9  ;;  %v3128_v48 = vpack.c.bf16 %v3125_v57, %v3124_v32 }
 0x7a5   : > { %v2953_v6 = vsel %vm490_vm2, %v2952_v38, %v2937_v25  ;;  %v2955_v7 = vsel %vm490_vm2, %v2947_v55, %v2954_v40  ;;  %v3127_v40 = vpack.c.bf16 %v3123_v52, %v3122_v17 }
 0x7a6   : > { %v2964_v18 = vrot.slane %v2951_v56, 4  ;;  %v2959_v13 = vperm.slane %v2953_v6, %v3876_v24  ;;  %v2963_v2 = vperm.slane %v2955_v7, %v3876_v24  ;;  %v2966_v26 = vrot.slane %v2941_v50, 4  ;;  %v3541_v62 = vpop.trf.xlu2  ;;  %3142 = vmatpush.bf16.msra.mxu3 %v3128_v48 }
 0x7a7   : > { %v3545_v16 = vunpack.i.h.bf16 %v3541_v62  ;;  %v3542_v35 = vunpack.i.l.bf16 %v3541_v62 }
 0x7a8   : > { %v2965_v41 = vsel %vm490_vm2, %v2964_v18, %v2941_v50  ;;  %v2967_v45 = vsel %vm490_vm2, %v2951_v56, %v2966_v26  ;;  %v2976_v8 = vrot.slane %v2959_v13, 4  ;;  %v2978_v14 = vrot.slane %v2963_v2, 4 }
 0x7a9   : > { %v2971_v47 = vperm.slane %v2965_v41, %v3876_v24  ;;  %v2975_v42 = vperm.slane %v2967_v45, %v3876_v24  ;;  %v2994_v28 = vrot.slane %v3545_v16, 4  ;;  %v2999_v59 = vperm.slane %v3545_v16, %v3868_v9 }
 0x7aa   : > { %v2979_v39 = vsel %vm490_vm2, 0.0, %v2978_v14  ;;  %v2984_v36 = vrot.slane %v3542_v35, 4  ;;  %v2989_v44 = vperm.slane %v3542_v35, %v3868_v9  ;;  %v2977_v23 = vsel %vm490_vm2, 0.0, %v2976_v8  ;;  %3143 = vmatpush.bf16.msra.mxu3 %v3127_v40 }
 0x7ab   : > { %v2982_v12 = vrot.slane %v2975_v42, 4  ;;  %v3041_v5 = vrot.slane %v2979_v39, 4  ;;  %v2995_v43 = vsel %vm490_vm2, 0.0, %v2994_v28  ;;  %v3004_v63 = vrot.slane %v2999_v59, 4 }
 0x7ac   : > { %v3003_v49 = vperm.slane %v2995_v43, %v3868_v9  ;;  %v2985_v51 = vsel %vm490_vm2, 0.0, %v2984_v36  ;;  %v2980_v34 = vrot.slane %v2971_v47, 4  ;;  %v3006_v31 = vrot.slane %v2989_v44, 4 }
 0x7ad   : > { %v2983_v58 = vsel %vm490_vm2, 0.0, %v2982_v12  ;;  %v2993_v10 = vperm.slane %v2985_v51, %v3868_v9  ;;  %v3005_v30 = vsel %vm490_vm2, %v3004_v63, %v2989_v44  ;;  %v3042_v29 = vsel %vm490_vm2, %v3041_v5, %v2977_v23 }
 0x7ae   : > { %v3052_v3 = vrot.slane %v2983_v58, 4  ;;  %v3016_v22 = vrot.slane %v3003_v49, 4  ;;  %v3011_v37 = vperm.slane %v3005_v30, %v3876_v24  ;;  %v3036_v61 = vsel %vm490_vm2, %v2978_v14, %v2959_v13 }
 0x7af   : > { %v3018_v11 = vrot.slane %v2993_v10, 4  ;;  %v3007_v1 = vsel %vm490_vm2, %v2999_v59, %v3006_v31  ;;  %v3046_v33 = vperm.slane %v3042_v29, %v3868_v9  ;;  %v2981_v19 = vsel %vm490_vm2, 0.0, %v2980_v34  ;;  %v3350_v31 = vld [vmem:[%s4809_s7 + $0x30] sm:$0xff] }
 0x7b0   : > { %v3017_v60 = vsel %vm490_vm2, %v3016_v22, %v2993_v10  ;;  %v3015_v21 = vperm.slane %v3007_v1, %v3876_v24  ;;  %v3047_v15 = vsel %vm490_vm2, %v2982_v12, %v2971_v47  ;;  %v3053_v0 = vsel %vm490_vm2, %v3052_v3, %v2981_v19 }
 0x7b1   : > { %v3019_v46 = vsel %vm490_vm2, %v3003_v49, %v3018_v11  ;;  %v3023_v54 = vperm.slane %v3017_v60, %v3876_v24  ;;  %v3028_v55 = vrot.slane %v3011_v37, 4  ;;  %v3057_v25 = vperm.slane %v3053_v0, %v3868_v9  ;;  %v3348_v60 = vld [vmem:[%s4809_s7 + $0x20] sm:$0xff] }
 0x7b2   : > { %v3027_v53 = vperm.slane %v3019_v46, %v3876_v24  ;;  %v3030_v20 = vrot.slane %v3015_v21, 4  ;;  %v3058_v27 = vrot.slane %v3046_v33, 4  ;;  %v3040_v50 = vperm.slane %v3036_v61, %v3868_v9  ;;  %v3349_v33 = vld [vmem:[%s4809_s7 + $0x28] sm:$0xff]  ;;  %v3554_v0 = vld [vmem:[%s4810_s8] ss:$0 sm:$0xff] }
 0x7b3   : > { %v3032_v38 = vrot.slane %v3023_v54, 4  ;;  %v3051_v18 = vperm.slane %v3047_v15, %v3868_v9  ;;  %v3064_v13 = vrot.slane %v3057_v25, 4  ;;  %v3029_v2 = vsel %vm490_vm2, 0.0, %v3028_v55  ;;  %v3190_v15 = vpop.f32.mrf.mxu0 }
 0x7b4   : > { %v3034_v4 = vrot.slane %v3027_v53, 4  ;;  %v3031_v56 = vsel %vm490_vm2, 0.0, %v3030_v20  ;;  %v3059_v62 = vsel %vm490_vm2, %v3058_v27, %v3040_v50  ;;  %v3074_v35 = vsel %vm490_vm2, %v3030_v20, %v3011_v37  ;;  %v3351_v37 = vld [vmem:[%s4809_s7 + $0x38] sm:$0xff] }
 0x7b5   : > { %v3079_v7 = vrot.slane %v3031_v56, 4  ;;  %v3033_v16 = vsel %vm490_vm2, 0.0, %v3032_v38  ;;  %v3065_v45 = vsel %vm490_vm2, %v3064_v13, %v3051_v18  ;;  %v3063_v28 = vperm.slane %v3059_v62, %v3876_v24 }
 0x7b6   : > { %v3035_v6 = vsel %vm490_vm2, 0.0, %v3034_v4  ;;  %v3069_v8 = vperm.slane %v3065_v45, %v3876_v24  ;;  %v3085_v47 = vsel %vm490_vm2, %v3034_v4, %v3023_v54  ;;  %v3078_v39 = vperm.slane %v3074_v35, %v3868_v9  ;;  %v3553_v54 = vld [vmem:[%s4808_s6] ss:$0 sm:$0xff] }
 0x7b7   : > { %v3090_v26 = vrot.slane %v3035_v6, 4  ;;  %v3080_v41 = vsel %vm490_vm2, %v3079_v7, %v3029_v2  ;;  %v3089_v5 = vperm.slane %v3085_v47, %v3868_v9  ;;  %v3072_v51 = vrot.slane %v3063_v28, 4 }
 0x7b8   : > { %v3084_v14 = vperm.slane %v3080_v41, %v3868_v9  ;;  %v3070_v12 = vrot.slane %v3069_v8, 4  ;;  %v3162_v21 = vpack.c.bf16 %v3349_v33, %v3348_v60 }
 0x7b9   : > { %v3091_v42 = vsel %vm490_vm2, %v3090_v26, %v3033_v16  ;;  %v3073_v3 = vsel %vm490_vm2, %v3069_v8, %v3072_v51 }
 0x7ba   : > { %v3095_v59 = vperm.slane %v3091_v42, %v3868_v9  ;;  %v3096_v36 = vrot.slane %v3084_v14, 4  ;;  %v3071_v63 = vsel %vm490_vm2, %v3070_v12, %v3063_v28 }
 0x7bb   : > { %v3192_v38 = vpop.f32.mrf.mxu0 }
 0x7bc   : > { %v3102_v43 = vrot.slane %v3095_v59, 4  ;;  %v3097_v49 = vsel %vm490_vm2, %v3096_v36, %v3078_v39 }
 0x7bd   : > { %v3101_v44 = vperm.slane %v3097_v49, %v3876_v24 }
 0x7be   : > { %v3103_v23 = vsel %vm490_vm2, %v3102_v43, %v3089_v5 }
 0x7bf   : > { %v3107_v34 = vperm.slane %v3103_v23, %v3876_v24  ;;  %v3110_v58 = vrot.slane %v3101_v44, 4  ;;  %v3163_v24 = vpack.c.bf16 %v3351_v37, %v3350_v31 }
 0x7c1   : > { %v3108_v10 = vrot.slane %v3107_v34, 4  ;;  %v3111_v22 = vsel %vm490_vm2, %v3107_v34, %v3110_v58  ;;  %3173 = vmatpush.bf16.msra.mxu2 %v3163_v24 }
 0x7c2   : > { %v3546_v30 = vpack.i.bf16 %v3111_v22, %v3073_v3 }
 0x7c3   : > { %v3109_v9 = vsel %vm490_vm2, %v3108_v10, %v3101_v44 }
 0x7c4   : > { %3547 = vrot.lane.b32.xlu0 %v3546_v30, %s3644_s30  ;;  %s358_s30 = sand.u32 1, %s3629_s14  }
 0x7c5   : > { %3174 = vmatpush.bf16.msra.mxu2 %v3162_v21  ;;  %s3336_s18 = sshll.u32 %s358_s30, 4  ;;  %s3227_s17 = scalar_lea.sflag [#allocation3], %s358_s30 }
 0x7c6   : > { %s360_s21 = scalar_lea.vmem [#allocation2], %s3336_s18  ;;  %s3595_s18 = scalar_lea.hbm %s4812_s10, 32 }
 0x7c7   : > { %s3242_s26 = sshll.u32 %s360_s21, 4  ;;  %p3597_p1 = scmp.lt.s32.totalorder %s3595_s18, %s3591_s11  ;;  %s3243_s26 = int_to_ptr.vmem [resolvable:$true] %s3242_s26 }
 0x7c9   : > { %p3598_p2 = por %p3597_p1, %p3596_p0 }
 0x7cb   : > { %p3599_p3 = pnand %p3598_p2, %p3594_p13 }
 0x836   : > { %v3548_v11 = vpop.permute.xlu0 %3547 }
 0x837   : > { %v3550_v29 = vunpack.i.h.bf16 %v3548_v11  ;;  %v3549_v32 = vunpack.i.l.bf16 %v3548_v11 }
 0x839   : > { %v3121_v57 = vsel %vm1830_vm3, %v3109_v9, %v3550_v29  ;;  %v3120_v61 = vsel %vm1830_vm3, %v3071_v63, %v3549_v32 }
 0x83a   : > { %v3126_v1 = vpack.c.bf16 %v3121_v57, %v3120_v61 }
 0x83c   : > { %3347 = vmatmul.msk.bf16.vlgmr.msra.gmra.mxu3 %vm450_vm1, %v3126_v1 }
 0x8bf   : > { %v3145_v46 = vpop.f32.mrf.mxu3 }
 0x8c0   : > { %v3146_v17 = vadd.f32 %v3553_v54, %v3145_v46 }
 0x8c7   : > { %v3147_v19 = vpop.f32.mrf.mxu3 }
 0x8c8   : > { %v3148_v52 = vadd.f32 %v3553_v54, %v3147_v19 }
 0x8ca   : > { %v3161_v53 = vpack.c.bf16 %v3148_v52, %v3146_v17 }
 0x8cc   : > { %3352 = vmatmul.msk.bf16.vlgmr.msra.gmra.mxu2 %vm450_vm1, %v3161_v53 }
 0x94f   : > { %v3176_v48 = vpop.f32.mrf.mxu2 }
 0x950   : > { %v3191_v55 = vadd.f32 %v3190_v15, %v3176_v48 }
 0x952   : > { %v3199_v20 = vadd.f32 %v3554_v0, %v3191_v55 }
 0x954   : > { %v3201_v25 = vmul.f32 %v3199_v20, %v3199_v20 }
 0x956   : > { %v3203_v27 = vmul.f32 %v3201_v25, %v3199_v20 }
 0x957   : > { %v3178_v4 = vpop.f32.mrf.mxu2 }
 0x958   : > { %v3205_v40 = vmul.f32 0.044715, %v3203_v27  ;;  %v3193_v56 = vadd.f32 %v3192_v38, %v3178_v4 }
 0x95a   : > { %v3207_v50 = vadd.f32 %v3205_v40, %v3199_v20  ;;  %v3200_v6 = vadd.f32 %v3554_v0, %v3193_v56 }
 0x95c   : > { %v3209_v7 = vmul.f32 0.7978846, %v3207_v50  ;;  %v3202_v18 = vmul.f32 %v3200_v6, %v3200_v6 }
 0x95e   : > { %3571 = vtanh.f32 %v3209_v7  ;;  %v3204_v13 = vmul.f32 %v3202_v18, %v3200_v6 }
 0x960   : > { %v3206_v2 = vmul.f32 0.044715, %v3204_v13 }
 0x962   : > { %v3208_v26 = vadd.f32 %v3206_v2, %v3200_v6 }
 0x964   : > { %v3572_v62 = vpop.eup %3571  ;;  %v3210_v16 = vmul.f32 0.7978846, %v3208_v26 }
 0x965   : > { %v3213_v35 = vadd.f32 1.0, %v3572_v62 }
 0x966   : > { %3573 = vtanh.f32 %v3210_v16 }
 0x967   : > { %v3215_v41 = vmul.f32 0.5, %v3213_v35 }
 0x969   : > { %v3217_v45 = vmul.f32 %v3215_v41, %v3199_v20 }
 0x96b   : > { %3219 = vst.msk [vmem:[%s360_s21] sm:$0xff] %vm450_vm1, %v3217_v45 }
 0x96c   : > { %v3574_v8 = vpop.eup %3573 }
 0x96d   : > { %v3214_v14 = vadd.f32 1.0, %v3574_v8 }
 0x96f   : > { %v3216_v47 = vmul.f32 0.5, %v3214_v14 }
 0x971   : > { %v3218_v42 = vmul.f32 %v3216_v47, %v3200_v6 }
 0x973   : > { %3220 = vst.msk [vmem:[%s360_s21 + $0x8] sm:$0xff] %vm450_vm1, %v3218_v42 }
 0x974   : > { %3602 = shalt.err (!%p3599_p3)
}
 0x975   : > { %s3645_s30 = smov 128   ;;  %s3646_s21 = smov 8  }
 0x976   : > { %3362 = dma.vmem_to_hbm [thread:$0]  (%p3740_p5), %s3243_s26, 256, %s3245_s27, %s3227_s17, %s3645_s30, %s3645_s30, %s3646_s21  }
 0x977 PF: > { %p3368_p4 = scmp.ge.s32.totalorder %s3637_s16, 2  ;;  %s3267_s28 = sand.u32 1, %s3625_s13  }
 0x978   : > { %s3268_s25 = scalar_lea.sflag [#allocation3], %s3267_s28 }
 0x979   : > { %p3365_p7 = pnand %p3368_p4, %p3744_p6 }
 0x97b   : > { %p3366_p8 = pneg %p3365_p7 }
 0x97d   : > { %3620 = dma.done.wait (%p3366_p8), %s3268_s25, 256  }
 0x97e   : > { %3622 = vsyncadd (%p3366_p8), %s3268_s25, 4294967040  ;;  %s4829_s29 = sld [smem:[#allocation5_spill]]  ;;  %p21_p9 = scmp.ge.s32.totalorder %s3727_s19, 4  }
 0x97f   : > { %s4830_s15 = sld [smem:[#allocation6_spill]]  ;;  %s4831_s13 = smov %s3629_s14 }
 0x980   : > { %s4833_s16 = smov %s3727_s19  ;;  %23 = sbr.rel (!%p21_p9) target bundleno = 3 (0x3), region = 104 }
 0x984   : > { %s4832_s14 = smov %s4829_s29 }
 0x985   :  { %3274 = vsyncpa [#allocation3], 1 }
 0x986   :  { %3276 = vsyncpa [#allocation3 + $0x1], 1 }

// kernel: forward.7
= control target key start
LH: loop header
LB: loop body
LE: loop exit
PB: predicated region body
PF: predicated region fallthrough
CT: control target
= control target key end

     0   :  { %s3951_s27 = smov 0   ;;  %s4841_s0 = inlined_call_operand.vmem [shape: f32[2,16,32], index: 0, kind: input, shape index: {}]   ;;  %s4842_s1 = inlined_call_operand.vmem [shape: f32[16,32], index: 1, kind: input, shape index: {}]   ;;  %s4843_s2 = inlined_call_operand.vmem [shape: f32[32,64], index: 2, kind: input, shape index: {}]   ;;  %s4844_s3 = inlined_call_operand.vmem [shape: f32[1,64], index: 3, kind: input, shape index: {}]   ;;  %s4845_s4 = inlined_call_operand.vmem [shape: f32[32,32], index: 4, kind: input, shape index: {}]   ;;  %s4846_s5 = inlined_call_operand.vmem [shape: f32[1,32], index: 5, kind: input, shape index: {}]   ;;  %s4847_s6 = inlined_call_operand.vmem [shape: f32[32,32], index: 6, kind: input, shape index: {}]   ;;  %s4848_s7 = inlined_call_operand.vmem [shape: f32[1,32], index: 7, kind: input, shape index: {}]   ;;  %s4849_s8 = inlined_call_operand.vmem [shape: f32[1,32], index: 8, kind: input, shape index: {}]   ;;  %s4850_s9 = inlined_call_operand.vmem [shape: f32[1,32], index: 9, kind: input, shape index: {}]   ;;  %s4851_s10 = inlined_call_operand.vmem [shape: f32[32,64], index: 10, kind: input, shape index: {}]   ;;  %s4852_s11 = inlined_call_operand.vmem [shape: f32[1,64], index: 11, kind: input, shape index: {}]   ;;  %s4853_s12 = inlined_call_operand.vmem [shape: f32[64,32], index: 12, kind: input, shape index: {}]   ;;  %s4854_s13 = inlined_call_operand.vmem [shape: f32[1,32], index: 13, kind: input, shape index: {}]   ;;  %s4855_s14 = inlined_call_operand.vmem [shape: f32[1,32], index: 14, kind: input, shape index: {}]   ;;  %s4856_s15 = inlined_call_operand.vmem [shape: f32[1,32], index: 15, kind: input, shape index: {}]   ;;  %s4857_s16 = inlined_call_operand.vmem [shape: f32[1,32], index: 16, kind: input, shape index: {}]   ;;  %s4858_s17 = inlined_call_operand.vmem [shape: f32[1,32], index: 17, kind: input, shape index: {}]   ;;  %s4859_s18 = inlined_call_operand.vmem [shape: f32[2,16,32], index: 18, kind: output, shape index: {}]  }
   0x1   :  { %4868 = sst [smem:[#allocation11_spill]] %s4841_s0 }
   0x2   :  { %4869 = sst [smem:[#allocation12_spill]] %s4842_s1 }
   0x3   :  { %4870 = sst [smem:[#allocation13_spill]] %s4843_s2 }
   0x4 LB: > { %s3622_s28 = sadd.s32 4294967295, %s3848_s27   ;;  %p3626_p0 = scmp.ge.s32.totalorder %s3848_s27, 1  ;;  %s3848_s27 = sphi %s3951_s27, %s28_s27  }
   0x5   : > { %p512_p1 = scmp.lt.s32.totalorder %s3848_s27, 3 }
   0x7   : > { %p513_p2 = pnand %p3626_p0, %p512_p1 }
   0x9   : > { %516 = sbr.rel (%p513_p2) target bundleno = 3155 (0xc53), region = 92 }
   0xe   : > { %v614_v0 = vld [vmem:[%s4845_s4 + $0x10] sm:$0xff]  ;;  %v615_v1 = vld [vmem:[%s4845_s4 + $0x18] sm:$0xff]  ;;  %s4871_s21 = sld [smem:[#allocation13_spill]]  ;;  %p566_p3 = scmp.lt.s32.totalorder %s3622_s28, 1  ;;  %v612_v5 = vld [vmem:[%s4845_s4] sm:$0xff]  ;;  %vm594_vm0 = vcmask 261120  }
   0xf   : > { %v618_v3 = vpack.c.bf16 %v615_v1, %v614_v0  ;;  %v613_v6 = vld [vmem:[%s4845_s4 + $0x8] sm:$0xff]  ;;  %s4872_s22 = sld [smem:[#allocation12_spill]]  ;;  %v3795_v22 = vld [vmem:[%s4846_s5] ss:$0 sm:$0xff]  ;;  %s3850_s23 = smov 112   ;;  %vm649_vm1 = vcmask 1047556  }
  0x10   : > { %s4902_s28 = smov (!%p566_p3, %s3622_s28), 1  ;;  %v617_v10 = vpack.c.bf16 %v613_v6, %v612_v5  ;;  %s4873_s29 = sld [smem:[#allocation11_spill]]  ;;  %v3796_v23 = vld [vmem:[%s4844_s3] ss:$0 sm:$0xff]  ;;  %v3851_v33 = vmov 1983009808  }
  0x11   : > { %632 = vmatpush.bf16.msra.mxu1 %v618_v3  ;;  %s3642_s2 = sshll.u32 %s4902_s28, 4  ;;  %v652_v34 = vunpack.c.l.s4 %v3851_v33  ;;  %v3852_v40 = vmov 1934713408   ;;  %s3853_s24 = smov 96   ;;  %vm1985_vm2 = vcmask 130048   ;;  %vm3433_vm10 = vcmask 523264  }
  0x12   : > { %v674_v41 = vunpack.c.l.s4 %v3852_v40  ;;  %s575_s0 = scalar_lea.vmem %s4859_s18, %s3642_s2 }
  0x13   : > { %v4023_v42 = vunpack.c.0.s8 %v652_v34 }
  0x14   : > { %v585_v2 = vld [vmem:[%s4871_s21 + $0x10] sm:$0xff]  ;;  %v586_v4 = vld [vmem:[%s4871_s21 + $0x18] sm:$0xff]  ;;  %v583_v8 = vld [vmem:[%s4871_s21] sm:$0xff]  ;;  %v4034_v48 = vunpack.c.0.s8 %v674_v41 }
  0x15   : > { %v589_v7 = vpack.c.bf16 %v586_v4, %v585_v2  ;;  %v584_v9 = vld [vmem:[%s4871_s21 + $0x8] sm:$0xff]  ;;  %v579_v11 = vld [vmem:[%s4872_s22] sm:$0xff]  ;;  %633 = vmatpush.bf16.msra.mxu1 %v617_v10 }
  0x16   : > { %v588_v12 = vpack.c.bf16 %v584_v9, %v583_v8  ;;  %v580_v13 = vld [vmem:[%s4872_s22 + $0x8] sm:$0xff]  ;;  %s3997_s30 = scalar_lea.vmem %s4873_s29, %s3642_s2 }
  0x17   : > { %604 = vmatpush.bf16.msra.mxu0 %v589_v7  ;;  %v577_v14 = vld [vmem:[%s3997_s30] sm:$0xff]  ;;  %v578_v15 = vld [vmem:[%s3997_s30 + $0x8] sm:$0xff] }
  0x18   : > { %v616_v16 = vpack.c.bf16 %v578_v15, %v577_v14  ;;  %v581_v17 = vadd.f32 %v579_v11, %v577_v14  ;;  %v582_v18 = vadd.f32 %v580_v13, %v578_v15 }
  0x1a   : > { %v587_v19 = vpack.c.bf16 %v582_v18, %v581_v17  ;;  %3632 = vmatmul.msk.bf16.vlgmr.msra.gmra.mxu1 %vm594_vm0, %v616_v16 }
  0x1b   : > { %605 = vmatpush.bf16.msra.mxu0 %v588_v12 }
  0x1e   : > { %3631 = vmatmul.msk.bf16.vlgmr.msra.gmra.mxu0 %vm594_vm0, %v587_v19 }
  0x97   : > { %v635_v20 = vpop.f32.mrf.mxu1 }
  0x98   : > { %v636_v24 = vadd.f32 %v3795_v22, %v635_v20 }
  0x9a   : > { %v877_v32 = vrot.slane %v636_v24, 4  ;;  %v4058_v2 = vperm.slane %v636_v24, %v4023_v42 }
  0x9b   : > { %v607_v21 = vpop.f32.mrf.mxu0 }
  0x9c   : > { %v4011_v28 = vadd.f32 %v3796_v23, %v607_v21  ;;  %v878_v37 = vsel %vm649_vm1, 0.0, %v877_v32  ;;  %v899_v8 = vrot.slane %v4058_v2, 4 }
  0x9d   : > { %v4028_v45 = vperm.slane %v878_v37, %v4023_v42 }
  0x9e   : > { %v648_v59 = vrot.slane %v4011_v28, 4  ;;  %v654_v4 = vperm.slane %v4011_v28, %v4023_v42 }
  0x9f   : > { %v637_v25 = vpop.f32.mrf.mxu1 }
  0xa0   : > { %v4009_v26 = vadd.f32 %v3795_v22, %v637_v25  ;;  %v650_v0 = vsel %vm649_vm1, 0.0, %v648_v59  ;;  %v671_v11 = vrot.slane %v654_v4, 4 }
  0xa1   : > { %v4064_v5 = vperm.slane %v650_v0, %v4023_v42 }
  0xa2   : > { %v3660_v30 = vpack.i.bf16 %v4009_v26, %v636_v24  ;;  %v929_v38 = vrot.slane %v4009_v26, 4 }
  0xa3   : > { %v609_v27 = vpop.f32.mrf.mxu0  ;;  %v683_v14 = vrot.slane %v4064_v5, 4 }
  0xa4   : > { %v4013_v29 = vadd.f32 %v3796_v23, %v609_v27  ;;  %3661 = vrot.lane.b32.xlu2 %v3660_v30, %s3850_s23  ;;  %v930_v47 = vsel %vm649_vm1, 0.0, %v929_v38 }
  0xa5   : > { %v4040_v51 = vperm.slane %v930_v47, %v4023_v42 }
  0xa6   : > { %v3665_v31 = vpack.i.bf16 %v4013_v29, %v4011_v28  ;;  %v701_v60 = vrot.slane %v4013_v29, 4  ;;  %v706_v6 = vperm.slane %v4013_v29, %v4023_v42 }
  0xa7   : > { %v963_v56 = vrot.slane %v4040_v51, 4 }
  0xa8   : > { %3666 = vrot.lane.b32.xlu0 %v3665_v31, %s3850_s23  ;;  %v702_v1 = vsel %vm649_vm1, 0.0, %v701_v60  ;;  %v723_v15 = vrot.slane %v706_v6, 4 }
  0xa9   : > { %v710_v7 = vperm.slane %v702_v1, %v4023_v42 }
  0xab   : > { %v735_v16 = vrot.slane %v710_v7, 4 }
  0xfe   : > { %v4018_v35 = vpop.permute.xlu2 %3661 }
  0xff   : > { %v3663_v36 = vunpack.i.l.bf16 %v4018_v35  ;;  %v3664_v43 = vunpack.i.h.bf16 %v4018_v35 }
 0x101   : > { %v887_v39 = vrot.slane %v3663_v36, 4  ;;  %v939_v50 = vrot.slane %v3664_v43, 4  ;;  %v4072_v17 = vperm.slane %v3663_v36, %v4023_v42 }
 0x103   : > { %v888_v44 = vsel %vm649_vm1, 0.0, %v887_v39  ;;  %v940_v54 = vsel %vm649_vm1, 0.0, %v939_v50  ;;  %v4081_v25 = vsel %vm649_vm1, %v4072_v17, %v899_v8 }
 0x104   : > { %v4031_v46 = vperm.slane %v888_v44, %v4023_v42  ;;  %v4051_v61 = vperm.slane %v940_v54, %v4023_v42 }
 0x106   : > { %v909_v49 = vrot.slane %v4031_v46, 4  ;;  %v964_v63 = vsel %vm649_vm1, %v4051_v61, %v963_v56 }
 0x107   : > { %v972_v3 = vperm.slane %v964_v63, %v4034_v48 }
 0x108   : > { %v910_v52 = vsel %vm649_vm1, %v909_v49, %v4028_v45 }
 0x109   : > { %v916_v53 = vperm.slane %v910_v52, %v4034_v48  ;;  %v979_v10 = vrot.slane %v972_v3, 4 }
 0x10b   : > { %v925_v55 = vrot.slane %v916_v53, 4  ;;  %v2079_v57 = vpack.c.bf16 %v916_v53, %v916_v53  ;;  %v980_v24 = vsel %vm649_vm1, 0.0, %v979_v10 }
 0x10c   : > { %v2090_v39 = vpack.c.bf16 %v980_v24, %v980_v24 }
 0x10d   : > { %v926_v58 = vsel %vm649_vm1, 0.0, %v925_v55 }
 0x10e   : > { %v2080_v62 = vpack.c.bf16 %v926_v58, %v926_v58 }
 0x110   : > { %3689 = vxpose.binary.xlu2.c.b16.start.end [1/2] (short) (narrow) %v2080_v62, %v2079_v57, 16 }
 0x11a   : > { %v3667_v9 = vpop.permute.xlu0 %3666 }
 0x11b   : > { %v3669_v12 = vunpack.i.h.bf16 %v3667_v9  ;;  %v3668_v13 = vunpack.i.l.bf16 %v3667_v9 }
 0x11d   : > { %v711_v18 = vrot.slane %v3669_v12, 4  ;;  %v716_v19 = vperm.slane %v3669_v12, %v4023_v42  ;;  %v659_v20 = vrot.slane %v3668_v13, 4  ;;  %v664_v21 = vperm.slane %v3668_v13, %v4023_v42 }
 0x11e   : > { %v3675_v22 = vpack.i.bf16 %v4013_v29, %v3669_v12  ;;  %v3670_v23 = vpack.i.bf16 %v4011_v28, %v3668_v13  ;;  %v2089_v28 = vpack.c.bf16 %v972_v3, %v972_v3 }
 0x11f   : > { %v712_v27 = vsel %vm649_vm1, 0.0, %v711_v18  ;;  %v721_v30 = vrot.slane %v716_v19, 4  ;;  %v724_v31 = vsel %vm649_vm1, %v716_v19, %v723_v15  ;;  %v660_v32 = vsel %vm649_vm1, 0.0, %v659_v20 }
 0x120   : > { %v720_v33 = vperm.slane %v712_v27, %v4023_v42  ;;  %v4088_v34 = vperm.slane %v724_v31, %v4034_v48  ;;  %v669_v29 = vrot.slane %v664_v21, 4  ;;  %3676 = vrot.lane.b32.xlu1 %v3675_v22, %s3853_s24  ;;  %3671 = vrot.lane.b32.xlu0 %v3670_v23, %s3853_s24  ;;  %v668_v37 = vperm.slane %v660_v32, %v4023_v42  ;;  %s3854_s24 = smov 16  }
 0x121   : > { %v722_v36 = vsel %vm649_vm1, %v721_v30, %v706_v6  ;;  %v672_v38 = vsel %vm649_vm1, %v664_v21, %v671_v11  ;;  %3698 = vxpose.binary.xlu2.c.b16.start.end [1/2] (short) (narrow) %v2090_v39, %v2089_v28, 16 }
 0x122   : > { %v728_v40 = vperm.slane %v722_v36, %v4034_v48  ;;  %v733_v41 = vrot.slane %v720_v33, 4  ;;  %v736_v44 = vsel %vm649_vm1, %v720_v33, %v735_v16  ;;  %v747_v47 = vrot.slane %v4088_v34, 4 }
 0x123   : > { %v744_v49 = vperm.slane %v736_v44, %v4034_v48  ;;  %v991_v50 = vpack.c.bf16 %v4088_v34, %v4088_v34  ;;  %v670_v52 = vsel %vm649_vm1, %v669_v29, %v654_v4  ;;  %v680_v53 = vperm.slane %v672_v38, %v4034_v48 }
 0x124   : > { %v734_v54 = vsel %vm649_vm1, %v733_v41, %v710_v7  ;;  %v745_v55 = vrot.slane %v728_v40, 4  ;;  %v748_v56 = vsel %vm649_vm1, 0.0, %v747_v47  ;;  %v989_v57 = vpack.c.bf16 %v728_v40, %v728_v40 }
 0x125   : > { %v740_v58 = vperm.slane %v734_v54, %v4034_v48  ;;  %v751_v59 = vrot.slane %v744_v49, 4  ;;  %v992_v60 = vpack.c.bf16 %v748_v56, %v748_v56  ;;  %v995_v62 = vpack.c.bf16 %v744_v49, %v744_v49 }
 0x126   : > { %v746_v63 = vsel %vm649_vm1, 0.0, %v745_v55  ;;  %v676_v0 = vperm.slane %v670_v52, %v4034_v48  ;;  %v681_v1 = vrot.slane %v668_v37, 4  ;;  %v684_v3 = vsel %vm649_vm1, %v668_v37, %v683_v14 }
 0x127   : > { %v749_v4 = vrot.slane %v740_v58, 4  ;;  %v752_v6 = vsel %vm649_vm1, 0.0, %v751_v59  ;;  %v990_v7 = vpack.c.bf16 %v746_v63, %v746_v63  ;;  %v993_v8 = vpack.c.bf16 %v740_v58, %v740_v58 }
 0x128   : > { %v996_v9 = vpack.c.bf16 %v752_v6, %v752_v6  ;;  %v1056_v10 = vrot.slane %v995_v62, 4  ;;  %v682_v11 = vsel %vm649_vm1, %v681_v1, %v4064_v5  ;;  %v692_v12 = vperm.slane %v684_v3, %v4034_v48 }
 0x129   : > { %v1050_v13 = vrot.slane %v993_v8, 4  ;;  %v688_v15 = vperm.slane %v682_v11, %v4034_v48  ;;  %v693_v16 = vrot.slane %v676_v0, 4  ;;  %v695_v18 = vrot.slane %v680_v53, 4 }
 0x12a   : > { %v1074_v19 = vrot.slane %v996_v9, 4  ;;  %v699_v20 = vrot.slane %v692_v12, 4  ;;  %v981_v14 = vpack.c.bf16 %v676_v0, %v676_v0  ;;  %v983_v21 = vpack.c.bf16 %v680_v53, %v680_v53 }
 0x12b   : > { %v694_v22 = vsel %vm649_vm1, 0.0, %v693_v16  ;;  %v696_v23 = vsel %vm649_vm1, 0.0, %v695_v18  ;;  %v697_v24 = vrot.slane %v688_v15, 4  ;;  %v985_v27 = vpack.c.bf16 %v688_v15, %v688_v15 }
 0x12c   : > { %v700_v30 = vsel %vm649_vm1, 0.0, %v699_v20  ;;  %v982_v5 = vpack.c.bf16 %v694_v22, %v694_v22  ;;  %v984_v31 = vpack.c.bf16 %v696_v23, %v696_v23  ;;  %v987_v32 = vpack.c.bf16 %v692_v12, %v692_v12 }
 0x12d   : > { %v988_v33 = vpack.c.bf16 %v700_v30, %v700_v30  ;;  %v1013_v34 = vrot.slane %v985_v27, 4  ;;  %v698_v29 = vsel %vm649_vm1, 0.0, %v697_v24  ;;  %v750_v28 = vsel %vm649_vm1, 0.0, %v749_v4 }
 0x12e   : > { %v1020_v36 = vrot.slane %v987_v32, 4  ;;  %v986_v37 = vpack.c.bf16 %v698_v29, %v698_v29  ;;  %v994_v38 = vpack.c.bf16 %v750_v28, %v750_v28  ;;  %v1051_v39 = vsel %vm649_vm1, %v1050_v13, %v989_v57 }
 0x12f   : > { %v1038_v40 = vrot.slane %v988_v33, 4  ;;  %v1015_v41 = vsel %vm649_vm1, %v1013_v34, %v981_v14  ;;  %v1055_v44 = vperm.slane %v1051_v39, %v4023_v42  ;;  %v1057_v47 = vsel %vm649_vm1, %v1056_v10, %v991_v50 }
 0x130   : > { %v1019_v49 = vperm.slane %v1015_v41, %v4023_v42  ;;  %v1021_v52 = vsel %vm649_vm1, %v1020_v36, %v983_v21  ;;  %v1032_v53 = vrot.slane %v986_v37, 4  ;;  %v1061_v54 = vperm.slane %v1057_v47, %v4023_v42 }
 0x131   : > { %v1025_v55 = vperm.slane %v1021_v52, %v4023_v42  ;;  %v1039_v56 = vsel %vm649_vm1, %v1038_v40, %v984_v31  ;;  %v1068_v58 = vrot.slane %v994_v38, 4  ;;  %v1075_v57 = vsel %vm649_vm1, %v1074_v19, %v992_v60 }
 0x132   : > { %v1033_v59 = vsel %vm649_vm1, %v1032_v53, %v982_v5  ;;  %v1043_v62 = vperm.slane %v1039_v56, %v4023_v42  ;;  %v1062_v63 = vrot.slane %v1061_v54, 4  ;;  %v1079_v50 = vperm.slane %v1075_v57, %v4023_v42 }
 0x133   : > { %v908_v0 = vperm.slane %v4081_v25, %v4034_v48  ;;  %v1026_v1 = vrot.slane %v1025_v55, 4  ;;  %v1037_v3 = vperm.slane %v1033_v59, %v4023_v42  ;;  %v1069_v4 = vsel %vm649_vm1, %v1068_v58, %v990_v7 }
 0x134   : > { %v1044_v6 = vrot.slane %v1043_v62, 4  ;;  %v1063_v8 = vsel %vm649_vm1, %v1062_v63, %v1055_v44  ;;  %v1073_v60 = vperm.slane %v1069_v4, %v4023_v42  ;;  %v1080_v9 = vrot.slane %v1079_v50, 4 }
 0x135   : > { %v1027_v10 = vsel %vm649_vm1, %v1026_v1, %v1019_v49  ;;  %v1067_v11 = vperm.slane %v1063_v8, %v4034_v48  ;;  %v923_v16 = vrot.slane %v908_v0, 4  ;;  %v934_v23 = vperm.slane %v4009_v26, %v4023_v42 }
 0x136   : > { %v1031_v12 = vperm.slane %v1027_v10, %v4034_v48  ;;  %v1045_v13 = vsel %vm649_vm1, %v1044_v6, %v1037_v3  ;;  %v1081_v25 = vsel %vm649_vm1, %v1080_v9, %v1073_v60  ;;  %v944_v26 = vperm.slane %v3664_v43, %v4023_v42 }
 0x137   : > { %v1049_v15 = vperm.slane %v1045_v13, %v4034_v48  ;;  %v1085_v7 = vperm.slane %v1081_v25, %v4034_v48  ;;  %v1095_v19 = vshrl.u32 %v1067_v11, 16  ;;  %v924_v31 = vsel %vm649_vm1, 0.0, %v923_v16 }
 0x138   : > { %v1089_v18 = vshrl.u32 %v1031_v12, 16  ;;  %v951_v29 = vrot.slane %v934_v23, 4  ;;  %v2077_v36 = vpack.c.bf16 %v908_v0, %v908_v0  ;;  %v2078_v37 = vpack.c.bf16 %v924_v31, %v924_v31 }
 0x139   : > { %v1088_v20 = vpack.i.b16 %v1049_v15, %v1031_v12  ;;  %v1094_v14 = vpack.i.b16 %v1085_v7, %v1067_v11  ;;  %v1090_v21 = vshrl.u32 %v1049_v15, 16  ;;  %v1096_v22 = vshrl.u32 %v1085_v7, 16 }
 0x13a   : > { %v897_v38 = vrot.slane %v4072_v17, 4  ;;  %v952_v39 = vsel %vm649_vm1, %v944_v26, %v951_v29  ;;  %v949_v35 = vrot.slane %v944_v26, 4  ;;  %v911_v17 = vrot.slane %v4028_v45, 4 }
 0x13b   : > { %v4145_v24 = vunpack.c.l.b16 %v1088_v20  ;;  %v4147_v27 = vunpack.c.l.b16 %v1094_v14  ;;  %v1091_v30 = vpack.i.b16 %v1090_v21, %v1089_v18  ;;  %v1097_v5 = vpack.i.b16 %v1096_v22, %v1095_v19 }
 0x13c   : > { %v960_v40 = vperm.slane %v952_v39, %v4034_v48  ;;  %v898_v41 = vsel %vm649_vm1, %v897_v38, %v4058_v2  ;;  %v950_v55 = vsel %vm649_vm1, %v949_v35, %v934_v23  ;;  %v912_v57 = vsel %vm649_vm1, %v4031_v46, %v911_v17 }
 0x13d   : > { %v2003_v33 = vunpack.c.l.b16 %v1091_v30  ;;  %v2004_v34 = vunpack.c.l.b16 %v1097_v5  ;;  %v904_v44 = vperm.slane %v898_v41, %v4034_v48  ;;  %v956_v2 = vperm.slane %v950_v55, %v4034_v48 }
 0x13e   : > { %v975_v47 = vrot.slane %v960_v40, 4  ;;  %v2085_v43 = vpack.c.bf16 %v960_v40, %v960_v40  ;;  %v920_v59 = vperm.slane %v912_v57, %v4034_v48  ;;  %v961_v3 = vrot.slane %v4051_v61, 4 }
 0x13f   : > { %v4152_v28 = vpack.c.b16 %v2004_v34, %v2003_v33  ;;  %v921_v49 = vrot.slane %v904_v44, 4  ;;  %v2075_v56 = vpack.c.bf16 %v904_v44, %v904_v44  ;;  %v973_v62 = vrot.slane %v956_v2, 4 }
 0x140   : > { %v976_v52 = vsel %vm649_vm1, 0.0, %v975_v47  ;;  %v927_v63 = vrot.slane %v920_v59, 4  ;;  %v2083_v0 = vpack.c.bf16 %v956_v2, %v956_v2  ;;  %v2081_v4 = vpack.c.bf16 %v920_v59, %v920_v59 }
 0x141   : > { %v2086_v53 = vpack.c.bf16 %v976_v52, %v976_v52  ;;  %v922_v54 = vsel %vm649_vm1, 0.0, %v921_v49  ;;  %v974_v50 = vsel %vm649_vm1, 0.0, %v973_v62  ;;  %v962_v8 = vsel %vm649_vm1, %v961_v3, %v4040_v51 }
 0x142   : > { %3680 = vxpose.binary.xlu0.c.b16.start.end [1/2] (short) (narrow) %v2078_v37, %v2077_v36, 16  ;;  %v2076_v58 = vpack.c.bf16 %v922_v54, %v922_v54  ;;  %v2084_v1 = vpack.c.bf16 %v974_v50, %v974_v50  ;;  %v928_v45 = vsel %vm649_vm1, 0.0, %v927_v63  ;;  %v968_v46 = vperm.slane %v962_v8, %v4034_v48 }
 0x143   : > { %v2082_v6 = vpack.c.bf16 %v928_v45, %v928_v45 }
 0x144   : > { %v977_v60 = vrot.slane %v968_v46, 4  ;;  %v2087_v10 = vpack.c.bf16 %v968_v46, %v968_v46 }
 0x146   : > { %v978_v9 = vsel %vm649_vm1, 0.0, %v977_v60 }
 0x147   : > { %v2088_v11 = vpack.c.bf16 %v978_v9, %v978_v9 }
 0x152   : > { %3692 = vxpose.binary.xlu0.c.b16.start.end [1/2] (short) (narrow) %v2086_v53, %v2085_v43, 16 }
 0x155   : > { %3683 = vxpose.binary.xlu1.c.b16.start.end [1/2] (short) (narrow) %v2076_v58, %v2075_v56, 16 }
 0x162   : > { %3695 = vxpose.binary.xlu0.c.b16.start.end [1/2] (short) (narrow) %v2084_v1, %v2083_v0, 16 }
 0x165   : > { %3686 = vxpose.binary.xlu1.c.b16.start.end [1/2] (short) (narrow) %v2082_v6, %v2081_v4, 16 }
 0x175   : > { %3701 = vxpose.binary.xlu1.c.b16.start.end [1/2] (short) (narrow) %v2088_v11, %v2087_v10, 16 }
 0x192   : > { %v3677_v12 = vpop.permute.xlu1 %3676  ;;  %v3672_v13 = vpop.permute.xlu0 %3671 }
 0x193   : > { %v3679_v25 = vunpack.i.h.bf16 %v3677_v12  ;;  %v3678_v15 = vunpack.i.l.bf16 %v3677_v12  ;;  %v3674_v61 = vunpack.i.h.bf16 %v3672_v13  ;;  %v3673_v7 = vunpack.i.l.bf16 %v3672_v13 }
 0x195   : > { %v827_v16 = vrot.slane %v3678_v15, 4  ;;  %v4179_v18 = vperm.slane %v3678_v15, %v4023_v42  ;;  %v765_v19 = vrot.slane %v3674_v61, 4  ;;  %v770_v51 = vperm.slane %v3674_v61, %v4023_v42 }
 0x196   : > { %v780_v20 = vperm.slane %v3673_v7, %v4023_v42  ;;  %v817_v14 = vrot.slane %v3679_v25, 4  ;;  %v822_v21 = vperm.slane %v3679_v25, %v4023_v42  ;;  %v775_v33 = vrot.slane %v3673_v7, 4 }
 0x197   : > { %v828_v22 = vsel %vm649_vm1, 0.0, %v827_v16  ;;  %v837_v23 = vrot.slane %v4179_v18, 4  ;;  %v766_v30 = vsel %vm649_vm1, 0.0, %v765_v19  ;;  %v787_v5 = vrot.slane %v770_v51, 4 }
 0x198   : > { %v4188_v31 = vperm.slane %v828_v22, %v4023_v42  ;;  %v785_v34 = vrot.slane %v780_v20, 4  ;;  %v818_v36 = vsel %vm649_vm1, 0.0, %v817_v14  ;;  %v774_v37 = vperm.slane %v766_v30, %v4023_v42 }
 0x199   : > { %v838_v29 = vsel %vm649_vm1, %v837_v23, %v822_v21  ;;  %v788_v38 = vsel %vm649_vm1, %v780_v20, %v787_v5  ;;  %v776_v47 = vsel %vm649_vm1, 0.0, %v775_v33  ;;  %v826_v52 = vperm.slane %v818_v36, %v4023_v42 }
 0x19a   : > { %v844_v26 = vperm.slane %v838_v29, %v4034_v48  ;;  %v786_v39 = vsel %vm649_vm1, %v785_v34, %v770_v51  ;;  %v796_v41 = vperm.slane %v788_v38, %v4034_v48  ;;  %v849_v44 = vrot.slane %v4188_v31, 4 }
 0x19b   : > { %v792_v49 = vperm.slane %v786_v39, %v4034_v48  ;;  %v799_v53 = vrot.slane %v774_v37, 4  ;;  %v784_v56 = vperm.slane %v776_v47, %v4023_v42  ;;  %v839_v61 = vrot.slane %v822_v21, 4 }
 0x19c   : > { %v861_v40 = vrot.slane %v844_v26, 4  ;;  %v811_v43 = vrot.slane %v796_v41, 4  ;;  %v1005_v54 = vpack.c.bf16 %v844_v26, %v844_v26  ;;  %v999_v2 = vpack.c.bf16 %v796_v41, %v796_v41 }
 0x19d   : > { %v809_v55 = vrot.slane %v792_v49, 4  ;;  %v850_v62 = vsel %vm649_vm1, %v849_v44, %v826_v52  ;;  %v997_v63 = vpack.c.bf16 %v792_v49, %v792_v49  ;;  %v800_v0 = vsel %vm649_vm1, %v784_v56, %v799_v53 }
 0x19e   : > { %v862_v35 = vsel %vm649_vm1, 0.0, %v861_v40  ;;  %v812_v58 = vsel %vm649_vm1, 0.0, %v811_v43  ;;  %v856_v1 = vperm.slane %v850_v62, %v4034_v48  ;;  %v808_v45 = vperm.slane %v800_v0, %v4034_v48 }
 0x19f   : > { %v1006_v17 = vpack.c.bf16 %v862_v35, %v862_v35  ;;  %v1000_v57 = vpack.c.bf16 %v812_v58, %v812_v58  ;;  %v810_v59 = vsel %vm649_vm1, 0.0, %v809_v55  ;;  %v797_v46 = vrot.slane %v784_v56, 4 }
 0x1a0   : > { %v998_v50 = vpack.c.bf16 %v810_v59, %v810_v59  ;;  %v865_v3 = vrot.slane %v856_v1, 4  ;;  %v815_v4 = vrot.slane %v808_v45, 4  ;;  %v1009_v60 = vpack.c.bf16 %v856_v1, %v856_v1 }
 0x1a1   : > { %3719 = vxpose.binary.xlu0.c.b16.start.end [1/2] (short) (narrow) %v1006_v17, %v1005_v54, 16  ;;  %v1003_v10 = vpack.c.bf16 %v808_v45, %v808_v45  ;;  %v798_v12 = vsel %vm649_vm1, %v797_v46, %v774_v37  ;;  %v840_v19 = vsel %vm649_vm1, %v4179_v18, %v839_v61  ;;  %v851_v22 = vrot.slane %v826_v52, 4 }
 0x1a2   : > { %3704 = vxpose.binary.xlu2.c.b16.start.end [1/2] (short) (narrow) %v1000_v57, %v999_v2, 16  ;;  %v866_v6 = vsel %vm649_vm1, 0.0, %v865_v3  ;;  %v816_v8 = vsel %vm649_vm1, 0.0, %v815_v4  ;;  %v804_v13 = vperm.slane %v798_v12, %v4034_v48  ;;  %v848_v51 = vperm.slane %v840_v19, %v4034_v48 }
 0x1a3   : > { %3707 = vxpose.binary.xlu1.c.b16.start.end [1/2] (short) (narrow) %v998_v50, %v997_v63, 16  ;;  %v1010_v9 = vpack.c.bf16 %v866_v6, %v866_v6  ;;  %v1004_v11 = vpack.c.bf16 %v816_v8, %v816_v8  ;;  %v852_v5 = vsel %vm649_vm1, %v4188_v31, %v851_v22 }
 0x1a4   : > { %v813_v25 = vrot.slane %v804_v13, 4  ;;  %v1001_v7 = vpack.c.bf16 %v804_v13, %v804_v13  ;;  %v863_v20 = vrot.slane %v848_v51, 4  ;;  %v1007_v23 = vpack.c.bf16 %v848_v51, %v848_v51 }
 0x1a5   : > { %v860_v21 = vperm.slane %v852_v5, %v4034_v48 }
 0x1a6   : > { %v814_v15 = vsel %vm649_vm1, 0.0, %v813_v25  ;;  %v864_v14 = vsel %vm649_vm1, 0.0, %v863_v20 }
 0x1a7   : > { %v1002_v16 = vpack.c.bf16 %v814_v15, %v814_v15  ;;  %v1008_v30 = vpack.c.bf16 %v864_v14, %v864_v14  ;;  %v867_v33 = vrot.slane %v860_v21, 4  ;;  %v1011_v29 = vpack.c.bf16 %v860_v21, %v860_v21 }
 0x1a9   : > { %v868_v34 = vsel %vm649_vm1, 0.0, %v867_v33 }
 0x1aa   : > { %v1012_v26 = vpack.c.bf16 %v868_v34, %v868_v34 }
 0x1b1   : > { %3725 = vxpose.binary.xlu0.c.b16.start.end [1/2] (short) (narrow) %v1010_v9, %v1009_v60, 16  ;;  %v3690_v36 = vpop.trf.xlu2 }
 0x1b2   : > { %3710 = vxpose.binary.xlu2.c.b16.start.end [1/2] (short) (narrow) %v1004_v11, %v1003_v10, 16  ;;  %v2347_v39 = vrot.slane %v3690_v36, 4 }
 0x1b9   : > { %v3691_v38 = vpop.trf.xlu2 }
 0x1ba   : > { %v2459_v54 = vrot.slane %v3691_v38, 4 }
 0x1c2   : > { %3713 = vxpose.binary.xlu2.c.b16.start.end [1/2] (short) (narrow) %v1002_v16, %v1001_v7, 16  ;;  %v3699_v31 = vpop.trf.xlu2 }
 0x1c3   : > { %v2383_v52 = vrot.slane %v3699_v31, 4 }
 0x1ca   : > { %v3700_v57 = vpop.trf.xlu2 }
 0x1cb   : > { %v2495_v59 = vrot.slane %v3700_v57, 4 }
 0x1d2   : > { %3716 = vxpose.binary.xlu2.c.b16.start.end [1/2] (short) (narrow) %v1008_v30, %v1007_v23, 16 }
 0x1e2   : > { %3722 = vxpose.binary.xlu2.c.b16.start.end [1/2] (short) (narrow) %v1012_v26, %v1011_v29, 16 }
 0x1ee   : > { %v3681_v18 = vpop.trf.xlu0 }
 0x1ef   : > { %v2361_v1 = vrot.slane %v3681_v18, 4 }
 0x1f6   : > { %v3682_v37 = vpop.trf.xlu0 }
 0x1f7   : > { %v2473_v25 = vrot.slane %v3682_v37, 4 }
 0x1fe   : > { %v3693_v40 = vpop.trf.xlu0 }
 0x1ff   : > { %v2385_v41 = vrot.slane %v3693_v40, 4  ;;  %v2384_v53 = vsel %vm649_vm1, %v2383_v52, %v3693_v40 }
 0x200   : > { %v2390_v33 = vperm.slane %v2384_v53, %v4023_v42 }
 0x201   : > { %v3684_v44 = vpop.trf.xlu1  ;;  %v2386_v35 = vsel %vm649_vm1, %v3699_v31, %v2385_v41 }
 0x202   : > { %v2349_v47 = vrot.slane %v3684_v44, 4  ;;  %v2348_v49 = vsel %vm649_vm1, %v2347_v39, %v3684_v44  ;;  %v2394_v34 = vperm.slane %v2386_v35, %v4023_v42  ;;  %v2419_v35 = vrot.slane %v2390_v33, 4 }
 0x203   : > { %v2354_v45 = vperm.slane %v2348_v49, %v4023_v42 }
 0x204   : > { %v2350_v43 = vsel %vm649_vm1, %v3690_v36, %v2349_v47  ;;  %v2431_v49 = vrot.slane %v2394_v34, 4 }
 0x205   : > { %v2358_v50 = vperm.slane %v2350_v43, %v4023_v42  ;;  %v2397_v46 = vrot.slane %v2354_v45, 4 }
 0x206   : > { %v3694_v17 = vpop.trf.xlu0 }
 0x207   : > { %v2497_v55 = vrot.slane %v3694_v17, 4  ;;  %v2496_v0 = vsel %vm649_vm1, %v2495_v59, %v3694_v17  ;;  %v2409_v3 = vrot.slane %v2358_v50, 4 }
 0x209   : > { %v3685_v56 = vpop.trf.xlu1  ;;  %v2498_v62 = vsel %vm649_vm1, %v3700_v57, %v2497_v55 }
 0x20a   : > { %v2461_v58 = vrot.slane %v3685_v56, 4  ;;  %v2460_v2 = vsel %vm649_vm1, %v2459_v54, %v3685_v56  ;;  %v4250_v36 = vperm.slane %v2498_v62, %v4023_v42 }
 0x20b   : > { %v2466_v19 = vperm.slane %v2460_v2, %v4023_v42 }
 0x20c   : > { %v2462_v63 = vsel %vm649_vm1, %v3691_v38, %v2461_v58  ;;  %v2543_v53 = vrot.slane %v4250_v36, 4 }
 0x20d   : > { %v2470_v13 = vperm.slane %v2462_v63, %v4023_v42  ;;  %v2509_v30 = vrot.slane %v2466_v19, 4 }
 0x20e   : > { %v3696_v15 = vpop.trf.xlu0 }
 0x20f   : > { %v2521_v20 = vrot.slane %v2470_v13, 4  ;;  %v2373_v38 = vrot.slane %v3696_v15, 4 }
 0x211   : > { %v3687_v4 = vpop.trf.xlu1 }
 0x212   : > { %v2359_v6 = vrot.slane %v3687_v4, 4  ;;  %v2362_v8 = vsel %vm649_vm1, %v3687_v4, %v2361_v1 }
 0x213   : > { %v2370_v60 = vperm.slane %v2362_v8, %v4023_v42 }
 0x214   : > { %v2360_v9 = vsel %vm649_vm1, %v2359_v6, %v3681_v18 }
 0x215   : > { %v2366_v10 = vperm.slane %v2360_v9, %v4023_v42  ;;  %v2407_v11 = vrot.slane %v2370_v60, 4  ;;  %v2410_v12 = vsel %vm649_vm1, %v2370_v60, %v2409_v3 }
 0x216   : > { %v2418_v47 = vperm.slane %v2410_v12, %v4034_v48  ;;  %v3697_v31 = vpop.trf.xlu0 }
 0x217   : > { %v2395_v61 = vrot.slane %v2366_v10, 4  ;;  %v2398_v7 = vsel %vm649_vm1, %v2366_v10, %v2397_v46  ;;  %v2408_v16 = vsel %vm649_vm1, %v2407_v11, %v2358_v50  ;;  %v2485_v62 = vrot.slane %v3697_v31, 4 }
 0x218   : > { %v2414_v44 = vperm.slane %v2408_v16, %v4034_v48  ;;  %v4262_v54 = vperm.slane %v2398_v7, %v4034_v48  ;;  %v2457_v63 = vrot.slane %v2418_v47, 4 }
 0x219   : > { %v2396_v51 = vsel %vm649_vm1, %v2395_v61, %v2354_v45  ;;  %v3688_v14 = vpop.trf.xlu1 }
 0x21a   : > { %v2471_v22 = vrot.slane %v3688_v14, 4  ;;  %v2474_v23 = vsel %vm649_vm1, %v3688_v14, %v2473_v25  ;;  %v4265_v17 = vperm.slane %v2396_v51, %v4034_v48  ;;  %v2449_v60 = vrot.slane %v4262_v54, 4 }
 0x21b   : > { %v2482_v5 = vperm.slane %v2474_v23, %v4023_v42 }
 0x21c   : > { %v2472_v21 = vsel %vm649_vm1, %v2471_v22, %v3682_v37  ;;  %v4255_v37 = vperm.slane %v2496_v0, %v4023_v42  ;;  %v2453_v0 = vrot.slane %v2414_v44, 4  ;;  %v2445_v9 = vrot.slane %v4265_v17, 4 }
 0x21d   : > { %v2478_v29 = vperm.slane %v2472_v21, %v4023_v42  ;;  %v2519_v26 = vrot.slane %v2482_v5, 4  ;;  %v2522_v18 = vsel %vm649_vm1, %v2482_v5, %v2521_v20 }
 0x21e   : > { %v4268_v55 = vperm.slane %v2522_v18, %v4034_v48  ;;  %v2531_v59 = vrot.slane %v4255_v37, 4 }
 0x21f   : > { %v2507_v39 = vrot.slane %v2478_v29, 4  ;;  %v2510_v40 = vsel %vm649_vm1, %v2478_v29, %v2509_v30  ;;  %v2520_v41 = vsel %vm649_vm1, %v2519_v26, %v2470_v13 }
 0x220   : > { %v4272_v2 = vperm.slane %v2520_v41, %v4034_v48  ;;  %v4278_v1 = vperm.slane %v2510_v40, %v4034_v48  ;;  %v2569_v8 = vrot.slane %v4268_v55, 4 }
 0x221   : > { %v2508_v52 = vsel %vm649_vm1, %v2507_v39, %v2466_v19  ;;  %v3702_v43 = vpop.trf.xlu1 }
 0x222   : > { %v2371_v56 = vrot.slane %v3702_v43, 4  ;;  %v2374_v58 = vsel %vm649_vm1, %v3702_v43, %v2373_v38  ;;  %v4281_v45 = vperm.slane %v2508_v52, %v4034_v48  ;;  %v2565_v13 = vrot.slane %v4272_v2, 4 }
 0x223   : > { %v2382_v57 = vperm.slane %v2374_v58, %v4023_v42  ;;  %v2561_v7 = vrot.slane %v4278_v1, 4 }
 0x224   : > { %v2372_v50 = vsel %vm649_vm1, %v2371_v56, %v3696_v15  ;;  %v2557_v14 = vrot.slane %v4281_v45, 4 }
 0x225   : > { %v2378_v3 = vperm.slane %v2372_v50, %v4023_v42  ;;  %v2432_v4 = vsel %vm649_vm1, %v2431_v49, %v2382_v57  ;;  %v2433_v6 = vrot.slane %v2382_v57, 4 }
 0x226   : > { %v2438_v46 = vperm.slane %v2432_v4, %v4034_v48 }
 0x227   : > { %v2420_v10 = vsel %vm649_vm1, %v2419_v35, %v2378_v3  ;;  %v2421_v11 = vrot.slane %v2378_v3, 4  ;;  %v2434_v12 = vsel %vm649_vm1, %v2394_v34, %v2433_v6 }
 0x228   : > { %v2442_v25 = vperm.slane %v2434_v12, %v4034_v48  ;;  %v2451_v15 = vrot.slane %v2438_v46, 4  ;;  %v4294_v61 = vsel %vm649_vm1, %v2438_v46, %v2453_v0  ;;  %v2426_v16 = vperm.slane %v2420_v10, %v4034_v48 }
 0x229   : > { %v3703_v19 = vpop.trf.xlu1  ;;  %v2615_v51 = vshrl.u32 %v4294_v61, 16  ;;  %v2422_v20 = vsel %vm649_vm1, %v2390_v33, %v2421_v11 }
 0x22a   : > { %v2455_v22 = vrot.slane %v2442_v25, 4  ;;  %v2483_v23 = vrot.slane %v3703_v19, 4  ;;  %v2486_v30 = vsel %vm649_vm1, %v3703_v19, %v2485_v62  ;;  %v2430_v5 = vperm.slane %v2422_v20, %v4034_v48 }
 0x22b   : > { %v2494_v21 = vperm.slane %v2486_v30, %v4023_v42  ;;  %v4305_v34 = vsel %vm649_vm1, %v2426_v16, %v2445_v9  ;;  %v4308_v29 = vsel %vm649_vm1, %v2442_v25, %v2457_v63  ;;  %v4311_v26 = vsel %vm649_vm1, %v2451_v15, %v2414_v44 }
 0x22c   : > { %4874 = vst [vmem:[#allocation2_spill] sm:$0xff] %v4311_v26  ;;  %v2484_v33 = vsel %vm649_vm1, %v2483_v23, %v3697_v31  ;;  %v2447_v18 = vrot.slane %v2430_v5, 4  ;;  %v4315_v38 = vsel %vm649_vm1, %v2430_v5, %v2449_v60  ;;  %v4318_v39 = vsel %vm649_vm1, %v2455_v22, %v2418_v47 }
 0x22d   : > { %v2490_v40 = vperm.slane %v2484_v33, %v4023_v42  ;;  %v2544_v41 = vsel %vm649_vm1, %v2543_v53, %v2494_v21  ;;  %v2545_v49 = vrot.slane %v2494_v21, 4  ;;  %v2599_v52 = vshrl.u32 %v4315_v38, 16 }
 0x22e   : > { %v2550_v35 = vperm.slane %v2544_v41, %v4034_v48  ;;  %v2623_v44 = vshrl.u32 %v4318_v39, 16  ;;  %v2583_v31 = vshrl.u32 %v4305_v34, 16  ;;  %v2631_v43 = vshrl.u32 %v4308_v29, 16 }
 0x22f   : > { %v2532_v56 = vsel %vm649_vm1, %v2531_v59, %v2490_v40  ;;  %v2533_v58 = vrot.slane %v2490_v40, 4  ;;  %v2546_v47 = vsel %vm649_vm1, %v4250_v36, %v2545_v49  ;;  %v2607_v57 = vshrl.u32 %v4311_v26, 16 }
 0x230   : > { %v2538_v53 = vperm.slane %v2532_v56, %v4034_v48  ;;  %v2554_v62 = vperm.slane %v2546_v47, %v4034_v48  ;;  %v2563_v63 = vrot.slane %v2550_v35, 4  ;;  %v4334_v50 = vsel %vm649_vm1, %v2550_v35, %v2565_v13 }
 0x231   : > { %v2616_v3 = vshrl.u32 %v4334_v50, 16  ;;  %v2534_v59 = vsel %vm649_vm1, %v4255_v37, %v2533_v58  ;;  %v2443_v4 = vrot.slane %v2426_v16, 4  ;;  %v4390_v33 = vsel %vm649_vm1, %v2447_v18, %v4262_v54 }
 0x232   : > { %v2567_v36 = vrot.slane %v2554_v62, 4  ;;  %v2542_v6 = vperm.slane %v2534_v59, %v4034_v48  ;;  %v4343_v46 = vsel %vm649_vm1, %v2538_v53, %v2557_v14  ;;  %v4346_v60 = vsel %vm649_vm1, %v2554_v62, %v2569_v8  ;;  %4877 = vst [vmem:[#allocation5_spill] sm:$0xff] %v4390_v33 }
 0x233   : > { %v4348_v9 = vpack.i.b16 %v2616_v3, %v2615_v51  ;;  %v2584_v11 = vshrl.u32 %v4343_v46, 16  ;;  %v2632_v8 = vshrl.u32 %v4346_v60, 16  ;;  %v4379_v14 = vsel %vm649_vm1, %v2443_v4, %v4265_v17 }
 0x234   : > { %v2559_v12 = vrot.slane %v2542_v6, 4  ;;  %v4356_v13 = vsel %vm649_vm1, %v2542_v6, %v2561_v7  ;;  %v4360_v25 = vsel %vm649_vm1, %v2567_v36, %v4268_v55  ;;  %v4375_v55 = vsel %vm649_vm1, %v2563_v63, %v4272_v2  ;;  %4876 = vst [vmem:[#allocation4_spill] sm:$0xff] %v4379_v14 }
 0x235   : > { %v2600_v16 = vshrl.u32 %v4356_v13, 16  ;;  %v2624_v51 = vshrl.u32 %v4360_v25, 16  ;;  %v4369_v20 = vpack.i.b16 %v2584_v11, %v2583_v31  ;;  %v4371_v7 = vpack.i.b16 %v2632_v8, %v2631_v43  ;;  %4875 = vst [vmem:[#allocation3_spill] sm:$0xff] %v4375_v55 }
 0x236   : > { %v2608_v5 = vshrl.u32 %v4375_v55, 16  ;;  %v2555_v21 = vrot.slane %v2538_v53, 4  ;;  %v4394_v2 = vsel %vm649_vm1, %v2559_v12, %v4278_v1  ;;  %v2591_v41 = vshrl.u32 %v4390_v33, 16 }
 0x237   : > { %v4381_v22 = vpack.i.b16 %v2600_v16, %v2599_v52  ;;  %v4383_v23 = vpack.i.b16 %v2624_v51, %v2623_v44  ;;  %4878 = vst [vmem:[#allocation6_spill] sm:$0xff] %v4394_v2  ;;  %v2592_v49 = vshrl.u32 %v4394_v2, 16  ;;  %v2575_v18 = vshrl.u32 %v4379_v14, 16 }
 0x238   : > { %v4396_v17 = vpack.i.b16 %v2608_v5, %v2607_v57  ;;  %v4404_v52 = vsel %vm649_vm1, %v2555_v21, %v4281_v45 }
 0x239   : > { %4880 = vst [vmem:[#allocation8_spill] sm:$0xff] %v4404_v52  ;;  %v2576_v1 = vshrl.u32 %v4404_v52, 16  ;;  %v4410_v35 = vpack.i.b16 %v2592_v49, %v2591_v41 }
 0x23a   : > { %4879 = vst [vmem:[#allocation7_spill] sm:$0xff] %v4396_v17 }
 0x23b   : > { %4881 = vst [vmem:[#allocation9_spill] sm:$0xff] %v4410_v35  ;;  %v4412_v44 = vpack.i.b16 %v2576_v1, %v2575_v18 }
 0x23d   : > { %4882 = vst [vmem:[#allocation10_spill] sm:$0xff] %v4412_v44 }
 0x243   : > { %v3705_v31 = vpop.trf.xlu2 }
 0x244   : > { %v1368_v4 = vrot.slane %v3705_v31, 4 }
 0x24b   : > { %v3706_v43 = vpop.trf.xlu2 }
 0x24c   : > { %v1480_v51 = vrot.slane %v3706_v43, 4 }
 0x24d   : > { %v3720_v58 = vpop.trf.xlu0 }
 0x24e   : > { %v1380_v8 = vrot.slane %v3720_v58, 4 }
 0x24f   : > { %v3708_v45 = vpop.trf.xlu1 }
 0x250   : > { %v1356_v3 = vrot.slane %v3708_v45, 4 }
 0x253   : > { %v3711_v56 = vpop.trf.xlu2 }
 0x254   : > { %v1366_v36 = vrot.slane %v3711_v56, 4  ;;  %v1369_v12 = vsel %vm649_vm1, %v3711_v56, %v1368_v4 }
 0x255   : > { %v3721_v53 = vpop.trf.xlu0  ;;  %v1377_v54 = vperm.slane %v1369_v12, %v4023_v42 }
 0x256   : > { %v1367_v18 = vsel %vm649_vm1, %v1366_v36, %v3705_v31  ;;  %v1492_v1 = vrot.slane %v3721_v53, 4 }
 0x257   : > { %v3709_v6 = vpop.trf.xlu1  ;;  %v1373_v10 = vperm.slane %v1367_v18, %v4023_v42 }
 0x258   : > { %v1468_v21 = vrot.slane %v3709_v6, 4 }
 0x25b   : > { %v3712_v47 = vpop.trf.xlu2 }
 0x25c   : > { %v1478_v5 = vrot.slane %v3712_v47, 4  ;;  %v1481_v30 = vsel %vm649_vm1, %v3712_v47, %v1480_v51 }
 0x25d   : > { %v3726_v63 = vpop.trf.xlu0  ;;  %v1489_v12 = vperm.slane %v1481_v30, %v4023_v42 }
 0x25e   : > { %v1378_v41 = vrot.slane %v3726_v63, 4  ;;  %v1381_v4 = vsel %vm649_vm1, %v3726_v63, %v1380_v8  ;;  %v1479_v19 = vsel %vm649_vm1, %v1478_v5, %v3706_v43  ;;  %v1414_v63 = vrot.slane %v1377_v54, 4 }
 0x25f   : > { %v1485_v51 = vperm.slane %v1479_v19, %v4023_v42  ;;  %v1526_v5 = vrot.slane %v1489_v12, 4 }
 0x260   : > { %v1379_v36 = vsel %vm649_vm1, %v1378_v41, %v3720_v58 }
 0x263   : > { %v3714_v57 = vpop.trf.xlu2 }
 0x264   : > { %v1354_v11 = vrot.slane %v3714_v57, 4  ;;  %v1357_v16 = vsel %vm649_vm1, %v3714_v57, %v1356_v3 }
 0x265   : > { %v3727_v49 = vpop.trf.xlu0  ;;  %v1365_v56 = vperm.slane %v1357_v16, %v4023_v42  ;;  %v1389_v16 = vperm.slane %v1381_v4, %v4023_v42 }
 0x266   : > { %v1355_v37 = vsel %vm649_vm1, %v1354_v11, %v3708_v45  ;;  %v1490_v57 = vrot.slane %v3727_v49, 4  ;;  %v1493_v11 = vsel %vm649_vm1, %v3727_v49, %v1492_v1  ;;  %v1514_v1 = vrot.slane %v1485_v51, 4 }
 0x267   : > { %v1361_v47 = vperm.slane %v1355_v37, %v4023_v42  ;;  %v1416_v8 = vrot.slane %v1365_v56, 4  ;;  %v1415_v30 = vsel %vm649_vm1, %v1414_v63, %v1365_v56  ;;  %v1440_v49 = vrot.slane %v1389_v16, 4 }
 0x268   : > { %v1491_v58 = vsel %vm649_vm1, %v1490_v57, %v3721_v53  ;;  %v4450_v53 = vperm.slane %v1415_v30, %v4034_v48 }
 0x269   : > { %v1417_v41 = vsel %vm649_vm1, %v1377_v54, %v1416_v8  ;;  %v4447_v18 = vperm.slane %v1491_v58, %v4023_v42 }
 0x26a   : > { %v4456_v63 = vperm.slane %v1417_v41, %v4034_v48 }
 0x26b   : > { %v3715_v62 = vpop.trf.xlu2  ;;  %v1540_v15 = vrot.slane %v4447_v18, 4 }
 0x26c   : > { %v1466_v40 = vrot.slane %v3715_v62, 4  ;;  %v1469_v31 = vsel %vm649_vm1, %v3715_v62, %v1468_v21  ;;  %v1385_v62 = vperm.slane %v1379_v36, %v4023_v42  ;;  %v1404_v21 = vrot.slane %v1361_v47, 4 }
 0x26d   : > { %v1477_v43 = vperm.slane %v1469_v31, %v4023_v42 }
 0x26e   : > { %v1467_v45 = vsel %vm649_vm1, %v1466_v40, %v3709_v6  ;;  %v4442_v40 = vperm.slane %v1493_v11, %v4023_v42  ;;  %v1402_v6 = vrot.slane %v1373_v10, 4  ;;  %v1428_v4 = vrot.slane %v1385_v62, 4 }
 0x26f   : > { %v1473_v37 = vperm.slane %v1467_v45, %v4023_v42  ;;  %v1528_v56 = vrot.slane %v1477_v43, 4  ;;  %v1405_v58 = vsel %vm649_vm1, %v1373_v10, %v1404_v21  ;;  %v1527_v32 = vsel %vm649_vm1, %v1526_v5, %v1477_v43 }
 0x270   : > { %v1552_v36 = vrot.slane %v4442_v40, 4  ;;  %v1403_v54 = vsel %vm649_vm1, %v1402_v6, %v1361_v47  ;;  %v4475_v5 = vperm.slane %v1527_v32, %v4034_v48  ;;  %v1464_v32 = vrot.slane %v4456_v63, 4 }
 0x271   : > { %v1516_v31 = vrot.slane %v1473_v37, 4  ;;  %v1515_v30 = vsel %vm649_vm1, %v1514_v1, %v1473_v37  ;;  %v4470_v10 = vperm.slane %v1403_v54, %v4034_v48  ;;  %v1413_v37 = vperm.slane %v1405_v58, %v4034_v48 }
 0x273   : > { %v4414_v59 = vpop.trf.xlu2  ;;  %v1517_v43 = vsel %vm649_vm1, %v1485_v51, %v1516_v31 }
 0x274   : > { %v1392_v19 = vrot.slane %v4414_v59, 4 }
 0x27b   : > { %v4424_v3 = vpop.trf.xlu2 }
 0x283   : > { %v3723_v57 = vpop.trf.xlu2 }
 0x284   : > { %v1390_v45 = vrot.slane %v3723_v57, 4  ;;  %v1393_v11 = vsel %vm649_vm1, %v3723_v57, %v1392_v19  ;;  %v1529_v19 = vsel %vm649_vm1, %v1489_v12, %v1528_v56  ;;  %v1460_v57 = vrot.slane %v4450_v53, 4 }
 0x285   : > { %v1401_v8 = vperm.slane %v1393_v11, %v4023_v42  ;;  %v4480_v21 = vperm.slane %v1529_v19, %v4034_v48  ;;  %v4487_v56 = vperm.slane %v1515_v30, %v4034_v48  ;;  %v1572_v30 = vrot.slane %v4475_v5, 4 }
 0x286   : > { %v1391_v0 = vsel %vm649_vm1, %v1390_v45, %v4414_v59  ;;  %v1452_v19 = vrot.slane %v4470_v10, 4 }
 0x287   : > { %v1397_v47 = vperm.slane %v1391_v0, %v4023_v42  ;;  %v1438_v6 = vrot.slane %v1401_v8, 4  ;;  %v1441_v41 = vsel %vm649_vm1, %v1401_v8, %v1440_v49  ;;  %v1504_v49 = vrot.slane %v4424_v3, 4 }
 0x288   : > { %v4484_v1 = vperm.slane %v1441_v41, %v4034_v48  ;;  %v1576_v41 = vrot.slane %v4480_v21, 4 }
 0x289   : > { %v1426_v59 = vrot.slane %v1397_v47, 4  ;;  %v1429_v12 = vsel %vm649_vm1, %v1397_v47, %v1428_v4  ;;  %v1439_v0 = vsel %vm649_vm1, %v1438_v6, %v1389_v16  ;;  %v1525_v16 = vperm.slane %v1517_v43, %v4034_v48 }
 0x28a   : > { %v4491_v31 = vperm.slane %v1439_v0, %v4034_v48  ;;  %v1437_v8 = vperm.slane %v1429_v12, %v4034_v48  ;;  %v1456_v47 = vrot.slane %v1413_v37, 4  ;;  %v1564_v43 = vrot.slane %v4487_v56, 4 }
 0x28b   : > { %v3724_v51 = vpop.trf.xlu2  ;;  %v1427_v4 = vsel %vm649_vm1, %v1426_v59, %v1385_v62  ;;  %v1465_v62 = vsel %vm649_vm1, %v4484_v1, %v1464_v32 }
 0x28c   : > { %v1502_v45 = vrot.slane %v3724_v51, 4  ;;  %v1505_v11 = vsel %vm649_vm1, %v3724_v51, %v1504_v49  ;;  %v1433_v54 = vperm.slane %v1427_v4, %v4034_v48  ;;  %v1461_v49 = vsel %vm649_vm1, %v4491_v31, %v1460_v57 }
 0x28d   : > { %v1513_v58 = vperm.slane %v1505_v11, %v4023_v42  ;;  %v1454_v4 = vrot.slane %v1437_v8, 4  ;;  %v1622_v57 = vshrl.u32 %v1461_v49, 16  ;;  %v1457_v44 = vsel %vm649_vm1, %v1437_v8, %v1456_v47 }
 0x28e   : > { %v1503_v6 = vsel %vm649_vm1, %v1502_v45, %v4424_v3  ;;  %v1453_v3 = vsel %vm649_vm1, %v1433_v54, %v1452_v19  ;;  %v1568_v45 = vrot.slane %v1525_v16, 4 }
 0x28f   : > { %v1509_v59 = vperm.slane %v1503_v6, %v4023_v42  ;;  %v1550_v12 = vrot.slane %v1513_v58, 4  ;;  %v1553_v0 = vsel %vm649_vm1, %v1513_v58, %v1552_v36  ;;  %v1638_v6 = vshrl.u32 %v1465_v62, 16 }
 0x290   : > { %v4512_v51 = vperm.slane %v1553_v0, %v4034_v48  ;;  %v1590_v2 = vshrl.u32 %v1453_v3, 16 }
 0x291   : > { %v1538_v32 = vrot.slane %v1509_v59, 4  ;;  %v1541_v11 = vsel %vm649_vm1, %v1509_v59, %v1540_v15  ;;  %v1551_v35 = vsel %vm649_vm1, %v1550_v12, %v4442_v40  ;;  %v1455_v59 = vsel %vm649_vm1, %v1454_v4, %v1413_v37 }
 0x292   : > { %v1577_v36 = vsel %vm649_vm1, %v4512_v51, %v1576_v41  ;;  %v1557_v58 = vperm.slane %v1551_v35, %v4034_v48  ;;  %v1549_v0 = vperm.slane %v1541_v11, %v4034_v48  ;;  %v1598_v55 = vshrl.u32 %v1455_v59, 16 }
 0x293   : > { %v1639_v33 = vshrl.u32 %v1577_v36, 16  ;;  %v1539_v19 = vsel %vm649_vm1, %v1538_v32, %v4447_v18  ;;  %v1636_v41 = vpack.i.b16 %v1577_v36, %v1465_v62  ;;  %v1606_v32 = vshrl.u32 %v1457_v44, 16 }
 0x294   : > { %v1573_v15 = vsel %vm649_vm1, %v1557_v58, %v1572_v30  ;;  %v1545_v40 = vperm.slane %v1539_v19, %v4034_v48  ;;  %v1566_v12 = vrot.slane %v1549_v0, 4  ;;  %v1569_v52 = vsel %vm649_vm1, %v1549_v0, %v1568_v45 }
 0x295   : > { %v1640_v14 = vpack.i.b16 %v1639_v33, %v1638_v6  ;;  %v1623_v35 = vshrl.u32 %v1573_v15, 16  ;;  %v1604_v18 = vpack.i.b16 %v1569_v52, %v1457_v44  ;;  %v1620_v8 = vpack.i.b16 %v1573_v15, %v1461_v49 }
 0x296   : > { %v1565_v11 = vsel %vm649_vm1, %v1545_v40, %v1564_v43  ;;  %v1567_v17 = vsel %vm649_vm1, %v1566_v12, %v1525_v16  ;;  %v1607_v4 = vshrl.u32 %v1569_v52, 16  ;;  %v1450_v62 = vrot.slane %v1433_v54, 4 }
 0x297   : > { %3731 = vxpose.binary.xlu1.c.b16.start.end [1/2] (short) (narrow) %v1640_v14, %v1636_v41, 16  ;;  %v1624_v47 = vpack.i.b16 %v1623_v35, %v1622_v57  ;;  %v1588_v30 = vpack.i.b16 %v1565_v11, %v1453_v3  ;;  %v1591_v26 = vshrl.u32 %v1565_v11, 16  ;;  %v1596_v19 = vpack.i.b16 %v1567_v17, %v1455_v59 }
 0x298   : > { %v1599_v37 = vshrl.u32 %v1567_v17, 16  ;;  %v1570_v6 = vrot.slane %v1557_v58, 4  ;;  %v1608_v36 = vpack.i.b16 %v1607_v4, %v1606_v32  ;;  %v1451_v16 = vsel %vm649_vm1, %v1450_v62, %v4470_v10 }
 0x299   : > { %3728 = vxpose.binary.xlu2.c.b16.start.end [1/2] (short) (narrow) %v1624_v47, %v1620_v8, 16  ;;  %v1592_v33 = vpack.i.b16 %v1591_v26, %v1590_v2  ;;  %v1562_v44 = vrot.slane %v1545_v40, 4  ;;  %v1458_v14 = vrot.slane %v4491_v31, 4  ;;  %v1582_v49 = vshrl.u32 %v1451_v16, 16 }
 0x29a   : > { %v1600_v45 = vpack.i.b16 %v1599_v37, %v1598_v55  ;;  %v1571_v17 = vsel %vm649_vm1, %v1570_v6, %v4475_v5  ;;  %v1574_v31 = vrot.slane %v4512_v51, 4  ;;  %v4883_v59 = vpack.i.b16 %v4334_v50, %v4294_v61 }
 0x29b   : > { %3734 = vxpose.binary.xlu0.c.b16.start.end [1/2] (short) (narrow) %v1592_v33, %v1588_v30, 16  ;;  %v1563_v43 = vsel %vm649_vm1, %v1562_v44, %v4487_v56  ;;  %v1459_v55 = vsel %vm649_vm1, %v1458_v14, %v4450_v53  ;;  %v1615_v54 = vshrl.u32 %v1571_v17, 16  ;;  %v1462_v56 = vrot.slane %v4484_v1, 4 }
 0x29c   : > { %v1580_v52 = vpack.i.b16 %v1563_v43, %v1451_v16  ;;  %v1583_v26 = vshrl.u32 %v1563_v43, 16  ;;  %v1614_v3 = vshrl.u32 %v1459_v55, 16  ;;  %v1612_v58 = vpack.i.b16 %v1571_v17, %v1459_v55 }
 0x29d   : > { %v1575_v5 = vsel %vm649_vm1, %v1574_v31, %v4480_v21  ;;  %v1463_v57 = vsel %vm649_vm1, %v1462_v56, %v4456_v63  ;;  %v4884_v1 = vpack.i.b16 %v4356_v13, %v4315_v38 }
 0x29e   : > { %v1584_v2 = vpack.i.b16 %v1583_v26, %v1582_v49  ;;  %v1616_v10 = vpack.i.b16 %v1615_v54, %v1614_v3  ;;  %v1631_v0 = vshrl.u32 %v1575_v5, 16  ;;  %v1630_v53 = vshrl.u32 %v1463_v57, 16 }
 0x29f   : > { %v1628_v15 = vpack.i.b16 %v1575_v5, %v1463_v57 }
 0x2a0   : > { %v1632_v40 = vpack.i.b16 %v1631_v0, %v1630_v53 }
 0x2a7   : > { %3737 = vxpose.binary.xlu1.c.b16.start.end [1/2] (short) (narrow) %v1616_v10, %v1612_v58, 16 }
 0x2a9   : > { %3749 = vxpose.binary.xlu2.c.b16.start.end [1/2] (short) (narrow) %v1600_v45, %v1596_v19, 16 }
 0x2ab   : > { %3740 = vxpose.binary.xlu0.c.b16.start.end [1/2] (short) (narrow) %v1608_v36, %v1604_v18, 16 }
 0x2b7   : > { %3743 = vxpose.binary.xlu1.c.b16.start.end [1/2] (short) (narrow) %v1632_v40, %v1628_v15, 16 }
 0x2b9   : > { %3758 = vxpose.binary.xlu2.c.b16.start.end [1/2] (short) (narrow) %v4348_v9, %v4883_v59, 16 }
 0x2bb   : > { %3746 = vxpose.binary.xlu0.c.b16.start.end [1/2] (short) (narrow) %v1584_v2, %v1580_v52, 16 }
 0x2cb   : > { %3755 = vxpose.binary.xlu0.c.b16.start.end [1/2] (short) (narrow) %v4381_v22, %v4884_v1, 16 }
 0x33a   : > { %v3729_v63 = vpop.trf.xlu2 }
 0x342   : > { %v3730_v11 = vpop.trf.xlu2 }
 0x343   : > { %v3732_v21 = vpop.trf.xlu1 }
 0x344   : > { %v1916_v8 = vrot.slane %v3732_v21, 4 }
 0x346   : > { %v1917_v50 = vsel %vm649_vm1, %v1916_v8, %v3729_v63 }
 0x347   : > { %v3735_v51 = vpop.trf.xlu0  ;;  %v1921_v30 = vperm.slane %v1917_v50, %v4023_v42 }
 0x349   : > { %v1928_v62 = vrot.slane %v1921_v30, 4 }
 0x34a   : > { %v3750_v61 = vpop.trf.xlu2 }
 0x34b   : > { %v3733_v12 = vpop.trf.xlu1  ;;  %v1898_v37 = vrot.slane %v3750_v61, 4 }
 0x34c   : > { %v1954_v13 = vrot.slane %v3733_v12, 4 }
 0x34e   : > { %v1955_v16 = vsel %vm649_vm1, %v1954_v13, %v3730_v11 }
 0x34f   : > { %v3736_v41 = vpop.trf.xlu0  ;;  %v1959_v49 = vperm.slane %v1955_v16, %v4023_v42 }
 0x351   : > { %v1966_v56 = vrot.slane %v1959_v49, 4 }
 0x352   : > { %v3751_v43 = vpop.trf.xlu2 }
 0x353   : > { %v3738_v35 = vpop.trf.xlu1  ;;  %v1936_v54 = vrot.slane %v3751_v43, 4 }
 0x357   : > { %v3741_v18 = vpop.trf.xlu0 }
 0x358   : > { %v1904_v9 = vrot.slane %v3741_v18, 4 }
 0x35a   : > { %v1905_v22 = vsel %vm649_vm1, %v1904_v9, %v3735_v51 }
 0x35b   : > { %v3739_v32 = vpop.trf.xlu1  ;;  %v1909_v6 = vperm.slane %v1905_v22, %v4023_v42 }
 0x35d   : > { %v1922_v26 = vrot.slane %v1909_v6, 4 }
 0x35f   : > { %v3742_v47 = vpop.trf.xlu0 }
 0x360   : > { %v1942_v4 = vrot.slane %v3742_v47, 4  ;;  %v4885_v47 = vpack.c.b16 %v4147_v27, %v4145_v24 }
 0x362   : > { %v1943_v52 = vsel %vm649_vm1, %v1942_v4, %v3736_v41 }
 0x363   : > { %v3744_v38 = vpop.trf.xlu1  ;;  %v1947_v58 = vperm.slane %v1943_v52, %v4023_v42 }
 0x364   : > { %v1910_v19 = vrot.slane %v3744_v38, 4 }
 0x365   : > { %v1960_v40 = vrot.slane %v1947_v58, 4  ;;  %v4889_v58 = vld [vmem:[#allocation3_spill] sm:$0xff] }
 0x366   : > { %v1911_v33 = vsel %vm649_vm1, %v1910_v19, %v3738_v35 }
 0x367   : > { %v1915_v45 = vperm.slane %v1911_v33, %v4023_v42  ;;  %v3747_v36 = vpop.trf.xlu0  ;;  %v4887_v33 = vpack.i.b16 %v4343_v46, %v4305_v34 }
 0x368   : > { %v1899_v44 = vsel %vm649_vm1, %v1898_v37, %v3747_v36 }
 0x369   : > { %v1903_v14 = vperm.slane %v1899_v44, %v4023_v42  ;;  %v1929_v17 = vsel %vm649_vm1, %v1928_v62, %v1915_v45  ;;  %v4888_v62 = vpack.i.b16 %v4346_v60, %v4308_v29  ;;  %v4602_v45 = vpop.trf.xlu2 }
 0x36a   : > { %v1933_v3 = vperm.slane %v1929_v17, %v4034_v48 }
 0x36b   : > { %v3745_v55 = vpop.trf.xlu1  ;;  %v1923_v10 = vsel %vm649_vm1, %v1922_v26, %v1903_v14 }
 0x36c   : > { %v1948_v2 = vrot.slane %v3745_v55, 4  ;;  %v1927_v53 = vperm.slane %v1923_v10, %v4034_v48  ;;  %v1934_v15 = vrot.slane %v1933_v3, 4  ;;  %v4890_v10 = vld [vmem:[#allocation2_spill] sm:$0xff] }
 0x36e   : > { %v1949_v31 = vsel %vm649_vm1, %v1948_v2, %v3739_v32  ;;  %v1935_v12 = vsel %vm649_vm1, %v1934_v15, %v1927_v53  ;;  %v4896_v53 = vld [vmem:[#allocation10_spill] sm:$0xff] }
 0x36f   : > { %v1953_v5 = vperm.slane %v1949_v31, %v4023_v42  ;;  %v3748_v57 = vpop.trf.xlu0  ;;  %v1978_v18 = vshrl.u32 %v1935_v12, 16  ;;  %v4891_v31 = vpack.i.b16 %v4889_v58, %v4890_v10 }
 0x370   : > { %v1937_v0 = vsel %vm649_vm1, %v1936_v54, %v3748_v57  ;;  %v4894_v57 = vld [vmem:[#allocation4_spill] sm:$0xff] }
 0x371   : > { %v1941_v59 = vperm.slane %v1937_v0, %v4023_v42  ;;  %v1967_v1 = vsel %vm649_vm1, %v1966_v56, %v1953_v5  ;;  %v4606_v44 = vpop.trf.xlu2  ;;  %v4892_v56 = vld [vmem:[#allocation7_spill] sm:$0xff]  ;;  %v4893_v5 = vld [vmem:[#allocation8_spill] sm:$0xff] }
 0x372   : > { %v1971_v21 = vperm.slane %v1967_v1, %v4034_v48  ;;  %v4895_v0 = vpack.i.b16 %v4893_v5, %v4894_v57  ;;  %v4897_v1 = vld [vmem:[#allocation6_spill] sm:$0xff] }
 0x373   : > { %v1961_v51 = vsel %vm649_vm1, %v1960_v40, %v1941_v59 }
 0x374   : > { %v1965_v63 = vperm.slane %v1961_v51, %v4034_v48  ;;  %v1972_v41 = vrot.slane %v1971_v21, 4  ;;  %v4898_v21 = vld [vmem:[#allocation5_spill] sm:$0xff] }
 0x375   : > { %v4899_v51 = vpack.i.b16 %v4897_v1, %v4898_v21 }
 0x376   : > { %v1973_v35 = vsel %vm649_vm1, %v1972_v41, %v1965_v63 }
 0x377   : > { %v1976_v11 = vpack.i.b16 %v1973_v35, %v1935_v12  ;;  %v1979_v32 = vshrl.u32 %v1973_v35, 16  ;;  %v3756_v6 = vpop.trf.xlu0  ;;  %v4900_v12 = vld [vmem:[#allocation9_spill] sm:$0xff] }
 0x378   : > { %v2897_v15 = vrot.slane %v3756_v6, 4 }
 0x379   : > { %1996 = vmatpush.bf16.msra.mxu2 %v1976_v11  ;;  %v1980_v8 = vpack.i.b16 %v1979_v32, %v1978_v18 }
 0x37b   : > { %2016 = vmatpush.bf16.msra.mxu3 %v1980_v8 }
 0x37c   : > { %3633 = vmatmul.msk.bf16.vlgmr.msra.gmra.mxu2 %vm1985_vm2, %v4885_v47 }
 0x37e   : > { %3634 = vmatmul.msk.bf16.vlgmr.msra.gmra.mxu3 %vm1985_vm2, %v4152_v28  ;;  %v4886_v28 = vpack.i.b16 %v4360_v25, %v4318_v39 }
 0x37f   : > { %v4604_v36 = vpop.trf.xlu0 }
 0x3ff   : > { %v1998_v61 = vpop.f32.mrf.mxu2 }
 0x400   : > { %v2023_v50 = vmul.f32 0.25, %v1998_v61 }
 0x401   : > { %v2018_v9 = vpop.f32.mrf.mxu3 }
 0x402   : > { %v2027_v30 = vsel %vm1985_vm2, %v2023_v50, -inf  ;;  %v2025_v38 = vmul.f32 0.25, %v2018_v9 }
 0x403   : > { %2028 = vmax.xlane.f32.xlu1 %v2027_v30 }
 0x404   : > { %v2033_v4 = vsel %vm1985_vm2, %v2025_v38, -inf }
 0x407   : > { %v2000_v13 = vpop.f32.mrf.mxu2 }
 0x408   : > { %v2024_v22 = vmul.f32 0.25, %v2000_v13 }
 0x409   : > { %v2020_v19 = vpop.f32.mrf.mxu3 }
 0x40a   : > { %v2026_v37 = vmul.f32 0.25, %v2020_v19  ;;  %v2030_v24 = vsel %vm1985_vm2, %v2024_v22, -inf }
 0x40b   : > { %2034 = vmax.xlane.f32.xlu1 %v2033_v4  ;;  %2031 = vmax.xlane.f32.xlu0 %v2030_v24 }
 0x40c   : > { %v2036_v27 = vsel %vm1985_vm2, %v2026_v37, -inf }
 0x40d   : > { %2037 = vmax.xlane.f32.xlu2 %v2036_v27 }
 0x434   : > { %3761 = vxpose.binary.xlu0.c.b16.start.end [1/2] (short) (narrow) %v4383_v23, %v4886_v28, 16 }
 0x436   : > { %3764 = vxpose.binary.xlu2.c.b16.start.end [1/2] (short) (narrow) %v4369_v20, %v4887_v33, 16 }
 0x445   : > { %3752 = vxpose.binary.xlu1.c.b16.start.end [1/2] (short) (narrow) %v4371_v7, %v4888_v62, 16 }
 0x476   : > { %v2029_v16 = vpop.xlane.xlu1 %2028 }
 0x477   : > { %v2039_v25 = vsub.f32 %v2023_v50, %v2029_v16 }
 0x479   : > { %v2043_v46 = vmul.f32 1.442695, %v2039_v25 }
 0x47b   : > { %3806 = vpow2.f32 %v2043_v46 }
 0x47e   : > { %v2032_v39 = vpop.xlane.xlu0 %2031  ;;  %v2035_v23 = vpop.xlane.xlu1 %2034 }
 0x47f   : > { %v2040_v14 = vsub.f32 %v2024_v22, %v2032_v39  ;;  %v2041_v34 = vsub.f32 %v2025_v38, %v2035_v23 }
 0x480   : > { %v2038_v43 = vpop.xlane.xlu2 %2037 }
 0x481   : > { %v2045_v20 = vmul.f32 1.442695, %v2040_v14  ;;  %v2047_v17 = vmul.f32 1.442695, %v2041_v34  ;;  %v2042_v29 = vsub.f32 %v2026_v37, %v2038_v43  ;;  %v3807_v7 = vpop.eup %3806 }
 0x482   : > { %v2051_v26 = vsel %vm1985_vm2, %v3807_v7, 0.0 }
 0x483   : > { %3808 = vpow2.f32 %v2045_v20  ;;  %v2049_v60 = vmul.f32 1.442695, %v2042_v29 }
 0x484   : > { %3810 = vpow2.f32 %v2047_v17 }
 0x485   : > { %3812 = vpow2.f32 %v2049_v60 }
 0x489   : > { %v3809_v52 = vpop.eup %3808 }
 0x48a   : > { %v3811_v49 = vpop.eup %3810  ;;  %v2054_v55 = vsel %vm1985_vm2, %v3809_v52, 0.0 }
 0x48b   : > { %v2057_v2 = vsel %vm1985_vm2, %v3811_v49, 0.0  ;;  %v3813_v54 = vpop.eup %3812 }
 0x48c   : > { %v2060_v3 = vsel %vm1985_vm2, %v3813_v54, 0.0 }
 0x4a5   : > { %2052 = vadd.xlane.f32.xlu0 %v2051_v26  ;;  %2055 = vadd.xlane.f32.xlu1 %v2054_v55 }
 0x4a7   : > { %2058 = vadd.xlane.f32.xlu2 %v2057_v2 }
 0x4ad   : > { %2061 = vadd.xlane.f32.xlu1 %v2060_v3 }
 0x4ce   : > { %3770 = vxpose.binary.xlu0.c.b16.start.end [1/2] (short) (narrow) %v4892_v56, %v4891_v31, 16 }
 0x4d0   : > { %3773 = vxpose.binary.xlu2.c.b16.start.end [1/2] (short) (narrow) %v4896_v53, %v4895_v0, 16 }
 0x4d7   : > { %v3765_v40 = vpop.trf.xlu2 }
 0x4d8   : > { %v4621_v59 = vsel %vm649_vm1, %v2897_v15, %v3765_v40 }
 0x4d9   : > { %v2902_v56 = vperm.slane %v4621_v59, %v4023_v42 }
 0x4db   : > { %v2915_v15 = vrot.slane %v2902_v56, 4 }
 0x4df   : > { %v3766_v18 = vpop.trf.xlu2 }
 0x4e0   : > { %v3762_v63 = vpop.trf.xlu0 }
 0x4e1   : > { %v2903_v20 = vrot.slane %v3762_v63, 4 }
 0x4e7   : > { %3767 = vxpose.binary.xlu1.c.b16.start.end [1/2] (short) (narrow) %v4900_v12, %v4899_v51, 16 }
 0x4e8   : > { %v3763_v35 = vpop.trf.xlu0 }
 0x4e9   : > { %v2941_v55 = vrot.slane %v3763_v35, 4 }
 0x4f1   : > { %v3753_v41 = vpop.trf.xlu1 }
 0x4f2   : > { %v2909_v34 = vrot.slane %v3753_v41, 4 }
 0x4f4   : > { %v2910_v46 = vsel %vm649_vm1, %v2909_v34, %v4602_v45 }
 0x4f5   : > { %v2914_v43 = vperm.slane %v2910_v46, %v4023_v42 }
 0x4f9   : > { %v3754_v11 = vpop.trf.xlu1 }
 0x4fa   : > { %v2947_v17 = vrot.slane %v3754_v11, 4 }
 0x518   : > { %v2056_v32 = vpop.xlane.xlu1 %2055  ;;  %v2053_v8 = vpop.xlane.xlu0 %2052 }
 0x519   : > { %3814 = vrcp.f32 %v2056_v32 }
 0x51a   : > { %3816 = vrcp.f32 %v2053_v8  ;;  %v2059_v47 = vpop.xlane.xlu2 %2058 }
 0x51b   : > { %3818 = vrcp.f32 %v2059_v47 }
 0x51f   : > { %v3815_v61 = vpop.eup %3814 }
 0x520   : > { %v3817_v50 = vpop.eup %3816  ;;  %v2062_v9 = vpop.xlane.xlu1 %2061  ;;  %v2068_v30 = vmul.f32 %v3815_v61, %v3809_v52 }
 0x521   : > { %v3819_v38 = vpop.eup %3818  ;;  %3820 = vrcp.f32 %v2062_v9  ;;  %v2067_v13 = vmul.f32 %v3817_v50, %v3807_v7  ;;  %v2921_v7 = vrot.slane %v2914_v43, 4 }
 0x522   : > { %v2072_v22 = vpack.c.bf16 %v2068_v30, %v2068_v30  ;;  %v2069_v4 = vmul.f32 %v3819_v38, %v3811_v49  ;;  %v2948_v49 = vsel %vm649_vm1, %v2947_v17, %v4606_v44  ;;  %v2935_v44 = vrot.slane %v4604_v36, 4 }
 0x523   : > { %v2071_v19 = vpack.c.bf16 %v2067_v13, %v2067_v13  ;;  %v2952_v2 = vperm.slane %v2948_v49, %v4023_v42 }
 0x524   : > { %v2976_v37 = vunpack.c.l.b16 %v2072_v22  ;;  %v2073_v62 = vpack.c.bf16 %v2069_v4, %v2069_v4  ;;  %v2936_v1 = vsel %vm649_vm1, %v2935_v44, %v3766_v18 }
 0x525   : > { %v2975_v24 = vunpack.c.l.b16 %v2071_v19  ;;  %v2959_v3 = vrot.slane %v2952_v2, 4  ;;  %v2940_v59 = vperm.slane %v2936_v1, %v4023_v42 }
 0x526   : > { %v3000_v39 = vunpack.c.l.b16 %v2073_v62 }
 0x527   : > { %v3821_v27 = vpop.eup %3820  ;;  %v2977_v28 = vpack.c.b16 %v2976_v37, %v2975_v24  ;;  %v2953_v8 = vrot.slane %v2940_v59, 4 }
 0x528   : > { %v2070_v33 = vmul.f32 %v3821_v27, %v3813_v54 }
 0x529   : > { %v2982_v6 = vsel %vm1985_vm2, %v2977_v28, 0 }
 0x52a   : > { %2991 = vmatpush.bf16.xpose.msrb.mxu2 %v2982_v6  ;;  %v2074_v16 = vpack.c.bf16 %v2070_v33, %v2070_v33 }
 0x52c   : > { %v3001_v25 = vunpack.c.l.b16 %v2074_v16 }
 0x52e   : > { %v3002_v23 = vpack.c.b16 %v3001_v25, %v3000_v39 }
 0x530   : > { %v3007_v14 = vsel %vm1985_vm2, %v3002_v23, 0 }
 0x531   : > { %3016 = vmatpush.bf16.xpose.msrb.mxu3 %v3007_v14 }
 0x571   : > { %v3774_v31 = vpop.trf.xlu2 }
 0x579   : > { %v3775_v41 = vpop.trf.xlu2 }
 0x57a   : > { %v3771_v29 = vpop.trf.xlu0 }
 0x57b   : > { %v2904_v60 = vsel %vm649_vm1, %v2903_v20, %v3771_v29 }
 0x57c   : > { %v2908_v52 = vperm.slane %v2904_v60, %v4023_v42 }
 0x57e   : > { %v2922_v26 = vsel %vm649_vm1, %v2921_v7, %v2908_v52 }
 0x57f   : > { %v2926_v0 = vperm.slane %v2922_v26, %v4034_v48 }
 0x581   : > { %v2927_v51 = vrot.slane %v2926_v0, 4 }
 0x582   : > { %v3772_v54 = vpop.trf.xlu0 }
 0x583   : > { %v2942_v45 = vsel %vm649_vm1, %v2941_v55, %v3772_v54 }
 0x584   : > { %v2946_v58 = vperm.slane %v2942_v45, %v4023_v42 }
 0x586   : > { %v2960_v10 = vsel %vm649_vm1, %v2959_v3, %v2946_v58 }
 0x587   : > { %v2964_v11 = vperm.slane %v2960_v10, %v4034_v48 }
 0x589   : > { %v2965_v61 = vrot.slane %v2964_v11, 4 }
 0x593   : > { %v3768_v5 = vpop.trf.xlu1 }
 0x594   : > { %v2891_v57 = vrot.slane %v3768_v5, 4 }
 0x596   : > { %v2892_v53 = vsel %vm649_vm1, %v2891_v57, %v3774_v31 }
 0x597   : > { %v2896_v40 = vperm.slane %v2892_v53, %v4023_v42 }
 0x599   : > { %v2916_v21 = vsel %vm649_vm1, %v2915_v15, %v2896_v40 }
 0x59a   : > { %v2920_v12 = vperm.slane %v2916_v21, %v4034_v48 }
 0x59b   : > { %v3769_v63 = vpop.trf.xlu1 }
 0x59c   : > { %v2929_v35 = vrot.slane %v3769_v63, 4  ;;  %v2928_v36 = vsel %vm649_vm1, %v2927_v51, %v2920_v12 }
 0x59d   : > { %v2970_v38 = vshrl.u32 %v2928_v36, 16 }
 0x59e   : > { %v2930_v32 = vsel %vm649_vm1, %v2929_v35, %v3775_v41 }
 0x59f   : > { %v2934_v47 = vperm.slane %v2930_v32, %v4023_v42 }
 0x5a1   : > { %v2954_v18 = vsel %vm649_vm1, %v2953_v8, %v2934_v47 }
 0x5a2   : > { %v2958_v50 = vperm.slane %v2954_v18, %v4034_v48 }
 0x5a4   : > { %v2966_v9 = vsel %vm649_vm1, %v2965_v61, %v2958_v50  ;;  %v3279_v50 = vld [vmem:[%s4847_s6 + $0x10] sm:$0xff] }
 0x5a5   : > { %v2969_v30 = vpack.i.b16 %v2966_v9, %v2928_v36  ;;  %v2971_v13 = vshrl.u32 %v2966_v9, 16  ;;  %v3280_v9 = vld [vmem:[%s4847_s6 + $0x18] sm:$0xff] }
 0x5a7   : > { %3635 = vmatmul.msk.bf16.vlgmr.msrb.gmra.mxu2 %vm1985_vm2, %v2969_v30  ;;  %v2972_v22 = vpack.i.b16 %v2971_v13, %v2970_v38 }
 0x5a9   : > { %3636 = vmatmul.msk.bf16.vlgmr.msrb.gmra.mxu3 %vm1985_vm2, %v2972_v22 }
 0x62a   : > { %v2993_v19 = vpop.f32.mrf.mxu2 }
 0x62c   : > { %v3018_v37 = vpop.f32.mrf.mxu3 }
 0x62d   : > { %v3776_v4 = vpack.i.bf16 %v3018_v37, %v2993_v19 }
 0x62f   : > { %3777 = vxpose.xlu1.b32.start [1/2] (short) (narrow) %v3776_v4, 16 }
 0x632   : > { %v2995_v24 = vpop.f32.mrf.mxu2 }
 0x634   : > { %v3020_v27 = vpop.f32.mrf.mxu3 }
 0x635   : > { %v3778_v28 = vpack.i.bf16 %v3020_v27, %v2995_v24  ;;  %v3277_v27 = vld [vmem:[%s4847_s6] sm:$0xff] }
 0x637   : > { %3779 = vxpose.xlu1.b32.end [2/2] (short) (narrow) %v3778_v28, 16  ;;  %v3278_v28 = vld [vmem:[%s4847_s6 + $0x8] sm:$0xff] }
 0x6d3   : > { %v3780_v33 = vpop.trf.xlu1 }
 0x6d4   : > { %v3784_v62 = vunpack.i.h.bf16 %v3780_v33  ;;  %v3781_v6 = vunpack.i.l.bf16 %v3780_v33 }
 0x6d6   : > { %v3097_v16 = vrot.slane %v3784_v62, 4  ;;  %v3102_v39 = vperm.slane %v3784_v62, %v4023_v42  ;;  %v3087_v25 = vrot.slane %v3781_v6, 4  ;;  %v3092_v23 = vperm.slane %v3781_v6, %v4023_v42 }
 0x6d8   : > { %v3098_v14 = vsel %vm649_vm1, 0.0, %v3097_v16  ;;  %v3107_v34 = vrot.slane %v3102_v39, 4  ;;  %v3088_v46 = vsel %vm649_vm1, 0.0, %v3087_v25  ;;  %v3109_v20 = vrot.slane %v3092_v23, 4 }
 0x6d9   : > { %v3106_v43 = vperm.slane %v3098_v14, %v4023_v42  ;;  %v3096_v17 = vperm.slane %v3088_v46, %v4023_v42  ;;  %v3283_v16 = vpack.c.bf16 %v3280_v9, %v3279_v50  ;;  %v3797_v9 = vld [vmem:[%s4848_s7] ss:$0 sm:$0xff] }
 0x6da   : > { %v3108_v29 = vsel %vm649_vm1, %v3107_v34, %v3092_v23  ;;  %v3110_v60 = vsel %vm649_vm1, %v3102_v39, %v3109_v20  ;;  %v3282_v20 = vpack.c.bf16 %v3278_v28, %v3277_v27 }
 0x6db   : > { %v3119_v7 = vrot.slane %v3106_v43, 4  ;;  %v3114_v52 = vperm.slane %v3108_v29, %v4034_v48  ;;  %v3118_v49 = vperm.slane %v3110_v60, %v4034_v48  ;;  %v3121_v26 = vrot.slane %v3096_v17, 4  ;;  %v3785_v55 = vpop.trf.xlu1  ;;  %3297 = vmatpush.bf16.msrb.mxu0 %v3283_v16 }
 0x6dc   : > { %v3789_v2 = vunpack.i.h.bf16 %v3785_v55  ;;  %v3786_v54 = vunpack.i.l.bf16 %v3785_v55 }
 0x6dd   : > { %v3120_v45 = vsel %vm649_vm1, %v3119_v7, %v3096_v17  ;;  %v3122_v3 = vsel %vm649_vm1, %v3106_v43, %v3121_v26  ;;  %v3131_v58 = vrot.slane %v3114_v52, 4  ;;  %v3133_v10 = vrot.slane %v3118_v49, 4 }
 0x6de   : > { %v3126_v31 = vperm.slane %v3120_v45, %v4034_v48  ;;  %v3130_v56 = vperm.slane %v3122_v3, %v4034_v48  ;;  %v3149_v5 = vrot.slane %v3789_v2, 4  ;;  %v3154_v57 = vperm.slane %v3789_v2, %v4023_v42 }
 0x6df   : > { %v3134_v44 = vsel %vm649_vm1, 0.0, %v3133_v10  ;;  %v3139_v0 = vrot.slane %v3786_v54, 4  ;;  %v3144_v12 = vperm.slane %v3786_v54, %v4023_v42  ;;  %v3132_v59 = vsel %vm649_vm1, 0.0, %v3131_v58  ;;  %3298 = vmatpush.bf16.msrb.mxu0 %v3282_v20 }
 0x6e0   : > { %v3137_v53 = vrot.slane %v3130_v56, 4  ;;  %v3196_v15 = vrot.slane %v3134_v44, 4  ;;  %v3150_v40 = vsel %vm649_vm1, 0.0, %v3149_v5  ;;  %v3159_v21 = vrot.slane %v3154_v57, 4 }
 0x6e1   : > { %v3158_v1 = vperm.slane %v3150_v40, %v4023_v42  ;;  %v3140_v51 = vsel %vm649_vm1, 0.0, %v3139_v0  ;;  %v3135_v63 = vrot.slane %v3126_v31, 4  ;;  %v3161_v8 = vrot.slane %v3144_v12, 4 }
 0x6e2   : > { %v3138_v41 = vsel %vm649_vm1, 0.0, %v3137_v53  ;;  %v3148_v35 = vperm.slane %v3140_v51, %v4023_v42  ;;  %v3160_v32 = vsel %vm649_vm1, %v3159_v21, %v3144_v12  ;;  %v3197_v61 = vsel %vm649_vm1, %v3196_v15, %v3132_v59 }
 0x6e3   : > { %v3207_v36 = vrot.slane %v3138_v41, 4  ;;  %v3171_v11 = vrot.slane %v3158_v1, 4  ;;  %v3166_v47 = vperm.slane %v3160_v32, %v4034_v48  ;;  %v3191_v30 = vsel %vm649_vm1, %v3133_v10, %v3114_v52 }
 0x6e4   : > { %v3173_v18 = vrot.slane %v3148_v35, 4  ;;  %v3162_v38 = vsel %vm649_vm1, %v3154_v57, %v3161_v8  ;;  %v3201_v22 = vperm.slane %v3197_v61, %v4023_v42  ;;  %v3136_v24 = vsel %vm649_vm1, 0.0, %v3135_v63 }
 0x6e5   : > { %v3172_v13 = vsel %vm649_vm1, %v3171_v11, %v3148_v35  ;;  %v3170_v19 = vperm.slane %v3162_v38, %v4034_v48  ;;  %v3202_v62 = vsel %vm649_vm1, %v3137_v53, %v3126_v31  ;;  %v3208_v6 = vsel %vm649_vm1, %v3207_v36, %v3136_v24  ;;  %v3841_v24 = vld [vmem:[%s3997_s30 + $0x8] sm:$0xff] }
 0x6e6   : > { %v3174_v37 = vsel %vm649_vm1, %v3158_v1, %v3173_v18  ;;  %v3178_v4 = vperm.slane %v3172_v13, %v4034_v48  ;;  %v3183_v39 = vrot.slane %v3166_v47, 4  ;;  %v3212_v23 = vperm.slane %v3208_v6, %v4023_v42  ;;  %v3840_v13 = vld [vmem:[%s3997_s30] sm:$0xff] }
 0x6e7   : > { %v3182_v33 = vperm.slane %v3174_v37, %v4034_v48  ;;  %v3185_v25 = vrot.slane %v3170_v19, 4  ;;  %v3213_v14 = vrot.slane %v3201_v22, 4  ;;  %v3195_v17 = vperm.slane %v3191_v30, %v4023_v42 }
 0x6e8   : > { %v3187_v34 = vrot.slane %v3178_v4, 4  ;;  %v3206_v7 = vperm.slane %v3202_v62, %v4023_v42  ;;  %v3219_v52 = vrot.slane %v3212_v23, 4  ;;  %v3184_v49 = vsel %vm649_vm1, 0.0, %v3183_v39 }
 0x6e9   : > { %v3189_v46 = vrot.slane %v3182_v33, 4  ;;  %v3186_v43 = vsel %vm649_vm1, 0.0, %v3185_v25  ;;  %v3214_v55 = vsel %vm649_vm1, %v3213_v14, %v3195_v17  ;;  %v3229_v2 = vsel %vm649_vm1, %v3185_v25, %v3166_v47 }
 0x6ea   : > { %v3234_v60 = vrot.slane %v3186_v43, 4  ;;  %v3188_v54 = vsel %vm649_vm1, 0.0, %v3187_v34  ;;  %v3220_v45 = vsel %vm649_vm1, %v3219_v52, %v3206_v7  ;;  %v3218_v5 = vperm.slane %v3214_v55, %v4034_v48  ;;  %v3370_v55 = vld [vmem:[%s4851_s10] sm:$0xff] }
 0x6eb   : > { %v3190_v29 = vsel %vm649_vm1, 0.0, %v3189_v46  ;;  %v3224_v58 = vperm.slane %v3220_v45, %v4034_v48  ;;  %v3240_v31 = vsel %vm649_vm1, %v3189_v46, %v3178_v4  ;;  %v3233_v44 = vperm.slane %v3229_v2, %v4023_v42  ;;  %v3371_v45 = vld [vmem:[%s4851_s10 + $0x8] sm:$0xff] }
 0x6ec   : > { %v3245_v26 = vrot.slane %v3190_v29, 4  ;;  %v3235_v3 = vsel %vm649_vm1, %v3234_v60, %v3184_v49  ;;  %v3244_v15 = vperm.slane %v3240_v31, %v4023_v42  ;;  %v3227_v51 = vrot.slane %v3218_v5, 4  ;;  %v3372_v49 = vld [vmem:[%s4851_s10 + $0x10] sm:$0xff] }
 0x6ed   : > { %v3239_v10 = vperm.slane %v3235_v3, %v4023_v42  ;;  %v3225_v53 = vrot.slane %v3224_v58, 4  ;;  %v3855_v33 = vmov 32.0  }
 0x6ee   : > { %v3246_v56 = vsel %vm649_vm1, %v3245_v26, %v3188_v54  ;;  %v3228_v36 = vsel %vm649_vm1, %v3224_v58, %v3227_v51  ;;  %3822 = vrcp.f32 %v3855_v33  ;;  %v3373_v26 = vld [vmem:[%s4851_s10 + $0x18] sm:$0xff]  ;;  %v3375_v58 = vpack.c.bf16 %v3371_v45, %v3370_v55 }
 0x6ef   : > { %v3250_v57 = vperm.slane %v3246_v56, %v4023_v42  ;;  %v3251_v0 = vrot.slane %v3239_v10, 4  ;;  %v3226_v21 = vsel %vm649_vm1, %v3225_v53, %v3218_v5  ;;  %v3376_v54 = vpack.c.bf16 %v3373_v26, %v3372_v49 }
 0x6f1   : > { %v3257_v40 = vrot.slane %v3250_v57, 4  ;;  %v3252_v1 = vsel %vm649_vm1, %v3251_v0, %v3233_v44  ;;  %3390 = vmatpush.bf16.msrb.mxu1 %v3376_v54 }
 0x6f2   : > { %v3256_v12 = vperm.slane %v3252_v1, %v4034_v48 }
 0x6f3   : > { %v3258_v59 = vsel %vm649_vm1, %v3257_v40, %v3244_v15 }
 0x6f4   : > { %v3262_v63 = vperm.slane %v3258_v59, %v4034_v48  ;;  %v3265_v41 = vrot.slane %v3256_v12, 4  ;;  %v3823_v62 = vpop.eup %3822 }
 0x6f5   : > { %v3316_v6 = vmul.f32 32.0, %v3823_v62  ;;  %vm3320_vm3 = vweird.f32 %v3823_v62  ;;  %3391 = vmatpush.bf16.msrb.mxu1 %v3375_v58 }
 0x6f6   : > { %v3263_v35 = vrot.slane %v3262_v63, 4  ;;  %v3266_v11 = vsel %vm649_vm1, %v3262_v63, %v3265_v41 }
 0x6f7   : > { %v3790_v42 = vpack.i.bf16 %v3266_v11, %v3228_v36  ;;  %v3317_v16 = vsub.f32 1.0, %v3316_v6  ;;  %v3417_v6 = vld [vmem:[%s4853_s12 + $0x8] sm:$0xff] }
 0x6f8   : > { %v3264_v32 = vsel %vm649_vm1, %v3263_v35, %v3256_v12  ;;  %v3798_v35 = vld [vmem:[%s4849_s8] ss:$0 sm:$0xff] }
 0x6f9   : > { %3791 = vrot.lane.b32.xlu0 %v3790_v42, %s3854_s24  ;;  %v3318_v39 = vmul.f32 %v3823_v62, %v3317_v16 }
 0x6fb   : > { %v3319_v25 = vadd.f32 %v3823_v62, %v3318_v39 }
 0x6fd   : > { %v4746_v23 = vsel %vm3320_vm3, %v3823_v62, %v3319_v25  ;;  %v3416_v62 = vld [vmem:[%s4853_s12] sm:$0xff] }
 0x6fe   : > { %v3425_v25 = vpack.c.bf16 %v3417_v6, %v3416_v62 }
 0x76b   : > { %v3792_v8 = vpop.permute.xlu0 %3791 }
 0x76c   : > { %v3794_v47 = vunpack.i.h.bf16 %v3792_v8  ;;  %v3793_v18 = vunpack.i.l.bf16 %v3792_v8  ;;  %v3799_v8 = vld [vmem:[%s4850_s9] ss:$0 sm:$0xff] }
 0x76e   : > { %v3276_v61 = vsel %vm1985_vm2, %v3264_v32, %v3794_v47  ;;  %v3275_v48 = vsel %vm1985_vm2, %v3226_v21, %v3793_v18 }
 0x76f   : > { %v3281_v50 = vpack.c.bf16 %v3276_v61, %v3275_v48 }
 0x771   : > { %3637 = vmatmul.msk.bf16.vlgmr.msrb.gmra.mxu0 %vm594_vm0, %v3281_v50  ;;  %v3422_v50 = vld [vmem:[%s4853_s12 + $0x30] sm:$0xff] }
 0x7ee   : > { %v3300_v30 = vpop.f32.mrf.mxu0 }
 0x7ef   : > { %v3301_v38 = vadd.f32 %v3797_v9, %v3300_v30  ;;  %v3800_v30 = vld [vmem:[%s4852_s11] ss:$0 sm:$0xff] }
 0x7f1   : > { %v3305_v22 = vadd.f32 %v3840_v13, %v3301_v38 }
 0x7f3   : > { %v3309_v19 = vsel %vm594_vm0, %v3305_v22, 0.0 }
 0x7f4   : > { %3310 = vadd.xlane.f32.xlu2 %v3309_v19  ;;  %v3421_v19 = vld [vmem:[%s4853_s12 + $0x28] sm:$0xff] }
 0x7f6   : > { %v3302_v37 = vpop.f32.mrf.mxu0 }
 0x7f7   : > { %v3303_v4 = vadd.f32 %v3797_v9, %v3302_v37  ;;  %v3423_v9 = vld [vmem:[%s4853_s12 + $0x38] sm:$0xff] }
 0x7f8   : > { %v3428_v38 = vpack.c.bf16 %v3423_v9, %v3422_v50 }
 0x7f9   : > { %v3306_v27 = vadd.f32 %v3841_v24, %v3303_v4  ;;  %v3418_v24 = vld [vmem:[%s4853_s12 + $0x10] sm:$0xff] }
 0x7fa   : > { %3441 = vmatpush.bf16.msra.mxu2 %v3428_v38 }
 0x7fb   : > { %v3312_v28 = vsel %vm594_vm0, %v3306_v27, 0.0 }
 0x7fc   : > { %3313 = vadd.xlane.f32.xlu1 %v3312_v28 }
 0x867   : > { %v3311_v14 = vpop.xlane.xlu2 %3310 }
 0x868   : > { %v3322_v34 = vmul.f32 %v4746_v23, %v3311_v14 }
 0x86a   : > { %v3324_v46 = vsub.f32 %v3305_v22, %v3322_v34  ;;  %v3420_v22 = vld [vmem:[%s4853_s12 + $0x20] sm:$0xff] }
 0x86b   : > { %v3427_v4 = vpack.c.bf16 %v3421_v19, %v3420_v22  ;;  %v3802_v19 = vld [vmem:[%s4855_s14] ss:$0 sm:$0xff] }
 0x86c   : > { %v3326_v20 = vmul.f32 %v3324_v46, %v3324_v46 }
 0x86d   : > { %3442 = vmatpush.bf16.msra.mxu2 %v3427_v4 }
 0x86e   : > { %v3328_v43 = vsel %vm594_vm0, %v3326_v20, 0.0 }
 0x86f   : > { %v3314_v17 = vpop.xlane.xlu1 %3313  ;;  %3329 = vadd.xlane.f32.xlu0 %v3328_v43 }
 0x870   : > { %v3323_v29 = vmul.f32 %v4746_v23, %v3314_v17 }
 0x872   : > { %v3325_v60 = vsub.f32 %v3306_v27, %v3323_v29  ;;  %v3419_v27 = vld [vmem:[%s4853_s12 + $0x18] sm:$0xff] }
 0x873   : > { %v3426_v33 = vpack.c.bf16 %v3419_v27, %v3418_v24  ;;  %v3803_v27 = vld [vmem:[%s4856_s15] ss:$0 sm:$0xff] }
 0x874   : > { %v3327_v7 = vmul.f32 %v3325_v60, %v3325_v60 }
 0x875   : > { %3443 = vmatpush.bf16.msra.mxu2 %v3426_v33 }
 0x876   : > { %v3331_v52 = vsel %vm594_vm0, %v3327_v7, 0.0 }
 0x877   : > { %3332 = vadd.xlane.f32.xlu1 %v3331_v52 }
 0x879   : > { %3444 = vmatpush.bf16.msra.mxu2 %v3425_v25 }
 0x8e2   : > { %v3330_v2 = vpop.xlane.xlu0 %3329 }
 0x8e3   : > { %v3334_v3 = vmul.f32 %v3330_v2, %v4746_v23 }
 0x8e5   : > { %v3336_v10 = vadd.f32 1e-05, %v3334_v3 }
 0x8e7   : > { %3824 = vrsqrt.f32 %v3336_v10  ;;  %vm3344_vm5 = vweird.f32 %v3336_v10 }
 0x8ea   : > { %v3333_v31 = vpop.xlane.xlu1 %3332 }
 0x8eb   : > { %v3335_v56 = vmul.f32 %v3333_v31, %v4746_v23 }
 0x8ed   : > { %v3825_v5 = vpop.eup %3824  ;;  %v3337_v57 = vadd.f32 1e-05, %v3335_v56 }
 0x8ee   : > { %v3339_v44 = vmul.f32 %v3825_v5, %v3336_v10  ;;  %vm3345_vm4 = vweird.f32 %v3825_v5  ;;  %v3801_v10 = vld [vmem:[%s4854_s13] ss:$0 sm:$0xff] }
 0x8ef   : > { %3826 = vrsqrt.f32 %v3337_v57  ;;  %vm3346_vm6 = vmor %vm3344_vm5, %vm3345_vm4  ;;  %vm3354_vm8 = vweird.f32 %v3337_v57 }
 0x8f0   : > { %v3340_v0 = vmul.f32 %v3825_v5, %v3339_v44 }
 0x8f2   : > { %v3341_v53 = vmul.f32 0.5, %v3340_v0 }
 0x8f4   : > { %v3342_v15 = vsub.f32 1.5, %v3341_v53 }
 0x8f5   : > { %v3827_v40 = vpop.eup %3826 }
 0x8f6   : > { %v3343_v1 = vmul.f32 %v3825_v5, %v3342_v15  ;;  %v3349_v21 = vmul.f32 %v3827_v40, %v3337_v57  ;;  %vm3355_vm7 = vweird.f32 %v3827_v40 }
 0x8f7   : > { %vm3356_vm9 = vmor %vm3354_vm8, %vm3355_vm7 }
 0x8f8   : > { %v3350_v51 = vmul.f32 %v3827_v40, %v3349_v21  ;;  %v3347_v12 = vsel %vm3346_vm6, %v3825_v5, %v3343_v1 }
 0x8f9   : > { %v3358_v41 = vmul.f32 %v3347_v12, %v3324_v46 }
 0x8fa   : > { %v3351_v59 = vmul.f32 0.5, %v3350_v51 }
 0x8fb   : > { %v3363_v32 = vmul.f32 %v3798_v35, %v3358_v41 }
 0x8fc   : > { %v3352_v63 = vsub.f32 1.5, %v3351_v59 }
 0x8fd   : > { %v3368_v18 = vadd.f32 %v3799_v8, %v3363_v32 }
 0x8fe   : > { %v3353_v36 = vmul.f32 %v3827_v40, %v3352_v63 }
 0x900   : > { %v3357_v11 = vsel %vm3356_vm9, %v3827_v40, %v3353_v36 }
 0x901   : > { %v3359_v42 = vmul.f32 %v3357_v11, %v3325_v60 }
 0x903   : > { %v3364_v47 = vmul.f32 %v3798_v35, %v3359_v42 }
 0x905   : > { %v3369_v61 = vadd.f32 %v3799_v8, %v3364_v47 }
 0x907   : > { %v3374_v48 = vpack.c.bf16 %v3369_v61, %v3368_v18 }
 0x909   : > { %3638 = vmatmul.msk.bf16.vlgmr.msrb.gmra.mxu1 %vm594_vm0, %v3374_v48 }
 0x986   : > { %v3393_v13 = vpop.f32.mrf.mxu1 }
 0x987   : > { %v3394_v37 = vadd.f32 %v3800_v30, %v3393_v13 }
 0x989   : > { %v3398_v28 = vmul.f32 %v3394_v37, %v3394_v37 }
 0x98b   : > { %v3400_v16 = vmul.f32 %v3398_v28, %v3394_v37 }
 0x98d   : > { %v3402_v39 = vmul.f32 0.044715, %v3400_v16 }
 0x98e   : > { %v3395_v14 = vpop.f32.mrf.mxu1 }
 0x98f   : > { %v3404_v34 = vadd.f32 %v3402_v39, %v3394_v37  ;;  %v3396_v46 = vadd.f32 %v3800_v30, %v3395_v14 }
 0x991   : > { %v3406_v20 = vmul.f32 0.7978846, %v3404_v34  ;;  %v3399_v43 = vmul.f32 %v3396_v46, %v3396_v46 }
 0x993   : > { %v3401_v17 = vmul.f32 %v3399_v43, %v3396_v46  ;;  %3828 = vtanh.f32 %v3406_v20 }
 0x995   : > { %v3403_v29 = vmul.f32 0.044715, %v3401_v17 }
 0x997   : > { %v3405_v60 = vadd.f32 %v3403_v29, %v3396_v46 }
 0x999   : > { %v3407_v7 = vmul.f32 0.7978846, %v3405_v60  ;;  %v3829_v52 = vpop.eup %3828 }
 0x99a   : > { %v3410_v49 = vadd.f32 1.0, %v3829_v52 }
 0x99b   : > { %3830 = vtanh.f32 %v3407_v7 }
 0x99c   : > { %v3412_v55 = vmul.f32 0.5, %v3410_v49 }
 0x99e   : > { %v3414_v45 = vmul.f32 %v3412_v55, %v3394_v37 }
 0x9a1   : > { %v3831_v26 = vpop.eup %3830 }
 0x9a2   : > { %v3411_v2 = vadd.f32 1.0, %v3831_v26 }
 0x9a4   : > { %v3413_v54 = vmul.f32 0.5, %v3411_v2 }
 0x9a6   : > { %v3415_v3 = vmul.f32 %v3413_v54, %v3396_v46 }
 0x9a8   : > { %v3424_v58 = vpack.c.bf16 %v3415_v3, %v3414_v45 }
 0x9aa   : > { %3639 = vmatmul.msk.bf16.vlgmr.msra.gmra.mxu2 %vm3433_vm10, %v3424_v58 }
 0xa2d   : > { %v3446_v31 = vpop.f32.mrf.mxu2 }
 0xa2e   : > { %v3447_v56 = vadd.f32 %v3801_v10, %v3446_v31 }
 0xa30   : > { %v3451_v5 = vadd.f32 %v3447_v56, %v3368_v18 }
 0xa32   : > { %v3455_v57 = vsel %vm594_vm0, %v3451_v5, 0.0 }
 0xa33   : > { %3456 = vadd.xlane.f32.xlu2 %v3455_v57 }
 0xa35   : > { %v3448_v44 = vpop.f32.mrf.mxu2 }
 0xa36   : > { %v3449_v0 = vadd.f32 %v3801_v10, %v3448_v44 }
 0xa38   : > { %v3452_v53 = vadd.f32 %v3449_v0, %v3369_v61 }
 0xa3a   : > { %v3458_v15 = vsel %vm594_vm0, %v3452_v53, 0.0 }
 0xa3b   : > { %3459 = vadd.xlane.f32.xlu1 %v3458_v15 }
 0xaa6   : > { %v3457_v40 = vpop.xlane.xlu2 %3456 }
 0xaa7   : > { %v3461_v1 = vmul.f32 %v3457_v40, %v4746_v23 }
 0xaa9   : > { %v3463_v21 = vsub.f32 %v3451_v5, %v3461_v1  ;;  %v3804_v1 = vld [vmem:[%s4857_s16] ss:$0 sm:$0xff] }
 0xaab   : > { %v3465_v51 = vmul.f32 %v3463_v21, %v3463_v21 }
 0xaad   : > { %v3467_v12 = vsel %vm594_vm0, %v3465_v51, 0.0  ;;  %v3805_v51 = vld [vmem:[%s4858_s17] ss:$0 sm:$0xff] }
 0xaae   : > { %v3460_v59 = vpop.xlane.xlu1 %3459  ;;  %3468 = vadd.xlane.f32.xlu2 %v3467_v12 }
 0xaaf   : > { %v3462_v63 = vmul.f32 %v3460_v59, %v4746_v23 }
 0xab1   : > { %v3464_v41 = vsub.f32 %v3452_v53, %v3462_v63 }
 0xab3   : > { %v3466_v35 = vmul.f32 %v3464_v41, %v3464_v41 }
 0xab5   : > { %v3470_v36 = vsel %vm594_vm0, %v3466_v35, 0.0 }
 0xab6   : > { %3471 = vadd.xlane.f32.xlu1 %v3470_v36 }
 0xb21   : > { %v3469_v11 = vpop.xlane.xlu2 %3468 }
 0xb22   : > { %v3473_v42 = vmul.f32 %v3469_v11, %v4746_v23 }
 0xb24   : > { %v3475_v32 = vadd.f32 1e-05, %v3473_v42 }
 0xb26   : > { %3832 = vrsqrt.f32 %v3475_v32  ;;  %vm3483_vm12 = vweird.f32 %v3475_v32 }
 0xb29   : > { %v3472_v8 = vpop.xlane.xlu1 %3471 }
 0xb2a   : > { %v3474_v47 = vmul.f32 %v3472_v8, %v4746_v23 }
 0xb2c   : > { %v3833_v18 = vpop.eup %3832  ;;  %v3476_v61 = vadd.f32 1e-05, %v3474_v47 }
 0xb2d   : > { %v3478_v48 = vmul.f32 %v3833_v18, %v3475_v32  ;;  %vm3484_vm11 = vweird.f32 %v3833_v18 }
 0xb2e   : > { %3834 = vrsqrt.f32 %v3476_v61  ;;  %vm3485_vm13 = vmor %vm3483_vm12, %vm3484_vm11  ;;  %vm3493_vm15 = vweird.f32 %v3476_v61 }
 0xb2f   : > { %v3479_v50 = vmul.f32 %v3833_v18, %v3478_v48 }
 0xb31   : > { %v3480_v9 = vmul.f32 0.5, %v3479_v50 }
 0xb33   : > { %v3481_v30 = vsub.f32 1.5, %v3480_v9 }
 0xb34   : > { %v3835_v38 = vpop.eup %3834 }
 0xb35   : > { %v3482_v13 = vmul.f32 %v3833_v18, %v3481_v30  ;;  %v3488_v22 = vmul.f32 %v3835_v38, %v3476_v61  ;;  %vm3494_vm14 = vweird.f32 %v3835_v38 }
 0xb36   : > { %vm3495_vm1 = vmor %vm3493_vm15, %vm3494_vm14 }
 0xb37   : > { %v3489_v37 = vmul.f32 %v3835_v38, %v3488_v22  ;;  %v3486_v4 = vsel %vm3485_vm13, %v3833_v18, %v3482_v13 }
 0xb38   : > { %v3497_v24 = vmul.f32 %v3486_v4, %v3463_v21 }
 0xb39   : > { %v3490_v28 = vmul.f32 0.5, %v3489_v37 }
 0xb3a   : > { %v3502_v33 = vmul.f32 %v3802_v19, %v3497_v24 }
 0xb3b   : > { %v3491_v62 = vsub.f32 1.5, %v3490_v28 }
 0xb3c   : > { %v3507_v6 = vadd.f32 %v3803_v27, %v3502_v33 }
 0xb3d   : > { %v3492_v16 = vmul.f32 %v3835_v38, %v3491_v62 }
 0xb3e   : > { %v3511_v39 = vsel %vm594_vm0, %v3507_v6, 0.0 }
 0xb3f   : > { %3512 = vadd.xlane.f32.xlu2 %v3511_v39  ;;  %v3496_v25 = vsel %vm3495_vm1, %v3835_v38, %v3492_v16 }
 0xb40   : > { %v3498_v14 = vmul.f32 %v3496_v25, %v3464_v41 }
 0xb42   : > { %v3503_v34 = vmul.f32 %v3802_v19, %v3498_v14 }
 0xb44   : > { %v3508_v46 = vadd.f32 %v3803_v27, %v3503_v34 }
 0xb46   : > { %v3514_v20 = vsel %vm594_vm0, %v3508_v46, 0.0 }
 0xb47   : > { %3515 = vadd.xlane.f32.xlu1 %v3514_v20 }
 0xbb2   : > { %v3513_v43 = vpop.xlane.xlu2 %3512 }
 0xbb3   : > { %v3517_v17 = vmul.f32 %v3513_v43, %v4746_v23 }
 0xbb5   : > { %v3519_v29 = vsub.f32 %v3507_v6, %v3517_v17 }
 0xbb7   : > { %v3521_v60 = vmul.f32 %v3519_v29, %v3519_v29 }
 0xbb9   : > { %v3523_v7 = vsel %vm594_vm0, %v3521_v60, 0.0 }
 0xbba   : > { %v3516_v52 = vpop.xlane.xlu1 %3515  ;;  %3524 = vadd.xlane.f32.xlu2 %v3523_v7 }
 0xbbb   : > { %v3518_v49 = vmul.f32 %v3516_v52, %v4746_v23 }
 0xbbd   : > { %v3520_v26 = vsub.f32 %v3508_v46, %v3518_v49 }
 0xbbf   : > { %v3522_v55 = vmul.f32 %v3520_v26, %v3520_v26 }
 0xbc1   : > { %v3526_v2 = vsel %vm594_vm0, %v3522_v55, 0.0 }
 0xbc2   : > { %3527 = vadd.xlane.f32.xlu1 %v3526_v2 }
 0xc2d   : > { %v3525_v54 = vpop.xlane.xlu2 %3524 }
 0xc2e   : > { %v3529_v45 = vmul.f32 %v3525_v54, %v4746_v23 }
 0xc30   : > { %v3531_v3 = vadd.f32 1e-05, %v3529_v45 }
 0xc32   : > { %3836 = vrsqrt.f32 %v3531_v3  ;;  %vm3539_vm3 = vweird.f32 %v3531_v3 }
 0xc35   : > { %v3528_v58 = vpop.xlane.xlu1 %3527 }
 0xc36   : > { %v3530_v10 = vmul.f32 %v3528_v58, %v4746_v23 }
 0xc38   : > { %v3837_v31 = vpop.eup %3836  ;;  %v3532_v56 = vadd.f32 1e-05, %v3530_v10 }
 0xc39   : > { %v3534_v5 = vmul.f32 %v3837_v31, %v3531_v3  ;;  %vm3540_vm2 = vweird.f32 %v3837_v31 }
 0xc3a   : > { %3838 = vrsqrt.f32 %v3532_v56  ;;  %vm3541_vm4 = vmor %vm3539_vm3, %vm3540_vm2  ;;  %vm3549_vm6 = vweird.f32 %v3532_v56 }
 0xc3b   : > { %v3535_v57 = vmul.f32 %v3837_v31, %v3534_v5 }
 0xc3d   : > { %v3536_v44 = vmul.f32 0.5, %v3535_v57 }
 0xc3f   : > { %v3537_v0 = vsub.f32 1.5, %v3536_v44 }
 0xc40   : > { %v3839_v53 = vpop.eup %3838 }
 0xc41   : > { %v3538_v15 = vmul.f32 %v3837_v31, %v3537_v0  ;;  %v3544_v40 = vmul.f32 %v3839_v53, %v3532_v56  ;;  %vm3550_vm5 = vweird.f32 %v3839_v53 }
 0xc42   : > { %vm3551_vm7 = vmor %vm3549_vm6, %vm3550_vm5 }
 0xc43   : > { %v3542_v21 = vsel %vm3541_vm4, %v3837_v31, %v3538_v15  ;;  %v3545_v23 = vmul.f32 %v3839_v53, %v3544_v40 }
 0xc44   : > { %v3553_v12 = vmul.f32 %v3542_v21, %v3519_v29 }
 0xc45   : > { %v3546_v59 = vmul.f32 0.5, %v3545_v23 }
 0xc46   : > { %v3558_v63 = vmul.f32 %v3804_v1, %v3553_v12 }
 0xc47   : > { %v3547_v41 = vsub.f32 1.5, %v3546_v59 }
 0xc48   : > { %v3563_v35 = vadd.f32 %v3805_v51, %v3558_v63 }
 0xc49   : > { %v3548_v36 = vmul.f32 %v3839_v53, %v3547_v41 }
 0xc4a   : > { %3565 = vst.msk [vmem:[%s575_s0] sm:$0xff] %vm594_vm0, %v3563_v35 }
 0xc4b   : > { %v3552_v11 = vsel %vm3551_vm7, %v3839_v53, %v3548_v36 }
 0xc4c   : > { %v3554_v42 = vmul.f32 %v3552_v11, %v3520_v26 }
 0xc4e   : > { %v3559_v32 = vmul.f32 %v3804_v1, %v3554_v42 }
 0xc50   : > { %v3564_v8 = vadd.f32 %v3805_v51, %v3559_v32 }
 0xc52   : > { %3566 = vst.msk [vmem:[%s575_s0 + $0x8] sm:$0xff] %vm594_vm0, %v3564_v8 }
 0xc53 PF: > { %s28_s27 = sadd.s32 1, %s3848_s27  }
 0xc54   : > { %p25_p4 = scmp.ge.s32.totalorder %s28_s27, 4  }
 0xc56   :  { %27 = sbr.rel (!%p25_p4) target bundleno = 4 (0x4), region = 122 }

// kernel: forward.6
= control target key start
LH: loop header
LB: loop body
LE: loop exit
PB: predicated region body
PF: predicated region fallthrough
CT: control target
= control target key end

     0   :  { %s4210_s30 = smov 0   ;;  %s5170_s0 = inlined_call_operand.vmem [shape: f32[2,16,32], index: 0, kind: input, shape index: {}]   ;;  %s5171_s1 = inlined_call_operand.vmem [shape: f32[32,32], index: 1, kind: input, shape index: {}]   ;;  %s5172_s2 = inlined_call_operand.vmem [shape: f32[1,32], index: 2, kind: input, shape index: {}]   ;;  %s5173_s3 = inlined_call_operand.vmem [shape: f32[32,64], index: 3, kind: input, shape index: {}]   ;;  %s5174_s4 = inlined_call_operand.vmem [shape: f32[1,64], index: 4, kind: input, shape index: {}]   ;;  %s5175_s5 = inlined_call_operand.vmem [shape: f32[32,32], index: 5, kind: input, shape index: {}]   ;;  %s5176_s6 = inlined_call_operand.vmem [shape: f32[1,32], index: 6, kind: input, shape index: {}]   ;;  %s5177_s7 = inlined_call_operand.vmem [shape: f32[1,32], index: 7, kind: input, shape index: {}]   ;;  %s5178_s8 = inlined_call_operand.vmem [shape: f32[1,32], index: 8, kind: input, shape index: {}]   ;;  %s5179_s9 = inlined_call_operand.vmem [shape: f32[2,16,32], index: 9, kind: output, shape index: {}]  }
   0x1 LB: > { %s3892_s10 = sadd.s32 4294967295, %s4152_s30   ;;  %p3896_p0 = scmp.ge.s32.totalorder %s4152_s30, 1  ;;  %s4152_s30 = sphi %s4210_s30, %s19_s30  }
   0x2   : > { %p287_p1 = scmp.lt.s32.totalorder %s4152_s30, 3 }
   0x4   : > { %p288_p2 = pnand %p3896_p0, %p287_p1 }
   0x5   : > { %p323_p3 = scmp.lt.s32.totalorder (!%p288_p2), %s3892_s10, 1  ;;  %s4154_s16 = smov (!%p288_p2), 112  }
   0x6   : > { %291 = sbr.rel (%p288_p2) target bundleno = 3973 (0xf85), region = 56  ;;  %s4157_s17 = smov (!%p288_p2), 96  }
   0x7   : > { %s4158_s22 = smov (!%p288_p2), 16  }
   0xb   : > { %v338_v0 = vld [vmem:[%s5173_s3 + $0x10] sm:$0xff]  ;;  %v339_v1 = vld [vmem:[%s5173_s3 + $0x18] sm:$0xff]  ;;  %v336_v2 = vld [vmem:[%s5173_s3] sm:$0xff]  ;;  %s5181_s10 = smov (!%p323_p3, %s3892_s10), 1  ;;  %vm347_vm0 = vcmask 261120   ;;  %vm398_vm1 = vcmask 1047556  }
   0xc   : > { %v342_v3 = vpack.c.bf16 %v339_v1, %v338_v0  ;;  %v337_v4 = vld [vmem:[%s5173_s3 + $0x8] sm:$0xff]  ;;  %v367_v5 = vld [vmem:[%s5171_s1 + $0x10] sm:$0xff]  ;;  %v368_v6 = vld [vmem:[%s5171_s1 + $0x18] sm:$0xff]  ;;  %s3916_s27 = sshll.u32 %s5181_s10, 4  ;;  %v4155_v27 = vmov 1983009808  }
   0xd   : > { %v370_v7 = vpack.c.bf16 %v368_v6, %v367_v5  ;;  %v365_v8 = vld [vmem:[%s5171_s1] sm:$0xff]  ;;  %v366_v9 = vld [vmem:[%s5171_s1 + $0x8] sm:$0xff]  ;;  %v341_v10 = vpack.c.bf16 %v337_v4, %v336_v2  ;;  %s4250_s11 = scalar_lea.vmem %s5170_s0, %s3916_s27  ;;  %v401_v28 = vunpack.c.l.s4 %v4155_v27  ;;  %v4156_v36 = vmov 1934713408   ;;  %s332_s15 = scalar_lea.vmem %s5179_s9, %s3916_s27 }
   0xe   : > { %357 = vmatpush.bf16.msra.mxu0 %v342_v3  ;;  %v369_v11 = vpack.c.bf16 %v366_v9, %v365_v8  ;;  %v334_v12 = vld [vmem:[%s4250_s11] sm:$0xff]  ;;  %v335_v13 = vld [vmem:[%s4250_s11 + $0x8] sm:$0xff]  ;;  %v423_v37 = vunpack.c.l.s4 %v4156_v36  ;;  %vm1734_vm2 = vcmask 130048  }
   0xf   : > { %381 = vmatpush.bf16.msra.mxu1 %v370_v7  ;;  %v340_v14 = vpack.c.bf16 %v335_v13, %v334_v12  ;;  %v4094_v17 = vld [vmem:[%s5172_s2] ss:$0 sm:$0xff]  ;;  %v4270_v31 = vunpack.c.0.s8 %v401_v28 }
  0x10   : > { %v4093_v18 = vld [vmem:[%s5174_s4] ss:$0 sm:$0xff]  ;;  %v4278_v47 = vunpack.c.0.s8 %v423_v37 }
  0x12   : > { %358 = vmatpush.bf16.msra.mxu0 %v341_v10 }
  0x13   : > { %382 = vmatpush.bf16.msra.mxu1 %v369_v11 }
  0x15   : > { %3901 = vmatmul.msk.bf16.vlgmr.msra.gmra.mxu0 %vm347_vm0, %v340_v14 }
  0x16   : > { %3902 = vmatmul.msk.bf16.vlgmr.msra.gmra.mxu1 %vm347_vm0, %v340_v14 }
  0x92   : > { %v360_v15 = vpop.f32.mrf.mxu0 }
  0x93   : > { %v384_v16 = vpop.f32.mrf.mxu1  ;;  %v4262_v21 = vadd.f32 %v4093_v18, %v360_v15 }
  0x94   : > { %v385_v19 = vadd.f32 %v4094_v17, %v384_v16 }
  0x95   : > { %v510_v61 = vrot.slane %v4262_v21, 4  ;;  %v4300_v9 = vperm.slane %v4262_v21, %v4270_v31 }
  0x96   : > { %v397_v30 = vrot.slane %v385_v19, 4  ;;  %v403_v49 = vperm.slane %v385_v19, %v4270_v31 }
  0x97   : > { %v511_v8 = vsel %vm398_vm1, 0.0, %v510_v61 }
  0x98   : > { %v399_v33 = vsel %vm398_vm1, 0.0, %v397_v30  ;;  %v420_v62 = vrot.slane %v403_v49, 4 }
  0x99   : > { %v407_v41 = vperm.slane %v399_v33, %v4270_v31 }
  0x9a   : > { %v362_v20 = vpop.f32.mrf.mxu0 }
  0x9b   : > { %v4264_v22 = vadd.f32 %v4093_v18, %v362_v20  ;;  %v386_v23 = vpop.f32.mrf.mxu1  ;;  %v432_v54 = vrot.slane %v407_v41, 4 }
  0x9c   : > { %v387_v24 = vadd.f32 %v4094_v17, %v386_v23 }
  0x9d   : > { %v3934_v25 = vpack.i.bf16 %v4264_v22, %v4262_v21 }
  0x9e   : > { %v3939_v26 = vpack.i.bf16 %v387_v24, %v385_v19  ;;  %v450_v29 = vrot.slane %v387_v24, 4  ;;  %v455_v34 = vperm.slane %v387_v24, %v4270_v31 }
  0x9f   : > { %3935 = vrot.lane.b32.xlu0 %v3934_v25, %s4154_s16  ;;  %v4311_v25 = vperm.slane %v511_v8, %v4270_v31 }
  0xa0   : > { %3940 = vrot.lane.b32.xlu2 %v3939_v26, %s4154_s16  ;;  %v451_v32 = vsel %vm398_vm1, 0.0, %v450_v29  ;;  %v472_v42 = vrot.slane %v455_v34, 4 }
  0xa1   : > { %v459_v35 = vperm.slane %v451_v32, %v4270_v31  ;;  %v532_v32 = vrot.slane %v4300_v9, 4 }
  0xa3   : > { %v484_v46 = vrot.slane %v459_v35, 4 }
  0xfa   : > { %v3941_v38 = vpop.permute.xlu2 %3940 }
  0xfb   : > { %v3943_v39 = vunpack.i.h.bf16 %v3941_v38  ;;  %v3942_v40 = vunpack.i.l.bf16 %v3941_v38 }
  0xfd   : > { %v460_v43 = vrot.slane %v3943_v39, 4  ;;  %v465_v44 = vperm.slane %v3943_v39, %v4270_v31  ;;  %v408_v45 = vrot.slane %v3942_v40, 4  ;;  %v413_v48 = vperm.slane %v3942_v40, %v4270_v31 }
  0xff   : > { %v461_v50 = vsel %vm398_vm1, 0.0, %v460_v43  ;;  %v470_v51 = vrot.slane %v465_v44, 4  ;;  %v409_v52 = vsel %vm398_vm1, 0.0, %v408_v45  ;;  %v473_v56 = vsel %vm398_vm1, %v465_v44, %v472_v42 }
 0x100   : > { %v469_v53 = vperm.slane %v461_v50, %v4270_v31  ;;  %v417_v59 = vperm.slane %v409_v52, %v4270_v31  ;;  %v418_v60 = vrot.slane %v413_v48, 4  ;;  %v481_v1 = vperm.slane %v473_v56, %v4278_v47 }
 0x101   : > { %v471_v55 = vsel %vm398_vm1, %v470_v51, %v455_v34  ;;  %v421_v11 = vsel %vm398_vm1, %v413_v48, %v420_v62  ;;  %v544_v44 = vrot.slane %v4311_v25, 4  ;;  %v4321_v45 = vperm.slane %v4264_v22, %v4270_v31 }
 0x102   : > { %v482_v57 = vrot.slane %v469_v53, 4  ;;  %v485_v58 = vsel %vm398_vm1, %v469_v53, %v484_v46  ;;  %v477_v0 = vperm.slane %v471_v55, %v4278_v47  ;;  %v419_v5 = vsel %vm398_vm1, %v418_v60, %v403_v49 }
 0x103   : > { %v493_v63 = vperm.slane %v485_v58, %v4278_v47  ;;  %v430_v6 = vrot.slane %v417_v59, 4  ;;  %v433_v7 = vsel %vm398_vm1, %v417_v59, %v432_v54  ;;  %v496_v13 = vrot.slane %v481_v1, 4 }
 0x104   : > { %v483_v2 = vsel %vm398_vm1, %v482_v57, %v459_v35  ;;  %v494_v12 = vrot.slane %v477_v0, 4  ;;  %v441_v15 = vperm.slane %v433_v7, %v4278_v47  ;;  %v425_v18 = vperm.slane %v419_v5, %v4278_v47 }
 0x105   : > { %v489_v3 = vperm.slane %v483_v2, %v4278_v47  ;;  %v500_v4 = vrot.slane %v493_v63, 4  ;;  %v431_v14 = vsel %vm398_vm1, %v430_v6, %v407_v41  ;;  %v744_v17 = vpack.c.bf16 %v493_v63, %v493_v63 }
 0x106   : > { %v437_v19 = vperm.slane %v431_v14, %v4278_v47  ;;  %v429_v24 = vperm.slane %v421_v11, %v4278_v47  ;;  %v448_v27 = vrot.slane %v441_v15, 4  ;;  %v497_v28 = vsel %vm398_vm1, 0.0, %v496_v13 }
 0x107   : > { %v498_v10 = vrot.slane %v489_v3, 4  ;;  %v501_v16 = vsel %vm398_vm1, 0.0, %v500_v4  ;;  %v742_v23 = vpack.c.bf16 %v489_v3, %v489_v3  ;;  %v740_v29 = vpack.c.bf16 %v481_v1, %v481_v1 }
 0x108   : > { %v446_v26 = vrot.slane %v437_v19, 4  ;;  %v745_v30 = vpack.c.bf16 %v501_v16, %v501_v16  ;;  %v495_v33 = vsel %vm398_vm1, 0.0, %v494_v12  ;;  %v805_v35 = vrot.slane %v744_v17, 4 }
 0x109   : > { %v499_v20 = vsel %vm398_vm1, 0.0, %v498_v10  ;;  %v442_v36 = vrot.slane %v425_v18, 4  ;;  %v738_v37 = vpack.c.bf16 %v477_v0, %v477_v0  ;;  %v799_v38 = vrot.slane %v742_v23, 4 }
 0x10a   : > { %v743_v34 = vpack.c.bf16 %v499_v20, %v499_v20  ;;  %v444_v39 = vrot.slane %v429_v24, 4  ;;  %v447_v40 = vsel %vm398_vm1, 0.0, %v446_v26  ;;  %v449_v41 = vsel %vm398_vm1, 0.0, %v448_v27 }
 0x10b   : > { %v734_v42 = vpack.c.bf16 %v437_v19, %v437_v19  ;;  %v736_v43 = vpack.c.bf16 %v441_v15, %v441_v15  ;;  %v739_v46 = vpack.c.bf16 %v495_v33, %v495_v33  ;;  %v741_v48 = vpack.c.bf16 %v497_v28, %v497_v28 }
 0x10c   : > { %v823_v49 = vrot.slane %v745_v30, 4  ;;  %v817_v50 = vrot.slane %v743_v34, 4  ;;  %v443_v51 = vsel %vm398_vm1, 0.0, %v442_v36  ;;  %v735_v52 = vpack.c.bf16 %v447_v40, %v447_v40 }
 0x10d   : > { %v806_v54 = vsel %vm398_vm1, %v805_v35, %v740_v29  ;;  %v445_v55 = vsel %vm398_vm1, 0.0, %v444_v39  ;;  %v737_v56 = vpack.c.bf16 %v449_v41, %v449_v41  ;;  %v800_v58 = vsel %vm398_vm1, %v799_v38, %v738_v37 }
 0x10e   : > { %v730_v59 = vpack.c.bf16 %v425_v18, %v425_v18  ;;  %v732_v60 = vpack.c.bf16 %v429_v24, %v429_v24  ;;  %v762_v61 = vrot.slane %v734_v42, 4  ;;  %v769_v62 = vrot.slane %v736_v43, 4 }
 0x10f   : > { %v731_v63 = vpack.c.bf16 %v443_v51, %v443_v51  ;;  %v810_v2 = vperm.slane %v806_v54, %v4270_v31  ;;  %v733_v3 = vpack.c.bf16 %v445_v55, %v445_v55  ;;  %v781_v4 = vrot.slane %v735_v52, 4 }
 0x110   : > { %v804_v6 = vperm.slane %v800_v58, %v4270_v31  ;;  %v787_v7 = vrot.slane %v737_v56, 4  ;;  %v818_v11 = vsel %vm398_vm1, %v817_v50, %v739_v46  ;;  %v764_v14 = vsel %vm398_vm1, %v762_v61, %v730_v59 }
 0x111   : > { %v3936_v53 = vpop.permute.xlu0 %3935  ;;  %v770_v15 = vsel %vm398_vm1, %v769_v62, %v732_v60  ;;  %v811_v18 = vrot.slane %v810_v2, 4  ;;  %v824_v19 = vsel %vm398_vm1, %v823_v49, %v741_v48  ;;  %v822_v26 = vperm.slane %v818_v11, %v4270_v31 }
 0x112   : > { %v4326_v57 = vunpack.i.l.bf16 %v3936_v53  ;;  %v4333_v5 = vunpack.i.h.bf16 %v3936_v53  ;;  %v768_v29 = vperm.slane %v764_v14, %v4270_v31  ;;  %v782_v33 = vsel %vm398_vm1, %v781_v4, %v731_v63 }
 0x113   : > { %v788_v34 = vsel %vm398_vm1, %v787_v7, %v733_v3  ;;  %v812_v37 = vsel %vm398_vm1, %v811_v18, %v804_v6  ;;  %v828_v38 = vperm.slane %v824_v19, %v4270_v31  ;;  %v786_v54 = vperm.slane %v782_v33, %v4270_v31 }
 0x114   : > { %v520_v0 = vrot.slane %v4326_v57, 4  ;;  %v525_v1 = vperm.slane %v4326_v57, %v4270_v31  ;;  %v4348_v20 = vperm.slane %v4333_v5, %v4270_v31  ;;  %v572_v52 = vrot.slane %v4333_v5, 4 }
 0x115   : > { %v829_v55 = vrot.slane %v828_v38, 4  ;;  %v792_v59 = vperm.slane %v788_v34, %v4270_v31  ;;  %v816_v60 = vperm.slane %v812_v37, %v4278_v47  ;;  %v562_v7 = vrot.slane %v4264_v22, 4 }
 0x116   : > { %v521_v8 = vsel %vm398_vm1, 0.0, %v520_v0  ;;  %v530_v10 = vrot.slane %v525_v1, 4  ;;  %v533_v13 = vsel %vm398_vm1, %v525_v1, %v532_v32  ;;  %v582_v39 = vrot.slane %v4348_v20, 4 }
 0x117   : > { %v529_v12 = vperm.slane %v521_v8, %v4270_v31  ;;  %v541_v16 = vperm.slane %v533_v13, %v4278_v47  ;;  %v830_v61 = vsel %vm398_vm1, %v829_v55, %v822_v26  ;;  %v793_v63 = vrot.slane %v792_v59, 4 }
 0x118   : > { %v531_v17 = vsel %vm398_vm1, %v530_v10, %v4300_v9  ;;  %v774_v9 = vperm.slane %v770_v15, %v4270_v31  ;;  %v583_v53 = vsel %vm398_vm1, %v582_v39, %v4321_v45  ;;  %v834_v0 = vperm.slane %v830_v61, %v4278_v47 }
 0x119   : > { %v537_v23 = vperm.slane %v531_v17, %v4278_v47  ;;  %v545_v24 = vsel %vm398_vm1, %v529_v12, %v544_v44  ;;  %v556_v27 = vrot.slane %v541_v16, 4  ;;  %v542_v30 = vrot.slane %v529_v12, 4 }
 0x11a   : > { %v553_v28 = vperm.slane %v545_v24, %v4278_v47  ;;  %v748_v40 = vpack.c.bf16 %v541_v16, %v541_v16  ;;  %v775_v48 = vrot.slane %v774_v9, 4  ;;  %v589_v62 = vperm.slane %v583_v53, %v4278_v47 }
 0x11b   : > { %v554_v32 = vrot.slane %v537_v23, 4  ;;  %v557_v35 = vsel %vm398_vm1, 0.0, %v556_v27  ;;  %v746_v43 = vpack.c.bf16 %v537_v23, %v537_v23  ;;  %v543_v51 = vsel %vm398_vm1, %v542_v30, %v4311_v25 }
 0x11c   : > { %v560_v36 = vrot.slane %v553_v28, 4  ;;  %v749_v41 = vpack.c.bf16 %v557_v35, %v557_v35  ;;  %v752_v49 = vpack.c.bf16 %v553_v28, %v553_v28  ;;  %v549_v56 = vperm.slane %v543_v51, %v4278_v47 }
 0x11d   : > { %v555_v42 = vsel %vm398_vm1, 0.0, %v554_v32  ;;  %v776_v58 = vsel %vm398_vm1, %v775_v48, %v768_v29  ;;  %v573_v1 = vsel %vm398_vm1, 0.0, %v572_v52  ;;  %v844_v2 = vshrl.u32 %v816_v60, 16 }
 0x11e   : > { %v747_v44 = vpack.c.bf16 %v555_v42, %v555_v42  ;;  %v561_v46 = vsel %vm398_vm1, 0.0, %v560_v36  ;;  %3944 = vxpose.binary.xlu1.c.b16.start.end [1/2] (short) (narrow) %v749_v41, %v748_v40, 16  ;;  %v780_v25 = vperm.slane %v776_v58, %v4278_v47  ;;  %v558_v3 = vrot.slane %v549_v56, 4 }
 0x11f   : > { %v753_v50 = vpack.c.bf16 %v561_v46, %v561_v46  ;;  %v794_v4 = vsel %vm398_vm1, %v793_v63, %v786_v54  ;;  %v843_v6 = vpack.i.b16 %v834_v0, %v816_v60  ;;  %v845_v11 = vshrl.u32 %v834_v0, 16 }
 0x120   : > { %3947 = vxpose.binary.xlu0.c.b16.start.end [1/2] (short) (narrow) %v747_v44, %v746_v43, 16  ;;  %v798_v8 = vperm.slane %v794_v4, %v4278_v47  ;;  %v838_v10 = vshrl.u32 %v780_v25, 16  ;;  %v581_v12 = vperm.slane %v573_v1, %v4270_v31  ;;  %v606_v13 = vrot.slane %v589_v62, 4 }
 0x121   : > { %3950 = vxpose.binary.xlu2.c.b16.start.end [1/2] (short) (narrow) %v753_v50, %v752_v49, 16  ;;  %v4383_v15 = vunpack.c.l.b16 %v843_v6  ;;  %v846_v17 = vpack.i.b16 %v845_v11, %v844_v2  ;;  %v559_v18 = vsel %vm398_vm1, 0.0, %v558_v3  ;;  %v563_v19 = vsel %vm398_vm1, 0.0, %v562_v7 }
 0x122   : > { %v837_v14 = vpack.i.b16 %v798_v8, %v780_v25  ;;  %v839_v16 = vshrl.u32 %v798_v8, 16  ;;  %v584_v27 = vrot.slane %v4321_v45, 4  ;;  %v594_v28 = vrot.slane %v581_v12, 4 }
 0x123   : > { %v1753_v26 = vunpack.c.l.b16 %v846_v17  ;;  %v607_v29 = vsel %vm398_vm1, 0.0, %v606_v13  ;;  %v750_v9 = vpack.c.bf16 %v549_v56, %v549_v56  ;;  %v751_v30 = vpack.c.bf16 %v559_v18, %v559_v18 }
 0x124   : > { %v4387_v23 = vunpack.c.l.b16 %v837_v14  ;;  %v840_v24 = vpack.i.b16 %v839_v16, %v838_v10  ;;  %v585_v34 = vsel %vm398_vm1, %v4348_v20, %v584_v27  ;;  %v571_v35 = vperm.slane %v563_v19, %v4270_v31 }
 0x125   : > { %v754_v36 = vpack.c.bf16 %v589_v62, %v589_v62  ;;  %v755_v37 = vpack.c.bf16 %v607_v29, %v607_v29  ;;  %v593_v39 = vperm.slane %v585_v34, %v4278_v47 }
 0x126   : > { %v1733_v32 = vpack.c.b16 %v4383_v15, %v4387_v23  ;;  %v1752_v33 = vunpack.c.l.b16 %v840_v24  ;;  %v595_v45 = vsel %vm398_vm1, %v594_v28, %v571_v35  ;;  %v596_v48 = vrot.slane %v571_v35, 4 }
 0x127   : > { %v601_v40 = vperm.slane %v595_v45, %v4278_v47  ;;  %v608_v41 = vrot.slane %v593_v39, 4  ;;  %v756_v44 = vpack.c.bf16 %v593_v39, %v593_v39 }
 0x128   : > { %v4396_v38 = vpack.c.b16 %v1753_v26, %v1752_v33  ;;  %v597_v51 = vsel %vm398_vm1, %v581_v12, %v596_v48 }
 0x129   : > { %v610_v42 = vrot.slane %v601_v40, 4  ;;  %v609_v43 = vsel %vm398_vm1, 0.0, %v608_v41  ;;  %v758_v49 = vpack.c.bf16 %v601_v40, %v601_v40  ;;  %v605_v52 = vperm.slane %v597_v51, %v4278_v47 }
 0x12a   : > { %v757_v46 = vpack.c.bf16 %v609_v43, %v609_v43 }
 0x12b   : > { %v611_v20 = vsel %vm398_vm1, 0.0, %v610_v42  ;;  %v612_v53 = vrot.slane %v605_v52, 4  ;;  %v760_v55 = vpack.c.bf16 %v605_v52, %v605_v52 }
 0x12c   : > { %v759_v50 = vpack.c.bf16 %v611_v20, %v611_v20 }
 0x12d   : > { %v613_v54 = vsel %vm398_vm1, 0.0, %v612_v53 }
 0x12e   : > { %3953 = vxpose.binary.xlu1.c.b16.start.end [1/2] (short) (narrow) %v751_v30, %v750_v9, 16  ;;  %v761_v56 = vpack.c.bf16 %v613_v54, %v613_v54 }
 0x131   : > { %3959 = vxpose.binary.xlu2.c.b16.start.end [1/2] (short) (narrow) %v755_v37, %v754_v36, 16 }
 0x13e   : > { %3956 = vxpose.binary.xlu1.c.b16.start.end [1/2] (short) (narrow) %v757_v46, %v756_v44, 16 }
 0x141   : > { %3965 = vxpose.binary.xlu2.c.b16.start.end [1/2] (short) (narrow) %v759_v50, %v758_v49, 16 }
 0x14e   : > { %3962 = vxpose.binary.xlu1.c.b16.start.end [1/2] (short) (narrow) %v761_v56, %v760_v55, 16 }
 0x1c2   : > { %v3951_v58 = vpop.trf.xlu2 }
 0x1c3   : > { %v1115_v17 = vrot.slane %v3951_v58, 4 }
 0x1ca   : > { %v3945_v59 = vpop.trf.xlu1  ;;  %v3952_v60 = vpop.trf.xlu2 }
 0x1cb   : > { %v1117_v4 = vrot.slane %v3945_v59, 4  ;;  %v1227_v18 = vrot.slane %v3952_v60, 4  ;;  %v1116_v36 = vsel %vm398_vm1, %v1115_v17, %v3945_v59 }
 0x1cc   : > { %v3948_v1 = vpop.trf.xlu0  ;;  %v4448_v54 = vperm.slane %v1116_v36, %v4270_v31 }
 0x1cd   : > { %v1105_v12 = vrot.slane %v3948_v1, 4  ;;  %v1118_v13 = vsel %vm398_vm1, %v3951_v58, %v1117_v4 }
 0x1ce   : > { %v4415_v27 = vperm.slane %v1118_v13, %v4270_v31 }
 0x1d0   : > { %v1163_v44 = vrot.slane %v4415_v27, 4 }
 0x1d2   : > { %v3946_v25 = vpop.trf.xlu1  ;;  %v3960_v61 = vpop.trf.xlu2 }
 0x1d3   : > { %v1229_v10 = vrot.slane %v3946_v25, 4  ;;  %v1129_v30 = vrot.slane %v3960_v61, 4  ;;  %v1228_v37 = vsel %vm398_vm1, %v1227_v18, %v3946_v25 }
 0x1d4   : > { %v3949_v11 = vpop.trf.xlu0  ;;  %v4451_v55 = vperm.slane %v1228_v37, %v4270_v31 }
 0x1d5   : > { %v1217_v19 = vrot.slane %v3949_v11, 4  ;;  %v1230_v26 = vsel %vm398_vm1, %v3952_v60, %v1229_v10 }
 0x1d6   : > { %v4428_v45 = vperm.slane %v1230_v26, %v4270_v31 }
 0x1d8   : > { %v1275_v59 = vrot.slane %v4428_v45, 4 }
 0x1da   : > { %v3954_v62 = vpop.trf.xlu1  ;;  %v4406_v0 = vpop.trf.xlu2 }
 0x1db   : > { %v1103_v6 = vrot.slane %v3954_v62, 4  ;;  %v1106_v28 = vsel %vm398_vm1, %v3954_v62, %v1105_v12  ;;  %v1241_v25 = vrot.slane %v4406_v0, 4 }
 0x1dc   : > { %v4432_v41 = vperm.slane %v1106_v28, %v4270_v31 }
 0x1dd   : > { %v1104_v14 = vsel %vm398_vm1, %v1103_v6, %v3948_v1 }
 0x1de   : > { %v4419_v29 = vperm.slane %v1104_v14, %v4270_v31  ;;  %v1164_v60 = vsel %vm398_vm1, %v1163_v44, %v4432_v41 }
 0x1df   : > { %v4472_v6 = vperm.slane %v1164_v60, %v4278_v47 }
 0x1e0   : > { %v1153_v46 = vrot.slane %v4419_v29, 4 }
 0x1e1   : > { %v1209_v36 = vrot.slane %v4472_v6, 4 }
 0x1e2   : > { %v3955_v63 = vpop.trf.xlu1  ;;  %v3966_v3 = vpop.trf.xlu2  ;;  %v1154_v1 = vsel %vm398_vm1, %v4448_v54, %v1153_v46 }
 0x1e3   : > { %v1215_v7 = vrot.slane %v3955_v63, 4  ;;  %v1127_v16 = vrot.slane %v3966_v3, 4  ;;  %v1218_v39 = vsel %vm398_vm1, %v3955_v63, %v1217_v19  ;;  %v1130_v52 = vsel %vm398_vm1, %v3966_v3, %v1129_v30 }
 0x1e4   : > { %v1226_v50 = vperm.slane %v1218_v39, %v4270_v31  ;;  %v1138_v62 = vperm.slane %v1130_v52, %v4270_v31  ;;  %v1165_v52 = vrot.slane %v4432_v41, 4 }
 0x1e5   : > { %v1216_v24 = vsel %vm398_vm1, %v1215_v7, %v3949_v11  ;;  %v1128_v34 = vsel %vm398_vm1, %v1127_v16, %v3960_v61  ;;  %v4483_v16 = vperm.slane %v1154_v1, %v4278_v47 }
 0x1e6   : > { %v4422_v33 = vperm.slane %v1216_v24, %v4270_v31  ;;  %v4438_v48 = vperm.slane %v1128_v34, %v4270_v31  ;;  %v1189_v1 = vrot.slane %v1138_v62, 4 }
 0x1e7   : > { %v1205_v37 = vrot.slane %v4483_v16, 4 }
 0x1e8   : > { %v1265_v51 = vrot.slane %v4422_v33, 4  ;;  %v1177_v63 = vrot.slane %v4438_v48, 4 }
 0x1ea   : > { %v3957_v2 = vpop.trf.xlu1  ;;  %v3967_v9 = vpop.trf.xlu2  ;;  %v1266_v4 = vsel %vm398_vm1, %v4451_v55, %v1265_v51  ;;  %v1277_v51 = vrot.slane %v1226_v50, 4 }
 0x1eb   : > { %v1141_v35 = vrot.slane %v3957_v2, 4  ;;  %v1239_v42 = vrot.slane %v3967_v9, 4  ;;  %v1242_v12 = vsel %vm398_vm1, %v3967_v9, %v1241_v25  ;;  %v4490_v19 = vperm.slane %v1266_v4, %v4278_v47 }
 0x1ec   : > { %v1250_v9 = vperm.slane %v1242_v12, %v4270_v31 }
 0x1ed   : > { %v1240_v61 = vsel %vm398_vm1, %v1239_v42, %v4406_v0  ;;  %v1317_v42 = vrot.slane %v4490_v19, 4 }
 0x1ee   : > { %v4475_v7 = vperm.slane %v1240_v61, %v4270_v31 }
 0x1f0   : > { %v1289_v30 = vrot.slane %v4475_v7, 4 }
 0x1f2   : > { %v4408_v8 = vpop.trf.xlu1 }
 0x1f3   : > { %v1253_v3 = vrot.slane %v4408_v8, 4 }
 0x1fa   : > { %v3963_v40 = vpop.trf.xlu1 }
 0x1fb   : > { %v1139_v43 = vrot.slane %v3963_v40, 4  ;;  %v1142_v20 = vsel %vm398_vm1, %v3963_v40, %v1141_v35 }
 0x1fc   : > { %v4441_v49 = vperm.slane %v1142_v20, %v4270_v31 }
 0x1fd   : > { %v1140_v53 = vsel %vm398_vm1, %v1139_v43, %v3957_v2  ;;  %v1276_v2 = vsel %vm398_vm1, %v1275_v59, %v1226_v50 }
 0x1fe   : > { %v4454_v56 = vperm.slane %v1140_v53, %v4270_v31  ;;  %v1187_v58 = vrot.slane %v4441_v49, 4  ;;  %v4486_v17 = vperm.slane %v1276_v2, %v4278_v47  ;;  %v1301_v53 = vrot.slane %v1250_v9, 4 }
 0x200   : > { %v1188_v0 = vsel %vm398_vm1, %v1187_v58, %v1138_v62  ;;  %v1178_v11 = vsel %vm398_vm1, %v4454_v56, %v1177_v63 }
 0x201   : > { %v4495_v26 = vperm.slane %v1188_v0, %v4278_v47  ;;  %v4498_v28 = vperm.slane %v1178_v11, %v4278_v47  ;;  %v1190_v0 = vsel %vm398_vm1, %v4441_v49, %v1189_v1  ;;  %v1166_v11 = vsel %vm398_vm1, %v4415_v27, %v1165_v52 }
 0x202   : > { %v3964_v10 = vpop.trf.xlu1 }
 0x203   : > { %v1251_v13 = vrot.slane %v3964_v10, 4  ;;  %v1254_v14 = vsel %vm398_vm1, %v3964_v10, %v1253_v3  ;;  %v1210_v43 = vsel %vm398_vm1, %v4495_v26, %v1209_v36  ;;  %v1206_v44 = vsel %vm398_vm1, %v4498_v28, %v1205_v37 }
 0x204   : > { %v1262_v18 = vperm.slane %v1254_v14, %v4270_v31  ;;  %v1371_v60 = vshrl.u32 %v1210_v43, 16  ;;  %v1355_v61 = vshrl.u32 %v1206_v44, 16  ;;  %v1278_v3 = vsel %vm398_vm1, %v4428_v45, %v1277_v51 }
 0x205   : > { %v1252_v24 = vsel %vm398_vm1, %v1251_v13, %v4408_v8  ;;  %v1321_v8 = vrot.slane %v4486_v17, 4  ;;  %v1286_v62 = vperm.slane %v1278_v3, %v4278_v47  ;;  %v1198_v13 = vperm.slane %v1190_v0, %v4278_v47 }
 0x206   : > { %v1258_v34 = vperm.slane %v1252_v24, %v4270_v31  ;;  %v1299_v35 = vrot.slane %v1262_v18, 4  ;;  %v1302_v2 = vsel %vm398_vm1, %v1262_v18, %v1301_v53  ;;  %v1174_v45 = vperm.slane %v1166_v11, %v4278_v47 }
 0x207   : > { %v1310_v12 = vperm.slane %v1302_v2, %v4278_v47  ;;  %v1325_v18 = vrot.slane %v1286_v62, 4  ;;  %v1211_v24 = vrot.slane %v1198_v13, 4  ;;  %v1151_v51 = vrot.slane %v4448_v54, 4 }
 0x208   : > { %v1300_v39 = vsel %vm398_vm1, %v1299_v35, %v1250_v9  ;;  %v1290_v40 = vsel %vm398_vm1, %v1258_v34, %v1289_v30  ;;  %v1213_v9 = vrot.slane %v1174_v45, 4  ;;  %v1287_v35 = vrot.slane %v1258_v34, 4 }
 0x209   : > { %v4512_v20 = vperm.slane %v1300_v39, %v4278_v47  ;;  %v4517_v46 = vperm.slane %v1290_v40, %v4278_v47  ;;  %v1323_v14 = vrot.slane %v1310_v12, 4  ;;  %v1326_v49 = vsel %vm398_vm1, %v1310_v12, %v1325_v18 }
 0x20a   : > { %v1214_v27 = vsel %vm398_vm1, %v1198_v13, %v1213_v9  ;;  %v1388_v36 = vshrl.u32 %v1326_v49, 16  ;;  %v1212_v37 = vsel %vm398_vm1, %v1211_v24, %v1174_v45  ;;  %v1175_v39 = vrot.slane %v4454_v56, 4 }
 0x20b   : > { %v1322_v58 = vsel %vm398_vm1, %v4512_v20, %v1321_v8  ;;  %v1318_v59 = vsel %vm398_vm1, %v4517_v46, %v1317_v42  ;;  %v1324_v30 = vsel %vm398_vm1, %v1323_v14, %v1286_v62  ;;  %v1263_v40 = vrot.slane %v4451_v55, 4 }
 0x20c   : > { %v1372_v25 = vshrl.u32 %v1322_v58, 16  ;;  %v1356_v63 = vshrl.u32 %v1318_v59, 16  ;;  %v1369_v50 = vpack.i.b16 %v1322_v58, %v1210_v43  ;;  %v1353_v10 = vpack.i.b16 %v1318_v59, %v1206_v44 }
 0x20d   : > { %v1380_v8 = vshrl.u32 %v1324_v30, 16  ;;  %v1387_v42 = vshrl.u32 %v1214_v27, 16  ;;  %v1379_v43 = vshrl.u32 %v1212_v37, 16  ;;  %v1288_v44 = vsel %vm398_vm1, %v1287_v35, %v4475_v7 }
 0x20e   : > { %v1373_v4 = vpack.i.b16 %v1372_v25, %v1371_v60  ;;  %v1357_v41 = vpack.i.b16 %v1356_v63, %v1355_v61  ;;  %v1264_v34 = vsel %vm398_vm1, %v1263_v40, %v4422_v33  ;;  %v1385_v52 = vpack.i.b16 %v1326_v49, %v1214_v27 }
 0x20f   : > { %v1389_v53 = vpack.i.b16 %v1388_v36, %v1387_v42  ;;  %v1377_v58 = vpack.i.b16 %v1324_v30, %v1212_v37  ;;  %v1381_v59 = vpack.i.b16 %v1380_v8, %v1379_v43  ;;  %v1176_v56 = vsel %vm398_vm1, %v1175_v39, %v4438_v48 }
 0x210   : > { %3968 = vxpose.binary.xlu0.c.b16.start.end [1/2] (short) (narrow) %v1373_v4, %v1369_v50, 16  ;;  %v1152_v55 = vsel %vm398_vm1, %v1151_v51, %v4419_v29  ;;  %v1294_v60 = vperm.slane %v1288_v44, %v4278_v47  ;;  %v1270_v7 = vperm.slane %v1264_v34, %v4278_v47  ;;  %v1319_v13 = vrot.slane %v4512_v20, 4 }
 0x211   : > { %3985 = vxpose.binary.xlu1.c.b16.start.end [1/2] (short) (narrow) %v1357_v41, %v1353_v10, 16  ;;  %v1182_v54 = vperm.slane %v1176_v56, %v4278_v47  ;;  %v1158_v33 = vperm.slane %v1152_v55, %v4278_v47  ;;  %v1315_v45 = vrot.slane %v4517_v46, 4  ;;  %v1207_v14 = vrot.slane %v4495_v26, 4 }
 0x212   : > { %v1311_v25 = vrot.slane %v1294_v60, 4  ;;  %v1313_v61 = vrot.slane %v1270_v7, 4  ;;  %v1203_v18 = vrot.slane %v4498_v28, 4  ;;  %v1320_v24 = vsel %vm398_vm1, %v1319_v13, %v4486_v17 }
 0x213   : > { %v1199_v63 = vrot.slane %v1182_v54, 4  ;;  %v1201_v1 = vrot.slane %v1158_v33, 4  ;;  %v1316_v9 = vsel %vm398_vm1, %v1315_v45, %v4490_v19  ;;  %v1208_v49 = vsel %vm398_vm1, %v1207_v14, %v4472_v6 }
 0x214   : > { %v1314_v2 = vsel %vm398_vm1, %v1294_v60, %v1313_v61  ;;  %v1312_v48 = vsel %vm398_vm1, %v1311_v25, %v1270_v7  ;;  %v1364_v30 = vshrl.u32 %v1320_v24, 16  ;;  %v1204_v35 = vsel %vm398_vm1, %v1203_v18, %v4483_v16 }
 0x215   : > { %v1202_v29 = vsel %vm398_vm1, %v1182_v54, %v1201_v1  ;;  %v1340_v3 = vshrl.u32 %v1314_v2, 16  ;;  %v1200_v50 = vsel %vm398_vm1, %v1199_v63, %v1158_v33  ;;  %v1332_v4 = vshrl.u32 %v1312_v48, 16 }
 0x216   : > { %v1339_v41 = vshrl.u32 %v1202_v29, 16  ;;  %v1331_v0 = vshrl.u32 %v1200_v50, 16  ;;  %v1337_v10 = vpack.i.b16 %v1314_v2, %v1202_v29  ;;  %v1329_v12 = vpack.i.b16 %v1312_v48, %v1200_v50 }
 0x217   : > { %v1348_v20 = vshrl.u32 %v1316_v9, 16  ;;  %v1363_v27 = vshrl.u32 %v1208_v49, 16  ;;  %v1347_v46 = vshrl.u32 %v1204_v35, 16  ;;  %v1361_v36 = vpack.i.b16 %v1320_v24, %v1208_v49 }
 0x218   : > { %v1341_v11 = vpack.i.b16 %v1340_v3, %v1339_v41  ;;  %v1333_v62 = vpack.i.b16 %v1332_v4, %v1331_v0  ;;  %v1345_v37 = vpack.i.b16 %v1316_v9, %v1204_v35  ;;  %v3997_v17 = vpack.i.bf16 %v4264_v22, %v4333_v5 }
 0x219   : > { %v1365_v26 = vpack.i.b16 %v1364_v30, %v1363_v27  ;;  %v1349_v28 = vpack.i.b16 %v1348_v20, %v1347_v46  ;;  %v3980_v6 = vpack.i.bf16 %v4262_v21, %v4326_v57 }
 0x220   : > { %3971 = vxpose.binary.xlu0.c.b16.start.end [1/2] (short) (narrow) %v1389_v53, %v1385_v52, 16 }
 0x221   : > { %3988 = vxpose.binary.xlu1.c.b16.start.end [1/2] (short) (narrow) %v1381_v59, %v1377_v58, 16 }
 0x230   : > { %3974 = vxpose.binary.xlu0.c.b16.start.end [1/2] (short) (narrow) %v1341_v11, %v1337_v10, 16 }
 0x231   : > { %3991 = vxpose.binary.xlu1.c.b16.start.end [1/2] (short) (narrow) %v1333_v62, %v1329_v12, 16 }
 0x240   : > { %3977 = vxpose.binary.xlu0.c.b16.start.end [1/2] (short) (narrow) %v1365_v26, %v1361_v36, 16 }
 0x241   : > { %3994 = vxpose.binary.xlu1.c.b16.start.end [1/2] (short) (narrow) %v1349_v28, %v1345_v37, 16 }
 0x29b   : > { %3998 = vrot.lane.b32.xlu1 %v3997_v17, %s4157_s17 }
 0x2ae   : > { %3981 = vrot.lane.b32.xlu0 %v3980_v6, %s4157_s17 }
 0x2bc   : > { %v3969_v19 = vpop.trf.xlu0 }
 0x2bd   : > { %v3986_v16 = vpop.trf.xlu1 }
 0x2be   : > { %v1653_v22 = vrot.slane %v3986_v16, 4 }
 0x2c4   : > { %v3970_v39 = vpop.trf.xlu0 }
 0x2c5   : > { %v3987_v8 = vpop.trf.xlu1 }
 0x2c6   : > { %v1691_v55 = vrot.slane %v3987_v8, 4 }
 0x2cc   : > { %v3972_v40 = vpop.trf.xlu0 }
 0x2cd   : > { %v3989_v42 = vpop.trf.xlu1  ;;  %v1665_v52 = vrot.slane %v3972_v40, 4 }
 0x2ce   : > { %v1659_v59 = vrot.slane %v3989_v42, 4 }
 0x2cf   : > { %v1666_v5 = vsel %vm398_vm1, %v1665_v52, %v3969_v19 }
 0x2d0   : > { %v1670_v57 = vperm.slane %v1666_v5, %v4270_v31 }
 0x2d2   : > { %v1677_v63 = vrot.slane %v1670_v57, 4 }
 0x2d4   : > { %v3973_v43 = vpop.trf.xlu0 }
 0x2d5   : > { %v3990_v44 = vpop.trf.xlu1  ;;  %v1703_v56 = vrot.slane %v3973_v43, 4 }
 0x2d6   : > { %v1697_v29 = vrot.slane %v3990_v44, 4 }
 0x2d7   : > { %v1704_v1 = vsel %vm398_vm1, %v1703_v56, %v3970_v39 }
 0x2d8   : > { %v1708_v41 = vperm.slane %v1704_v1, %v4270_v31 }
 0x2da   : > { %v1715_v45 = vrot.slane %v1708_v41, 4 }
 0x2dc   : > { %v3975_v51 = vpop.trf.xlu0 }
 0x2dd   : > { %v3992_v34 = vpop.trf.xlu1  ;;  %v1654_v21 = vsel %vm398_vm1, %v1653_v22, %v3975_v51 }
 0x2de   : > { %v1658_v7 = vperm.slane %v1654_v21, %v4270_v31 }
 0x2e0   : > { %v1671_v3 = vrot.slane %v1658_v7, 4 }
 0x2e4   : > { %v3976_v53 = vpop.trf.xlu0 }
 0x2e5   : > { %v3993_v58 = vpop.trf.xlu1  ;;  %v1692_v2 = vsel %vm398_vm1, %v1691_v55, %v3976_v53 }
 0x2e6   : > { %v1696_v0 = vperm.slane %v1692_v2, %v4270_v31 }
 0x2e8   : > { %v1709_v24 = vrot.slane %v1696_v0, 4 }
 0x2ec   : > { %v3978_v60 = vpop.trf.xlu0 }
 0x2ed   : > { %v1660_v54 = vsel %vm398_vm1, %v1659_v59, %v3978_v60  ;;  %v3995_v33 = vpop.trf.xlu1 }
 0x2ee   : > { %v1664_v25 = vperm.slane %v1660_v54, %v4270_v31  ;;  %v1647_v61 = vrot.slane %v3995_v33, 4 }
 0x2f0   : > { %v1648_v48 = vsel %vm398_vm1, %v1647_v61, %v3992_v34  ;;  %v1678_v50 = vsel %vm398_vm1, %v1677_v63, %v1664_v25 }
 0x2f1   : > { %v1652_v4 = vperm.slane %v1648_v48, %v4270_v31  ;;  %v1682_v11 = vperm.slane %v1678_v50, %v4278_v47 }
 0x2f3   : > { %v1672_v13 = vsel %vm398_vm1, %v1671_v3, %v1652_v4  ;;  %v1683_v35 = vrot.slane %v1682_v11, 4 }
 0x2f4   : > { %v3979_v10 = vpop.trf.xlu0  ;;  %v1676_v30 = vperm.slane %v1672_v13, %v4278_v47 }
 0x2f5   : > { %v1698_v12 = vsel %vm398_vm1, %v1697_v29, %v3979_v10  ;;  %v3996_v62 = vpop.trf.xlu1 }
 0x2f6   : > { %v1702_v14 = vperm.slane %v1698_v12, %v4270_v31  ;;  %v1685_v18 = vrot.slane %v3996_v62, 4  ;;  %v1684_v26 = vsel %vm398_vm1, %v1683_v35, %v1676_v30 }
 0x2f7   : > { %v1727_v6 = vshrl.u32 %v1684_v26, 16 }
 0x2f8   : > { %v1716_v9 = vsel %vm398_vm1, %v1715_v45, %v1702_v14  ;;  %v1686_v49 = vsel %vm398_vm1, %v1685_v18, %v3993_v58 }
 0x2f9   : > { %v1690_v20 = vperm.slane %v1686_v49, %v4270_v31  ;;  %v1720_v27 = vperm.slane %v1716_v9, %v4278_v47 }
 0x2fb   : > { %v1710_v46 = vsel %vm398_vm1, %v1709_v24, %v1690_v20  ;;  %v1721_v36 = vrot.slane %v1720_v27, 4 }
 0x2fc   : > { %v1714_v37 = vperm.slane %v1710_v46, %v4278_v47 }
 0x2fe   : > { %v1722_v28 = vsel %vm398_vm1, %v1721_v36, %v1714_v37 }
 0x2ff   : > { %v4600_v17 = vpack.i.b16 %v1722_v28, %v1684_v26  ;;  %v1728_v19 = vshrl.u32 %v1722_v28, 16 }
 0x301   : > { %1745 = vmatpush.bf16.msra.mxu2 %v4600_v17  ;;  %v4603_v16 = vpack.i.b16 %v1728_v19, %v1727_v6 }
 0x303   : > { %1765 = vmatpush.bf16.msra.mxu3 %v4603_v16 }
 0x304   : > { %3903 = vmatmul.msk.bf16.vlgmr.msra.gmra.mxu2 %vm1734_vm2, %v1733_v32 }
 0x306   : > { %3904 = vmatmul.msk.bf16.vlgmr.msra.gmra.mxu3 %vm1734_vm2, %v4396_v38 }
 0x30d   : > { %v3999_v8 = vpop.permute.xlu1 %3998 }
 0x30e   : > { %v4001_v52 = vunpack.i.h.bf16 %v3999_v8  ;;  %v4000_v38 = vunpack.i.l.bf16 %v3999_v8 }
 0x310   : > { %v683_v21 = vperm.slane %v4001_v52, %v4270_v31  ;;  %v693_v54 = vperm.slane %v4000_v38, %v4270_v31  ;;  %v678_v10 = vrot.slane %v4001_v52, 4  ;;  %v688_v9 = vrot.slane %v4000_v38, 4 }
 0x312   : > { %v700_v61 = vrot.slane %v683_v21, 4  ;;  %v698_v41 = vrot.slane %v693_v54, 4  ;;  %v679_v24 = vsel %vm398_vm1, 0.0, %v678_v10  ;;  %v689_v27 = vsel %vm398_vm1, 0.0, %v688_v9 }
 0x313   : > { %v687_v35 = vperm.slane %v679_v24, %v4270_v31  ;;  %v697_v37 = vperm.slane %v689_v27, %v4270_v31 }
 0x314   : > { %v701_v12 = vsel %vm398_vm1, %v693_v54, %v700_v61  ;;  %v699_v18 = vsel %vm398_vm1, %v698_v41, %v683_v21 }
 0x315   : > { %v709_v14 = vperm.slane %v701_v12, %v4278_v47  ;;  %v705_v30 = vperm.slane %v699_v18, %v4278_v47  ;;  %v712_v26 = vrot.slane %v687_v35, 4 }
 0x317   : > { %v724_v20 = vrot.slane %v709_v14, 4  ;;  %v722_v36 = vrot.slane %v705_v30, 4 }
 0x319   : > { %v725_v28 = vsel %vm398_vm1, 0.0, %v724_v20 }
 0x31a   : > { %v1835_v8 = vpack.c.bf16 %v725_v28, %v725_v28 }
 0x320   : > { %v3982_v39 = vpop.permute.xlu0 %3981 }
 0x321   : > { %v3984_v40 = vunpack.i.h.bf16 %v3982_v39  ;;  %v3983_v42 = vunpack.i.l.bf16 %v3982_v39  ;;  %v1834_v39 = vpack.c.bf16 %v709_v14, %v709_v14 }
 0x323   : > { %v626_v43 = vrot.slane %v3984_v40, 4  ;;  %v631_v44 = vperm.slane %v3984_v40, %v4270_v31  ;;  %v636_v51 = vrot.slane %v3983_v42, 4  ;;  %v641_v34 = vperm.slane %v3983_v42, %v4270_v31 }
 0x324   : > { %v723_v40 = vsel %vm398_vm1, 0.0, %v722_v36  ;;  %v710_v42 = vrot.slane %v697_v37, 4 }
 0x325   : > { %v627_v53 = vsel %vm398_vm1, 0.0, %v626_v43  ;;  %v648_v58 = vrot.slane %v631_v44, 4  ;;  %v637_v15 = vsel %vm398_vm1, 0.0, %v636_v51  ;;  %v646_v23 = vrot.slane %v641_v34, 4 }
 0x326   : > { %v645_v32 = vperm.slane %v637_v15, %v4270_v31  ;;  %v635_v22 = vperm.slane %v627_v53, %v4270_v31  ;;  %v713_v43 = vsel %vm398_vm1, %v697_v37, %v712_v26  ;;  %v1833_v51 = vpack.c.bf16 %v723_v40, %v723_v40 }
 0x327   : > { %v647_v5 = vsel %vm398_vm1, %v646_v23, %v631_v44  ;;  %v649_v59 = vsel %vm398_vm1, %v641_v34, %v648_v58  ;;  %v1832_v44 = vpack.c.bf16 %v705_v30, %v705_v30  ;;  %v721_v34 = vperm.slane %v713_v43, %v4278_v47 }
 0x328   : > { %v653_v57 = vperm.slane %v647_v5, %v4278_v47  ;;  %v658_v56 = vrot.slane %v645_v32, 4  ;;  %v657_v55 = vperm.slane %v649_v59, %v4278_v47  ;;  %v660_v33 = vrot.slane %v635_v22, 4 }
 0x329   : > { %v711_v52 = vsel %vm398_vm1, %v710_v42, %v687_v35  ;;  %v728_v53 = vrot.slane %v721_v34, 4 }
 0x32a   : > { %v672_v60 = vrot.slane %v657_v55, 4  ;;  %v670_v7 = vrot.slane %v653_v57, 4  ;;  %v659_v25 = vsel %vm398_vm1, %v658_v56, %v635_v22  ;;  %v1826_v48 = vpack.c.bf16 %v657_v55, %v657_v55 }
 0x32b   : > { %v665_v2 = vperm.slane %v659_v25, %v4278_v47  ;;  %v1824_v50 = vpack.c.bf16 %v653_v57, %v653_v57  ;;  %v661_v0 = vsel %vm398_vm1, %v645_v32, %v660_v33  ;;  %v717_v58 = vperm.slane %v711_v52, %v4278_v47 }
 0x32c   : > { %v673_v63 = vsel %vm398_vm1, 0.0, %v672_v60  ;;  %v671_v1 = vsel %vm398_vm1, 0.0, %v670_v7  ;;  %v669_v45 = vperm.slane %v661_v0, %v4278_v47  ;;  %v729_v15 = vsel %vm398_vm1, 0.0, %v728_v53 }
 0x32d   : > { %v1827_v29 = vpack.c.bf16 %v673_v63, %v673_v63  ;;  %v1825_v3 = vpack.c.bf16 %v671_v1, %v671_v1  ;;  %v674_v4 = vrot.slane %v665_v2, 4  ;;  %v1828_v62 = vpack.c.bf16 %v665_v2, %v665_v2 }
 0x32e   : > { %v676_v49 = vrot.slane %v669_v45, 4  ;;  %v1830_v6 = vpack.c.bf16 %v669_v45, %v669_v45  ;;  %v726_v23 = vrot.slane %v717_v58, 4  ;;  %v1838_v32 = vpack.c.bf16 %v721_v34, %v721_v34 }
 0x32f   : > { %4002 = vxpose.binary.xlu2.c.b16.start.end [1/2] (short) (narrow) %v1827_v29, %v1826_v48, 16  ;;  %v675_v11 = vsel %vm398_vm1, 0.0, %v674_v4  ;;  %v1839_v38 = vpack.c.bf16 %v729_v15, %v729_v15  ;;  %v1836_v5 = vpack.c.bf16 %v717_v58, %v717_v58 }
 0x330   : > { %4005 = vxpose.binary.xlu1.c.b16.start.end [1/2] (short) (narrow) %v1825_v3, %v1824_v50, 16  ;;  %v1829_v13 = vpack.c.bf16 %v675_v11, %v675_v11  ;;  %v677_v46 = vsel %vm398_vm1, 0.0, %v676_v49  ;;  %v727_v22 = vsel %vm398_vm1, 0.0, %v726_v23 }
 0x331   : > { %v1831_v19 = vpack.c.bf16 %v677_v46, %v677_v46  ;;  %v1837_v59 = vpack.c.bf16 %v727_v22, %v727_v22 }
 0x332   : > { %4011 = vxpose.binary.xlu0.c.b16.start.end [1/2] (short) (narrow) %v1829_v13, %v1828_v62, 16 }
 0x33f   : > { %4008 = vxpose.binary.xlu2.c.b16.start.end [1/2] (short) (narrow) %v1831_v19, %v1830_v6, 16 }
 0x340   : > { %4014 = vxpose.binary.xlu1.c.b16.start.end [1/2] (short) (narrow) %v1835_v8, %v1834_v39, 16 }
 0x342   : > { %4017 = vxpose.binary.xlu0.c.b16.start.end [1/2] (short) (narrow) %v1833_v51, %v1832_v44, 16 }
 0x34f   : > { %4020 = vxpose.binary.xlu2.c.b16.start.end [1/2] (short) (narrow) %v1839_v38, %v1838_v32, 16 }
 0x352   : > { %4023 = vxpose.binary.xlu0.c.b16.start.end [1/2] (short) (narrow) %v1837_v59, %v1836_v5, 16 }
 0x3d0   : > { %v4003_v21 = vpop.trf.xlu2 }
 0x3d1   : > { %v2110_v12 = vrot.slane %v4003_v21, 4 }
 0x3d8   : > { %v4004_v57 = vpop.trf.xlu2 }
 0x3d9   : > { %v2222_v46 = vrot.slane %v4004_v57, 4 }
 0x3dc   : > { %v4006_v56 = vpop.trf.xlu1 }
 0x3dd   : > { %v2098_v4 = vrot.slane %v4006_v56, 4 }
 0x3de   : > { %v4012_v55 = vpop.trf.xlu0 }
 0x3df   : > { %v2096_v60 = vrot.slane %v4012_v55, 4  ;;  %v2099_v62 = vsel %vm398_vm1, %v4012_v55, %v2098_v4 }
 0x3e0   : > { %v4009_v7 = vpop.trf.xlu2  ;;  %v2107_v49 = vperm.slane %v2099_v62, %v4270_v31 }
 0x3e1   : > { %v2108_v54 = vrot.slane %v4009_v7, 4  ;;  %v2097_v33 = vsel %vm398_vm1, %v2096_v60, %v4006_v56  ;;  %v2111_v18 = vsel %vm398_vm1, %v4009_v7, %v2110_v12 }
 0x3e2   : > { %v2103_v63 = vperm.slane %v2097_v33, %v4270_v31  ;;  %v2119_v35 = vperm.slane %v2111_v18, %v4270_v31  ;;  %v2158_v36 = vrot.slane %v2107_v49, 4 }
 0x3e3   : > { %v2109_v25 = vsel %vm398_vm1, %v2108_v54, %v4003_v21 }
 0x3e4   : > { %v2115_v61 = vperm.slane %v2109_v25, %v4270_v31  ;;  %v4007_v2 = vpop.trf.xlu1  ;;  %v2156_v37 = vrot.slane %v2119_v35, 4  ;;  %v2159_v8 = vsel %vm398_vm1, %v2119_v35, %v2158_v36  ;;  %v2146_v43 = vrot.slane %v2103_v63, 4 }
 0x3e5   : > { %v2210_v24 = vrot.slane %v4007_v2, 4  ;;  %v4674_v52 = vperm.slane %v2159_v8, %v4278_v47 }
 0x3e6   : > { %v2144_v1 = vrot.slane %v2115_v61, 4  ;;  %v4013_v48 = vpop.trf.xlu0  ;;  %v2157_v51 = vsel %vm398_vm1, %v2156_v37, %v2107_v49  ;;  %v2147_v32 = vsel %vm398_vm1, %v2115_v61, %v2146_v43 }
 0x3e7   : > { %v2208_v3 = vrot.slane %v4013_v48, 4  ;;  %v2211_v27 = vsel %vm398_vm1, %v4013_v48, %v2210_v24  ;;  %v4680_v38 = vperm.slane %v2157_v51, %v4278_v47  ;;  %v2206_v54 = vrot.slane %v4674_v52, 4 }
 0x3e8   : > { %v2145_v29 = vsel %vm398_vm1, %v2144_v1, %v2103_v63  ;;  %v4010_v50 = vpop.trf.xlu2  ;;  %v2219_v28 = vperm.slane %v2211_v27, %v4270_v31  ;;  %v2155_v63 = vperm.slane %v2147_v32, %v4278_v47 }
 0x3e9   : > { %v2220_v41 = vrot.slane %v4010_v50, 4  ;;  %v2209_v0 = vsel %vm398_vm1, %v2208_v3, %v4007_v2  ;;  %v2223_v6 = vsel %vm398_vm1, %v4010_v50, %v2222_v46  ;;  %v4687_v33 = vperm.slane %v2145_v29, %v4278_v47 }
 0x3ea   : > { %v2215_v13 = vperm.slane %v2209_v0, %v4270_v31  ;;  %v2231_v44 = vperm.slane %v2223_v6, %v4270_v31  ;;  %v2270_v34 = vrot.slane %v2219_v28, 4  ;;  %v2202_v3 = vrot.slane %v4680_v38, 4 }
 0x3eb   : > { %v2221_v10 = vsel %vm398_vm1, %v2220_v41, %v4004_v57 }
 0x3ec   : > { %v2227_v11 = vperm.slane %v2221_v10, %v4270_v31  ;;  %v4015_v14 = vpop.trf.xlu1  ;;  %v2268_v22 = vrot.slane %v2231_v44, 4  ;;  %v2258_v5 = vrot.slane %v2215_v13, 4  ;;  %v2271_v59 = vsel %vm398_vm1, %v2231_v44, %v2270_v34 }
 0x3ed   : > { %v2134_v26 = vrot.slane %v4015_v14, 4  ;;  %v4693_v2 = vperm.slane %v2271_v59, %v4278_v47 }
 0x3ee   : > { %v2256_v45 = vrot.slane %v2227_v11, 4  ;;  %v4018_v9 = vpop.trf.xlu0  ;;  %v2269_v1 = vsel %vm398_vm1, %v2268_v22, %v2219_v28  ;;  %v2259_v50 = vsel %vm398_vm1, %v2227_v11, %v2258_v5  ;;  %v2194_v11 = vrot.slane %v4687_v33, 4 }
 0x3ef   : > { %v2122_v21 = vrot.slane %v4018_v9, 4  ;;  %v4711_v49 = vperm.slane %v2259_v50, %v4278_v47  ;;  %v2318_v46 = vrot.slane %v4693_v2, 4 }
 0x3f0   : > { %v4661_v30 = vsel %vm398_vm1, %v2256_v45, %v2215_v13  ;;  %v4021_v20 = vpop.trf.xlu2  ;;  %v4704_v13 = vperm.slane %v2269_v1, %v4278_v47 }
 0x3f1   : > { %v2132_v39 = vrot.slane %v4021_v20, 4  ;;  %v2135_v40 = vsel %vm398_vm1, %v4021_v20, %v2134_v26  ;;  %v4721_v36 = vperm.slane %v4661_v30, %v4278_v47  ;;  %v2310_v30 = vrot.slane %v4711_v49, 4 }
 0x3f2   : > { %v2143_v58 = vperm.slane %v2135_v40, %v4270_v31  ;;  %v2314_v44 = vrot.slane %v4704_v13, 4 }
 0x3f3   : > { %v2133_v53 = vsel %vm398_vm1, %v2132_v39, %v4015_v14  ;;  %v2198_v14 = vrot.slane %v2155_v63, 4 }
 0x3f4   : > { %v4016_v42 = vpop.trf.xlu1  ;;  %v2139_v57 = vperm.slane %v2133_v53, %v4270_v31  ;;  %v2180_v56 = vrot.slane %v2143_v58, 4 }
 0x3f5   : > { %v2246_v15 = vrot.slane %v4016_v42, 4 }
 0x3f6   : > { %v4667_v19 = vpop.trf.xlu0  ;;  %v2168_v4 = vrot.slane %v2139_v57, 4 }
 0x3f7   : > { %v2234_v35 = vrot.slane %v4667_v19, 4 }
 0x3f8   : > { %v4022_v23 = vpop.trf.xlu2 }
 0x3f9   : > { %v2244_v60 = vrot.slane %v4022_v23, 4  ;;  %v2247_v7 = vsel %vm398_vm1, %v4022_v23, %v2246_v15 }
 0x3fa   : > { %v2255_v41 = vperm.slane %v2247_v7, %v4270_v31 }
 0x3fb   : > { %v2245_v62 = vsel %vm398_vm1, %v2244_v60, %v4016_v42 }
 0x3fc   : > { %v2251_v27 = vperm.slane %v2245_v62, %v4270_v31  ;;  %v2292_v26 = vrot.slane %v2255_v41, 4 }
 0x3fe   : > { %v4024_v55 = vpop.trf.xlu0  ;;  %v2280_v34 = vrot.slane %v2251_v27, 4 }
 0x3ff   : > { %v2120_v25 = vrot.slane %v4024_v55, 4  ;;  %v2123_v61 = vsel %vm398_vm1, %v4024_v55, %v2122_v21  ;;  %v2306_v21 = vrot.slane %v4721_v36, 4 }
 0x400   : > { %v2131_v48 = vperm.slane %v2123_v61, %v4270_v31 }
 0x401   : > { %v2121_v29 = vsel %vm398_vm1, %v2120_v25, %v4018_v9 }
 0x402   : > { %v2127_v0 = vperm.slane %v2121_v29, %v4270_v31  ;;  %v2181_v10 = vsel %vm398_vm1, %v2180_v56, %v2131_v48  ;;  %v2182_v12 = vrot.slane %v2131_v48, 4 }
 0x403   : > { %v2187_v45 = vperm.slane %v2181_v10, %v4278_v47 }
 0x404   : > { %v2169_v18 = vsel %vm398_vm1, %v2168_v4, %v2127_v0  ;;  %v2170_v24 = vrot.slane %v2127_v0, 4  ;;  %v2183_v9 = vsel %vm398_vm1, %v2143_v58, %v2182_v12 }
 0x405   : > { %v4715_v20 = vperm.slane %v2169_v18, %v4278_v47  ;;  %v4724_v28 = vperm.slane %v2183_v9, %v4278_v47  ;;  %v2200_v39 = vrot.slane %v2187_v45, 4  ;;  %v2203_v58 = vsel %vm398_vm1, %v2187_v45, %v2202_v3 }
 0x406   : > { %v4025_v37 = vpop.trf.xlu0  ;;  %v2171_v6 = vsel %vm398_vm1, %v2139_v57, %v2170_v24  ;;  %v2364_v7 = vshrl.u32 %v2203_v58, 16 }
 0x407   : > { %v2232_v8 = vrot.slane %v4025_v37, 4  ;;  %v2235_v40 = vsel %vm398_vm1, %v4025_v37, %v2234_v35  ;;  %v2179_v42 = vperm.slane %v2171_v6, %v4278_v47  ;;  %v4734_v51 = vsel %vm398_vm1, %v4715_v20, %v2194_v11 }
 0x408   : > { %v2243_v43 = vperm.slane %v2235_v40, %v4270_v31  ;;  %v2207_v5 = vsel %vm398_vm1, %v4724_v28, %v2206_v54  ;;  %v4747_v57 = vsel %vm398_vm1, %v2200_v39, %v4680_v38 }
 0x409   : > { %v2233_v53 = vsel %vm398_vm1, %v2232_v8, %v4667_v19  ;;  %v2196_v15 = vrot.slane %v2179_v42, 4  ;;  %v2380_v1 = vshrl.u32 %v2207_v5, 16  ;;  %v2199_v38 = vsel %vm398_vm1, %v2179_v42, %v2198_v14 }
 0x40a   : > { %v2239_v23 = vperm.slane %v2233_v53, %v4270_v31  ;;  %v2293_v32 = vsel %vm398_vm1, %v2292_v26, %v2243_v43  ;;  %v2294_v22 = vrot.slane %v2243_v43, 4  ;;  %v2348_v14 = vshrl.u32 %v2199_v38, 16 }
 0x40b   : > { %v2299_v59 = vperm.slane %v2293_v32, %v4278_v47  ;;  %v4750_v19 = vsel %vm398_vm1, %v2196_v15, %v2155_v63  ;;  %v2332_v63 = vshrl.u32 %v4734_v51, 16  ;;  %v2204_v32 = vrot.slane %v4724_v28, 4 }
 0x40c   : > { %v2281_v56 = vsel %vm398_vm1, %v2280_v34, %v2239_v23  ;;  %v2282_v55 = vrot.slane %v2239_v23, 4  ;;  %v2295_v60 = vsel %vm398_vm1, %v2255_v41, %v2294_v22  ;;  %v2340_v43 = vshrl.u32 %v4750_v19, 16 }
 0x40d   : > { %v2287_v25 = vperm.slane %v2281_v56, %v4278_v47  ;;  %v2315_v54 = vsel %vm398_vm1, %v2299_v59, %v2314_v44  ;;  %v2303_v61 = vperm.slane %v2295_v60, %v4278_v47  ;;  %v2312_v50 = vrot.slane %v2299_v59, 4 }
 0x40e   : > { %v2365_v48 = vshrl.u32 %v2315_v54, 16  ;;  %v2283_v3 = vsel %vm398_vm1, %v2251_v27, %v2282_v55  ;;  %v2362_v0 = vpack.i.b16 %v2315_v54, %v2203_v58  ;;  %v2356_v27 = vshrl.u32 %v4747_v57, 16  ;;  %v1747_v55 = vpop.f32.mrf.mxu2 }
 0x40f   : > { %v2319_v4 = vsel %vm398_vm1, %v2303_v61, %v2318_v46  ;;  %v2291_v29 = vperm.slane %v2283_v3, %v4278_v47  ;;  %v4763_v41 = vsel %vm398_vm1, %v2287_v25, %v2306_v21  ;;  %v4772_v37 = vsel %vm398_vm1, %v2312_v50, %v4704_v13 }
 0x410   : > { %v2366_v10 = vpack.i.b16 %v2365_v48, %v2364_v7  ;;  %v2381_v12 = vshrl.u32 %v2319_v4, 16  ;;  %v2330_v62 = vpack.i.b16 %v4763_v41, %v4734_v51  ;;  %v2333_v18 = vshrl.u32 %v4763_v41, 16 }
 0x411   : > { %v2311_v45 = vsel %vm398_vm1, %v2291_v29, %v2310_v30  ;;  %v2308_v11 = vrot.slane %v2291_v29, 4  ;;  %v2378_v24 = vpack.i.b16 %v2319_v4, %v2207_v5  ;;  %v2354_v8 = vpack.i.b16 %v4772_v37, %v4747_v57 }
 0x412   : > { %4026 = vxpose.binary.xlu2.c.b16.start.end [1/2] (short) (narrow) %v2366_v10, %v2362_v0, 16  ;;  %v2382_v9 = vpack.i.b16 %v2381_v12, %v2380_v1  ;;  %v2349_v35 = vshrl.u32 %v2311_v45, 16  ;;  %v2346_v46 = vpack.i.b16 %v2311_v45, %v2199_v38  ;;  %v2334_v26 = vpack.i.b16 %v2333_v18, %v2332_v63 }
 0x413   : > { %v4776_v6 = vsel %vm398_vm1, %v2308_v11, %v4711_v49  ;;  %v2357_v40 = vshrl.u32 %v4772_v37, 16  ;;  %v2192_v13 = vrot.slane %v4715_v20, 4  ;;  %v2304_v49 = vrot.slane %v2287_v25, 4  ;;  %v1767_v25 = vpop.f32.mrf.mxu3 }
 0x414   : > { %4029 = vxpose.binary.xlu1.c.b16.start.end [1/2] (short) (narrow) %v2382_v9, %v2378_v24, 16  ;;  %v2350_v39 = vpack.i.b16 %v2349_v35, %v2348_v14  ;;  %v2338_v42 = vpack.i.b16 %v4776_v6, %v4750_v19  ;;  %v2341_v44 = vshrl.u32 %v4776_v6, 16  ;;  %v2316_v58 = vrot.slane %v2303_v61, 4 }
 0x415   : > { %v4786_v30 = vpack.i.b16 %v2357_v40, %v2356_v27  ;;  %v4792_v34 = vsel %vm398_vm1, %v2192_v13, %v4687_v33  ;;  %v4796_v53 = vsel %vm398_vm1, %v2304_v49, %v4721_v36  ;;  %v2205_v33 = vsel %vm398_vm1, %v2204_v32, %v4674_v52 }
 0x416   : > { %4032 = vxpose.binary.xlu0.c.b16.start.end [1/2] (short) (narrow) %v2350_v39, %v2346_v46, 16  ;;  %v4788_v51 = vpack.i.b16 %v2341_v44, %v2340_v43  ;;  %v2322_v15 = vpack.i.b16 %v4796_v53, %v4792_v34  ;;  %v2324_v20 = vshrl.u32 %v4792_v34, 16  ;;  %v2325_v23 = vshrl.u32 %v4796_v53, 16  ;;  %v1749_v61 = vpop.f32.mrf.mxu2 }
 0x417   : > { %v2317_v5 = vsel %vm398_vm1, %v2316_v58, %v4693_v2  ;;  %v2372_v36 = vshrl.u32 %v2205_v33, 16  ;;  %v1772_v60 = vmul.f32 0.25, %v1747_v55  ;;  %v1774_v54 = vmul.f32 0.25, %v1767_v25 }
 0x418   : > { %v2326_v22 = vpack.i.b16 %v2325_v23, %v2324_v20  ;;  %v2373_v59 = vshrl.u32 %v2317_v5, 16  ;;  %v2370_v21 = vpack.i.b16 %v2317_v5, %v2205_v33  ;;  %v1773_v2 = vmul.f32 0.25, %v1749_v61 }
 0x419   : > { %v1776_v7 = vsel %vm1734_vm2, %v1772_v60, -inf  ;;  %v1782_v28 = vsel %vm1734_vm2, %v1774_v54, -inf }
 0x41a   : > { %v2374_v56 = vpack.i.b16 %v2373_v59, %v2372_v36  ;;  %v1779_v1 = vsel %vm1734_vm2, %v1773_v2, -inf }
 0x41b   : > { %v1769_v52 = vpop.f32.mrf.mxu3 }
 0x41c   : > { %v1775_v48 = vmul.f32 0.25, %v1769_v52 }
 0x41e   : > { %v1785_v38 = vsel %vm1734_vm2, %v1775_v48, -inf }
 0x426   : > { %4035 = vxpose.binary.xlu0.c.b16.start.end [1/2] (short) (narrow) %v2374_v56, %v2370_v21, 16 }
 0x483   : > { %1777 = vmax.xlane.f32.xlu2 %v1776_v7 }
 0x48b   : > { %1783 = vmax.xlane.f32.xlu2 %v1782_v28 }
 0x493   : > { %1780 = vmax.xlane.f32.xlu2 %v1779_v1 }
 0x49b   : > { %1786 = vmax.xlane.f32.xlu2 %v1785_v38 }
 0x4b3   : > { %v4027_v63 = vpop.trf.xlu2 }
 0x4bb   : > { %v4814_v29 = vpop.trf.xlu2 }
 0x4c0   : > { %v4030_v3 = vpop.trf.xlu1 }
 0x4c1   : > { %v2658_v50 = vrot.slane %v4030_v3, 4 }
 0x4c2   : > { %v4033_v49 = vpop.trf.xlu0 }
 0x4c3   : > { %v4812_v4 = vsel %vm398_vm1, %v2658_v50, %v4027_v63  ;;  %v2646_v23 = vrot.slane %v4033_v49, 4 }
 0x4c4   : > { %4038 = vxpose.binary.xlu2.c.b16.start.end [1/2] (short) (narrow) %v2334_v26, %v2330_v62, 16 }
 0x4c8   : > { %v4031_v32 = vpop.trf.xlu1 }
 0x4c9   : > { %v2696_v63 = vrot.slane %v4031_v32, 4 }
 0x4ca   : > { %v4034_v58 = vpop.trf.xlu0 }
 0x4cb   : > { %v2684_v37 = vrot.slane %v4034_v58, 4 }
 0x4d2   : > { %v4036_v20 = vpop.trf.xlu0 }
 0x4d3   : > { %v2652_v3 = vrot.slane %v4036_v20, 4 }
 0x4da   : > { %v4037_v57 = vpop.trf.xlu0 }
 0x4f6   : > { %v1778_v41 = vpop.xlane.xlu2 %1777 }
 0x4f7   : > { %v1788_v0 = vsub.f32 %v1772_v60, %v1778_v41 }
 0x4f9   : > { %v1792_v10 = vmul.f32 1.442695, %v1788_v0 }
 0x4fb   : > { %4102 = vpow2.f32 %v1792_v10 }
 0x4fe   : > { %v1784_v12 = vpop.xlane.xlu2 %1783 }
 0x4ff   : > { %v1790_v40 = vsub.f32 %v1774_v54, %v1784_v12  ;;  %v2697_v12 = vsel %vm398_vm1, %v2696_v63, %v4814_v29 }
 0x501   : > { %v4103_v45 = vpop.eup %4102  ;;  %v1796_v43 = vmul.f32 1.442695, %v1790_v40 }
 0x502   : > { %v1800_v14 = vsel %vm1734_vm2, %v4103_v45, 0.0 }
 0x503   : > { %1801 = vadd.xlane.f32.xlu1 %v1800_v14  ;;  %v2690_v14 = vrot.slane %v4037_v57, 4 }
 0x506   : > { %v1781_v11 = vpop.xlane.xlu2 %1780 }
 0x507   : > { %v1789_v18 = vsub.f32 %v1773_v2, %v1781_v11  ;;  %v2701_v11 = vperm.slane %v2697_v12, %v4270_v31 }
 0x509   : > { %v1794_v24 = vmul.f32 1.442695, %v1789_v18 }
 0x50b   : > { %4104 = vpow2.f32 %v1794_v24  ;;  %v2708_v24 = vrot.slane %v2701_v11, 4 }
 0x50e   : > { %v1787_v9 = vpop.xlane.xlu2 %1786 }
 0x50f   : > { %v1791_v35 = vsub.f32 %v1775_v48, %v1787_v9 }
 0x511   : > { %v4105_v27 = vpop.eup %4104  ;;  %v1798_v46 = vmul.f32 1.442695, %v1791_v35 }
 0x512   : > { %v1803_v62 = vsel %vm1734_vm2, %v4105_v27, 0.0 }
 0x513   : > { %4106 = vpow2.f32 %v1798_v46  ;;  %1804 = vadd.xlane.f32.xlu0 %v1803_v62 }
 0x514   : > { %4108 = vpow2.f32 %v1796_v43 }
 0x519   : > { %v4107_v26 = vpop.eup %4106 }
 0x51a   : > { %v1809_v39 = vsel %vm1734_vm2, %v4107_v26, 0.0  ;;  %v4109_v44 = vpop.eup %4108 }
 0x51b   : > { %1810 = vadd.xlane.f32.xlu1 %v1809_v39  ;;  %v1806_v13 = vsel %vm1734_vm2, %v4109_v44, 0.0 }
 0x535   : > { %1807 = vadd.xlane.f32.xlu2 %v1806_v13 }
 0x53c   : > { %4044 = vxpose.binary.xlu0.c.b16.start.end [1/2] (short) (narrow) %v4786_v30, %v2354_v8, 16 }
 0x555   : > { %4041 = vxpose.binary.xlu1.c.b16.start.end [1/2] (short) (narrow) %v4788_v51, %v2338_v42, 16 }
 0x55e   : > { %4047 = vxpose.binary.xlu2.c.b16.start.end [1/2] (short) (narrow) %v2326_v22, %v2322_v15, 16 }
 0x565   : > { %v4039_v5 = vpop.trf.xlu2 }
 0x566   : > { %v2647_v33 = vsel %vm398_vm1, %v2646_v23, %v4039_v5 }
 0x56d   : > { %v4040_v30 = vpop.trf.xlu2 }
 0x56e   : > { %v4833_v19 = vsel %vm398_vm1, %v2684_v37, %v4040_v30 }
 0x56f   : > { %v2689_v49 = vperm.slane %v4833_v19, %v4270_v31 }
 0x571   : > { %v2702_v57 = vrot.slane %v2689_v49, 4 }
 0x576   : > { %v1802_v8 = vpop.xlane.xlu1 %1801 }
 0x577   : > { %4110 = vrcp.f32 %v1802_v8 }
 0x57d   : > { %v4111_v42 = vpop.eup %4110 }
 0x57e   : > { %v1816_v51 = vmul.f32 %v4111_v42, %v4103_v45 }
 0x580   : > { %v1820_v15 = vpack.c.bf16 %v1816_v51, %v1816_v51 }
 0x582   : > { %v2724_v59 = vunpack.c.l.b16 %v1820_v15 }
 0x586   : > { %v1805_v6 = vpop.xlane.xlu0 %1804 }
 0x587   : > { %4112 = vrcp.f32 %v1805_v6 }
 0x58d   : > { %v4113_v34 = vpop.eup %4112 }
 0x58e   : > { %v1817_v53 = vmul.f32 %v4113_v34, %v4105_v27  ;;  %v1811_v55 = vpop.xlane.xlu1 %1810  ;;  %v2651_v27 = vperm.slane %v2647_v33, %v4270_v31 }
 0x58f   : > { %4114 = vrcp.f32 %v1811_v55 }
 0x590   : > { %v1821_v22 = vpack.c.bf16 %v1817_v53, %v1817_v53  ;;  %v2664_v39 = vrot.slane %v2651_v27, 4 }
 0x592   : > { %v2725_v36 = vunpack.c.l.b16 %v1821_v22 }
 0x594   : > { %v2726_v21 = vpack.c.b16 %v2725_v36, %v2724_v59 }
 0x595   : > { %v4115_v7 = vpop.eup %4114 }
 0x596   : > { %v2731_v56 = vsel %vm1734_vm2, %v2726_v21, 0  ;;  %v1819_v25 = vmul.f32 %v4115_v7, %v4107_v26 }
 0x597   : > { %2740 = vmatpush.bf16.xpose.msrb.mxu2 %v2731_v56 }
 0x598   : > { %v1823_v61 = vpack.c.bf16 %v1819_v25, %v1819_v25 }
 0x59a   : > { %v2750_v52 = vunpack.c.l.b16 %v1823_v61 }
 0x59f   : > { %3372 = vmatpush.bf16.msra.mxu2 %v4600_v17  ;;  %v2663_v17 = vperm.slane %v4812_v4, %v4270_v31 }
 0x5a1   : > { %v2670_v0 = vrot.slane %v2663_v17, 4 }
 0x5a8   : > { %v1808_v60 = vpop.xlane.xlu2 %1807 }
 0x5a9   : > { %4116 = vrcp.f32 %v1808_v60 }
 0x5af   : > { %v4117_v54 = vpop.eup %4116 }
 0x5b0   : > { %v1818_v28 = vmul.f32 %v4117_v54, %v4109_v44 }
 0x5b2   : > { %v1822_v2 = vpack.c.bf16 %v1818_v28, %v1818_v28 }
 0x5b4   : > { %v2749_v1 = vunpack.c.l.b16 %v1822_v2 }
 0x5b6   : > { %v2751_v48 = vpack.c.b16 %v2750_v52, %v2749_v1 }
 0x5b8   : > { %v2756_v38 = vsel %vm1734_vm2, %v2751_v48, 0 }
 0x5b9   : > { %2765 = vmatpush.bf16.xpose.msrb.mxu3 %v2756_v38 }
 0x5c1   : > { %3392 = vmatpush.bf16.msra.mxu3 %v4603_v16 }
 0x5e8   : > { %v4045_v50 = vpop.trf.xlu0 }
 0x5e9   : > { %v2653_v41 = vsel %vm398_vm1, %v2652_v3, %v4045_v50 }
 0x5ea   : > { %v2657_v10 = vperm.slane %v2653_v41, %v4270_v31 }
 0x5ec   : > { %v2671_v45 = vsel %vm398_vm1, %v2670_v0, %v2657_v10 }
 0x5ed   : > { %v2675_v29 = vperm.slane %v2671_v45, %v4278_v47 }
 0x5ef   : > { %v2676_v44 = vrot.slane %v2675_v29, 4 }
 0x5f0   : > { %v4046_v16 = vpop.trf.xlu0 }
 0x5f1   : > { %v2691_v18 = vsel %vm398_vm1, %v2690_v14, %v4046_v16 }
 0x5f2   : > { %v2695_v4 = vperm.slane %v2691_v18, %v4270_v31 }
 0x5f4   : > { %v2709_v9 = vsel %vm398_vm1, %v2708_v24, %v2695_v4 }
 0x5f5   : > { %v2713_v5 = vperm.slane %v2709_v9, %v4278_v47 }
 0x5f7   : > { %v2714_v30 = vrot.slane %v2713_v5, 4 }
 0x5ff   : > { %v4048_v35 = vpop.trf.xlu2 }
 0x601   : > { %v4042_v46 = vpop.trf.xlu1 }
 0x602   : > { %v2640_v62 = vrot.slane %v4042_v46, 4 }
 0x604   : > { %v2641_v26 = vsel %vm398_vm1, %v2640_v62, %v4048_v35 }
 0x605   : > { %v2645_v40 = vperm.slane %v2641_v26, %v4270_v31 }
 0x607   : > { %v2665_v43 = vsel %vm398_vm1, %v2664_v39, %v2645_v40  ;;  %v4049_v20 = vpop.trf.xlu2 }
 0x608   : > { %v2669_v13 = vperm.slane %v2665_v43, %v4278_v47 }
 0x609   : > { %v4043_v58 = vpop.trf.xlu1 }
 0x60a   : > { %v2678_v23 = vrot.slane %v4043_v58, 4  ;;  %v2677_v32 = vsel %vm398_vm1, %v2676_v44, %v2669_v13 }
 0x60b   : > { %v2719_v51 = vshrl.u32 %v2677_v32, 16 }
 0x60c   : > { %v2679_v33 = vsel %vm398_vm1, %v2678_v23, %v4049_v20 }
 0x60d   : > { %v2683_v37 = vperm.slane %v2679_v33, %v4270_v31 }
 0x60f   : > { %v2703_v8 = vsel %vm398_vm1, %v2702_v57, %v2683_v37 }
 0x610   : > { %v2707_v6 = vperm.slane %v2703_v8, %v4278_v47 }
 0x612   : > { %v2715_v42 = vsel %vm398_vm1, %v2714_v30, %v2707_v6  ;;  %v3028_v6 = vld [vmem:[%s5175_s5 + $0x10] sm:$0xff] }
 0x613   : > { %v4865_v19 = vpack.i.b16 %v2715_v42, %v2677_v32  ;;  %v2720_v34 = vshrl.u32 %v2715_v42, 16  ;;  %v3029_v42 = vld [vmem:[%s5175_s5 + $0x18] sm:$0xff] }
 0x615   : > { %3905 = vmatmul.msk.bf16.vlgmr.msrb.gmra.mxu2 %vm1734_vm2, %v4865_v19  ;;  %v4869_v53 = vpack.i.b16 %v2720_v34, %v2719_v51 }
 0x617   : > { %3906 = vmatmul.msk.bf16.vlgmr.msrb.gmra.mxu3 %vm1734_vm2, %v4869_v53 }
 0x698   : > { %v2742_v15 = vpop.f32.mrf.mxu2 }
 0x69a   : > { %v2767_v22 = vpop.f32.mrf.mxu3 }
 0x69b   : > { %v4050_v59 = vpack.i.bf16 %v2767_v22, %v2742_v15 }
 0x69d   : > { %4051 = vxpose.xlu1.b32.start [1/2] (short) (narrow) %v4050_v59, 16 }
 0x6a0   : > { %v2744_v36 = vpop.f32.mrf.mxu2 }
 0x6a2   : > { %v2769_v21 = vpop.f32.mrf.mxu3 }
 0x6a3   : > { %v4052_v56 = vpack.i.bf16 %v2769_v21, %v2744_v36 }
 0x6a5   : > { %4053 = vxpose.xlu1.b32.end [2/2] (short) (narrow) %v4052_v56, 16 }
 0x741   : > { %v4054_v55 = vpop.trf.xlu1 }
 0x742   : > { %v4058_v60 = vunpack.i.h.bf16 %v4054_v55  ;;  %v4055_v7 = vunpack.i.l.bf16 %v4054_v55 }
 0x744   : > { %v2846_v25 = vrot.slane %v4058_v60, 4  ;;  %v2851_v54 = vperm.slane %v4058_v60, %v4270_v31  ;;  %v2836_v28 = vrot.slane %v4055_v7, 4  ;;  %v2841_v61 = vperm.slane %v4055_v7, %v4270_v31 }
 0x746   : > { %v2847_v2 = vsel %vm398_vm1, 0.0, %v2846_v25  ;;  %v2856_v1 = vrot.slane %v2851_v54, 4  ;;  %v2837_v52 = vsel %vm398_vm1, 0.0, %v2836_v28  ;;  %v2858_v48 = vrot.slane %v2841_v61, 4 }
 0x747   : > { %v2855_v38 = vperm.slane %v2847_v2, %v4270_v31  ;;  %v2845_v3 = vperm.slane %v2837_v52, %v4270_v31  ;;  %v3032_v25 = vpack.c.bf16 %v3029_v42, %v3028_v6 }
 0x748   : > { %v2857_v17 = vsel %vm398_vm1, %v2856_v1, %v2841_v61  ;;  %v2859_v63 = vsel %vm398_vm1, %v2851_v54, %v2858_v48 }
 0x749   : > { %v2868_v50 = vrot.slane %v2855_v38, 4  ;;  %v2863_v41 = vperm.slane %v2857_v17, %v4278_v47  ;;  %v2867_v0 = vperm.slane %v2859_v63, %v4278_v47  ;;  %v2870_v10 = vrot.slane %v2845_v3, 4  ;;  %v4059_v12 = vpop.trf.xlu1  ;;  %3046 = vmatpush.bf16.msrb.mxu0 %v3032_v25  ;;  %3769 = vmatpush.bf16.msrb.mxu2 %v3032_v25  ;;  %v4145_v25 = vld [vmem:[%s4250_s11 + $0x8] sm:$0xff] }
 0x74a   : > { %v4063_v45 = vunpack.i.h.bf16 %v4059_v12  ;;  %v4060_v14 = vunpack.i.l.bf16 %v4059_v12 }
 0x74b   : > { %v2869_v11 = vsel %vm398_vm1, %v2868_v50, %v2845_v3  ;;  %v2871_v16 = vsel %vm398_vm1, %v2855_v38, %v2870_v10  ;;  %v2880_v18 = vrot.slane %v2863_v41, 4  ;;  %v2882_v24 = vrot.slane %v2867_v0, 4 }
 0x74c   : > { %v2875_v4 = vperm.slane %v2869_v11, %v4278_v47  ;;  %v2879_v9 = vperm.slane %v2871_v16, %v4278_v47  ;;  %v2898_v35 = vrot.slane %v4063_v45, 4  ;;  %v2903_v27 = vperm.slane %v4063_v45, %v4270_v31 }
 0x74d   : > { %v2883_v46 = vsel %vm398_vm1, 0.0, %v2882_v24  ;;  %v2888_v62 = vrot.slane %v4060_v14, 4  ;;  %v2893_v13 = vperm.slane %v4060_v14, %v4270_v31  ;;  %v2881_v49 = vsel %vm398_vm1, 0.0, %v2880_v18 }
 0x74e   : > { %v2886_v29 = vrot.slane %v2879_v9, 4  ;;  %v2945_v26 = vrot.slane %v2883_v46, 4  ;;  %v2899_v39 = vsel %vm398_vm1, 0.0, %v2898_v35  ;;  %v2908_v43 = vrot.slane %v2903_v27, 4 }
 0x74f   : > { %v2907_v40 = vperm.slane %v2899_v39, %v4270_v31  ;;  %v2889_v44 = vsel %vm398_vm1, 0.0, %v2888_v62  ;;  %v2884_v58 = vrot.slane %v2875_v4, 4  ;;  %v2910_v57 = vrot.slane %v2893_v13, 4 }
 0x750   : > { %v2887_v20 = vsel %vm398_vm1, 0.0, %v2886_v29  ;;  %v2897_v23 = vperm.slane %v2889_v44, %v4270_v31  ;;  %v2909_v33 = vsel %vm398_vm1, %v2908_v43, %v2893_v13  ;;  %v2946_v30 = vsel %vm398_vm1, %v2945_v26, %v2881_v49 }
 0x751   : > { %v2956_v32 = vrot.slane %v2887_v20, 4  ;;  %v2920_v5 = vrot.slane %v2907_v40, 4  ;;  %v2915_v37 = vperm.slane %v2909_v33, %v4278_v47  ;;  %v2940_v51 = vsel %vm398_vm1, %v2882_v24, %v2863_v41 }
 0x752   : > { %v2922_v8 = vrot.slane %v2897_v23, 4  ;;  %v2911_v34 = vsel %vm398_vm1, %v2903_v27, %v2910_v57  ;;  %v2950_v22 = vperm.slane %v2946_v30, %v4270_v31  ;;  %v2885_v56 = vsel %vm398_vm1, 0.0, %v2884_v58  ;;  %v3026_v57 = vld [vmem:[%s5175_s5] sm:$0xff] }
 0x753   : > { %v2921_v15 = vsel %vm398_vm1, %v2920_v5, %v2897_v23  ;;  %v2919_v59 = vperm.slane %v2911_v34, %v4278_v47  ;;  %v2951_v60 = vsel %vm398_vm1, %v2886_v29, %v2875_v4  ;;  %v2957_v7 = vsel %vm398_vm1, %v2956_v32, %v2885_v56 }
 0x754   : > { %v2923_v36 = vsel %vm398_vm1, %v2907_v40, %v2922_v8  ;;  %v2927_v21 = vperm.slane %v2921_v15, %v4278_v47  ;;  %v2932_v54 = vrot.slane %v2915_v37, 4  ;;  %v2961_v61 = vperm.slane %v2957_v7, %v4270_v31 }
 0x755   : > { %v2931_v55 = vperm.slane %v2923_v36, %v4278_v47  ;;  %v2934_v28 = vrot.slane %v2919_v59, 4  ;;  %v2962_v2 = vrot.slane %v2950_v22, 4  ;;  %v2944_v38 = vperm.slane %v2940_v51, %v4270_v31  ;;  %v4095_v22 = vld [vmem:[%s5176_s6] ss:$0 sm:$0xff] }
 0x756   : > { %v2936_v1 = vrot.slane %v2927_v21, 4  ;;  %v2955_v63 = vperm.slane %v2951_v60, %v4270_v31  ;;  %v2968_v50 = vrot.slane %v2961_v61, 4  ;;  %v2933_v41 = vsel %vm398_vm1, 0.0, %v2932_v54 }
 0x757   : > { %v2938_v52 = vrot.slane %v2931_v55, 4  ;;  %v2935_v48 = vsel %vm398_vm1, 0.0, %v2934_v28  ;;  %v2963_v10 = vsel %vm398_vm1, %v2962_v2, %v2944_v38  ;;  %v2978_v12 = vsel %vm398_vm1, %v2934_v28, %v2915_v37  ;;  %v3027_v37 = vld [vmem:[%s5175_s5 + $0x8] sm:$0xff] }
 0x758   : > { %v2983_v17 = vrot.slane %v2935_v48, 4  ;;  %v2937_v45 = vsel %vm398_vm1, 0.0, %v2936_v1  ;;  %v2969_v14 = vsel %vm398_vm1, %v2968_v50, %v2955_v63  ;;  %v2967_v9 = vperm.slane %v2963_v10, %v4278_v47 }
 0x759   : > { %v2939_v3 = vsel %vm398_vm1, 0.0, %v2938_v52  ;;  %v2973_v16 = vperm.slane %v2969_v14, %v4278_v47  ;;  %v2989_v24 = vsel %vm398_vm1, %v2938_v52, %v2927_v21  ;;  %v2982_v27 = vperm.slane %v2978_v12, %v4270_v31  ;;  %v4144_v21 = vld [vmem:[%s4250_s11] sm:$0xff] }
 0x75a   : > { %v2994_v0 = vrot.slane %v2939_v3, 4  ;;  %v2984_v11 = vsel %vm398_vm1, %v2983_v17, %v2933_v41  ;;  %v2993_v29 = vperm.slane %v2989_v24, %v4270_v31  ;;  %v2976_v43 = vrot.slane %v2967_v9, 4  ;;  %v3119_v24 = vld [vmem:[%s5171_s1] sm:$0xff] }
 0x75b   : > { %v2988_v18 = vperm.slane %v2984_v11, %v4270_v31  ;;  %v2974_v62 = vrot.slane %v2973_v16, 4  ;;  %v3031_v8 = vpack.c.bf16 %v3027_v37, %v3026_v57  ;;  %v4159_v61 = vmov 32.0  }
 0x75c   : > { %v2995_v4 = vsel %vm398_vm1, %v2994_v0, %v2937_v45  ;;  %v2977_v23 = vsel %vm398_vm1, %v2973_v16, %v2976_v43  ;;  %4118 = vrcp.f32 %v4159_v61  ;;  %v3121_v16 = vld [vmem:[%s5171_s1 + $0x10] sm:$0xff] }
 0x75d   : > { %v2999_v35 = vperm.slane %v2995_v4, %v4270_v31  ;;  %v3000_v46 = vrot.slane %v2988_v18, 4  ;;  %v2975_v40 = vsel %vm398_vm1, %v2974_v62, %v2967_v9  ;;  %3047 = vmatpush.bf16.msrb.mxu0 %v3031_v8  ;;  %3770 = vmatpush.bf16.msrb.mxu2 %v3031_v8  ;;  %v3122_v18 = vld [vmem:[%s5171_s1 + $0x18] sm:$0xff]  ;;  %v4096_v8 = vld [vmem:[%s5177_s7] ss:$0 sm:$0xff] }
 0x75e   : > { %v3125_v9 = vpack.c.bf16 %v3122_v18, %v3121_v16 }
 0x75f   : > { %v3006_v26 = vrot.slane %v2999_v35, 4  ;;  %v3001_v39 = vsel %vm398_vm1, %v3000_v46, %v2982_v27  ;;  %v3120_v35 = vld [vmem:[%s5171_s1 + $0x8] sm:$0xff] }
 0x760   : > { %v3005_v44 = vperm.slane %v3001_v39, %v4278_v47  ;;  %3139 = vmatpush.bf16.msrb.mxu1 %v3125_v9  ;;  %v3124_v46 = vpack.c.bf16 %v3120_v35, %v3119_v24 }
 0x761   : > { %v3007_v13 = vsel %vm398_vm1, %v3006_v26, %v2993_v29 }
 0x762   : > { %v3011_v49 = vperm.slane %v3007_v13, %v4278_v47  ;;  %v3014_v58 = vrot.slane %v3005_v44, 4  ;;  %v4119_v2 = vpop.eup %4118 }
 0x763   : > { %v3065_v1 = vmul.f32 32.0, %v4119_v2  ;;  %vm3069_vm3 = vweird.f32 %v4119_v2 }
 0x764   : > { %v3012_v20 = vrot.slane %v3011_v49, 4  ;;  %v3015_v32 = vsel %vm398_vm1, %v3011_v49, %v3014_v58  ;;  %3140 = vmatpush.bf16.msrb.mxu1 %v3124_v46 }
 0x765   : > { %v4064_v5 = vpack.i.bf16 %v3015_v32, %v2977_v23  ;;  %v3066_v52 = vsub.f32 1.0, %v3065_v1 }
 0x766   : > { %v3013_v33 = vsel %vm398_vm1, %v3012_v20, %v3005_v44 }
 0x767   : > { %4065 = vrot.lane.b32.xlu0 %v4064_v5, %s4158_s22  ;;  %v3067_v48 = vmul.f32 %v4119_v2, %v3066_v52 }
 0x769   : > { %v3068_v38 = vadd.f32 %v4119_v2, %v3067_v48 }
 0x76b   : > { %v4960_v3 = vsel %vm3069_vm3, %v4119_v2, %v3068_v38 }
 0x7d9   : > { %v4066_v30 = vpop.permute.xlu0 %4065 }
 0x7da   : > { %v4068_v6 = vunpack.i.h.bf16 %v4066_v30  ;;  %v4067_v42 = vunpack.i.l.bf16 %v4066_v30 }
 0x7dc   : > { %v3025_v51 = vsel %vm1734_vm2, %v3013_v33, %v4068_v6  ;;  %v3024_v34 = vsel %vm1734_vm2, %v2975_v40, %v4067_v42 }
 0x7dd   : > { %v3030_v15 = vpack.c.bf16 %v3025_v51, %v3024_v34  ;;  %v4097_v34 = vld [vmem:[%s5178_s8] ss:$0 sm:$0xff] }
 0x7df   : > { %3907 = vmatmul.msk.bf16.vlgmr.msrb.gmra.mxu0 %vm347_vm0, %v3030_v15 }
 0x85c   : > { %v3049_v59 = vpop.f32.mrf.mxu0 }
 0x85d   : > { %v3050_v36 = vadd.f32 %v4095_v22, %v3049_v59 }
 0x85f   : > { %v3054_v56 = vadd.f32 %v4144_v21, %v3050_v36 }
 0x861   : > { %v3058_v55 = vsel %vm347_vm0, %v3054_v56, 0.0 }
 0x862   : > { %3059 = vadd.xlane.f32.xlu2 %v3058_v55 }
 0x864   : > { %v3051_v60 = vpop.f32.mrf.mxu0 }
 0x865   : > { %v3052_v7 = vadd.f32 %v4095_v22, %v3051_v60 }
 0x867   : > { %v3055_v54 = vadd.f32 %v4145_v25, %v3052_v7 }
 0x869   : > { %v3061_v28 = vsel %vm347_vm0, %v3055_v54, 0.0 }
 0x86a   : > { %3062 = vadd.xlane.f32.xlu1 %v3061_v28 }
 0x8d5   : > { %v3060_v17 = vpop.xlane.xlu2 %3059 }
 0x8d6   : > { %v3071_v63 = vmul.f32 %v4960_v3, %v3060_v17 }
 0x8d8   : > { %v3073_v50 = vsub.f32 %v3054_v56, %v3071_v63  ;;  %v4098_v56 = vld [vmem:[%s5172_s2] ss:$0 sm:$0xff] }
 0x8da   : > { %v3075_v41 = vmul.f32 %v3073_v50, %v3073_v50 }
 0x8dc   : > { %v3077_v0 = vsel %vm347_vm0, %v3075_v41, 0.0 }
 0x8dd   : > { %v3063_v10 = vpop.xlane.xlu1 %3062  ;;  %3078 = vadd.xlane.f32.xlu1 %v3077_v0 }
 0x8de   : > { %v3072_v12 = vmul.f32 %v4960_v3, %v3063_v10 }
 0x8e0   : > { %v3074_v45 = vsub.f32 %v3055_v54, %v3072_v12 }
 0x8e2   : > { %v3076_v14 = vmul.f32 %v3074_v45, %v3074_v45 }
 0x8e4   : > { %v3080_v11 = vsel %vm347_vm0, %v3076_v14, 0.0 }
 0x8e5   : > { %3081 = vadd.xlane.f32.xlu0 %v3080_v11 }
 0x950   : > { %v3079_v4 = vpop.xlane.xlu1 %3078 }
 0x951   : > { %v3083_v27 = vmul.f32 %v3079_v4, %v4960_v3 }
 0x953   : > { %v3085_v62 = vadd.f32 1e-05, %v3083_v27 }
 0x955   : > { %4120 = vrsqrt.f32 %v3085_v62  ;;  %vm3093_vm5 = vweird.f32 %v3085_v62 }
 0x958   : > { %v3082_v29 = vpop.xlane.xlu0 %3081 }
 0x959   : > { %v3084_v26 = vmul.f32 %v3082_v29, %v4960_v3 }
 0x95b   : > { %v4121_v39 = vpop.eup %4120  ;;  %v3086_v40 = vadd.f32 1e-05, %v3084_v26 }
 0x95c   : > { %v3088_v43 = vmul.f32 %v4121_v39, %v3085_v62  ;;  %vm3094_vm4 = vweird.f32 %v4121_v39 }
 0x95d   : > { %4122 = vrsqrt.f32 %v3086_v40  ;;  %vm3095_vm6 = vmor %vm3093_vm5, %vm3094_vm4  ;;  %vm3103_vm8 = vweird.f32 %v3086_v40 }
 0x95e   : > { %v3089_v44 = vmul.f32 %v4121_v39, %v3088_v43 }
 0x960   : > { %v3090_v13 = vmul.f32 0.5, %v3089_v44 }
 0x962   : > { %v3091_v49 = vsub.f32 1.5, %v3090_v13 }
 0x963   : > { %v4123_v58 = vpop.eup %4122 }
 0x964   : > { %v3092_v20 = vmul.f32 %v4121_v39, %v3091_v49  ;;  %v3098_v23 = vmul.f32 %v4123_v58, %v3086_v40  ;;  %vm3104_vm7 = vweird.f32 %v4123_v58 }
 0x965   : > { %vm3105_vm9 = vmor %vm3103_vm8, %vm3104_vm7 }
 0x966   : > { %v3099_v32 = vmul.f32 %v4123_v58, %v3098_v23  ;;  %v3096_v5 = vsel %vm3095_vm6, %v4121_v39, %v3092_v20 }
 0x967   : > { %v3107_v37 = vmul.f32 %v3096_v5, %v3073_v50 }
 0x968   : > { %v3100_v33 = vmul.f32 0.5, %v3099_v32 }
 0x969   : > { %v3112_v51 = vmul.f32 %v4096_v8, %v3107_v37 }
 0x96a   : > { %v3101_v57 = vsub.f32 1.5, %v3100_v33 }
 0x96b   : > { %v4986_v22 = vadd.f32 %v4097_v34, %v3112_v51 }
 0x96c   : > { %v3102_v30 = vmul.f32 %v4123_v58, %v3101_v57 }
 0x96e   : > { %v3106_v6 = vsel %vm3105_vm9, %v4123_v58, %v3102_v30 }
 0x96f   : > { %v3108_v42 = vmul.f32 %v3106_v6, %v3074_v45 }
 0x971   : > { %v3113_v15 = vmul.f32 %v4096_v8, %v3108_v42 }
 0x973   : > { %v4988_v59 = vadd.f32 %v4097_v34, %v3113_v15 }
 0x975   : > { %v3123_v36 = vpack.c.bf16 %v4988_v59, %v4986_v22 }
 0x977   : > { %3908 = vmatmul.msk.bf16.vlgmr.msrb.gmra.mxu1 %vm347_vm0, %v3123_v36 }
 0x9f4   : > { %v3142_v21 = vpop.f32.mrf.mxu1 }
 0x9f5   : > { %v3143_v60 = vadd.f32 %v4098_v56, %v3142_v21 }
 0x9f7   : > { %v3155_v28 = vrot.slane %v3143_v60, 4  ;;  %v3160_v1 = vperm.slane %v3143_v60, %v4270_v31 }
 0x9f9   : > { %v3156_v48 = vsel %vm398_vm1, 0.0, %v3155_v28  ;;  %v3177_v14 = vrot.slane %v3160_v1, 4 }
 0x9fa   : > { %v3164_v45 = vperm.slane %v3156_v48, %v4270_v31 }
 0x9fc   : > { %v3144_v55 = vpop.f32.mrf.mxu1  ;;  %v3189_v44 = vrot.slane %v3164_v45, 4 }
 0x9fd   : > { %v3145_v7 = vadd.f32 %v4098_v56, %v3144_v55 }
 0x9ff   : > { %v4069_v25 = vpack.i.bf16 %v3145_v7, %v3143_v60  ;;  %v3207_v54 = vrot.slane %v3145_v7, 4  ;;  %v3212_v61 = vperm.slane %v3145_v7, %v4270_v31 }
 0xa01   : > { %4070 = vrot.lane.b32.xlu2 %v4069_v25, %s4154_s16  ;;  %v3208_v2 = vsel %vm398_vm1, 0.0, %v3207_v54  ;;  %v3229_v50 = vrot.slane %v3212_v61, 4 }
 0xa02   : > { %v3216_v63 = vperm.slane %v3208_v2, %v4270_v31 }
 0xa04   : > { %v3241_v4 = vrot.slane %v3216_v63, 4 }
 0xa5b   : > { %v4071_v52 = vpop.permute.xlu2 %4070 }
 0xa5c   : > { %v4073_v38 = vunpack.i.h.bf16 %v4071_v52  ;;  %v4072_v17 = vunpack.i.l.bf16 %v4071_v52 }
 0xa5e   : > { %v3217_v41 = vrot.slane %v4073_v38, 4  ;;  %v3222_v0 = vperm.slane %v4073_v38, %v4270_v31  ;;  %v3165_v10 = vrot.slane %v4072_v17, 4  ;;  %v3170_v12 = vperm.slane %v4072_v17, %v4270_v31 }
 0xa60   : > { %v3218_v11 = vsel %vm398_vm1, 0.0, %v3217_v41  ;;  %v3227_v16 = vrot.slane %v3222_v0, 4  ;;  %v3230_v18 = vsel %vm398_vm1, %v3222_v0, %v3229_v50  ;;  %v3166_v24 = vsel %vm398_vm1, 0.0, %v3165_v10 }
 0xa61   : > { %v3226_v9 = vperm.slane %v3218_v11, %v4270_v31  ;;  %v3238_v35 = vperm.slane %v3230_v18, %v4278_v47  ;;  %v3175_v27 = vrot.slane %v3170_v12, 4  ;;  %v3174_v62 = vperm.slane %v3166_v24, %v4270_v31 }
 0xa62   : > { %v3228_v46 = vsel %vm398_vm1, %v3227_v16, %v3212_v61  ;;  %v3178_v29 = vsel %vm398_vm1, %v3170_v12, %v3177_v14 }
 0xa63   : > { %v3234_v26 = vperm.slane %v3228_v46, %v4278_v47  ;;  %v3239_v39 = vrot.slane %v3226_v9, 4  ;;  %v3242_v40 = vsel %vm398_vm1, %v3226_v9, %v3241_v4  ;;  %v3253_v43 = vrot.slane %v3238_v35, 4 }
 0xa64   : > { %v3250_v13 = vperm.slane %v3242_v40, %v4278_v47  ;;  %v3269_v49 = vpack.c.bf16 %v3238_v35, %v3238_v35  ;;  %v3176_v58 = vsel %vm398_vm1, %v3175_v27, %v3160_v1  ;;  %v3186_v5 = vperm.slane %v3178_v29, %v4278_v47 }
 0xa65   : > { %v3240_v20 = vsel %vm398_vm1, %v3239_v39, %v3216_v63  ;;  %v3251_v23 = vrot.slane %v3234_v26, 4  ;;  %v3254_v32 = vsel %vm398_vm1, 0.0, %v3253_v43  ;;  %v3267_v37 = vpack.c.bf16 %v3234_v26, %v3234_v26 }
 0xa66   : > { %v3246_v33 = vperm.slane %v3240_v20, %v4278_v47  ;;  %v3257_v57 = vrot.slane %v3250_v13, 4  ;;  %v3273_v8 = vpack.c.bf16 %v3250_v13, %v3250_v13  ;;  %v3270_v30 = vpack.c.bf16 %v3254_v32, %v3254_v32 }
 0xa67   : > { %v3182_v6 = vperm.slane %v3176_v58, %v4278_v47  ;;  %v3187_v42 = vrot.slane %v3174_v62, 4  ;;  %v3190_v51 = vsel %vm398_vm1, %v3174_v62, %v3189_v44  ;;  %v3252_v34 = vsel %vm398_vm1, 0.0, %v3251_v23 }
 0xa68   : > { %v3255_v15 = vrot.slane %v3246_v33, 4  ;;  %v3258_v36 = vsel %vm398_vm1, 0.0, %v3257_v57  ;;  %v3271_v21 = vpack.c.bf16 %v3246_v33, %v3246_v33  ;;  %v3317_v55 = vrot.slane %v3273_v8, 4 }
 0xa69   : > { %v3274_v56 = vpack.c.bf16 %v3258_v36, %v3258_v36  ;;  %v3188_v60 = vsel %vm398_vm1, %v3187_v42, %v3164_v45  ;;  %v3198_v7 = vperm.slane %v3190_v51, %v4278_v47  ;;  %v3199_v61 = vrot.slane %v3182_v6, 4 }
 0xa6a   : > { %v3256_v25 = vsel %vm398_vm1, 0.0, %v3255_v15  ;;  %v3311_v54 = vrot.slane %v3271_v21, 4  ;;  %v3194_v28 = vperm.slane %v3188_v60, %v4278_v47  ;;  %v3318_v1 = vsel %vm398_vm1, %v3317_v55, %v3269_v49 }
 0xa6b   : > { %v3272_v2 = vpack.c.bf16 %v3256_v25, %v3256_v25  ;;  %v3335_v52 = vrot.slane %v3274_v56, 4  ;;  %v3201_v48 = vrot.slane %v3186_v5, 4  ;;  %v3268_v38 = vpack.c.bf16 %v3252_v34, %v3252_v34 }
 0xa6c   : > { %v3312_v17 = vsel %vm398_vm1, %v3311_v54, %v3267_v37  ;;  %v3322_v63 = vperm.slane %v3318_v1, %v4270_v31  ;;  %v3203_v50 = vrot.slane %v3194_v28, 4  ;;  %v3200_v12 = vsel %vm398_vm1, 0.0, %v3199_v61 }
 0xa6d   : > { %v3316_v41 = vperm.slane %v3312_v17, %v4270_v31  ;;  %v3329_v0 = vrot.slane %v3272_v2, 4  ;;  %v3336_v10 = vsel %vm398_vm1, %v3335_v52, %v3270_v30  ;;  %v3205_v16 = vrot.slane %v3198_v7, 4 }
 0xa6e   : > { %v3323_v45 = vrot.slane %v3322_v63, 4  ;;  %v3340_v14 = vperm.slane %v3336_v10, %v4270_v31  ;;  %v3204_v11 = vsel %vm398_vm1, 0.0, %v3203_v50  ;;  %v3202_v24 = vsel %vm398_vm1, 0.0, %v3201_v48 }
 0xa6f   : > { %v3330_v18 = vsel %vm398_vm1, %v3329_v0, %v3268_v38  ;;  %v3259_v4 = vpack.c.bf16 %v3182_v6, %v3182_v6  ;;  %v3206_v27 = vsel %vm398_vm1, 0.0, %v3205_v16  ;;  %v3260_v46 = vpack.c.bf16 %v3200_v12, %v3200_v12 }
 0xa70   : > { %v3334_v9 = vperm.slane %v3330_v18, %v4270_v31  ;;  %v3341_v35 = vrot.slane %v3340_v14, 4  ;;  %v3263_v62 = vpack.c.bf16 %v3194_v28, %v3194_v28  ;;  %v3264_v29 = vpack.c.bf16 %v3204_v11, %v3204_v11 }
 0xa71   : > { %v3265_v26 = vpack.c.bf16 %v3198_v7, %v3198_v7  ;;  %v3266_v39 = vpack.c.bf16 %v3206_v27, %v3206_v27  ;;  %v3261_v40 = vpack.c.bf16 %v3186_v5, %v3186_v5  ;;  %v3262_v43 = vpack.c.bf16 %v3202_v24, %v3202_v24 }
 0xa72   : > { %v3324_v44 = vsel %vm398_vm1, %v3323_v45, %v3316_v41  ;;  %v3342_v13 = vsel %vm398_vm1, %v3341_v35, %v3334_v9  ;;  %v3275_v49 = vrot.slane %v3263_v62, 4  ;;  %v3293_v20 = vrot.slane %v3264_v29, 4 }
 0xa73   : > { %v3281_v58 = vrot.slane %v3265_v26, 4  ;;  %v3299_v23 = vrot.slane %v3266_v39, 4  ;;  %v3328_v32 = vperm.slane %v3324_v44, %v4278_v47  ;;  %v3346_v33 = vperm.slane %v3342_v13, %v4278_v47 }
 0xa74   : > { %v3276_v57 = vsel %vm398_vm1, %v3275_v49, %v3259_v4  ;;  %v3294_v8 = vsel %vm398_vm1, %v3293_v20, %v3260_v46 }
 0xa75   : > { %v3282_v37 = vsel %vm398_vm1, %v3281_v58, %v3261_v40  ;;  %v3300_v5 = vsel %vm398_vm1, %v3299_v23, %v3262_v43  ;;  %v3280_v30 = vperm.slane %v3276_v57, %v4270_v31  ;;  %v3298_v42 = vperm.slane %v3294_v8, %v4270_v31 }
 0xa76   : > { %v3286_v6 = vperm.slane %v3282_v37, %v4270_v31  ;;  %v3304_v51 = vperm.slane %v3300_v5, %v4270_v31  ;;  %v3357_v34 = vshrl.u32 %v3346_v33, 16  ;;  %v3355_v21 = vpack.i.b16 %v3346_v33, %v3328_v32 }
 0xa77   : > { %v3356_v56 = vshrl.u32 %v3328_v32, 16 }
 0xa78   : > { %v3287_v15 = vrot.slane %v3286_v6, 4  ;;  %v3305_v36 = vrot.slane %v3304_v51, 4  ;;  %v3360_v61 = vunpack.c.l.b16 %v3355_v21 }
 0xa79   : > { %v3358_v54 = vpack.i.b16 %v3357_v34, %v3356_v56 }
 0xa7a   : > { %v3288_v55 = vsel %vm398_vm1, %v3287_v15, %v3280_v30  ;;  %v3306_v60 = vsel %vm398_vm1, %v3305_v36, %v3298_v42 }
 0xa7b   : > { %v3292_v7 = vperm.slane %v3288_v55, %v4278_v47  ;;  %v3310_v25 = vperm.slane %v3306_v60, %v4278_v47  ;;  %v3380_v38 = vunpack.c.l.b16 %v3358_v54 }
 0xa7d   : > { %v3349_v28 = vpack.i.b16 %v3310_v25, %v3292_v7  ;;  %v3350_v2 = vshrl.u32 %v3292_v7, 16  ;;  %v3351_v1 = vshrl.u32 %v3310_v25, 16 }
 0xa7f   : > { %v3359_v52 = vunpack.c.l.b16 %v3349_v28  ;;  %v3352_v48 = vpack.i.b16 %v3351_v1, %v3350_v2 }
 0xa81   : > { %v3361_v17 = vpack.c.b16 %v3360_v61, %v3359_v52  ;;  %v3379_v63 = vunpack.c.l.b16 %v3352_v48 }
 0xa83   : > { %3909 = vmatmul.msk.bf16.vlgmr.msra.gmra.mxu2 %vm1734_vm2, %v3361_v17  ;;  %v3381_v50 = vpack.c.b16 %v3380_v38, %v3379_v63 }
 0xa85   : > { %3910 = vmatmul.msk.bf16.vlgmr.msra.gmra.mxu3 %vm1734_vm2, %v3381_v50 }
 0xb06   : > { %v3374_v41 = vpop.f32.mrf.mxu2 }
 0xb07   : > { %v3399_v0 = vmul.f32 0.25, %v3374_v41 }
 0xb08   : > { %v3394_v10 = vpop.f32.mrf.mxu3 }
 0xb09   : > { %v3403_v12 = vsel %vm1734_vm2, %v3399_v0, -inf  ;;  %v3401_v4 = vmul.f32 0.25, %v3394_v10 }
 0xb0a   : > { %3404 = vmax.xlane.f32.xlu1 %v3403_v12 }
 0xb0b   : > { %v3409_v9 = vsel %vm1734_vm2, %v3401_v4, -inf }
 0xb0e   : > { %v3376_v45 = vpop.f32.mrf.mxu2 }
 0xb0f   : > { %v3400_v14 = vmul.f32 0.25, %v3376_v45 }
 0xb10   : > { %v3396_v11 = vpop.f32.mrf.mxu3 }
 0xb11   : > { %v3402_v16 = vmul.f32 0.25, %v3396_v11  ;;  %v3406_v18 = vsel %vm1734_vm2, %v3400_v14, -inf }
 0xb12   : > { %3407 = vmax.xlane.f32.xlu1 %v3406_v18 }
 0xb13   : > { %v3412_v24 = vsel %vm1734_vm2, %v3402_v16, -inf }
 0xb14   : > { %3413 = vmax.xlane.f32.xlu2 %v3412_v24 }
 0xb1a   : > { %3410 = vmax.xlane.f32.xlu1 %v3409_v9 }
 0xb7d   : > { %v3405_v35 = vpop.xlane.xlu1 %3404 }
 0xb7e   : > { %v3415_v27 = vsub.f32 %v3399_v0, %v3405_v35 }
 0xb80   : > { %v3419_v46 = vmul.f32 1.442695, %v3415_v27 }
 0xb82   : > { %4124 = vpow2.f32 %v3419_v46 }
 0xb85   : > { %v3408_v62 = vpop.xlane.xlu1 %3407 }
 0xb86   : > { %v3416_v29 = vsub.f32 %v3400_v14, %v3408_v62 }
 0xb87   : > { %v3414_v26 = vpop.xlane.xlu2 %3413 }
 0xb88   : > { %v4125_v39 = vpop.eup %4124  ;;  %v3421_v40 = vmul.f32 1.442695, %v3416_v29  ;;  %v3418_v43 = vsub.f32 %v3402_v16, %v3414_v26 }
 0xb89   : > { %v3427_v44 = vsel %vm1734_vm2, %v4125_v39, 0.0 }
 0xb8a   : > { %4126 = vpow2.f32 %v3421_v40  ;;  %3428 = vadd.xlane.f32.xlu1 %v3427_v44  ;;  %v3425_v13 = vmul.f32 1.442695, %v3418_v43 }
 0xb8c   : > { %4128 = vpow2.f32 %v3425_v13 }
 0xb8d   : > { %v3411_v49 = vpop.xlane.xlu1 %3410 }
 0xb8e   : > { %v3417_v58 = vsub.f32 %v3401_v4, %v3411_v49 }
 0xb90   : > { %v4127_v20 = vpop.eup %4126  ;;  %v3423_v23 = vmul.f32 1.442695, %v3417_v58 }
 0xb91   : > { %v3430_v32 = vsel %vm1734_vm2, %v4127_v20, 0.0 }
 0xb92   : > { %4130 = vpow2.f32 %v3423_v23  ;;  %3431 = vadd.xlane.f32.xlu1 %v3430_v32  ;;  %v4129_v33 = vpop.eup %4128 }
 0xb93   : > { %v3436_v37 = vsel %vm1734_vm2, %v4129_v33, 0.0 }
 0xb98   : > { %v4131_v57 = vpop.eup %4130 }
 0xb99   : > { %v3433_v8 = vsel %vm1734_vm2, %v4131_v57, 0.0 }
 0xb9a   : > { %3437 = vadd.xlane.f32.xlu1 %v3436_v37  ;;  %3434 = vadd.xlane.f32.xlu0 %v3433_v8 }
 0xbfd   : > { %v3429_v5 = vpop.xlane.xlu1 %3428 }
 0xbfe   : > { %4132 = vrcp.f32 %v3429_v5 }
 0xc04   : > { %v4133_v6 = vpop.eup %4132 }
 0xc05   : > { %v3432_v30 = vpop.xlane.xlu1 %3431  ;;  %v3443_v42 = vmul.f32 %v4133_v6, %v4125_v39 }
 0xc06   : > { %4134 = vrcp.f32 %v3432_v30 }
 0xc07   : > { %v3447_v21 = vpack.c.bf16 %v3443_v42, %v3443_v42 }
 0xc09   : > { %v3453_v55 = vunpack.c.l.b16 %v3447_v21 }
 0xc0c   : > { %v4135_v51 = vpop.eup %4134 }
 0xc0d   : > { %v3444_v34 = vmul.f32 %v4135_v51, %v4127_v20  ;;  %v3435_v15 = vpop.xlane.xlu0 %3434  ;;  %v3438_v36 = vpop.xlane.xlu1 %3437 }
 0xc0e   : > { %4136 = vrcp.f32 %v3435_v15 }
 0xc0f   : > { %4138 = vrcp.f32 %v3438_v36  ;;  %v3448_v56 = vpack.c.bf16 %v3444_v34, %v3444_v34 }
 0xc11   : > { %v3454_v60 = vunpack.c.l.b16 %v3448_v56 }
 0xc13   : > { %v3455_v7 = vpack.c.b16 %v3454_v60, %v3453_v55 }
 0xc14   : > { %v4137_v25 = vpop.eup %4136 }
 0xc15   : > { %v4139_v54 = vpop.eup %4138  ;;  %v3445_v28 = vmul.f32 %v4137_v25, %v4131_v57  ;;  %v3457_v61 = vsel %vm1734_vm2, %v3455_v7, 0 }
 0xc16   : > { %v3446_v2 = vmul.f32 %v4139_v54, %v4129_v33  ;;  %3466 = vmatpush.bf16.xpose.msra.mxu0 %v3457_v61 }
 0xc17   : > { %v3449_v1 = vpack.c.bf16 %v3445_v28, %v3445_v28 }
 0xc18   : > { %v3450_v52 = vpack.c.bf16 %v3446_v2, %v3446_v2 }
 0xc19   : > { %v3475_v48 = vunpack.c.l.b16 %v3449_v1 }
 0xc1a   : > { %v3476_v38 = vunpack.c.l.b16 %v3450_v52 }
 0xc1c   : > { %v3477_v17 = vpack.c.b16 %v3476_v38, %v3475_v48 }
 0xc1d   : > { %3911 = vmatmul.msk.bf16.vlgmr.msra.gmra.mxu0 %vm1734_vm2, %v4865_v19 }
 0xc1e   : > { %v3479_v63 = vsel %vm1734_vm2, %v3477_v17, 0 }
 0xc1f   : > { %3488 = vmatpush.bf16.xpose.msra.mxu1 %v3479_v63 }
 0xc26   : > { %3912 = vmatmul.msk.bf16.vlgmr.msra.gmra.mxu1 %vm1734_vm2, %v4869_v53 }
 0xc9a   : > { %v3468_v50 = vpop.f32.mrf.mxu0 }
 0xca2   : > { %v3470_v10 = vpop.f32.mrf.mxu0 }
 0xca3   : > { %v3490_v41 = vpop.f32.mrf.mxu1 }
 0xca4   : > { %v4074_v0 = vpack.i.bf16 %v3490_v41, %v3468_v50 }
 0xca6   : > { %4075 = vxpose.xlu0.b32.start [1/2] (short) (narrow) %v4074_v0, 16 }
 0xcab   : > { %v3492_v12 = vpop.f32.mrf.mxu1 }
 0xcac   : > { %v4076_v45 = vpack.i.bf16 %v3492_v12, %v3470_v10 }
 0xcae   : > { %4077 = vxpose.xlu0.b32.end [2/2] (short) (narrow) %v4076_v45, 16 }
 0xd4a   : > { %v4078_v14 = vpop.trf.xlu0 }
 0xd4b   : > { %v4082_v11 = vunpack.i.h.bf16 %v4078_v14  ;;  %v4079_v16 = vunpack.i.l.bf16 %v4078_v14 }
 0xd4d   : > { %v3569_v18 = vrot.slane %v4082_v11, 4  ;;  %v3574_v19 = vperm.slane %v4082_v11, %v4270_v31  ;;  %v3559_v24 = vrot.slane %v4079_v16, 4  ;;  %v3564_v4 = vperm.slane %v4079_v16, %v4270_v31 }
 0xd4f   : > { %v3570_v9 = vsel %vm398_vm1, 0.0, %v3569_v18  ;;  %v3579_v53 = vrot.slane %v3574_v19, 4  ;;  %v3560_v35 = vsel %vm398_vm1, 0.0, %v3559_v24  ;;  %v3581_v27 = vrot.slane %v3564_v4, 4 }
 0xd50   : > { %v3578_v46 = vperm.slane %v3570_v9, %v4270_v31  ;;  %v3568_v62 = vperm.slane %v3560_v35, %v4270_v31 }
 0xd51   : > { %v3580_v29 = vsel %vm398_vm1, %v3579_v53, %v3564_v4  ;;  %v3582_v26 = vsel %vm398_vm1, %v3574_v19, %v3581_v27 }
 0xd52   : > { %v3591_v39 = vrot.slane %v3578_v46, 4  ;;  %v3586_v40 = vperm.slane %v3580_v29, %v4278_v47  ;;  %v3590_v43 = vperm.slane %v3582_v26, %v4278_v47  ;;  %v3593_v44 = vrot.slane %v3568_v62, 4  ;;  %v4083_v13 = vpop.trf.xlu0 }
 0xd53   : > { %v4087_v49 = vunpack.i.h.bf16 %v4083_v13  ;;  %v4084_v58 = vunpack.i.l.bf16 %v4083_v13 }
 0xd54   : > { %v3592_v20 = vsel %vm398_vm1, %v3591_v39, %v3568_v62  ;;  %v3594_v23 = vsel %vm398_vm1, %v3578_v46, %v3593_v44  ;;  %v3603_v32 = vrot.slane %v3586_v40, 4  ;;  %v3605_v33 = vrot.slane %v3590_v43, 4 }
 0xd55   : > { %v3598_v57 = vperm.slane %v3592_v20, %v4278_v47  ;;  %v3602_v37 = vperm.slane %v3594_v23, %v4278_v47  ;;  %v3621_v8 = vrot.slane %v4087_v49, 4  ;;  %v3626_v5 = vperm.slane %v4087_v49, %v4270_v31 }
 0xd56   : > { %v3606_v30 = vsel %vm398_vm1, 0.0, %v3605_v33  ;;  %v3611_v6 = vrot.slane %v4084_v58, 4  ;;  %v3616_v56 = vperm.slane %v4084_v58, %v4270_v31  ;;  %v3604_v55 = vsel %vm398_vm1, 0.0, %v3603_v32 }
 0xd57   : > { %v3609_v42 = vrot.slane %v3602_v37, 4  ;;  %v3668_v51 = vrot.slane %v3606_v30, 4  ;;  %v3622_v34 = vsel %vm398_vm1, 0.0, %v3621_v8  ;;  %v3631_v36 = vrot.slane %v3626_v5, 4 }
 0xd58   : > { %v3630_v15 = vperm.slane %v3622_v34, %v4270_v31  ;;  %v3612_v21 = vsel %vm398_vm1, 0.0, %v3611_v6  ;;  %v3607_v60 = vrot.slane %v3598_v57, 4  ;;  %v3633_v2 = vrot.slane %v3616_v56, 4 }
 0xd59   : > { %v3610_v7 = vsel %vm398_vm1, 0.0, %v3609_v42  ;;  %v3620_v25 = vperm.slane %v3612_v21, %v4270_v31  ;;  %v3632_v61 = vsel %vm398_vm1, %v3631_v36, %v3616_v56  ;;  %v3669_v48 = vsel %vm398_vm1, %v3668_v51, %v3604_v55 }
 0xd5a   : > { %v3679_v54 = vrot.slane %v3610_v7, 4  ;;  %v3643_v28 = vrot.slane %v3630_v15, 4  ;;  %v3638_v1 = vperm.slane %v3632_v61, %v4278_v47  ;;  %v3634_v38 = vsel %vm398_vm1, %v3626_v5, %v3633_v2 }
 0xd5b   : > { %v3645_v52 = vrot.slane %v3620_v25, 4  ;;  %v3673_v63 = vperm.slane %v3669_v48, %v4270_v31  ;;  %v3642_v50 = vperm.slane %v3634_v38, %v4278_v47  ;;  %v3608_v10 = vsel %vm398_vm1, 0.0, %v3607_v60 }
 0xd5c   : > { %v3644_v17 = vsel %vm398_vm1, %v3643_v28, %v3620_v25  ;;  %v3663_v12 = vsel %vm398_vm1, %v3605_v33, %v3586_v40  ;;  %v3674_v14 = vsel %vm398_vm1, %v3609_v42, %v3598_v57  ;;  %v3680_v11 = vsel %vm398_vm1, %v3679_v54, %v3608_v10 }
 0xd5d   : > { %v3646_v41 = vsel %vm398_vm1, %v3630_v15, %v3645_v52  ;;  %v3650_v0 = vperm.slane %v3644_v17, %v4278_v47  ;;  %v3655_v16 = vrot.slane %v3638_v1, 4  ;;  %v3657_v18 = vrot.slane %v3642_v50, 4 }
 0xd5e   : > { %v3654_v45 = vperm.slane %v3646_v41, %v4278_v47  ;;  %v3684_v19 = vperm.slane %v3680_v11, %v4270_v31  ;;  %v3685_v24 = vrot.slane %v3673_v63, 4  ;;  %v3667_v35 = vperm.slane %v3663_v12, %v4270_v31 }
 0xd5f   : > { %v3659_v4 = vrot.slane %v3650_v0, 4  ;;  %v3658_v53 = vsel %vm398_vm1, 0.0, %v3657_v18  ;;  %v3678_v62 = vperm.slane %v3674_v14, %v4270_v31  ;;  %v3656_v26 = vsel %vm398_vm1, 0.0, %v3655_v16 }
 0xd60   : > { %v3661_v9 = vrot.slane %v3654_v45, 4  ;;  %v3706_v46 = vrot.slane %v3658_v53, 4  ;;  %v3691_v29 = vrot.slane %v3684_v19, 4  ;;  %v3686_v40 = vsel %vm398_vm1, %v3685_v24, %v3667_v35 }
 0xd61   : > { %v3660_v43 = vsel %vm398_vm1, 0.0, %v3659_v4  ;;  %v3701_v44 = vsel %vm398_vm1, %v3657_v18, %v3638_v1  ;;  %v3690_v33 = vperm.slane %v3686_v40, %v4278_v47 }
 0xd62   : > { %v3662_v27 = vsel %vm398_vm1, 0.0, %v3661_v9  ;;  %v3707_v13 = vsel %vm398_vm1, %v3706_v46, %v3656_v26  ;;  %v3692_v49 = vsel %vm398_vm1, %v3691_v29, %v3678_v62  ;;  %v3712_v23 = vsel %vm398_vm1, %v3661_v9, %v3650_v0 }
 0xd63   : > { %v3717_v39 = vrot.slane %v3662_v27, 4  ;;  %v3696_v58 = vperm.slane %v3692_v49, %v4278_v47  ;;  %v3711_v20 = vperm.slane %v3707_v13, %v4270_v31  ;;  %v3705_v37 = vperm.slane %v3701_v44, %v4270_v31  ;;  %v4100_v49 = vld [vmem:[%s5177_s7] ss:$0 sm:$0xff] }
 0xd64   : > { %v3716_v30 = vperm.slane %v3712_v23, %v4270_v31  ;;  %v3699_v34 = vrot.slane %v3690_v33, 4 }
 0xd65   : > { %v3718_v32 = vsel %vm398_vm1, %v3717_v39, %v3660_v43  ;;  %v3723_v8 = vrot.slane %v3711_v20, 4  ;;  %v3697_v5 = vrot.slane %v3696_v58, 4  ;;  %v4101_v20 = vld [vmem:[%s5178_s8] ss:$0 sm:$0xff] }
 0xd66   : > { %v3722_v57 = vperm.slane %v3718_v32, %v4270_v31  ;;  %v3700_v60 = vsel %vm398_vm1, %v3696_v58, %v3699_v34 }
 0xd67   : > { %v3724_v42 = vsel %vm398_vm1, %v3723_v8, %v3705_v37  ;;  %v3698_v51 = vsel %vm398_vm1, %v3697_v5, %v3690_v33 }
 0xd68   : > { %v3729_v6 = vrot.slane %v3722_v57, 4  ;;  %v3728_v15 = vperm.slane %v3724_v42, %v4278_v47 }
 0xd6a   : > { %v3730_v36 = vsel %vm398_vm1, %v3729_v6, %v3716_v30  ;;  %v3737_v56 = vrot.slane %v3728_v15, 4 }
 0xd6b   : > { %v3734_v21 = vperm.slane %v3730_v36, %v4278_v47  ;;  %v4099_v47 = vld [vmem:[%s5176_s6] ss:$0 sm:$0xff] }
 0xd6d   : > { %v3735_v55 = vrot.slane %v3734_v21, 4  ;;  %v3738_v7 = vsel %vm398_vm1, %v3734_v21, %v3737_v56 }
 0xd6e   : > { %v4088_v25 = vpack.i.bf16 %v3738_v7, %v3700_v60 }
 0xd6f   : > { %v3736_v31 = vsel %vm398_vm1, %v3735_v55, %v3728_v15 }
 0xd70   : > { %4089 = vrot.lane.b32.xlu1 %v4088_v25, %s4158_s22 }
 0xde2   : > { %v4090_v54 = vpop.permute.xlu1 %4089 }
 0xde3   : > { %v4092_v28 = vunpack.i.h.bf16 %v4090_v54  ;;  %v4091_v61 = vunpack.i.l.bf16 %v4090_v54 }
 0xde5   : > { %v3748_v2 = vsel %vm1734_vm2, %v3736_v31, %v4092_v28  ;;  %v3747_v1 = vsel %vm1734_vm2, %v3698_v51, %v4091_v61 }
 0xde6   : > { %v3753_v52 = vpack.c.bf16 %v3748_v2, %v3747_v1 }
 0xde8   : > { %3913 = vmatmul.msk.bf16.vlgmr.msrb.gmra.mxu2 %vm347_vm0, %v3753_v52 }
 0xe6b   : > { %v3772_v48 = vpop.f32.mrf.mxu2 }
 0xe6c   : > { %v3773_v38 = vadd.f32 %v4099_v47, %v3772_v48 }
 0xe6e   : > { %v3777_v17 = vadd.f32 %v3773_v38, %v4986_v22 }
 0xe70   : > { %v3781_v63 = vsel %vm347_vm0, %v3777_v17, 0.0 }
 0xe71   : > { %3782 = vadd.xlane.f32.xlu2 %v3781_v63 }
 0xe73   : > { %v3774_v50 = vpop.f32.mrf.mxu2 }
 0xe74   : > { %v3775_v41 = vadd.f32 %v4099_v47, %v3774_v50 }
 0xe76   : > { %v3778_v0 = vadd.f32 %v3775_v41, %v4988_v59 }
 0xe78   : > { %v3784_v10 = vsel %vm347_vm0, %v3778_v0, 0.0 }
 0xe79   : > { %3785 = vadd.xlane.f32.xlu2 %v3784_v10 }
 0xee4   : > { %v3783_v12 = vpop.xlane.xlu2 %3782 }
 0xee5   : > { %v3787_v45 = vmul.f32 %v3783_v12, %v4960_v3 }
 0xee7   : > { %v3789_v14 = vsub.f32 %v3777_v17, %v3787_v45 }
 0xee9   : > { %v3791_v11 = vmul.f32 %v3789_v14, %v3789_v14 }
 0xeeb   : > { %v3793_v16 = vsel %vm347_vm0, %v3791_v11, 0.0 }
 0xeec   : > { %3794 = vadd.xlane.f32.xlu1 %v3793_v16  ;;  %v3786_v18 = vpop.xlane.xlu2 %3785 }
 0xeed   : > { %v3788_v22 = vmul.f32 %v3786_v18, %v4960_v3 }
 0xeef   : > { %v3790_v19 = vsub.f32 %v3778_v0, %v3788_v22 }
 0xef1   : > { %v3792_v24 = vmul.f32 %v3790_v19, %v3790_v19 }
 0xef3   : > { %v3796_v4 = vsel %vm347_vm0, %v3792_v24, 0.0 }
 0xef4   : > { %3797 = vadd.xlane.f32.xlu2 %v3796_v4 }
 0xf5f   : > { %v3795_v59 = vpop.xlane.xlu1 %3794 }
 0xf60   : > { %v3799_v9 = vmul.f32 %v3795_v59, %v4960_v3 }
 0xf62   : > { %v3801_v53 = vadd.f32 1e-05, %v3799_v9 }
 0xf64   : > { %4140 = vrsqrt.f32 %v3801_v53  ;;  %vm3809_vm11 = vweird.f32 %v3801_v53 }
 0xf67   : > { %v3798_v35 = vpop.xlane.xlu2 %3797 }
 0xf68   : > { %v3800_v27 = vmul.f32 %v3798_v35, %v4960_v3 }
 0xf6a   : > { %v4141_v46 = vpop.eup %4140  ;;  %v3802_v62 = vadd.f32 1e-05, %v3800_v27 }
 0xf6b   : > { %v3804_v29 = vmul.f32 %v4141_v46, %v3801_v53  ;;  %vm3810_vm10 = vweird.f32 %v4141_v46 }
 0xf6c   : > { %4142 = vrsqrt.f32 %v3802_v62  ;;  %vm3811_vm12 = vmor %vm3809_vm11, %vm3810_vm10  ;;  %vm3819_vm14 = vweird.f32 %v3802_v62 }
 0xf6d   : > { %v3805_v26 = vmul.f32 %v4141_v46, %v3804_v29 }
 0xf6f   : > { %v3806_v39 = vmul.f32 0.5, %v3805_v26 }
 0xf71   : > { %v3807_v40 = vsub.f32 1.5, %v3806_v39 }
 0xf72   : > { %v4143_v43 = vpop.eup %4142 }
 0xf73   : > { %v3808_v44 = vmul.f32 %v4141_v46, %v3807_v40  ;;  %v3814_v13 = vmul.f32 %v4143_v43, %v3802_v62  ;;  %vm3820_vm13 = vweird.f32 %v4143_v43 }
 0xf74   : > { %vm3821_vm15 = vmor %vm3819_vm14, %vm3820_vm13 }
 0xf75   : > { %v3812_v58 = vsel %vm3811_vm12, %v4141_v46, %v3808_v44  ;;  %v3815_v3 = vmul.f32 %v4143_v43, %v3814_v13 }
 0xf76   : > { %v3823_v23 = vmul.f32 %v3812_v58, %v3789_v14 }
 0xf77   : > { %v3816_v32 = vmul.f32 0.5, %v3815_v3 }
 0xf78   : > { %v3828_v33 = vmul.f32 %v4100_v49, %v3823_v23 }
 0xf79   : > { %v3817_v57 = vsub.f32 1.5, %v3816_v32 }
 0xf7a   : > { %v3833_v37 = vadd.f32 %v4101_v20, %v3828_v33 }
 0xf7b   : > { %v3818_v8 = vmul.f32 %v4143_v43, %v3817_v57 }
 0xf7c   : > { %3835 = vst.msk [vmem:[%s332_s15] sm:$0xff] %vm347_vm0, %v3833_v37 }
 0xf7d   : > { %v3822_v5 = vsel %vm3821_vm15, %v4143_v43, %v3818_v8 }
 0xf7e   : > { %v3824_v30 = vmul.f32 %v3822_v5, %v3790_v19 }
 0xf80   : > { %v3829_v6 = vmul.f32 %v4100_v49, %v3824_v30 }
 0xf82   : > { %v3834_v42 = vadd.f32 %v4101_v20, %v3829_v6 }
 0xf84   : > { %3836 = vst.msk [vmem:[%s332_s15 + $0x8] sm:$0xff] %vm347_vm0, %v3834_v42 }
 0xf85 PF: > { %s19_s30 = sadd.s32 1, %s4152_s30  }
 0xf86   : > { %p16_p4 = scmp.ge.s32.totalorder %s19_s30, 4  }
 0xf88   :  { %18 = sbr.rel (!%p16_p4) target bundleno = 1 (0x1), region = 86 }

// kernel: forward.9
= control target key start
LH: loop header
LB: loop body
LE: loop exit
PB: predicated region body
PF: predicated region fallthrough
CT: control target
= control target key end

     0   :  { %s2116_s15 = smov 0   ;;  %s2118_s16 = smov 0   ;;  %s3072_s0 = inlined_call_operand.vmem [shape: f32[2,6,6,32], index: 0, kind: input, shape index: {}]   ;;  %s3073_s1 = inlined_call_operand.vmem [shape: f32[2,2,3,9,1,32], index: 1, kind: input, shape index: {}]   ;;  %s3074_s2 = inlined_call_operand.vmem [shape: f32[2,32], index: 2, kind: input, shape index: {}]   ;;  %s3075_s3 = inlined_call_operand.vmem [shape: f32[2,1], index: 3, kind: input, shape index: {}]   ;;  %s3076_s4 = inlined_call_operand.vmem [shape: f32[2,2,16], index: 4, kind: output, shape index: {}]  }
   0x1   :  { %s2120_s17 = smov 0  }
   0x2 LB: > { %s1920_s18 = sadd.s32 4294967295, %s2088_s17   ;;  %s2133_s19 = sadd.s32 1, %s2088_s17   ;;  %s2088_s17 = sphi %s2120_s17, %s3141_s17   ;;  %s2084_s16 = sphi %s2118_s16, %s3140_s16   ;;  %s2080_s15 = sphi %s2116_s15, %s3139_s15  }
   0x3   : > { %s44_s20 = ssub.s32 %s2088_s17, %s2133_s19  ;;  %s47_s21 = sadd.s32 1, %s2084_s16 }
   0x4   : > { %p45_p0 = scmp.eq.s32.totalorder %s44_s20, 0  ;;  %p54_p1 = scmp.ne.s32.totalorder %s2084_s16, %s2080_s15 }
   0x5   : > { %p55_p2 = scmp.eq.s32.totalorder %s2088_s17, 0  ;;  %p1923_p4 = scmp.ge.s32.totalorder %s2088_s17, 2 }
   0x6   : > { %s2142_s22 = scalar_select %p45_p0, %s2084_s16, %s47_s21  }
   0x7   : > { %p56_p3 = por %p55_p2, %p54_p1  ;;  %154 = sbr.rel (%p1923_p4) target bundleno = 25 (0x19), region = 24 }
   0xc   : > { %165 = sbr.rel (!%p56_p3) target bundleno = 25 (0x19), region = 32  ;;  %s167_s23 = sand.u32 (%p56_p3), 1, %s2084_s16  }
   0xd   : > { %s1973_s24 = smul.u32 (%p56_p3), 27, %s2088_s17 }
   0xe   : > { %s1972_s25 = smul.u32 (%p56_p3), 54, %s167_s23 }
   0xf   : > { %s171_s28 = scalar_lea.vmem (%p56_p3), %s3073_s1, %s1973_s24 }
  0x10   : > { %v186_v0 = vld [vmem:[%s171_s28] sm:$0xff] (%p56_p3)  ;;  %v188_v1 = vld [vmem:[%s171_s28 + $0x8] sm:$0xff] (%p56_p3)  ;;  %v190_v2 = vld [vmem:[%s171_s28 + $0x10] sm:$0xff] (%p56_p3)  ;;  %s169_s29 = scalar_lea.vmem (%p56_p3), [#allocation2], %s1972_s25 }
  0x11   : > { %187 = vst [vmem:[%s169_s29] sm:$0xff] %v186_v0  ;;  %v192_v3 = vld [vmem:[%s171_s28 + $0x36] sm:$0xff]  ;;  %v194_v4 = vld [vmem:[%s171_s28 + $0x3e] sm:$0xff]  ;;  %v196_v5 = vld [vmem:[%s171_s28 + $0x46] sm:$0xff] }
  0x12   : > { %189 = vst [vmem:[%s169_s29 + $0x8] sm:$0xff] %v188_v1  ;;  %v1924_v6 = vld [vmem:[%s171_s28 + $0x18] sm:$0x7]  ;;  %v1926_v7 = vld [vmem:[%s171_s28 + $0x4e] sm:$0x7] }
  0x13   : > { %191 = vst [vmem:[%s169_s29 + $0x10] sm:$0xff] %v190_v2 }
  0x14   : > { %193 = vst [vmem:[%s169_s29 + $0x1b] sm:$0xff] %v192_v3 }
  0x15   : > { %195 = vst [vmem:[%s169_s29 + $0x23] sm:$0xff] %v194_v4 }
  0x16   : > { %197 = vst [vmem:[%s169_s29 + $0x2b] sm:$0xff] %v196_v5 }
  0x17   : > { %1925 = vst [vmem:[%s169_s29 + $0x18] sm:$0x7] %v1924_v6 }
  0x18   : > { %1927 = vst [vmem:[%s169_s29 + $0x33] sm:$0x7] %v1926_v7 }
  0x19 PF: > { %p1928_p5 = scmp.ge.s32.totalorder %s2088_s17, 1  ;;  %p214_p6 = scmp.lt.s32.totalorder %s2088_s17, 3 }
  0x1b   : > { %p215_p7 = pnand %p1928_p5, %p214_p6 }
  0x1d   : > { %218 = sbr.rel (%p215_p7) target bundleno = 570 (0x23a), region = 58 }
  0x22   : > { %v1067_v8 = vld [vmem:[%s3075_s3] sm:$0x1]  ;;  %s221_s6 = sand.u32 1, %s2080_s15   ;;  %p250_p8 = scmp.lt.s32.totalorder %s1920_s18, 1  ;;  %v2090_v9 = vmov 0   ;;  %vm273_vm0 = vcmask 1042432  }
  0x23   : > { %2001 = vset.pattern.permute.xlu0 %v2090_v9  ;;  %s1974_s7 = smul.u32 54, %s221_s6  ;;  %2002 = vset.pattern.permute.xlu1 %v2090_v9  ;;  %vm274_vm1 = vcmask 1046532   ;;  %vm296_vm3 = vcmask 1041408   ;;  %vm297_vm4 = vcmask 1045508   ;;  %vm944_vm6 = vcmask 261120  }
  0x24   : > { %1070 = vperm.xlu0 %2001, %v1067_v8   ;;  %s3143_s18 = smov (!%p250_p8, %s1920_s18), 1  ;;  %2003 = vset.pattern.permute.xlu2 %v2090_v9  ;;  %vm2185_vm2 = vmor %vm273_vm0, %vm274_vm1  ;;  %vm1826_vm7 = vcmask 130112   ;;  %vm1841_vm8 = vcmask 1040384   ;;  %vm1843_vm9 = vcmask 123904  }
  0x25   : > { %s1975_s8 = smul.u32 48, %s3143_s18  ;;  %s2163_s9 = scalar_lea.vmem [#allocation2], %s1974_s7  ;;  %vm2222_vm5 = vmor %vm296_vm3, %vm297_vm4 }
  0x26   : > { %v2004_v21 = vld [vmem:[%s2163_s9] ss:$0 sm:$0xff]  ;;  %v2005_v26 = vld [vmem:[%s2163_s9 + $0x1] ss:$0 sm:$0xff]  ;;  %v2006_v35 = vld [vmem:[%s2163_s9 + $0x2] ss:$0 sm:$0xff] }
  0x27   : > { %s2168_s12 = scalar_lea.vmem %s3072_s0, %s1975_s8  ;;  %v2007_v36 = vld [vmem:[%s2163_s9 + $0x3] ss:$0 sm:$0xff]  ;;  %v451_v37 = vrot.slane %v2004_v21, 4  ;;  %v452_v39 = vrot.slane %v2005_v26, 4  ;;  %v453_v50 = vrot.slane %v2006_v35, 4  ;;  %s1930_s23 = sshll.u32 %s3143_s18, 1 }
  0x28   : > { %v2171_v10 = vld [vmem:[%s2168_s12] sm:$0x3f]  ;;  %v2174_v11 = vld [vmem:[%s2168_s12 + $0x10] sm:$0x3f]  ;;  %v2180_v16 = vld [vmem:[%s2168_s12 + $0x8] sm:$0x3f]  ;;  %s258_s26 = scalar_lea.vmem %s3076_s4, %s1930_s23 }
  0x29   : > { %v269_v12 = vrot.slane %v2171_v10, 4  ;;  %v271_v13 = vrot.slane %v2174_v11, 4  ;;  %v1931_v14 = vrot.slane %v2171_v10, 9  ;;  %3090 = vst [vmem:[#allocation3_spill] sm:$0xff] %v2180_v16  ;;  %v2183_v17 = vld [vmem:[%s2168_s12 + $0x18] sm:$0x3f]  ;;  %v505_v27 = vmul.f32 %v2004_v21, %v2171_v10 }
  0x2a   : > { %v1933_v19 = vrot.slane %v2174_v11, 9  ;;  %v270_v22 = vrot.slane %v2180_v16, 4  ;;  %v272_v23 = vrot.slane %v2183_v17, 4  ;;  %v507_v28 = vmul.f32 %v2004_v21, %v2174_v11  ;;  %v2008_v60 = vld [vmem:[%s2163_s9 + $0x4] ss:$0 sm:$0xff] }
  0x2b   : > { %v278_v15 = vrot.slane %v269_v12, 5  ;;  %v286_v20 = vrot.slane %v271_v13, 5  ;;  %v1932_v29 = vrot.slane %v2180_v16, 9  ;;  %v1934_v32 = vrot.slane %v2183_v17, 9  ;;  %721 = vst [vmem:[#allocation1] ss:$2 sm:$0xff] %v505_v27 }
  0x2c   : > { %v282_v31 = vrot.slane %v270_v22, 5  ;;  %v290_v33 = vrot.slane %v272_v23, 5  ;;  %725 = vst [vmem:[#allocation1 + $0x10] ss:$2 sm:$0xff] %v507_v28  ;;  %v1935_v38 = vrot.slane %v2171_v10, 10  ;;  %v301_v42 = vrot.slane %v269_v12, 6 }
  0x2d   : > { %v2195_v24 = vsel %vm2185_vm2, %v1931_v14, %v278_v15  ;;  %v2199_v25 = vsel %vm2185_vm2, %v1933_v19, %v286_v20  ;;  %v1936_v43 = vrot.slane %v2180_v16, 10  ;;  %v305_v44 = vrot.slane %v270_v22, 6  ;;  %v2249_v62 = vld [vmem:[%s2168_s12 + $0x20] sm:$0x3f] }
  0x2e   : > { %3093 = vst [vmem:[#allocation4_spill] sm:$0xff] %v2195_v24  ;;  %v509_v30 = vmul.f32 %v2005_v26, %v2195_v24  ;;  %v511_v34 = vmul.f32 %v2005_v26, %v2199_v25  ;;  %v2213_v40 = vsel %vm2185_vm2, %v1932_v29, %v282_v31  ;;  %v2217_v41 = vsel %vm2185_vm2, %v1934_v32, %v290_v33  ;;  %v2009_v8 = vld [vmem:[%s2163_s9 + $0x5] ss:$0 sm:$0xff]  ;;  %v2010_v22 = vld [vmem:[%s2163_s9 + $0x6] ss:$0 sm:$0xff] }
  0x2f   : > { %v1937_v45 = vrot.slane %v2174_v11, 10  ;;  %v309_v46 = vrot.slane %v271_v13, 6  ;;  %v1938_v47 = vrot.slane %v2183_v17, 10  ;;  %v313_v49 = vrot.slane %v272_v23, 6 }
  0x30   : > { %731 = vst [vmem:[#allocation1 + $0x20] ss:$2 sm:$0xff] %v509_v30  ;;  %v454_v51 = vrot.slane %v2007_v36, 4  ;;  %v506_v52 = vmul.f32 %v451_v37, %v2180_v16  ;;  %v508_v53 = vmul.f32 %v451_v37, %v2183_v17  ;;  %v510_v54 = vmul.f32 %v452_v39, %v2213_v40  ;;  %v2279_v30 = vld [vmem:[%s2168_s12 + $0x28] sm:$0x3f] }
  0x31   : > { %735 = vst [vmem:[#allocation1 + $0x30] ss:$2 sm:$0xff] %v511_v34  ;;  %v512_v55 = vmul.f32 %v452_v39, %v2217_v41  ;;  %v2232_v56 = vsel %vm2222_vm5, %v1935_v38, %v301_v42  ;;  %v2236_v57 = vsel %vm2222_vm5, %v1936_v43, %v305_v44  ;;  %v2240_v58 = vsel %vm2222_vm5, %v1937_v45, %v309_v46  ;;  %v2011_v38 = vld [vmem:[%s2163_s9 + $0x7] ss:$0 sm:$0xff] }
  0x32   : > { %723 = vst [vmem:[#allocation1 + $0x1] ss:$2 sm:$0xff] %v506_v52  ;;  %v2244_v59 = vsel %vm2222_vm5, %v1938_v47, %v313_v49  ;;  %v513_v61 = vmul.f32 %v2006_v35, %v2232_v56  ;;  %v514_v63 = vmul.f32 %v453_v50, %v2236_v57  ;;  %v515_v0 = vmul.f32 %v2006_v35, %v2240_v58  ;;  %v2012_v52 = vld [vmem:[%s2163_s9 + $0x8] ss:$0 sm:$0xff] }
  0x33   : > { %3096 = vst [vmem:[#allocation5_spill] sm:$0xff] %v2232_v56  ;;  %v516_v1 = vmul.f32 %v453_v50, %v2244_v59  ;;  %v517_v3 = vmul.f32 %v2007_v36, %v2180_v16  ;;  %v518_v5 = vmul.f32 %v454_v51, %v2174_v11  ;;  %v320_v7 = vrot.slane %v2249_v62, 4 }
  0x34   : > { %727 = vst [vmem:[#allocation1 + $0x11] ss:$2 sm:$0xff] %v508_v53  ;;  %v455_v9 = vrot.slane %v2008_v60, 4  ;;  %v519_v12 = vmul.f32 %v2007_v36, %v2183_v17  ;;  %v1939_v13 = vrot.slane %v2249_v62, 9  ;;  %v520_v19 = vmul.f32 %v454_v51, %v2249_v62 }
  0x35   : > { %3097 = vst [vmem:[#allocation6_spill] sm:$0xff] %v2236_v57  ;;  %v323_v15 = vrot.slane %v320_v7, 5  ;;  %v1940_v20 = vrot.slane %v2249_v62, 10  ;;  %v328_v21 = vrot.slane %v320_v7, 6  ;;  %v521_v23 = vmul.f32 %v2008_v60, %v2213_v40 }
  0x36   : > { %733 = vst [vmem:[#allocation1 + $0x21] ss:$2 sm:$0xff] %v510_v54  ;;  %v456_v27 = vrot.slane %v2009_v8, 4  ;;  %v522_v28 = vmul.f32 %v455_v9, %v2199_v25  ;;  %v523_v29 = vmul.f32 %v2008_v60, %v2217_v41  ;;  %v525_v33 = vmul.f32 %v2009_v8, %v2236_v57 }
  0x37   : > { %737 = vst [vmem:[#allocation1 + $0x31] ss:$2 sm:$0xff] %v512_v55  ;;  %v2274_v26 = vsel %vm2185_vm2, %v1939_v13, %v323_v15  ;;  %v2287_v34 = vsel %vm2222_vm5, %v1940_v20, %v328_v21  ;;  %v332_v37 = vrot.slane %v2279_v30, 4  ;;  %v457_v39 = vrot.slane %v2010_v22, 4  ;;  %v2014_v21 = vld [vmem:[%s2163_s9 + $0xa] ss:$0 sm:$0xff] }
  0x38   : > { %v524_v32 = vmul.f32 %v455_v9, %v2274_v26  ;;  %v526_v35 = vmul.f32 %v456_v27, %v2240_v58  ;;  %v527_v42 = vmul.f32 %v2009_v8, %v2244_v59  ;;  %v528_v44 = vmul.f32 %v456_v27, %v2287_v34 }
  0x39   : > { %v2254_v2 = vld.sshfl [vmem:[#allocation1] sm:$0xff pattern:$0x75316420]  ;;  %v1941_v45 = vrot.slane %v2279_v30, 9  ;;  %v529_v46 = vmul.f32 %v2010_v22, %v2174_v11  ;;  %v335_v47 = vrot.slane %v332_v37, 5  ;;  %v458_v50 = vrot.slane %v2011_v38, 4 }
  0x3a   : > { %740 = vst [vmem:[#allocation1] ss:$2 sm:$0xff] %v513_v61  ;;  %v530_v51 = vmul.f32 %v457_v39, %v2183_v17  ;;  %v531_v53 = vmul.f32 %v2010_v22, %v2249_v62  ;;  %v532_v55 = vmul.f32 %v457_v39, %v2279_v30  ;;  %v533_v60 = vmul.f32 %v2011_v38, %v2199_v25 }
  0x3b   : > { %v2257_v4 = vld.sshfl [vmem:[#allocation1 + $0x10] sm:$0xff pattern:$0x75316420]  ;;  %741 = vst [vmem:[#allocation1 + $0x1] ss:$2 sm:$0xff] %v514_v63  ;;  %v2311_v61 = vsel %vm2185_vm2, %v1941_v45, %v335_v47  ;;  %v1942_v63 = vrot.slane %v2279_v30, 10  ;;  %v535_v8 = vmul.f32 %v2011_v38, %v2274_v26  ;;  %v539_v22 = vmul.f32 %v2012_v52, %v2287_v34 }
  0x3c   : > { %742 = vst [vmem:[#allocation1 + $0x10] ss:$2 sm:$0xff] %v515_v0  ;;  %v534_v0 = vmul.f32 %v458_v50, %v2217_v41  ;;  %v459_v7 = vrot.slane %v2012_v52, 4  ;;  %v536_v18 = vmul.f32 %v458_v50, %v2311_v61  ;;  %v545_v39 = vmul.f32 %v2014_v21, %v2195_v24 }
  0x3d   : > { %v2260_v6 = vld.sshfl [vmem:[#allocation1 + $0x20] sm:$0xff pattern:$0x75316420]  ;;  %743 = vst [vmem:[#allocation1 + $0x11] ss:$2 sm:$0xff] %v516_v1  ;;  %v340_v1 = vrot.slane %v332_v37, 6  ;;  %v547_v47 = vmul.f32 %v2014_v21, %v2199_v25 }
  0x3e   : > { %v2266_v14 = vld.sshfl [vmem:[#allocation1 + $0x30] sm:$0xff pattern:$0x75316420]  ;;  %746 = vst [vmem:[#allocation1 + $0x20] ss:$2 sm:$0xff] %v517_v3  ;;  %v538_v20 = vmul.f32 %v459_v7, %v2244_v59 }
  0x3f   : > { %747 = vst [vmem:[#allocation1 + $0x21] ss:$2 sm:$0xff] %v518_v5  ;;  %v2013_v5 = vld [vmem:[%s2163_s9 + $0x9] ss:$0 sm:$0xff]  ;;  %v2325_v13 = vsel %vm2222_vm5, %v1942_v63, %v340_v1 }
  0x40   : > { %748 = vst [vmem:[#allocation1 + $0x30] ss:$2 sm:$0xff] %v519_v12  ;;  %v537_v12 = vmul.f32 %v2012_v52, %v2240_v58  ;;  %v540_v27 = vmul.f32 %v459_v7, %v2325_v13 }
  0x41   : > { %749 = vst [vmem:[#allocation1 + $0x31] ss:$2 sm:$0xff] %v520_v19  ;;  %v460_v19 = vrot.slane %v2013_v5, 4 }
  0x42   : > { %v2281_v31 = vld.sshfl [vmem:[#allocation1] sm:$0xff pattern:$0x75316420]  ;;  %3098 = vst [vmem:[#allocation7_spill] sm:$0xff] %v2311_v61 }
  0x43   : > { %752 = vst [vmem:[#allocation1] ss:$2 sm:$0xff] %v521_v23  ;;  %v542_v48 = vmul.f32 %v460_v19, %v2180_v16  ;;  %v544_v38 = vmul.f32 %v460_v19, %v2183_v17  ;;  %v2018_v19 = vld [vmem:[%s2163_s9 + $0xe] ss:$0 sm:$0xff] }
  0x44   : > { %v2290_v36 = vld.sshfl [vmem:[#allocation1 + $0x10] sm:$0xff pattern:$0x75316420]  ;;  %753 = vst [vmem:[#allocation1 + $0x1] ss:$2 sm:$0xff] %v522_v28  ;;  %v541_v28 = vmul.f32 %v2013_v5, %v2171_v10 }
  0x45   : > { %754 = vst [vmem:[#allocation1 + $0x10] ss:$2 sm:$0xff] %v523_v29 }
  0x46   : > { %v2295_v43 = vld.sshfl [vmem:[#allocation1 + $0x20] sm:$0xff pattern:$0x75316420]  ;;  %755 = vst [vmem:[#allocation1 + $0x11] ss:$2 sm:$0xff] %v524_v32 }
  0x47   : > { %758 = vst [vmem:[#allocation1 + $0x20] ss:$2 sm:$0xff] %v525_v33  ;;  %v2015_v32 = vld [vmem:[%s2163_s9 + $0xb] ss:$0 sm:$0xff]  ;;  %v461_v33 = vrot.slane %v2014_v21, 4 }
  0x48   : > { %759 = vst [vmem:[#allocation1 + $0x21] ss:$2 sm:$0xff] %v526_v35  ;;  %v2300_v49 = vld.sshfl [vmem:[#allocation1 + $0x30] sm:$0xff pattern:$0x75316420]  ;;  %v543_v35 = vmul.f32 %v2013_v5, %v2174_v11  ;;  %v549_v52 = vmul.f32 %v2015_v32, %v2232_v56 }
  0x49   : > { %760 = vst [vmem:[#allocation1 + $0x30] ss:$2 sm:$0xff] %v527_v42  ;;  %v546_v45 = vmul.f32 %v461_v33, %v2213_v40 }
  0x4a   : > { %761 = vst [vmem:[#allocation1 + $0x31] ss:$2 sm:$0xff] %v528_v44  ;;  %v462_v44 = vrot.slane %v2015_v32, 4 }
  0x4b   : > { %v2305_v54 = vld.sshfl [vmem:[#allocation1] sm:$0xff pattern:$0x75316420]  ;;  %3099 = vst [vmem:[#allocation8_spill] sm:$0xff] %v2325_v13 }
  0x4c   : > { %764 = vst [vmem:[#allocation1] ss:$2 sm:$0xff] %v529_v46  ;;  %v2016_v46 = vld [vmem:[%s2163_s9 + $0xc] ss:$0 sm:$0xff]  ;;  %v552_v5 = vmul.f32 %v462_v44, %v2244_v59 }
  0x4d   : > { %765 = vst [vmem:[#allocation1 + $0x1] ss:$2 sm:$0xff] %v530_v51  ;;  %v2315_v3 = vld.sshfl [vmem:[#allocation1 + $0x10] sm:$0xff pattern:$0x75316420]  ;;  %v548_v51 = vmul.f32 %v461_v33, %v2217_v41  ;;  %v463_v63 = vrot.slane %v2016_v46, 4  ;;  %v553_v7 = vmul.f32 %v2016_v46, %v2180_v16 }
  0x4e   : > { %766 = vst [vmem:[#allocation1 + $0x10] ss:$2 sm:$0xff] %v531_v53  ;;  %v550_v53 = vmul.f32 %v462_v44, %v2236_v57  ;;  %v465_v33 = vrot.slane %v2018_v19, 4  ;;  %v561_v44 = vmul.f32 %v2018_v19, %v2236_v57 }
  0x4f   : > { %v2319_v9 = vld.sshfl [vmem:[#allocation1 + $0x20] sm:$0xff pattern:$0x75316420]  ;;  %767 = vst [vmem:[#allocation1 + $0x11] ss:$2 sm:$0xff] %v532_v55 }
  0x50   : > { %770 = vst [vmem:[#allocation1 + $0x20] ss:$2 sm:$0xff] %v533_v60  ;;  %v2017_v60 = vld [vmem:[%s2163_s9 + $0xd] ss:$0 sm:$0xff] }
  0x51   : > { %771 = vst [vmem:[#allocation1 + $0x21] ss:$2 sm:$0xff] %v534_v0  ;;  %v2327_v15 = vld.sshfl [vmem:[#allocation1 + $0x30] sm:$0xff pattern:$0x75316420]  ;;  %v551_v0 = vmul.f32 %v2015_v32, %v2240_v58 }
  0x52   : > { %772 = vst [vmem:[#allocation1 + $0x30] ss:$2 sm:$0xff] %v535_v8  ;;  %v2019_v32 = vld [vmem:[%s2163_s9 + $0xf] ss:$0 sm:$0xff] }
  0x53   : > { %773 = vst [vmem:[#allocation1 + $0x31] ss:$2 sm:$0xff] %v536_v18  ;;  %v464_v18 = vrot.slane %v2017_v60, 4 }
  0x54   : > { %v2332_v23 = vld.sshfl [vmem:[#allocation1] sm:$0xff pattern:$0x75316420] }
  0x55   : > { %776 = vst [vmem:[#allocation1] ss:$2 sm:$0xff] %v537_v12  ;;  %v554_v12 = vmul.f32 %v463_v63, %v2174_v11 }
  0x56   : > { %777 = vst [vmem:[#allocation1 + $0x1] ss:$2 sm:$0xff] %v538_v20  ;;  %v2337_v29 = vld.sshfl [vmem:[#allocation1 + $0x10] sm:$0xff pattern:$0x75316420]  ;;  %v555_v20 = vmul.f32 %v2016_v46, %v2183_v17  ;;  %v466_v46 = vrot.slane %v2019_v32, 4 }
  0x57   : > { %3100 = vst [vmem:[#allocation9_spill] sm:$0xff] %v2337_v29 }
  0x58   : > { %778 = vst [vmem:[#allocation1 + $0x10] ss:$2 sm:$0xff] %v539_v22  ;;  %v2341_v37 = vld.sshfl [vmem:[#allocation1 + $0x20] sm:$0xff pattern:$0x75316420]  ;;  %v556_v22 = vmul.f32 %v463_v63, %v2249_v62  ;;  %v565_v63 = vmul.f32 %v2019_v32, %v2174_v11 }
  0x59   : > { %779 = vst [vmem:[#allocation1 + $0x11] ss:$2 sm:$0xff] %v540_v27  ;;  %v557_v27 = vmul.f32 %v2017_v60, %v2213_v40 }
  0x5a   : > { %782 = vst [vmem:[#allocation1 + $0x20] ss:$2 sm:$0xff] %v541_v28  ;;  %v2345_v42 = vld.sshfl [vmem:[#allocation1 + $0x30] sm:$0xff pattern:$0x75316420]  ;;  %v558_v28 = vmul.f32 %v464_v18, %v2199_v25 }
  0x5b   : > { %783 = vst [vmem:[#allocation1 + $0x21] ss:$2 sm:$0xff] %v542_v48 }
  0x5c   : > { %3101 = vst [vmem:[#allocation10_spill] sm:$0xff] %v2345_v42 }
  0x5d   : > { %784 = vst [vmem:[#allocation1 + $0x30] ss:$2 sm:$0xff] %v543_v35  ;;  %v2350_v50 = vld.sshfl [vmem:[#allocation1] sm:$0xff pattern:$0x75316420]  ;;  %v559_v35 = vmul.f32 %v2017_v60, %v2217_v41  ;;  %v564_v60 = vmul.f32 %v465_v33, %v2287_v34 }
  0x5e   : > { %785 = vst [vmem:[#allocation1 + $0x31] ss:$2 sm:$0xff] %v544_v38 }
  0x5f   : > { %788 = vst [vmem:[#allocation1] ss:$2 sm:$0xff] %v545_v39  ;;  %v560_v39 = vmul.f32 %v464_v18, %v2274_v26 }
  0x60   : > { %789 = vst [vmem:[#allocation1 + $0x1] ss:$2 sm:$0xff] %v546_v45  ;;  %v2355_v55 = vld.sshfl [vmem:[#allocation1 + $0x10] sm:$0xff pattern:$0x75316420] }
  0x61   : > { %3102 = vst [vmem:[#allocation11_spill] sm:$0xff] %v2355_v55  ;;  %v2024_v55 = vld [vmem:[%s2163_s9 + $0x14] ss:$0 sm:$0xff] }
  0x62   : > { %790 = vst [vmem:[#allocation1 + $0x10] ss:$2 sm:$0xff] %v547_v47  ;;  %v2359_v1 = vld.sshfl [vmem:[#allocation1 + $0x20] sm:$0xff pattern:$0x75316420]  ;;  %v562_v47 = vmul.f32 %v465_v33, %v2240_v58 }
  0x63   : > { %791 = vst [vmem:[#allocation1 + $0x11] ss:$2 sm:$0xff] %v548_v51  ;;  %v2020_v51 = vld [vmem:[%s2163_s9 + $0x10] ss:$0 sm:$0xff] }
  0x64   : > { %794 = vst [vmem:[#allocation1 + $0x20] ss:$2 sm:$0xff] %v549_v52  ;;  %v563_v52 = vmul.f32 %v2018_v19, %v2244_v59  ;;  %v467_v18 = vrot.slane %v2020_v51, 4 }
  0x65   : > { %795 = vst [vmem:[#allocation1 + $0x21] ss:$2 sm:$0xff] %v550_v53  ;;  %v2363_v8 = vld.sshfl [vmem:[#allocation1 + $0x30] sm:$0xff pattern:$0x75316420] }
  0x66   : > { %796 = vst [vmem:[#allocation1 + $0x30] ss:$2 sm:$0xff] %v551_v0  ;;  %v566_v0 = vmul.f32 %v466_v46, %v2183_v17  ;;  %v570_v33 = vmul.f32 %v467_v18, %v2217_v41 }
  0x67   : > { %797 = vst [vmem:[#allocation1 + $0x31] ss:$2 sm:$0xff] %v552_v5  ;;  %v2368_v21 = vld.sshfl [vmem:[#allocation1] sm:$0xff pattern:$0x75316420] }
  0x68   : > { %800 = vst [vmem:[#allocation1] ss:$2 sm:$0xff] %v553_v7  ;;  %v2021_v7 = vld [vmem:[%s2163_s9 + $0x11] ss:$0 sm:$0xff] }
  0x69   : > { %801 = vst [vmem:[#allocation1 + $0x1] ss:$2 sm:$0xff] %v554_v12  ;;  %v567_v12 = vmul.f32 %v2019_v32, %v2249_v62  ;;  %v571_v32 = vmul.f32 %v2020_v51, %v2274_v26 }
  0x6a   : > { %v2373_v48 = vld.sshfl [vmem:[#allocation1 + $0x10] sm:$0xff pattern:$0x75316420] }
  0x6b   : > { %802 = vst [vmem:[#allocation1 + $0x10] ss:$2 sm:$0xff] %v555_v20  ;;  %v568_v20 = vmul.f32 %v466_v46, %v2279_v30  ;;  %v573_v46 = vmul.f32 %v2021_v7, %v2240_v58 }
  0x6c   : > { %v2377_v38 = vld.sshfl [vmem:[#allocation1 + $0x20] sm:$0xff pattern:$0x75316420]  ;;  %803 = vst [vmem:[#allocation1 + $0x11] ss:$2 sm:$0xff] %v556_v22  ;;  %v569_v22 = vmul.f32 %v2020_v51, %v2199_v25 }
  0x6d   : > { %806 = vst [vmem:[#allocation1 + $0x20] ss:$2 sm:$0xff] %v557_v27 }
  0x6e   : > { %807 = vst [vmem:[#allocation1 + $0x21] ss:$2 sm:$0xff] %v558_v28  ;;  %v2381_v45 = vld.sshfl [vmem:[#allocation1 + $0x30] sm:$0xff pattern:$0x75316420]  ;;  %v468_v28 = vrot.slane %v2021_v7, 4 }
  0x6f   : > { %808 = vst [vmem:[#allocation1 + $0x30] ss:$2 sm:$0xff] %v559_v35  ;;  %v2022_v35 = vld [vmem:[%s2163_s9 + $0x12] ss:$0 sm:$0xff] }
  0x70   : > { %809 = vst [vmem:[#allocation1 + $0x31] ss:$2 sm:$0xff] %v560_v39  ;;  %v2386_v53 = vld.sshfl [vmem:[#allocation1] sm:$0xff pattern:$0x75316420] }
  0x71   : > { %812 = vst [vmem:[#allocation1] ss:$2 sm:$0xff] %v561_v44  ;;  %v572_v44 = vmul.f32 %v467_v18, %v2311_v61  ;;  %v577_v18 = vmul.f32 %v2022_v35, %v2171_v10  ;;  %v471_v10 = vrot.slane %v2024_v55, 4 }
  0x72   : > { %813 = vst [vmem:[#allocation1 + $0x1] ss:$2 sm:$0xff] %v562_v47  ;;  %v574_v47 = vmul.f32 %v468_v28, %v2244_v59 }
  0x73   : > { %v2391_v5 = vld.sshfl [vmem:[#allocation1 + $0x10] sm:$0xff pattern:$0x75316420] }
  0x74   : > { %814 = vst [vmem:[#allocation1 + $0x10] ss:$2 sm:$0xff] %v563_v52 }
  0x75   : > { %v2395_v19 = vld.sshfl [vmem:[#allocation1 + $0x20] sm:$0xff pattern:$0x75316420]  ;;  %815 = vst [vmem:[#allocation1 + $0x11] ss:$2 sm:$0xff] %v564_v60 }
  0x76   : > { %818 = vst [vmem:[#allocation1 + $0x20] ss:$2 sm:$0xff] %v565_v63  ;;  %v2023_v60 = vld [vmem:[%s2163_s9 + $0x13] ss:$0 sm:$0xff]  ;;  %v469_v63 = vrot.slane %v2022_v35, 4 }
  0x77   : > { %819 = vst [vmem:[#allocation1 + $0x21] ss:$2 sm:$0xff] %v566_v0  ;;  %v2399_v27 = vld.sshfl [vmem:[#allocation1 + $0x30] sm:$0xff pattern:$0x75316420]  ;;  %v575_v0 = vmul.f32 %v2021_v7, %v2287_v34 }
  0x78   : > { %820 = vst [vmem:[#allocation1 + $0x30] ss:$2 sm:$0xff] %v567_v12  ;;  %v576_v12 = vmul.f32 %v468_v28, %v2325_v13 }
  0x79   : > { %821 = vst [vmem:[#allocation1 + $0x31] ss:$2 sm:$0xff] %v568_v20  ;;  %v2404_v39 = vld.sshfl [vmem:[#allocation1] sm:$0xff pattern:$0x75316420] }
  0x7a   : > { %824 = vst [vmem:[#allocation1] ss:$2 sm:$0xff] %v569_v22  ;;  %v470_v22 = vrot.slane %v2023_v60, 4 }
  0x7b   : > { %825 = vst [vmem:[#allocation1 + $0x1] ss:$2 sm:$0xff] %v570_v33  ;;  %v578_v33 = vmul.f32 %v469_v63, %v2180_v16 }
  0x7c   : > { %v2409_v52 = vld.sshfl [vmem:[#allocation1 + $0x10] sm:$0xff pattern:$0x75316420]  ;;  %v582_v28 = vmul.f32 %v470_v22, %v2213_v40 }
  0x7d   : > { %826 = vst [vmem:[#allocation1 + $0x10] ss:$2 sm:$0xff] %v571_v32  ;;  %v581_v32 = vmul.f32 %v2023_v60, %v2195_v24  ;;  %v586_v24 = vmul.f32 %v471_v10, %v2236_v57 }
  0x7e   : > { %v2413_v51 = vld.sshfl [vmem:[#allocation1 + $0x20] sm:$0xff pattern:$0x75316420]  ;;  %827 = vst [vmem:[#allocation1 + $0x11] ss:$2 sm:$0xff] %v572_v44 }
  0x7f   : > { %830 = vst [vmem:[#allocation1 + $0x20] ss:$2 sm:$0xff] %v573_v46  ;;  %v2426_v44 = vld [vmem:[%s2163_s9 + $0x15] ss:$0 sm:$0xff]  ;;  %v579_v46 = vmul.f32 %v2022_v35, %v2174_v11  ;;  %v2026_v35 = vld [vmem:[%s2163_s9 + $0x16] ss:$0 sm:$0xff] }
  0x80   : > { %831 = vst [vmem:[#allocation1 + $0x21] ss:$2 sm:$0xff] %v574_v47  ;;  %v2417_v20 = vld.sshfl [vmem:[#allocation1 + $0x30] sm:$0xff pattern:$0x75316420]  ;;  %v580_v47 = vmul.f32 %v469_v63, %v2183_v17  ;;  %v584_v63 = vmul.f32 %v470_v22, %v2217_v41  ;;  %v473_v22 = vrot.slane %v2026_v35, 4 }
  0x81   : > { %3103 = vst [vmem:[#allocation12_spill] sm:$0xff] %v2417_v20 }
  0x82   : > { %832 = vst [vmem:[#allocation1 + $0x30] ss:$2 sm:$0xff] %v575_v0  ;;  %v2421_v7 = vld.sshfl [vmem:[#allocation1] sm:$0xff pattern:$0x75316420] }
  0x83   : > { %833 = vst [vmem:[#allocation1 + $0x31] ss:$2 sm:$0xff] %v576_v12  ;;  %v583_v12 = vmul.f32 %v2023_v60, %v2199_v25  ;;  %v589_v60 = vmul.f32 %v2426_v44, %v2180_v16 }
  0x84   : > { %836 = vst [vmem:[#allocation1] ss:$2 sm:$0xff] %v577_v18  ;;  %v585_v18 = vmul.f32 %v2024_v55, %v2232_v56  ;;  %v945_v56 = vsel %vm944_vm6, %v2254_v2, 0.0 }
  0x85   : > { %837 = vst [vmem:[#allocation1 + $0x1] ss:$2 sm:$0xff] %v578_v33  ;;  %v2432_v0 = vld.sshfl [vmem:[#allocation1 + $0x10] sm:$0xff pattern:$0x75316420]  ;;  %v472_v33 = vrot.slane %v2426_v44, 4 }
  0x86   : > { %3104 = vst [vmem:[#allocation13_spill] sm:$0xff] %v2432_v0  ;;  %v594_v0 = vmul.f32 %v473_v22, %v2199_v25 }
  0x87   : > { %v2430_v42 = vld.sshfl [vmem:[#allocation1 + $0x20] sm:$0xff pattern:$0x75316420]  ;;  %838 = vst [vmem:[#allocation1 + $0x10] ss:$2 sm:$0xff] %v579_v46  ;;  %v946_v46 = vsel %vm944_vm6, %v2260_v6, 0.0  ;;  %v593_v6 = vmul.f32 %v2026_v35, %v2213_v40 }
  0x88   : > { %842 = vst [vmem:[#allocation1 + $0x20] ss:$2 sm:$0xff] %v581_v32  ;;  %v2443_v32 = vld [vmem:[%s2163_s9 + $0x17] ss:$0 sm:$0xff]  ;;  %v947_v16 = vadd.f32 %v946_v46, %v945_v56  ;;  %v982_v56 = vsel %vm944_vm6, %v2377_v38, 0.0  ;;  %v591_v46 = vmul.f32 %v2426_v44, %v2183_v17 }
  0x89   : > { %843 = vst [vmem:[#allocation1 + $0x21] ss:$2 sm:$0xff] %v582_v28  ;;  %v590_v28 = vmul.f32 %v472_v33, %v2174_v11  ;;  %v597_v2 = vmul.f32 %v2443_v32, %v2236_v57  ;;  %v3106_v38 = vrot.slane %v2443_v32, 4  ;;  %v595_v57 = vmul.f32 %v2026_v35, %v2217_v41 }
  0x8a   : > { %v2438_v20 = vld.sshfl [vmem:[#allocation1 + $0x30] sm:$0xff pattern:$0x75316420]  ;;  %839 = vst [vmem:[#allocation1 + $0x11] ss:$2 sm:$0xff] %v580_v47  ;;  %v587_v47 = vmul.f32 %v2024_v55, %v2240_v58  ;;  %v948_v55 = vsel %vm944_vm6, %v2281_v31, 0.0 }
  0x8b   : > { %3105 = vst [vmem:[#allocation14_spill] sm:$0xff] %v2438_v20  ;;  %v949_v31 = vadd.f32 %v948_v55, %v947_v16  ;;  %v962_v55 = vsel %vm944_vm6, %v2257_v4, 0.0  ;;  %v997_v4 = vsel %vm944_vm6, %v2373_v48, 0.0 }
  0x8c   : > { %v840_v13 = vld.sshfl [vmem:[#allocation1] sm:$0xff pattern:$0x75316420]  ;;  %844 = vst [vmem:[#allocation1 + $0x30] ss:$2 sm:$0xff] %v583_v12  ;;  %v588_v12 = vmul.f32 %v471_v10, %v2244_v59 }
  0x8d   : > { %848 = vst [vmem:[#allocation1] ss:$2 sm:$0xff] %v585_v18  ;;  %v979_v18 = vsel %vm944_vm6, %v2359_v1, 0.0  ;;  %v2463_v10 = vld [vmem:[%s2163_s9 + $0x18] ss:$0 sm:$0xff]  ;;  %v1013_v29 = vsel %vm944_vm6, %v840_v13, 0.0 }
  0x8e   : > { %849 = vst [vmem:[#allocation1 + $0x1] ss:$2 sm:$0xff] %v586_v24  ;;  %v980_v24 = vsel %vm944_vm6, %v2368_v21, 0.0  ;;  %v950_v13 = vsel %vm944_vm6, %v2295_v43, 0.0  ;;  %v592_v43 = vmul.f32 %v472_v33, %v2249_v62  ;;  %v996_v33 = vsel %vm944_vm6, %v2363_v8, 0.0 }
  0x8f   : > { %845 = vst [vmem:[#allocation1 + $0x31] ss:$2 sm:$0xff] %v584_v63  ;;  %v981_v1 = vadd.f32 %v980_v24, %v979_v18  ;;  %v951_v18 = vadd.f32 %v950_v13, %v949_v31  ;;  %v601_v35 = vmul.f32 %v2463_v10, %v2174_v11  ;;  %v986_v8 = vsel %vm944_vm6, %v2395_v19, 0.0 }
  0x90   : > { %v846_v20 = vld.sshfl [vmem:[#allocation1 + $0x20] sm:$0xff pattern:$0x75316420]  ;;  %v965_v11 = vsel %vm944_vm6, %v2290_v36, 0.0  ;;  %v998_v19 = vadd.f32 %v997_v4, %v996_v33  ;;  %v1001_v33 = vsel %vm944_vm6, %v2391_v5, 0.0 }
  0x91   : > { %854 = vst [vmem:[#allocation1 + $0x20] ss:$2 sm:$0xff] %v589_v60  ;;  %v841_v63 = vld.sshfl [vmem:[#allocation1 + $0x10] sm:$0xff pattern:$0x75316420]  ;;  %v1014_v21 = vsel %vm944_vm6, %v846_v20, 0.0  ;;  %v983_v16 = vadd.f32 %v982_v56, %v981_v1 }
  0x92   : > { %855 = vst [vmem:[#allocation1 + $0x21] ss:$2 sm:$0xff] %v590_v28  ;;  %v2469_v60 = vld [vmem:[%s2163_s9 + $0x19] ss:$0 sm:$0xff]  ;;  %v1015_v20 = vadd.f32 %v1014_v21, %v1013_v29  ;;  %v963_v1 = vsel %vm944_vm6, %v2266_v14, 0.0  ;;  %v1030_v13 = vsel %vm944_vm6, %v841_v63, 0.0 }
  0x93   : > { %850 = vst [vmem:[#allocation1 + $0x10] ss:$2 sm:$0xff] %v587_v47  ;;  %v2480_v47 = vld [vmem:[%s2163_s9 + $0x1a] ss:$0 sm:$0xff]  ;;  %v476_v24 = vrot.slane %v2469_v60, 4 }
  0x94   : > { %851 = vst [vmem:[#allocation1 + $0x11] ss:$2 sm:$0xff] %v588_v12  ;;  %v598_v12 = vmul.f32 %v3106_v38, %v2240_v58  ;;  %v477_v14 = vrot.slane %v2480_v47, 4  ;;  %v605_v38 = vmul.f32 %v2469_v60, %v2199_v25  ;;  %v609_v4 = vmul.f32 %v2480_v47, %v2240_v58 }
  0x95   : > { %v852_v28 = vld.sshfl [vmem:[#allocation1] sm:$0xff pattern:$0x75316420] }
  0x96   : > { %860 = vst [vmem:[#allocation1] ss:$2 sm:$0xff] %v593_v6  ;;  %v1016_v44 = vsel %vm944_vm6, %v852_v28, 0.0  ;;  %v984_v6 = vsel %vm944_vm6, %v2386_v53, 0.0  ;;  %v952_v53 = vsel %vm944_vm6, %v2305_v54, 0.0  ;;  %v3107_v54 = vrot.slane %v2463_v10, 4 }
  0x97   : > { %861 = vst [vmem:[#allocation1 + $0x1] ss:$2 sm:$0xff] %v594_v0  ;;  %v847_v29 = vld.sshfl [vmem:[#allocation1 + $0x30] sm:$0xff pattern:$0x75316420]  ;;  %v596_v0 = vmul.f32 %v473_v22, %v2274_v26  ;;  %v1017_v56 = vadd.f32 %v1016_v44, %v1015_v20  ;;  %v985_v22 = vadd.f32 %v984_v6, %v983_v16  ;;  %v953_v48 = vadd.f32 %v952_v53, %v951_v18 }
  0x98   : > { %856 = vst [vmem:[#allocation1 + $0x30] ss:$2 sm:$0xff] %v591_v46  ;;  %v964_v46 = vadd.f32 %v963_v1, %v962_v55  ;;  %v1031_v20 = vsel %vm944_vm6, %v847_v29, 0.0  ;;  %v999_v18 = vsel %vm944_vm6, %v2381_v45, 0.0  ;;  %v988_v44 = vsel %vm944_vm6, %v2404_v39, 0.0 }
  0x99   : > { %v858_v21 = vld.sshfl [vmem:[#allocation1 + $0x20] sm:$0xff pattern:$0x75316420]  ;;  %857 = vst [vmem:[#allocation1 + $0x31] ss:$2 sm:$0xff] %v592_v43  ;;  %v987_v36 = vadd.f32 %v986_v8, %v985_v22  ;;  %v1032_v43 = vadd.f32 %v1031_v20, %v1030_v13  ;;  %v3108_v55 = vrot.slane %v2443_v32, 4 }
  0x9a   : > { %866 = vst [vmem:[#allocation1 + $0x20] ss:$2 sm:$0xff] %v597_v2  ;;  %v1018_v28 = vsel %vm944_vm6, %v858_v21, 0.0  ;;  %v602_v2 = vmul.f32 %v3107_v54, %v2183_v17  ;;  %v954_v17 = vsel %vm944_vm6, %v2319_v9, 0.0  ;;  %v599_v9 = vmul.f32 %v2443_v32, %v2244_v59 }
  0x9b   : > { %867 = vst [vmem:[#allocation1 + $0x21] ss:$2 sm:$0xff] %v598_v12  ;;  %v853_v31 = vld.sshfl [vmem:[#allocation1 + $0x10] sm:$0xff pattern:$0x75316420]  ;;  %v1019_v16 = vadd.f32 %v1018_v28, %v1017_v56  ;;  %v966_v6 = vadd.f32 %v965_v11, %v964_v46  ;;  %v955_v29 = vadd.f32 %v954_v17, %v953_v48  ;;  %v600_v21 = vmul.f32 %v3108_v55, %v2287_v34 }
  0x9c   : > { %862 = vst [vmem:[#allocation1 + $0x10] ss:$2 sm:$0xff] %v595_v57  ;;  %v606_v57 = vmul.f32 %v476_v24, %v2217_v41  ;;  %v1033_v1 = vsel %vm944_vm6, %v853_v31, 0.0  ;;  %v956_v53 = vsel %vm944_vm6, %v2332_v23, 0.0  ;;  %v1000_v56 = vadd.f32 %v999_v18, %v998_v19 }
  0x9d   : > { %863 = vst [vmem:[#allocation1 + $0x11] ss:$2 sm:$0xff] %v596_v0  ;;  %v967_v0 = vsel %vm944_vm6, %v2300_v49, 0.0  ;;  %v989_v32 = vadd.f32 %v988_v44, %v987_v36  ;;  %v603_v49 = vmul.f32 %v2463_v10, %v2249_v62  ;;  %v990_v23 = vsel %vm944_vm6, %v2413_v51, 0.0 }
  0x9e   : > { %v864_v12 = vld.sshfl [vmem:[#allocation1] sm:$0xff pattern:$0x75316420]  ;;  %v968_v28 = vadd.f32 %v967_v0, %v966_v6  ;;  %v969_v31 = vsel %vm944_vm6, %v2315_v3, 0.0  ;;  %v1034_v5 = vadd.f32 %v1033_v1, %v1032_v43  ;;  %v610_v54 = vmul.f32 %v477_v14, %v2244_v59 }
  0x9f   : > { %872 = vst [vmem:[#allocation1] ss:$2 sm:$0xff] %v601_v35  ;;  %v1020_v63 = vsel %vm944_vm6, %v864_v12, 0.0  ;;  %v957_v11 = vadd.f32 %v956_v53, %v955_v29  ;;  %v958_v51 = vsel %vm944_vm6, %v2341_v37, 0.0  ;;  %v1002_v3 = vadd.f32 %v1001_v33, %v1000_v56  ;;  %v2582_v0 = vld [vmem:[%s2163_s9 + $0x1b] ss:$0 sm:$0xff] }
  0xa0   : > { %873 = vst [vmem:[#allocation1 + $0x1] ss:$2 sm:$0xff] %v602_v2  ;;  %v1021_v39 = vadd.f32 %v1020_v63, %v1019_v16  ;;  %v859_v22 = vld.sshfl [vmem:[#allocation1 + $0x30] sm:$0xff pattern:$0x75316420]  ;;  %v3109_v2 = vrot.slane %v2463_v10, 4  ;;  %v970_v16 = vadd.f32 %v969_v31, %v968_v28  ;;  %v608_v6 = vmul.f32 %v476_v24, %v2311_v61 }
  0xa1   : > { %868 = vst [vmem:[#allocation1 + $0x30] ss:$2 sm:$0xff] %v599_v9  ;;  %v1035_v48 = vsel %vm944_vm6, %v859_v22, 0.0  ;;  %v1003_v12 = vsel %vm944_vm6, %v2399_v27, 0.0  ;;  %v992_v10 = vsel %vm944_vm6, %v2421_v7, 0.0  ;;  %v971_v37 = vsel %vm944_vm6, %v2327_v15, 0.0 }
  0xa2   : > { %v870_v45 = vld.sshfl [vmem:[#allocation1 + $0x20] sm:$0xff pattern:$0x75316420]  ;;  %v604_v8 = vmul.f32 %v3109_v2, %v2279_v30  ;;  %869 = vst [vmem:[#allocation1 + $0x31] ss:$2 sm:$0xff] %v600_v21  ;;  %v1036_v19 = vadd.f32 %v1035_v48, %v1034_v5  ;;  %v959_v36 = vadd.f32 %v958_v51, %v957_v11  ;;  %v607_v27 = vmul.f32 %v2469_v60, %v2274_v26  ;;  %v3113_v2 = vld [vmem:[#allocation10_spill] sm:$0xff] }
  0xa3   : > { %878 = vst [vmem:[#allocation1 + $0x20] ss:$2 sm:$0xff] %v605_v38  ;;  %v1022_v35 = vsel %vm944_vm6, %v870_v45, 0.0  ;;  %v991_v38 = vadd.f32 %v990_v23, %v989_v32  ;;  %v1004_v18 = vadd.f32 %v1003_v12, %v1002_v3  ;;  %v960_v7 = vsel %vm944_vm6, %v2350_v50, 0.0  ;;  %v1802_v50 = vld [vmem:[%s3075_s3 + $0x1] sm:$0x1] }
  0xa4   : > { %879 = vst [vmem:[#allocation1 + $0x21] ss:$2 sm:$0xff] %v606_v57  ;;  %v865_v46 = vld.sshfl [vmem:[#allocation1 + $0x10] sm:$0xff pattern:$0x75316420]  ;;  %v1023_v13 = vadd.f32 %v1022_v35, %v1021_v39  ;;  %v1005_v15 = vsel %vm944_vm6, %v2409_v52, 0.0  ;;  %v972_v55 = vadd.f32 %v971_v37, %v970_v16  ;;  %v611_v60 = vmul.f32 %v2480_v47, %v2287_v34  ;;  %1805 = vperm.xlu0 %2001, %v1802_v50  }
  0xa5   : > { %874 = vst [vmem:[#allocation1 + $0x10] ss:$2 sm:$0xff] %v603_v49  ;;  %v1037_v57 = vsel %vm944_vm6, %v865_v46, 0.0  ;;  %v993_v9 = vadd.f32 %v992_v10, %v991_v38  ;;  %v994_v43 = vsel %vm944_vm6, %v2430_v42, 0.0  ;;  %v3110_v1 = vld [vmem:[#allocation9_spill] sm:$0xff]  ;;  %v961_v42 = vadd.f32 %v960_v7, %v959_v36  ;;  %v3111_v33 = vld [vmem:[#allocation8_spill] sm:$0xff] }
  0xa6   : > { %875 = vst [vmem:[#allocation1 + $0x11] ss:$2 sm:$0xff] %v604_v8  ;;  %v1038_v21 = vadd.f32 %v1037_v57, %v1036_v19  ;;  %v973_v52 = vsel %vm944_vm6, %v3110_v1, 0.0  ;;  %v1006_v53 = vadd.f32 %v1005_v15, %v1004_v18  ;;  %v3112_v32 = vld [vmem:[#allocation12_spill] sm:$0xff]  ;;  %v2595_v49 = vld [vmem:[%s2163_s9 + $0x1c] ss:$0 sm:$0xff] }
  0xa7   : > { %v876_v20 = vld.sshfl [vmem:[#allocation1] sm:$0xff pattern:$0x75316420]  ;;  %v995_v56 = vadd.f32 %v994_v43, %v993_v9  ;;  %v1007_v35 = vsel %vm944_vm6, %v3112_v32, 0.0  ;;  %v974_v23 = vadd.f32 %v973_v52, %v972_v55  ;;  %v1187_v31 = vrot.slane %v2582_v0, 4  ;;  %v3115_v16 = vld [vmem:[#allocation3_spill] sm:$0xff] }
  0xa8   : > { %884 = vst [vmem:[#allocation1] ss:$2 sm:$0xff] %v609_v4  ;;  %v1024_v17 = vsel %vm944_vm6, %v876_v20, 0.0  ;;  %v612_v4 = vmul.f32 %v477_v14, %v3111_v33  ;;  %v975_v8 = vsel %vm944_vm6, %v3113_v2, 0.0  ;;  %v1047_v14 = vsel %vm944_vm6, %v961_v42, -inf  ;;  %v3114_v51 = vld [vmem:[#allocation13_spill] sm:$0xff] }
  0xa9   : > { %885 = vst [vmem:[#allocation1 + $0x1] ss:$2 sm:$0xff] %v610_v54  ;;  %v1025_v63 = vadd.f32 %v1024_v17, %v1023_v13  ;;  %v871_v24 = vld.sshfl [vmem:[#allocation1 + $0x30] sm:$0xff pattern:$0x75316420]  ;;  %v1008_v46 = vadd.f32 %v1007_v35, %v1006_v53  ;;  %v1048_v11 = vsel %vm944_vm6, %v995_v56, -inf  ;;  %v976_v10 = vadd.f32 %v975_v8, %v974_v23 }
  0xaa   : > { %880 = vst [vmem:[#allocation1 + $0x30] ss:$2 sm:$0xff] %v607_v27  ;;  %v1039_v39 = vsel %vm944_vm6, %v871_v24, 0.0  ;;  %v1009_v13 = vsel %vm944_vm6, %v3114_v51, 0.0  ;;  %v1188_v3 = vrot.slane %v2595_v49, 4  ;;  %v1242_v19 = vmul.f32 %v1187_v31, %v3115_v16  ;;  %v3116_v36 = vld [vmem:[#allocation11_spill] sm:$0xff] }
  0xab   : > { %v882_v44 = vld.sshfl [vmem:[#allocation1 + $0x20] sm:$0xff pattern:$0x75316420]  ;;  %881 = vst [vmem:[#allocation1 + $0x31] ss:$2 sm:$0xff] %v608_v6  ;;  %v1040_v28 = vadd.f32 %v1039_v39, %v1038_v21  ;;  %v1010_v9 = vadd.f32 %v1009_v13, %v1008_v46  ;;  %v3118_v15 = vld [vmem:[#allocation14_spill] sm:$0xff] }
  0xac   : > { %v1026_v29 = vsel %vm944_vm6, %v882_v44, 0.0  ;;  %v2608_v20 = vld [vmem:[%s2168_s12] sm:$0x3f]  ;;  %v1011_v43 = vsel %vm944_vm6, %v3118_v15, 0.0  ;;  %v1246_v55 = vmul.f32 %v1188_v3, %v2213_v40  ;;  %v2633_v52 = vld [vmem:[%s2168_s12 + $0x10] sm:$0x3f]  ;;  %v1248_v16 = vmul.f32 %v1188_v3, %v2217_v41 }
  0xad   : > { %v1027_v45 = vadd.f32 %v1026_v29, %v1025_v63  ;;  %v877_v54 = vld.sshfl [vmem:[#allocation1 + $0x10] sm:$0xff pattern:$0x75316420]  ;;  %v1241_v38 = vmul.f32 %v2608_v20, %v2582_v0  ;;  %v2031_v57 = vld [vmem:[%s3074_s2] ss:$0 sm:$0xff]  ;;  %v977_v63 = vsel %vm944_vm6, %v3116_v36, 0.0  ;;  %v1243_v42 = vmul.f32 %v2633_v52, %v2582_v0 }
  0xae   : > { %886 = vst [vmem:[#allocation1 + $0x10] ss:$2 sm:$0xff] %v611_v60  ;;  %v1041_v48 = vsel %vm944_vm6, %v877_v54, 0.0  ;;  %v2620_v27 = vld [vmem:[%s2163_s9 + $0x1d] ss:$0 sm:$0xff]  ;;  %v3117_v18 = vld [vmem:[#allocation4_spill] sm:$0xff]  ;;  %v978_v21 = vadd.f32 %v977_v63, %v976_v10  ;;  %v1012_v53 = vadd.f32 %v1011_v43, %v1010_v9 }
  0xaf   : > { %887 = vst [vmem:[#allocation1 + $0x11] ss:$2 sm:$0xff] %v612_v4  ;;  %v1042_v17 = vadd.f32 %v1041_v48, %v1040_v28  ;;  %v1245_v44 = vmul.f32 %v2595_v49, %v3117_v18  ;;  %v2629_v60 = vld [vmem:[%s2163_s9 + $0x1e] ss:$0 sm:$0xff]  ;;  %v1189_v1 = vrot.slane %v2620_v27, 4  ;;  %v3120_v0 = vld [vmem:[#allocation6_spill] sm:$0xff] }
  0xb0   : > { %v888_v22 = vld.sshfl [vmem:[#allocation1] sm:$0xff pattern:$0x75316420]  ;;  %1469 = vst [vmem:[#allocation1 + $0x21] ss:$2 sm:$0xff] %v1246_v55  ;;  %v1052_v32 = vsel %vm944_vm6, %v978_v21, -inf }
  0xb1   : > { %v1028_v5 = vsel %vm944_vm6, %v888_v22, 0.0  ;;  %1457 = vst [vmem:[#allocation1] ss:$2 sm:$0xff] %v1241_v38  ;;  %v1190_v35 = vrot.slane %v2629_v60, 4  ;;  %v3119_v22 = vld [vmem:[#allocation5_spill] sm:$0xff]  ;;  %v1250_v28 = vmul.f32 %v1189_v1, %v3120_v0  ;;  %v1252_v15 = vmul.f32 %v1189_v1, %v2244_v59 }
  0xb2   : > { %v1029_v47 = vadd.f32 %v1028_v5, %v1027_v45  ;;  %v883_v7 = vld.sshfl [vmem:[#allocation1 + $0x30] sm:$0xff pattern:$0x75316420]  ;;  %1459 = vst [vmem:[#allocation1 + $0x1] ss:$2 sm:$0xff] %v1242_v19  ;;  %v1249_v23 = vmul.f32 %v2620_v27, %v3119_v22  ;;  %v1053_v5 = vsel %vm944_vm6, %v1012_v53, -inf }
  0xb3   : > { %v1043_v29 = vsel %vm944_vm6, %v883_v7, 0.0  ;;  %1467 = vst [vmem:[#allocation1 + $0x20] ss:$2 sm:$0xff] %v1245_v44  ;;  %v2041_v2 = vld [vmem:[%s2163_s9 + $0x1f] ss:$0 sm:$0xff]  ;;  %v1254_v48 = vmul.f32 %v2633_v52, %v1190_v35  ;;  %v1251_v44 = vmul.f32 %v2620_v27, %v2240_v58  ;;  %v1256_v55 = vmul.f32 %v1190_v35, %v2249_v62 }
  0xb4   : > { %v1049_v12 = vsel %vm944_vm6, %v1029_v47, -inf  ;;  %v1044_v50 = vadd.f32 %v1043_v29, %v1042_v17  ;;  %v2648_v47 = vld [vmem:[%s2168_s12 + $0x8] sm:$0x3f]  ;;  %v1191_v10 = vrot.slane %v2041_v2, 4  ;;  %v1257_v36 = vmul.f32 %v2041_v2, %v2213_v40  ;;  %1473 = vst [vmem:[#allocation1 + $0x31] ss:$2 sm:$0xff] %v1248_v16 }
  0xb5   : > { %v1050_v37 = vmax.f32 %v1047_v14, %v1049_v12  ;;  %v1253_v14 = vmul.f32 %v2648_v47, %v2629_v60  ;;  %v2042_v38 = vld [vmem:[%s2163_s9 + $0x20] ss:$0 sm:$0xff]  ;;  %v1247_v12 = vmul.f32 %v2595_v49, %v2199_v25  ;;  %v2043_v49 = vld [vmem:[%s2163_s9 + $0x21] ss:$0 sm:$0xff]  ;;  %v2046_v62 = vld [vmem:[%s2163_s9 + $0x24] ss:$0 sm:$0xff] }
  0xb6   : > { %v889_v45 = vld.sshfl [vmem:[#allocation1 + $0x10] sm:$0xff pattern:$0x75316420]  ;;  %v1258_v63 = vmul.f32 %v1191_v10, %v2199_v25  ;;  %v1261_v3 = vmul.f32 %v2042_v38, %v3120_v0  ;;  %v1193_v43 = vrot.slane %v2043_v49, 4  ;;  %v1263_v35 = vmul.f32 %v2042_v38, %v2244_v59 }
  0xb7   : > { %v1051_v6 = vmax.f32 %v1050_v37, %v1048_v11  ;;  %v1045_v56 = vsel %vm944_vm6, %v889_v45, 0.0  ;;  %1461 = vst [vmem:[#allocation1 + $0x10] ss:$2 sm:$0xff] %v1243_v42  ;;  %v2656_v11 = vld [vmem:[%s2168_s12 + $0x18] sm:$0x3f] }
  0xb8   : > { %v1046_v4 = vadd.f32 %v1045_v56, %v1044_v50  ;;  %v1244_v51 = vmul.f32 %v2656_v11, %v1187_v31  ;;  %v1192_v31 = vrot.slane %v2042_v38, 4  ;;  %1471 = vst [vmem:[#allocation1 + $0x30] ss:$2 sm:$0xff] %v1247_v12  ;;  %v1255_v27 = vmul.f32 %v2656_v11, %v2629_v60  ;;  %v2045_v42 = vld [vmem:[%s2163_s9 + $0x23] ss:$0 sm:$0xff] }
  0xb9   : > { %v1059_v24 = vmul.f32 %v2031_v57, %v1051_v6  ;;  %v2652_v46 = vld.sshfl [vmem:[#allocation1] sm:$0xff pattern:$0x75316420]  ;;  %v1266_v1 = vmul.f32 %v2656_v11, %v1193_v43  ;;  %v1195_v56 = vrot.slane %v2045_v42, 4 }
  0xba   : > { %v1054_v54 = vsel %vm944_vm6, %v1046_v4, -inf  ;;  %1476 = vst [vmem:[#allocation1] ss:$2 sm:$0xff] %v1249_v23  ;;  %v2662_v17 = vld.sshfl [vmem:[#allocation1 + $0x20] sm:$0xff pattern:$0x75316420]  ;;  %v1262_v7 = vmul.f32 %v1192_v31, %v2240_v58 }
  0xbb   : > { %v1061_v39 = vsel %vm944_vm6, %v1059_v24, 0.0  ;;  %v1055_v8 = vmax.f32 %v1052_v32, %v1054_v54  ;;  %1477 = vst [vmem:[#allocation1 + $0x1] ss:$2 sm:$0xff] %v1250_v28  ;;  %v2044_v6 = vld [vmem:[%s2163_s9 + $0x22] ss:$0 sm:$0xff]  ;;  %v1265_v24 = vmul.f32 %v2633_v52, %v2043_v49  ;;  %v1260_v32 = vmul.f32 %v1191_v10, %v2274_v26 }
  0xbc   : > { %1062 = vadd.xlane.f32.xlu1 %v1061_v39  ;;  %1463 = vst [vmem:[#allocation1 + $0x11] ss:$2 sm:$0xff] %v1244_v51  ;;  %v1194_v50 = vrot.slane %v2044_v6, 4  ;;  %v1269_v45 = vmul.f32 %v2044_v6, %v2199_v25  ;;  %v1259_v39 = vmul.f32 %v2041_v2, %v2217_v41  ;;  %v1264_v28 = vmul.f32 %v1192_v31, %v2287_v34  ;;  %v2048_v38 = vld [vmem:[%s2163_s9 + $0x26] ss:$0 sm:$0xff] }
  0xbd   : > { %v1056_v13 = vmax.f32 %v1055_v8, %v1053_v5  ;;  %1482 = vst [vmem:[#allocation1 + $0x20] ss:$2 sm:$0xff] %v1253_v14  ;;  %v1196_v5 = vrot.slane %v2046_v62, 4  ;;  %v1273_v54 = vmul.f32 %v2045_v42, %v2240_v58  ;;  %v1274_v2 = vmul.f32 %v1195_v56, %v2244_v59  ;;  %v2047_v14 = vld [vmem:[%s2163_s9 + $0x25] ss:$0 sm:$0xff] }
  0xbe   : > { %1483 = vst [vmem:[#allocation1 + $0x21] ss:$2 sm:$0xff] %v1254_v48  ;;  %v1270_v53 = vmul.f32 %v1194_v50, %v2217_v41  ;;  %v1277_v48 = vmul.f32 %v2608_v20, %v2046_v62  ;;  %v2713_v12 = vld [vmem:[%s2168_s12 + $0x20] sm:$0x3f]  ;;  %v1197_v16 = vrot.slane %v2047_v14, 4  ;;  %v1271_v31 = vmul.f32 %v2044_v6, %v2274_v26 }
  0xbf   : > { %v1060_v19 = vmul.f32 %v2031_v57, %v1056_v13  ;;  %v2684_v21 = vld.sshfl [vmem:[#allocation1 + $0x30] sm:$0xff pattern:$0x75316420]  ;;  %v1278_v13 = vmul.f32 %v2648_v47, %v1196_v5  ;;  %v1267_v10 = vmul.f32 %v2713_v12, %v2043_v49 }
  0xc0   : > { %1484 = vst [vmem:[#allocation1 + $0x30] ss:$2 sm:$0xff] %v1255_v27  ;;  %v1282_v49 = vmul.f32 %v1197_v16, %v2213_v40  ;;  %v2050_v27 = vld [vmem:[%s2163_s9 + $0x28] ss:$0 sm:$0xff] }
  0xc1   : > { %v1064_v37 = vsel %vm944_vm6, %v1060_v19, 0.0  ;;  %1485 = vst [vmem:[#allocation1 + $0x31] ss:$2 sm:$0xff] %v1256_v55  ;;  %v1275_v55 = vmul.f32 %v2045_v42, %v2287_v34 }
  0xc2   : > { %v2672_v57 = vld.sshfl [vmem:[#allocation1] sm:$0xff pattern:$0x75316420] }
  0xc3   : > { %1488 = vst [vmem:[#allocation1] ss:$2 sm:$0xff] %v1257_v36  ;;  %v2675_v9 = vld.sshfl [vmem:[#allocation1 + $0x10] sm:$0xff pattern:$0x75316420]  ;;  %v1272_v36 = vmul.f32 %v1194_v50, %v2311_v61 }
  0xc4   : > { %1065 = vadd.xlane.f32.xlu1 %v1064_v37  ;;  %1489 = vst [vmem:[#allocation1 + $0x1] ss:$2 sm:$0xff] %v1258_v63  ;;  %v1268_v37 = vmul.f32 %v1193_v43, %v2279_v30  ;;  %v1285_v30 = vmul.f32 %v2048_v38, %v3119_v22 }
  0xc5   : > { %v2679_v29 = vld.sshfl [vmem:[#allocation1 + $0x20] sm:$0xff pattern:$0x75316420]  ;;  %1478 = vst [vmem:[#allocation1 + $0x10] ss:$2 sm:$0xff] %v1251_v44  ;;  %v1198_v44 = vrot.slane %v2048_v38, 4 }
  0xc6   : > { %1494 = vst [vmem:[#allocation1 + $0x20] ss:$2 sm:$0xff] %v1261_v3  ;;  %v1281_v3 = vmul.f32 %v2047_v14, %v3117_v18 }
  0xc7   : > { %1495 = vst [vmem:[#allocation1 + $0x21] ss:$2 sm:$0xff] %v1262_v7  ;;  %v1286_v43 = vmul.f32 %v1198_v44, %v3120_v0 }
  0xc8   : > { %1479 = vst [vmem:[#allocation1 + $0x11] ss:$2 sm:$0xff] %v1252_v15  ;;  %v2703_v8 = vld.sshfl [vmem:[#allocation1 + $0x30] sm:$0xff pattern:$0x75316420] }
  0xc9   : > { %1496 = vst [vmem:[#allocation1 + $0x30] ss:$2 sm:$0xff] %v1263_v35  ;;  %v2049_v15 = vld [vmem:[%s2163_s9 + $0x27] ss:$0 sm:$0xff] }
  0xca   : > { %1497 = vst [vmem:[#allocation1 + $0x31] ss:$2 sm:$0xff] %v1264_v28  ;;  %v1199_v50 = vrot.slane %v2049_v15, 4  ;;  %v1289_v35 = vmul.f32 %v2648_v47, %v2049_v15 }
  0xcb   : > { %v2690_v60 = vld.sshfl [vmem:[#allocation1] sm:$0xff pattern:$0x75316420] }
  0xcc   : > { %1500 = vst [vmem:[#allocation1] ss:$2 sm:$0xff] %v1265_v24  ;;  %v1290_v42 = vmul.f32 %v2633_v52, %v1199_v50 }
  0xcd   : > { %1501 = vst [vmem:[#allocation1 + $0x1] ss:$2 sm:$0xff] %v1266_v1  ;;  %v1276_v1 = vmul.f32 %v1195_v56, %v3111_v33  ;;  %v1293_v56 = vmul.f32 %v2050_v27, %v2213_v40 }
  0xce   : > { %v2695_v4 = vld.sshfl [vmem:[#allocation1 + $0x20] sm:$0xff pattern:$0x75316420] }
  0xcf   : > { %1506 = vst [vmem:[#allocation1 + $0x20] ss:$2 sm:$0xff] %v1269_v45  ;;  %v2699_v23 = vld.sshfl [vmem:[#allocation1 + $0x10] sm:$0xff pattern:$0x75316420]  ;;  %v1279_v45 = vmul.f32 %v2633_v52, %v2046_v62 }
  0xd0   : > { %1507 = vst [vmem:[#allocation1 + $0x21] ss:$2 sm:$0xff] %v1270_v53  ;;  %v1280_v53 = vmul.f32 %v2656_v11, %v1196_v5 }
  0xd1   : > { %1490 = vst [vmem:[#allocation1 + $0x10] ss:$2 sm:$0xff] %v1259_v39  ;;  %v2725_v7 = vld.sshfl [vmem:[#allocation1 + $0x30] sm:$0xff pattern:$0x75316420] }
  0xd2   : > { %1491 = vst [vmem:[#allocation1 + $0x11] ss:$2 sm:$0xff] %v1260_v32  ;;  %v1200_v32 = vrot.slane %v2050_v27, 4 }
  0xd3   : > { %1508 = vst [vmem:[#allocation1 + $0x30] ss:$2 sm:$0xff] %v1271_v31  ;;  %v1287_v31 = vmul.f32 %v2048_v38, %v2240_v58 }
  0xd4   : > { %v2708_v51 = vld.sshfl [vmem:[#allocation1] sm:$0xff pattern:$0x75316420]  ;;  %1509 = vst [vmem:[#allocation1 + $0x31] ss:$2 sm:$0xff] %v1272_v36  ;;  %v1294_v5 = vmul.f32 %v1200_v32, %v2199_v25  ;;  %v1288_v36 = vmul.f32 %v1198_v44, %v2244_v59 }
  0xd5   : > { %1512 = vst [vmem:[#allocation1] ss:$2 sm:$0xff] %v1273_v54  ;;  %v2051_v54 = vld [vmem:[%s2163_s9 + $0x29] ss:$0 sm:$0xff] }
  0xd6   : > { %1513 = vst [vmem:[#allocation1 + $0x1] ss:$2 sm:$0xff] %v1274_v2  ;;  %v2751_v2 = vld [vmem:[%s2163_s9 + $0x2a] ss:$0 sm:$0xff] }
  0xd7   : > { %v2716_v19 = vld.sshfl [vmem:[#allocation1 + $0x20] sm:$0xff pattern:$0x75316420]  ;;  %v1301_v38 = vmul.f32 %v2633_v52, %v2751_v2 }
  0xd8   : > { %1518 = vst [vmem:[#allocation1 + $0x20] ss:$2 sm:$0xff] %v1277_v48  ;;  %v1283_v48 = vmul.f32 %v2047_v14, %v2199_v25 }
  0xd9   : > { %1519 = vst [vmem:[#allocation1 + $0x21] ss:$2 sm:$0xff] %v1278_v13  ;;  %v2721_v63 = vld.sshfl [vmem:[#allocation1 + $0x10] sm:$0xff pattern:$0x75316420]  ;;  %v1201_v13 = vrot.slane %v2051_v54, 4 }
  0xda   : > { %1502 = vst [vmem:[#allocation1 + $0x10] ss:$2 sm:$0xff] %v1267_v10 }
  0xdb   : > { %1503 = vst [vmem:[#allocation1 + $0x11] ss:$2 sm:$0xff] %v1268_v37  ;;  %v2743_v28 = vld.sshfl [vmem:[#allocation1 + $0x30] sm:$0xff pattern:$0x75316420]  ;;  %v1284_v37 = vmul.f32 %v1197_v16, %v2217_v41  ;;  %v1298_v14 = vmul.f32 %v1201_v13, %v2240_v58 }
  0xdc   : > { %3122 = vst [vmem:[#allocation8_spill] sm:$0xff] %v2743_v28  ;;  %v2032_v16 = vld [vmem:[%s2163_s9 + $0x2b] ss:$0 sm:$0xff] }
  0xdd   : > { %v2729_v6 = vld.sshfl [vmem:[#allocation1] sm:$0xff pattern:$0x75316420]  ;;  %1520 = vst [vmem:[#allocation1 + $0x30] ss:$2 sm:$0xff] %v1279_v45  ;;  %v1291_v45 = vmul.f32 %v2656_v11, %v2049_v15 }
  0xde   : > { %1524 = vst [vmem:[#allocation1] ss:$2 sm:$0xff] %v1281_v3 }
  0xdf   : > { %1525 = vst [vmem:[#allocation1 + $0x1] ss:$2 sm:$0xff] %v1282_v49  ;;  %v1202_v49 = vrot.slane %v2751_v2, 4 }
  0xe0   : > { %v2734_v24 = vld.sshfl [vmem:[#allocation1 + $0x20] sm:$0xff pattern:$0x75316420]  ;;  %1521 = vst [vmem:[#allocation1 + $0x31] ss:$2 sm:$0xff] %v1280_v53  ;;  %v1203_v53 = vrot.slane %v2032_v16, 4 }
  0xe1   : > { %1530 = vst [vmem:[#allocation1 + $0x20] ss:$2 sm:$0xff] %v1285_v30  ;;  %v1297_v30 = vmul.f32 %v2051_v54, %v3120_v0  ;;  %v1302_v44 = vmul.f32 %v2656_v11, %v1202_v49 }
  0xe2   : > { %1531 = vst [vmem:[#allocation1 + $0x21] ss:$2 sm:$0xff] %v1286_v43  ;;  %v2739_v39 = vld.sshfl [vmem:[#allocation1 + $0x10] sm:$0xff pattern:$0x75316420]  ;;  %v1306_v15 = vmul.f32 %v1203_v53, %v2217_v41 }
  0xe3   : > { %3121 = vst [vmem:[#allocation9_spill] sm:$0xff] %v2739_v39 }
  0xe4   : > { %1514 = vst [vmem:[#allocation1 + $0x10] ss:$2 sm:$0xff] %v1275_v55 }
  0xe5   : > { %1515 = vst [vmem:[#allocation1 + $0x11] ss:$2 sm:$0xff] %v1276_v1  ;;  %v2773_v1 = vld [vmem:[%s2163_s9 + $0x2c] ss:$0 sm:$0xff] }
  0xe6   : > { %v2747_v62 = vld.sshfl [vmem:[#allocation1] sm:$0xff pattern:$0x75316420]  ;;  %v3125_v39 = vrot.slane %v2773_v1, 4 }
  0xe7   : > { %1536 = vst [vmem:[#allocation1] ss:$2 sm:$0xff] %v1289_v35  ;;  %v2764_v43 = vld.sshfl [vmem:[#allocation1 + $0x30] sm:$0xff pattern:$0x75316420] }
  0xe8   : > { %1537 = vst [vmem:[#allocation1 + $0x1] ss:$2 sm:$0xff] %v1290_v42  ;;  %v1292_v42 = vmul.f32 %v2713_v12, %v1199_v50  ;;  %v2789_v50 = vld [vmem:[%s2163_s9 + $0x2d] ss:$0 sm:$0xff] }
  0xe9   : > { %v2754_v10 = vld.sshfl [vmem:[#allocation1 + $0x20] sm:$0xff pattern:$0x75316420]  ;;  %1532 = vst [vmem:[#allocation1 + $0x30] ss:$2 sm:$0xff] %v1287_v31  ;;  %v3086_v31 = vrot.slane %v2773_v1, 4 }
  0xea   : > { %1542 = vst [vmem:[#allocation1 + $0x20] ss:$2 sm:$0xff] %v1293_v56  ;;  %v1295_v56 = vmul.f32 %v2050_v27, %v2217_v41  ;;  %v1309_v27 = vmul.f32 %v2773_v1, %v2240_v58 }
  0xeb   : > { %1543 = vst [vmem:[#allocation1 + $0x21] ss:$2 sm:$0xff] %v1294_v5  ;;  %v1296_v5 = vmul.f32 %v1200_v32, %v2274_v26  ;;  %v1310_v32 = vmul.f32 %v3086_v31, %v2244_v59 }
  0xec   : > { %v2759_v3 = vld.sshfl [vmem:[#allocation1 + $0x10] sm:$0xff pattern:$0x75316420]  ;;  %1533 = vst [vmem:[#allocation1 + $0x31] ss:$2 sm:$0xff] %v1288_v36 }
  0xed   : > { %3123 = vst [vmem:[#allocation12_spill] sm:$0xff] %v2759_v3  ;;  %v2832_v3 = vld [vmem:[%s2163_s9 + $0x30] ss:$0 sm:$0xff] }
  0xee   : > { %1526 = vst [vmem:[#allocation1 + $0x10] ss:$2 sm:$0xff] %v1283_v48 }
  0xef   : > { %1527 = vst [vmem:[#allocation1 + $0x11] ss:$2 sm:$0xff] %v1284_v37  ;;  %v2769_v55 = vld.sshfl [vmem:[#allocation1] sm:$0xff pattern:$0x75316420]  ;;  %v1305_v37 = vmul.f32 %v2032_v16, %v2199_v25 }
  0xf0   : > { %1548 = vst [vmem:[#allocation1] ss:$2 sm:$0xff] %v1297_v30 }
  0xf1   : > { %1549 = vst [vmem:[#allocation1 + $0x1] ss:$2 sm:$0xff] %v1298_v14  ;;  %v2799_v14 = vld [vmem:[%s2163_s9 + $0x2e] ss:$0 sm:$0xff] }
  0xf2   : > { %v2776_v35 = vld.sshfl [vmem:[#allocation1 + $0x20] sm:$0xff pattern:$0x75316420] }
  0xf3   : > { %1554 = vst [vmem:[#allocation1 + $0x20] ss:$2 sm:$0xff] %v1301_v38  ;;  %v2786_v36 = vld.sshfl [vmem:[#allocation1 + $0x30] sm:$0xff pattern:$0x75316420]  ;;  %v1299_v38 = vmul.f32 %v2051_v54, %v2244_v59 }
  0xf4   : > { %1555 = vst [vmem:[#allocation1 + $0x21] ss:$2 sm:$0xff] %v1302_v44  ;;  %v1205_v44 = vrot.slane %v2789_v50, 4 }
  0xf5   : > { %1544 = vst [vmem:[#allocation1 + $0x30] ss:$2 sm:$0xff] %v1295_v56  ;;  %v1303_v56 = vmul.f32 %v2713_v12, %v2751_v2 }
  0xf6   : > { %v2781_v48 = vld.sshfl [vmem:[#allocation1 + $0x10] sm:$0xff pattern:$0x75316420]  ;;  %1545 = vst [vmem:[#allocation1 + $0x31] ss:$2 sm:$0xff] %v1296_v5  ;;  %v1314_v54 = vmul.f32 %v2648_v47, %v1205_v44 }
  0xf7   : > { %1538 = vst [vmem:[#allocation1 + $0x10] ss:$2 sm:$0xff] %v1291_v45 }
  0xf8   : > { %1539 = vst [vmem:[#allocation1 + $0x11] ss:$2 sm:$0xff] %v1292_v42  ;;  %v2793_v30 = vld.sshfl [vmem:[#allocation1] sm:$0xff pattern:$0x75316420]  ;;  %v1300_v42 = vmul.f32 %v1201_v13, %v2287_v34 }
  0xf9   : > { %1560 = vst [vmem:[#allocation1] ss:$2 sm:$0xff] %v1305_v37  ;;  %v2817_v13 = vld [vmem:[%s2163_s9 + $0x2f] ss:$0 sm:$0xff] }
  0xfa   : > { %1561 = vst [vmem:[#allocation1 + $0x1] ss:$2 sm:$0xff] %v1306_v15  ;;  %v1313_v15 = vmul.f32 %v2608_v20, %v2789_v50  ;;  %v3124_v20 = vrot.slane %v2799_v14, 4 }
  0xfb   : > { %v2803_v45 = vld.sshfl [vmem:[#allocation1 + $0x20] sm:$0xff pattern:$0x75316420] }
  0xfc   : > { %1566 = vst [vmem:[#allocation1 + $0x20] ss:$2 sm:$0xff] %v1309_v27  ;;  %v2820_v27 = vld [vmem:[%s2168_s12 + $0x28] sm:$0x3f] }
  0xfd   : > { %1567 = vst [vmem:[#allocation1 + $0x21] ss:$2 sm:$0xff] %v1310_v32  ;;  %v2814_v31 = vld.sshfl [vmem:[#allocation1 + $0x30] sm:$0xff pattern:$0x75316420]  ;;  %v1304_v2 = vmul.f32 %v2820_v27, %v1202_v49  ;;  %v1317_v32 = vmul.f32 %v2799_v14, %v3117_v18  ;;  %v1308_v49 = vmul.f32 %v1203_v53, %v2311_v61  ;;  %v1312_v61 = vmul.f32 %v3125_v39, %v3111_v33 }
  0xfe   : > { %1556 = vst [vmem:[#allocation1 + $0x30] ss:$2 sm:$0xff] %v1303_v56  ;;  %v3087_v56 = vrot.slane %v2817_v13, 4 }
  0xff   : > { %v2808_v5 = vld.sshfl [vmem:[#allocation1 + $0x10] sm:$0xff pattern:$0x75316420]  ;;  %1557 = vst [vmem:[#allocation1 + $0x31] ss:$2 sm:$0xff] %v1304_v2 }
 0x100   : > { %1550 = vst [vmem:[#allocation1 + $0x10] ss:$2 sm:$0xff] %v1299_v38  ;;  %v1318_v38 = vmul.f32 %v3124_v20, %v2213_v40  ;;  %v3089_v20 = vrot.slane %v2832_v3, 4  ;;  %v1322_v53 = vmul.f32 %v3087_v56, %v3120_v0 }
 0x101   : > { %1551 = vst [vmem:[#allocation1 + $0x11] ss:$2 sm:$0xff] %v1300_v42  ;;  %v2825_v37 = vld.sshfl [vmem:[#allocation1] sm:$0xff pattern:$0x75316420]  ;;  %v1307_v42 = vmul.f32 %v2032_v16, %v2274_v26  ;;  %v1321_v16 = vmul.f32 %v2817_v13, %v3119_v22 }
 0x102   : > { %1572 = vst [vmem:[#allocation1] ss:$2 sm:$0xff] %v1313_v15  ;;  %v2844_v15 = vld [vmem:[%s2163_s9 + $0x31] ss:$0 sm:$0xff] }
 0x103   : > { %1573 = vst [vmem:[#allocation1 + $0x1] ss:$2 sm:$0xff] %v1314_v54  ;;  %v1325_v54 = vmul.f32 %v2648_v47, %v2832_v3  ;;  %v1311_v47 = vmul.f32 %v2773_v1, %v2287_v34  ;;  %v1316_v1 = vmul.f32 %v2656_v11, %v1205_v44  ;;  %v1329_v39 = vmul.f32 %v2844_v15, %v2213_v40 }
 0x104   : > { %v2836_v28 = vld.sshfl [vmem:[#allocation1 + $0x20] sm:$0xff pattern:$0x75316420]  ;;  %v1717_v40 = vsel %vm944_vm6, %v2754_v10, 0.0 }
 0x105   : > { %1578 = vst [vmem:[#allocation1 + $0x20] ss:$2 sm:$0xff] %v1317_v32  ;;  %v2852_v32 = vld [vmem:[%s2163_s9 + $0x32] ss:$0 sm:$0xff] }
 0x106   : > { %1579 = vst [vmem:[#allocation1 + $0x21] ss:$2 sm:$0xff] %v1318_v38  ;;  %v1326_v38 = vmul.f32 %v2633_v52, %v3089_v20  ;;  %v2867_v20 = vld.sshfl [vmem:[#allocation1 + $0x30] sm:$0xff pattern:$0x75316420] }
 0x107   : > { %3126 = vst [vmem:[#allocation10_spill] sm:$0xff] %v2867_v20 }
 0x108   : > { %v2838_v18 = vld.sshfl [vmem:[#allocation1 + $0x10] sm:$0xff pattern:$0x75316420]  ;;  %1568 = vst [vmem:[#allocation1 + $0x30] ss:$2 sm:$0xff] %v1311_v47 }
 0x109   : > { %1562 = vst [vmem:[#allocation1 + $0x10] ss:$2 sm:$0xff] %v1307_v42  ;;  %v1680_v42 = vsel %vm944_vm6, %v2652_v46, 0.0  ;;  %v1715_v46 = vsel %vm944_vm6, %v2747_v62, 0.0  ;;  %v2884_v62 = vld [vmem:[%s2163_s9 + $0x33] ss:$0 sm:$0xff] }
 0x10a   : > { %1563 = vst [vmem:[#allocation1 + $0x11] ss:$2 sm:$0xff] %v1308_v49  ;;  %v1576_v2 = vld.sshfl [vmem:[#allocation1] sm:$0xff pattern:$0x75316420]  ;;  %v1681_v49 = vsel %vm944_vm6, %v2662_v17, 0.0  ;;  %v1315_v17 = vmul.f32 %v2633_v52, %v2789_v50 }
 0x10b   : > { %1584 = vst [vmem:[#allocation1] ss:$2 sm:$0xff] %v1321_v16  ;;  %v1714_v16 = vsel %vm944_vm6, %v2734_v24, 0.0  ;;  %v1682_v22 = vadd.f32 %v1681_v49, %v1680_v42  ;;  %v3127_v50 = vrot.slane %v2844_v15, 4  ;;  %v2892_v42 = vld [vmem:[%s2163_s9 + $0x34] ss:$0 sm:$0xff] }
 0x10c   : > { %1585 = vst [vmem:[#allocation1 + $0x1] ss:$2 sm:$0xff] %v1322_v53  ;;  %v1716_v53 = vadd.f32 %v1715_v46, %v1714_v16  ;;  %v3128_v16 = vrot.slane %v2852_v32, 4 }
 0x10d   : > { %v1582_v56 = vld.sshfl [vmem:[#allocation1 + $0x20] sm:$0xff pattern:$0x75316420]  ;;  %v1330_v20 = vmul.f32 %v3127_v50, %v2199_v25  ;;  %1569 = vst [vmem:[#allocation1 + $0x31] ss:$2 sm:$0xff] %v1312_v61  ;;  %v1685_v61 = vsel %vm944_vm6, %v2679_v29, 0.0 }
 0x10e   : > { %1590 = vst [vmem:[#allocation1 + $0x20] ss:$2 sm:$0xff] %v1325_v54  ;;  %v1683_v54 = vsel %vm944_vm6, %v2672_v57, 0.0  ;;  %v1749_v44 = vsel %vm944_vm6, %v1582_v56, 0.0  ;;  %v1333_v57 = vmul.f32 %v2852_v32, %v3120_v0  ;;  %v1334_v46 = vmul.f32 %v3128_v16, %v2240_v58 }
 0x10f   : > { %1591 = vst [vmem:[#allocation1 + $0x21] ss:$2 sm:$0xff] %v1326_v38  ;;  %v1748_v38 = vsel %vm944_vm6, %v1576_v2, 0.0  ;;  %v1684_v47 = vadd.f32 %v1683_v54, %v1682_v22  ;;  %v1718_v2 = vadd.f32 %v1717_v40, %v1716_v53  ;;  %v1319_v0 = vmul.f32 %v2799_v14, %v2199_v25 }
 0x110   : > { %v1750_v56 = vadd.f32 %v1749_v44, %v1748_v38  ;;  %v1211_v22 = vrot.slane %v2884_v62, 4  ;;  %v1212_v29 = vrot.slane %v2892_v42, 4  ;;  %v1323_v53 = vmul.f32 %v2817_v13, %v2240_v58 }
 0x111   : > { %v2881_v24 = vld.sshfl [vmem:[#allocation1 + $0x10] sm:$0xff pattern:$0x75316420]  ;;  %v1687_v50 = vsel %vm944_vm6, %v2690_v60, 0.0  ;;  %v3130_v44 = vrot.slane %v2817_v13, 4  ;;  %v1721_v16 = vsel %vm944_vm6, %v2776_v35, 0.0 }
 0x112   : > { %1574 = vst [vmem:[#allocation1 + $0x10] ss:$2 sm:$0xff] %v1315_v17  ;;  %v1338_v60 = vmul.f32 %v2656_v11, %v1211_v22 }
 0x113   : > { %v1588_v49 = vld.sshfl [vmem:[#allocation1] sm:$0xff pattern:$0x75316420]  ;;  %1575 = vst [vmem:[#allocation1 + $0x11] ss:$2 sm:$0xff] %v1316_v1  ;;  %v1719_v1 = vsel %vm944_vm6, %v2769_v55, 0.0  ;;  %v1324_v55 = vmul.f32 %v3130_v44, %v2244_v59 }
 0x114   : > { %1596 = vst [vmem:[#allocation1] ss:$2 sm:$0xff] %v1329_v39  ;;  %v1751_v10 = vsel %vm944_vm6, %v1588_v49, 0.0  ;;  %v3129_v39 = vrot.slane %v2799_v14, 4  ;;  %v2923_v14 = vld [vmem:[%s2163_s9 + $0x35] ss:$0 sm:$0xff]  ;;  %v1720_v49 = vadd.f32 %v1719_v1, %v1718_v2 }
 0x115   : > { %1597 = vst [vmem:[#allocation1 + $0x1] ss:$2 sm:$0xff] %v1330_v20  ;;  %v1686_v20 = vadd.f32 %v1685_v61, %v1684_v47  ;;  %v1752_v38 = vadd.f32 %v1751_v10, %v1750_v56  ;;  %v2920_v40 = vld.sshfl [vmem:[#allocation1 + $0x30] sm:$0xff pattern:$0x75316420]  ;;  %v1341_v61 = vmul.f32 %v2892_v42, %v2199_v25  ;;  %v1689_v2 = vsel %vm944_vm6, %v2695_v4, 0.0 }
 0x116   : > { %v1594_v17 = vld.sshfl [vmem:[#allocation1 + $0x20] sm:$0xff pattern:$0x75316420]  ;;  %v1320_v54 = vmul.f32 %v3129_v39, %v2217_v41  ;;  %1580 = vst [vmem:[#allocation1 + $0x30] ss:$2 sm:$0xff] %v1319_v0  ;;  %v1722_v0 = vadd.f32 %v1721_v16, %v1720_v49  ;;  %v1698_v25 = vsel %vm944_vm6, %v2684_v21, 0.0  ;;  %v1331_v39 = vmul.f32 %v2844_v15, %v2217_v41 }
 0x117   : > { %1602 = vst [vmem:[#allocation1 + $0x20] ss:$2 sm:$0xff] %v1333_v57  ;;  %v1337_v57 = vmul.f32 %v2633_v52, %v2884_v62  ;;  %v1753_v47 = vsel %vm944_vm6, %v1594_v17, 0.0  ;;  %v1342_v52 = vmul.f32 %v1212_v29, %v2217_v41  ;;  %v1697_v17 = vsel %vm944_vm6, %v2675_v9, 0.0 }
 0x118   : > { %1603 = vst [vmem:[#allocation1 + $0x21] ss:$2 sm:$0xff] %v1334_v46  ;;  %v1688_v46 = vadd.f32 %v1687_v50, %v1686_v20  ;;  %v1754_v10 = vadd.f32 %v1753_v47, %v1752_v38  ;;  %v1213_v1 = vrot.slane %v2923_v14, 4  ;;  %v1723_v4 = vsel %vm944_vm6, %v2793_v30, 0.0 }
 0x119   : > { %1581 = vst [vmem:[#allocation1 + $0x31] ss:$2 sm:$0xff] %v1320_v54  ;;  %v1327_v54 = vmul.f32 %v2656_v11, %v2832_v3  ;;  %v3131_v50 = vrot.slane %v2832_v3, 4  ;;  %v1731_v21 = vsel %vm944_vm6, %v2764_v43, 0.0  ;;  %v1732_v38 = vsel %vm944_vm6, %v2781_v48, 0.0 }
 0x11a   : > { %v1577_v13 = vld.sshfl [vmem:[#allocation1 + $0x10] sm:$0xff pattern:$0x75316420]  ;;  %v1691_v41 = vsel %vm944_vm6, %v2708_v51, 0.0  ;;  %v1699_v44 = vadd.f32 %v1698_v25, %v1697_v17  ;;  %v1700_v11 = vsel %vm944_vm6, %v2699_v23, 0.0  ;;  %v3132_v3 = vrot.slane %v2844_v15, 4 }
 0x11b   : > { %1586 = vst [vmem:[#allocation1 + $0x10] ss:$2 sm:$0xff] %v1323_v53  ;;  %v1690_v53 = vadd.f32 %v1689_v2, %v1688_v46  ;;  %v1328_v9 = vmul.f32 %v2713_v12, %v3131_v50  ;;  %v1724_v43 = vadd.f32 %v1723_v4, %v1722_v0  ;;  %v1725_v51 = vsel %vm944_vm6, %v2803_v45, 0.0 }
 0x11c   : > { %v1600_v56 = vld.sshfl [vmem:[#allocation1] sm:$0xff pattern:$0x75316420]  ;;  %1587 = vst [vmem:[#allocation1 + $0x11] ss:$2 sm:$0xff] %v1324_v55  ;;  %v1332_v55 = vmul.f32 %v3132_v3, %v2274_v26  ;;  %v1733_v47 = vadd.f32 %v1732_v38, %v1731_v21  ;;  %v1734_v23 = vsel %vm944_vm6, %v2786_v36, 0.0  ;;  %v1346_v15 = vmul.f32 %v1213_v1, %v2244_v59 }
 0x11d   : > { %1608 = vst [vmem:[#allocation1] ss:$2 sm:$0xff] %v1337_v57  ;;  %v1755_v35 = vsel %vm944_vm6, %v1600_v56, 0.0  ;;  %v1345_v57 = vmul.f32 %v2923_v14, %v2240_v58  ;;  %v2977_v58 = vpop.permute.xlu0 %1070  ;;  %v1693_v45 = vsel %vm944_vm6, %v2716_v19, 0.0  ;;  %v1701_v56 = vadd.f32 %v1700_v11, %v1699_v44 }
 0x11e   : > { %1609 = vst [vmem:[#allocation1 + $0x1] ss:$2 sm:$0xff] %v1338_v60  ;;  %v1756_v30 = vadd.f32 %v1755_v35, %v1754_v10  ;;  %v1765_v60 = vsel %vm944_vm6, %v1577_v13, 0.0  ;;  %v1339_v36 = vmul.f32 %v2713_v12, %v2884_v62  ;;  %v1726_v2 = vadd.f32 %v1725_v51, %v1724_v43 }
 0x11f   : > { %v1606_v20 = vld.sshfl [vmem:[#allocation1 + $0x20] sm:$0xff pattern:$0x75316420]  ;;  %v1702_v10 = vsel %vm944_vm6, %v2703_v8, 0.0  ;;  %v1072_v35 = vperm.slane %v2977_v58, 0  ;;  %v1735_v17 = vadd.f32 %v1734_v23, %v1733_v47  ;;  %v1727_v19 = vsel %vm944_vm6, %v2825_v37, 0.0 }
 0x120   : > { %1614 = vst [vmem:[#allocation1 + $0x20] ss:$2 sm:$0xff] %v1341_v61  ;;  %v1757_v48 = vsel %vm944_vm6, %v1606_v20, 0.0  ;;  %v1583_v49 = vld.sshfl [vmem:[#allocation1 + $0x30] sm:$0xff pattern:$0x75316420]  ;;  %v1692_v61 = vadd.f32 %v1691_v41, %v1690_v53  ;;  %v1335_v12 = vmul.f32 %v2852_v32, %v2244_v59  ;;  %v1340_v37 = vmul.f32 %v2820_v27, %v1211_v22 }
 0x121   : > { %1615 = vst [vmem:[#allocation1 + $0x21] ss:$2 sm:$0xff] %v1342_v52  ;;  %v1766_v46 = vsel %vm944_vm6, %v1583_v49, 0.0  ;;  %v1758_v52 = vadd.f32 %v1757_v48, %v1756_v30  ;;  %v3133_v53 = vrot.slane %v2852_v32, 4  ;;  %v1695_v59 = vsel %vm944_vm6, %v2729_v6, 0.0 }
 0x122   : > { %1592 = vst [vmem:[#allocation1 + $0x30] ss:$2 sm:$0xff] %v1327_v54  ;;  %v1767_v25 = vadd.f32 %v1766_v46, %v1765_v60  ;;  %v1694_v54 = vadd.f32 %v1693_v45, %v1692_v61  ;;  %v1704_v38 = vsel %vm944_vm6, %v2721_v63, 0.0  ;;  %v1728_v41 = vadd.f32 %v1727_v19, %v1726_v2  ;;  %v3134_v46 = vld [vmem:[#allocation7_spill] sm:$0xff] }
 0x123   : > { %v1589_v16 = vld.sshfl [vmem:[#allocation1 + $0x10] sm:$0xff pattern:$0x75316420]  ;;  %1593 = vst [vmem:[#allocation1 + $0x31] ss:$2 sm:$0xff] %v1328_v9  ;;  %v1336_v50 = vmul.f32 %v3133_v53, %v2287_v34  ;;  %v1703_v9 = vadd.f32 %v1702_v10, %v1701_v56  ;;  %v1729_v62 = vsel %vm944_vm6, %v2836_v28, 0.0  ;;  %v1343_v60 = vmul.f32 %v2892_v42, %v2274_v26 }
 0x124   : > { %1598 = vst [vmem:[#allocation1 + $0x10] ss:$2 sm:$0xff] %v1331_v39  ;;  %v1736_v39 = vsel %vm944_vm6, %v2808_v5, 0.0  ;;  %v1768_v4 = vsel %vm944_vm6, %v1589_v16, 0.0  ;;  %v1738_v6 = vsel %vm944_vm6, %v2814_v31, 0.0  ;;  %v1696_v22 = vadd.f32 %v1695_v59, %v1694_v54 }
 0x125   : > { %v1612_v13 = vld.sshfl [vmem:[#allocation1] sm:$0xff pattern:$0x75316420]  ;;  %1599 = vst [vmem:[#allocation1 + $0x11] ss:$2 sm:$0xff] %v1332_v55  ;;  %v1737_v44 = vadd.f32 %v1736_v39, %v1735_v17  ;;  %v1769_v11 = vadd.f32 %v1768_v4, %v1767_v25  ;;  %v1706_v43 = vsel %vm944_vm6, %v2725_v7, 0.0  ;;  %v1730_v49 = vadd.f32 %v1729_v62, %v1728_v41 }
 0x126   : > { %1620 = vst [vmem:[#allocation1] ss:$2 sm:$0xff] %v1345_v57  ;;  %v1759_v0 = vsel %vm944_vm6, %v1612_v13, 0.0  ;;  %v1705_v57 = vadd.f32 %v1704_v38, %v1703_v9  ;;  %v1740_v47 = vsel %vm944_vm6, %v2838_v18, 0.0  ;;  %v1782_v16 = vsel %vm944_vm6, %v1696_v22, -inf }
 0x127   : > { %1621 = vst [vmem:[#allocation1 + $0x1] ss:$2 sm:$0xff] %v1346_v15  ;;  %v1760_v20 = vadd.f32 %v1759_v0, %v1758_v52  ;;  %v1739_v28 = vadd.f32 %v1738_v6, %v1737_v44  ;;  %v1344_v61 = vmul.f32 %v1212_v29, %v3134_v46  ;;  %v1347_v45 = vmul.f32 %v2923_v14, %v2287_v34  ;;  %v3135_v52 = vld [vmem:[#allocation9_spill] sm:$0xff]  ;;  %v2059_v42 = vld [vmem:[%s3074_s2 + $0x1] ss:$0 sm:$0xff]  ;;  %v3136_v34 = vld [vmem:[#allocation10_spill] sm:$0xff] }
 0x128   : > { %v1618_v8 = vld.sshfl [vmem:[#allocation1 + $0x20] sm:$0xff pattern:$0x75316420]  ;;  %v1707_v7 = vadd.f32 %v1706_v43, %v1705_v57  ;;  %v1708_v56 = vsel %vm944_vm6, %v3135_v52, 0.0  ;;  %v1783_v18 = vsel %vm944_vm6, %v1730_v49, -inf  ;;  %v1348_v2 = vmul.f32 %v1213_v1, %v3111_v33  ;;  %v1806_v57 = vpop.permute.xlu0 %1805 }
 0x129   : > { %v1761_v21 = vsel %vm944_vm6, %v1618_v8, 0.0  ;;  %v1741_v13 = vadd.f32 %v1740_v47, %v1739_v28  ;;  %v1742_v0 = vsel %vm944_vm6, %v3136_v34, 0.0  ;;  %v3137_v33 = vld [vmem:[#allocation8_spill] sm:$0xff]  ;;  %v1744_v53 = vsel %vm944_vm6, %v2881_v24, 0.0 }
 0x12a   : > { %v1595_v32 = vld.sshfl [vmem:[#allocation1 + $0x30] sm:$0xff pattern:$0x75316420]  ;;  %v1762_v3 = vadd.f32 %v1761_v21, %v1760_v20  ;;  %v1709_v25 = vadd.f32 %v1708_v56, %v1707_v7  ;;  %v1710_v1 = vsel %vm944_vm6, %v3137_v33, 0.0  ;;  %v1807_v43 = vperm.slane %v1806_v57, 0 }
 0x12b   : > { %1604 = vst [vmem:[#allocation1 + $0x30] ss:$2 sm:$0xff] %v1335_v12  ;;  %v1770_v27 = vsel %vm944_vm6, %v1595_v32, 0.0  ;;  %v1743_v4 = vadd.f32 %v1742_v0, %v1741_v13 }
 0x12c   : > { %v1601_v63 = vld.sshfl [vmem:[#allocation1 + $0x10] sm:$0xff pattern:$0x75316420]  ;;  %1605 = vst [vmem:[#allocation1 + $0x31] ss:$2 sm:$0xff] %v1336_v50  ;;  %v1771_v51 = vadd.f32 %v1770_v27, %v1769_v11  ;;  %v1711_v9 = vadd.f32 %v1710_v1, %v1709_v25 }
 0x12d   : > { %1610 = vst [vmem:[#allocation1 + $0x10] ss:$2 sm:$0xff] %v1339_v36  ;;  %v1772_v23 = vsel %vm944_vm6, %v1601_v63, 0.0  ;;  %v1745_v59 = vadd.f32 %v1744_v53, %v1743_v4 }
 0x12e   : > { %v1624_v48 = vld.sshfl [vmem:[#allocation1] sm:$0xff pattern:$0x75316420]  ;;  %1611 = vst [vmem:[#allocation1 + $0x11] ss:$2 sm:$0xff] %v1340_v37  ;;  %v1773_v26 = vadd.f32 %v1772_v23, %v1771_v51  ;;  %v1821_v23 = vlaneseq }
 0x12f   : > { %v1063_v5 = vpop.xlane.xlu1 %1062  ;;  %v1763_v31 = vsel %vm944_vm6, %v1624_v48, 0.0 }
 0x130   : > { %v1074_v30 = vadd.f32 %v1072_v35, %v1063_v5  ;;  %v1764_v15 = vadd.f32 %v1763_v31, %v1762_v3  ;;  %v1746_v5 = vsel %vm944_vm6, %v2920_v40, 0.0 }
 0x131   : > { %v1747_v32 = vadd.f32 %v1746_v5, %v1745_v59 }
 0x132   : > { %v1076_v55 = vmax.f32 %v1074_v30, 0.0  ;;  %v1784_v36 = vsel %vm944_vm6, %v1764_v15, -inf  ;;  %v1822_v15 = vand.u32 127, %v1821_v23 }
 0x133   : > { %v1785_v10 = vmax.f32 %v1782_v16, %v1784_v36  ;;  %v1607_v29 = vld.sshfl [vmem:[#allocation1 + $0x30] sm:$0xff pattern:$0x75316420]  ;;  %v1788_v27 = vsel %vm944_vm6, %v1747_v32, -inf }
 0x134   : > { %1816 = vperm.xlu0 %2001, %v1076_v55   ;;  %1616 = vst [vmem:[#allocation1 + $0x30] ss:$2 sm:$0xff] %v1343_v60  ;;  %v1774_v19 = vsel %vm944_vm6, %v1607_v29, 0.0  ;;  %v1824_v16 = vadd.s32 4294967288, %v1822_v15 }
 0x135   : > { %v1786_v39 = vmax.f32 %v1785_v10, %v1783_v18  ;;  %v1613_v14 = vld.sshfl [vmem:[#allocation1 + $0x10] sm:$0xff pattern:$0x75316420]  ;;  %1617 = vst [vmem:[#allocation1 + $0x31] ss:$2 sm:$0xff] %v1344_v61  ;;  %v1775_v8 = vadd.f32 %v1774_v19, %v1773_v26 }
 0x136   : > { %1622 = vst [vmem:[#allocation1 + $0x10] ss:$2 sm:$0xff] %v1347_v45  ;;  %v1776_v50 = vsel %vm944_vm6, %v1613_v14, 0.0 }
 0x137   : > { %v1066_v17 = vpop.xlane.xlu1 %1065  ;;  %v1794_v20 = vmul.f32 %v2059_v42, %v1786_v39  ;;  %1623 = vst [vmem:[#allocation1 + $0x11] ss:$2 sm:$0xff] %v1348_v2  ;;  %v1777_v21 = vadd.f32 %v1776_v50, %v1775_v8 }
 0x138   : > { %v1075_v12 = vadd.f32 %v1072_v35, %v1066_v17  ;;  %v3138_v35 = vld [vmem:[#allocation12_spill] sm:$0xff] }
 0x139   : > { %v1796_v58 = vsel %vm944_vm6, %v1794_v20, 0.0  ;;  %v1712_v37 = vsel %vm944_vm6, %v3138_v35, 0.0 }
 0x13a   : > { %v1077_v54 = vmax.f32 %v1075_v12, 0.0  ;;  %1797 = vadd.xlane.f32.xlu2 %v1796_v58  ;;  %v1713_v41 = vadd.f32 %v1712_v37, %v1711_v9 }
 0x13c   : > { %1819 = vperm.xlu1 %2002, %v1077_v54   ;;  %v1619_v38 = vld.sshfl [vmem:[#allocation1 + $0x30] sm:$0xff pattern:$0x75316420]  ;;  %v1787_v6 = vsel %vm944_vm6, %v1713_v41, -inf }
 0x13d   : > { %v1778_v30 = vsel %vm944_vm6, %v1619_v38, 0.0 }
 0x13e   : > { %v1625_v24 = vld.sshfl [vmem:[#allocation1 + $0x10] sm:$0xff pattern:$0x75316420]  ;;  %v1779_v44 = vadd.f32 %v1778_v30, %v1777_v21 }
 0x13f   : > { %v1780_v11 = vsel %vm944_vm6, %v1625_v24, 0.0 }
 0x140   : > { %v1781_v62 = vadd.f32 %v1780_v11, %v1779_v44 }
 0x142   : > { %v1789_v22 = vsel %vm944_vm6, %v1781_v62, -inf }
 0x143   : > { %v1790_v3 = vmax.f32 %v1787_v6, %v1789_v22 }
 0x145   : > { %v1791_v55 = vmax.f32 %v1790_v3, %v1788_v27 }
 0x147   : > { %v1795_v63 = vmul.f32 %v2059_v42, %v1791_v55 }
 0x149   : > { %v1799_v40 = vsel %vm944_vm6, %v1795_v63, 0.0 }
 0x14a   : > { %1800 = vadd.xlane.f32.xlu2 %v1799_v40 }
 0x1a6   : > { %v1817_v60 = vpop.permute.xlu0 %1816 }
 0x1a7   : > { %v1823_v52 = vperm.slane %v1817_v60, %v1822_v15 }
 0x1ad   : > { %v1798_v48 = vpop.xlane.xlu2 %1797 }
 0x1ae   : > { %v1809_v49 = vadd.f32 %v1807_v43, %v1798_v48  ;;  %v1820_v7 = vpop.permute.xlu1 %1819 }
 0x1af   : > { %v1825_v61 = vperm.slane %v1820_v7, %v1824_v16 }
 0x1b0   : > { %v1811_v28 = vmax.f32 %v1809_v49, 0.0 }
 0x1b1   : > { %v1827_v36 = vsel %vm1826_vm7, %v1825_v61, %v1823_v52 }
 0x1b2   : > { %1832 = vperm.xlu2 %2003, %v1811_v28  }
 0x1bd   : > { %v1801_v51 = vpop.xlane.xlu2 %1800 }
 0x1be   : > { %v1810_v31 = vadd.f32 %v1807_v43, %v1801_v51 }
 0x1c0   : > { %v1812_v47 = vmax.f32 %v1810_v31, 0.0 }
 0x1c2   : > { %1835 = vperm.xlu0 %2001, %v1812_v47  }
 0x20c   : > { %v1833_v46 = vpop.permute.xlu2 %1832 }
 0x20d   : > { %v1837_v56 = vperm.slane %v1833_v46, %v1822_v15 }
 0x234   : > { %v1836_v45 = vpop.permute.xlu0 %1835 }
 0x235   : > { %v1838_v18 = vperm.slane %v1836_v45, %v1824_v16 }
 0x237   : > { %v1839_v13 = vsel %vm1826_vm7, %v1838_v18, %v1837_v56 }
 0x238   : > { %v1842_v26 = vsel %vm1841_vm8, %v1827_v36, %v1839_v13 }
 0x239   : > { %1844 = vst.msk [vmem:[%s258_s26] sm:$0x3] %vm1843_vm9, %v1842_v26 }
 0x23a PF: > { %p11_p9 = scmp.ge.s32.totalorder %s2133_s19, 4   ;;  %s3139_s15 = smov %s2084_s16 }
 0x23b   : > { %s3140_s16 = smov %s2142_s22  ;;  %s3141_s17 = smov %s2133_s19 }
 0x23c   :  { %13 = sbr.rel (!%p11_p9) target bundleno = 2 (0x2), region = 121 }

</bundles_post_ra>
